<compile_context>
chip_gen: v6e
topology: v6e:2x2x1
jax: 0.10.0
libtpu: 0.0.40
codegen_flags: <defaults>
</compile_context>

<pallas_src>
import functools

import numpy as np
import jax
import jax.numpy as jnp
from jax import lax
from jax.experimental import pallas as pl
from jax.experimental.pallas import tpu as pltpu


# ----------------------------------------------------------------------------
# Fused DLDblock kernel (whole batch in one grid step)
# ----------------------------------------------------------------------------
def _dld_kernel(x_ref, dwband_ref, dwb_ref, pwblk_ref, pwb_ref, o_ref, zp_ref,
                *, N, H, W, C, ROW_OFF, dilations):
    # x_ref     : (N, H, W*C)        lane-dense activations
    # dwband_ref: (9, WC, WC)        banded depthwise matrices, row = stage*3+ky
    # dwb_ref   : (3, WC)            depthwise folded-BN bias lane vectors
    # pwblk_ref : (6, WC, WC)        block-diagonal 1x1-conv matrices
    # pwb_ref   : (6, WC)            pointwise folded-BN bias lane vectors
    # zp_ref    : (N, H+2*ROW_OFF, WC) zero-row-halo VMEM scratch
    WC = W * C
    M = N * H

    # Zero only the halo rows (top/bottom ROW_OFF rows of every image); the
    # interior is always overwritten before it is read.
    zp_ref[:, 0:ROW_OFF, :] = jnp.zeros((N, ROW_OFF, WC), jnp.float32)
    zp_ref[:, ROW_OFF + H:ROW_OFF + H + ROW_OFF, :] = (
        jnp.zeros((N, ROW_OFF, WC), jnp.float32))

    def mxu(a, b):
        return jnp.dot(a, b, preferred_element_type=jnp.float32,
                       precision=lax.Precision.HIGHEST)

    def dwconv_bn_relu(a, stage):
        # dilated 3x3 depthwise conv + folded BN + ReLU.
        # kx taps & W-edge padding live in the banded weight; ky taps are three
        # row-shifted slabs read from the zero-row-halo scratch.
        d = dilations[stage]
        zp_ref[:, ROW_OFF:ROW_OFF + H, :] = a.reshape(N, H, WC)
        acc = jnp.zeros((M, WC), jnp.float32)
        for ky in range(3):
            r0 = ROW_OFF + (ky - 1) * d
            tap = zp_ref[:, r0:r0 + H, :].reshape(M, WC)
            acc = acc + mxu(tap, dwband_ref[stage * 3 + ky])
        return jnp.maximum(acc + dwb_ref[stage:stage + 1, :], 0.0)

    def pwconv_bn_relu(a, idx):
        # 1x1 conv (channel mixing) + folded BN + ReLU as one block-diagonal
        # (WC, WC) MXU matmul.
        acc = mxu(a, pwblk_ref[idx])
        return jnp.maximum(acc + pwb_ref[idx:idx + 1, :], 0.0)

    x = x_ref[...].astype(jnp.float32).reshape(M, WC)

    # DLDblock dataflow (matches the PyTorch module exactly)
    x12 = pwconv_bn_relu(dwconv_bn_relu(x, 0), 0)      # stage12 (d=2)
    x1 = pwconv_bn_relu(x + x12, 1)                    # fuse1
    s1 = x + x1
    x22 = pwconv_bn_relu(dwconv_bn_relu(x1, 1), 2)     # stage22 (d=4)
    x2 = pwconv_bn_relu(s1 + x22, 3)                   # fuse2 (x + x1 + x22)
    s2 = s1 + x2
    x32 = pwconv_bn_relu(dwconv_bn_relu(x2, 2), 4)     # stage32 (d=6)
    x3 = pwconv_bn_relu(s2 + x32, 5)                   # fuse3 (x + x1 + x2 + x32)

    o_ref[...] = x3.reshape(N, H, WC).astype(o_ref.dtype)


# ----------------------------------------------------------------------------
# Trace-time weight packing (BN folded, MXU-ready 128x128 matrices)
# ----------------------------------------------------------------------------
def _pack_params(params, W, C):
    WC = W * C
    stages = ("stage12", "stage22", "stage32")
    dilations = (2, 4, 6)

    # --- depthwise: banded (WC, WC) per (stage, ky); band offsets 0, +/- d*C
    #     carry the per-channel tap weights; lanes whose source pixel falls
    #     outside [0, W) simply have no band entry (zero padding baked in).
    j = np.arange(WC)
    cidx = j % C
    dw_mats, dw_bias = [], []
    for name, d in zip(stages, dilations):
        p = params[name]
        scale, bias = p["dw_sb"]
        wf = p["dw_w"] * scale[None, None, :]            # (3,3,C) BN-scale folded
        for ky in range(3):
            D = jnp.zeros((WC, WC), jnp.float32)
            for kx in range(3):
                off = (kx - 1) * d * C
                i = j + off                              # input lane per output lane
                valid = (i >= 0) & (i < WC)
                D = D.at[i[valid], j[valid]].add(wf[ky, kx][cidx[valid]])
            dw_mats.append(D)
        dw_bias.append(jnp.tile(bias, (W,)))
    dw_band = jnp.stack(dw_mats, axis=0).astype(jnp.float32)    # (9, WC, WC)
    dw_b = jnp.stack(dw_bias, axis=0).astype(jnp.float32)       # (3, WC)

    # --- pointwise layers (execution order): block-diagonal (WC, WC) weights
    pw_layers = [
        (params["stage12"]["pw_w"], *params["stage12"]["pw_sb"]),
        (params["fuse1"]["w"], *params["fuse1"]["sb"]),
        (params["stage22"]["pw_w"], *params["stage22"]["pw_sb"]),
        (params["fuse2"]["w"], *params["fuse2"]["sb"]),
        (params["stage32"]["pw_w"], *params["stage32"]["pw_sb"]),
        (params["fuse3"]["w"], *params["fuse3"]["sb"]),
    ]
    eye_w = jnp.eye(W, dtype=jnp.float32)
    pw_mats, pw_bias = [], []
    for w, scale, bias in pw_layers:
        wf = (w * scale[None, :]).astype(jnp.float32)    # (Cin,Cout), BN folded
        pw_mats.append(jnp.kron(eye_w, wf))              # (WC, WC) block-diagonal
        pw_bias.append(jnp.tile(bias, (W,)))
    pw_blk = jnp.stack(pw_mats, axis=0).astype(jnp.float32)     # (6, WC, WC)
    pw_b = jnp.stack(pw_bias, axis=0).astype(jnp.float32)       # (6, WC)
    return dw_band, dw_b, pw_blk, pw_b


def dld_forward_pallas(x, params):
    # x: (N, H, W, C) NHWC (channels-last view of the PyTorch NCHW input)
    N, H, W, C = x.shape
    WC = W * C
    MAX_D = 6
    ROW_OFF = -(-MAX_D // 8) * 8            # sublane-aligned row halo >= max dilation
    HP = H + 2 * ROW_OFF

    dw_band, dw_b, pw_blk, pw_b = _pack_params(params, W, C)
    x2d = x.reshape(N, H, WC)               # lane-dense layout (last dim = 128)

    kern = functools.partial(_dld_kernel, N=N, H=H, W=W, C=C,
                             ROW_OFF=ROW_OFF, dilations=(2, 4, 6))
    out = pl.pallas_call(
        kern,
        out_shape=jax.ShapeDtypeStruct((N, H, WC), x.dtype),
        grid=(1,),
        in_specs=[
            pl.BlockSpec((N, H, WC), lambda i: (0, 0, 0)),
            pl.BlockSpec(dw_band.shape, lambda i: (0, 0, 0)),
            pl.BlockSpec(dw_b.shape, lambda i: (0, 0)),
            pl.BlockSpec(pw_blk.shape, lambda i: (0, 0, 0)),
            pl.BlockSpec(pw_b.shape, lambda i: (0, 0)),
        ],
        out_specs=pl.BlockSpec((N, H, WC), lambda i: (0, 0, 0)),
        scratch_shapes=[pltpu.VMEM((N, HP, WC), jnp.float32)],
        compiler_params=pltpu.CompilerParams(
            dimension_semantics=("arbitrary",)),
    )(x2d, dw_band, dw_b, pw_blk, pw_b)
    return out.reshape(N, H, W, C)


# ----------------------------------------------------------------------------
# Pure-JAX reference (exact fp32) for the correctness check
# ----------------------------------------------------------------------------
def ref_dw(x, w, scale, bias, dilation):
    C = x.shape[-1]
    w4 = w.reshape(3, 3, 1, C)                                 # HWIO, grouped
    y = lax.conv_general_dilated(
        x, w4, window_strides=(1, 1),
        padding=((dilation, dilation), (dilation, dilation)),
        rhs_dilation=(dilation, dilation),
        dimension_numbers=("NHWC", "HWIO", "NHWC"),
        feature_group_count=C,
        precision=lax.Precision.HIGHEST)
    return jnp.maximum(y * scale + bias, 0.0)


def ref_pw(x, w, scale, bias):
    y = jnp.einsum("nhwc,cd->nhwd", x, w, precision=lax.Precision.HIGHEST)
    return jnp.maximum(y * scale + bias, 0.0)


def dld_forward_reference(x, params):
    def dsconv(a, p, d):
        y = ref_dw(a, p["dw_w"], p["dw_sb"][0], p["dw_sb"][1], d)
        return ref_pw(y, p["pw_w"], p["pw_sb"][0], p["pw_sb"][1])

    x12 = dsconv(x, params["stage12"], 2)
    x1 = ref_pw(x + x12, params["fuse1"]["w"], *params["fuse1"]["sb"])
    x22 = dsconv(x1, params["stage22"], 4)
    x2 = ref_pw(x + x1 + x22, params["fuse2"]["w"], *params["fuse2"]["sb"])
    x32 = dsconv(x2, params["stage32"], 6)
    x3 = ref_pw(x + x1 + x2 + x32, params["fuse3"]["w"], *params["fuse3"]["sb"])
    return x3


# ----------------------------------------------------------------------------
# Deterministic synthetic parameters (eval-mode BN folded to scale/bias)
# ----------------------------------------------------------------------------
def fold_bn(gamma, beta, mean, var, eps=1e-5):
    scale = gamma / jnp.sqrt(var + eps)
    return scale, beta - mean * scale


def init_params(key, C):
    keys = iter(jax.random.split(key, 64))

    def nrm(shape, scl=0.3):
        return scl * jax.random.normal(next(keys), shape, jnp.float32)

    def bn(cn):
        gamma = 1.0 + 0.1 * jax.random.normal(next(keys), (cn,), jnp.float32)
        beta = 0.1 * jax.random.normal(next(keys), (cn,), jnp.float32)
        mean = 0.1 * jax.random.normal(next(keys), (cn,), jnp.float32)
        var = 1.0 + 0.5 * jax.random.uniform(next(keys), (cn,), jnp.float32)
        return fold_bn(gamma, beta, mean, var)

    params = {}
    for name in ("stage12", "stage22", "stage32"):   # DSConv3x3 blocks
        # dw_w: (3,3,C) per-channel taps; pw_w: (Cin, Cout)
        # (from PyTorch: dw weight[c,0,ky,kx] -> dw_w[ky,kx,c];
        #                pw weight[:, :, 0, 0].T -> pw_w)
        params[name] = dict(dw_w=nrm((3, 3, C)), dw_sb=bn(C),
                            pw_w=nrm((C, C)), pw_sb=bn(C))
    for name in ("fuse1", "fuse2", "fuse3"):         # 1x1 convbnrelu fuse layers
        params[name] = dict(w=nrm((C, C)), sb=bn(C))
    return params


if __name__ == "__main__":
    N, H, W, C = 2, 16, 16, 8                        # NHWC == NCHW [2, 8, 16, 16]
    key = jax.random.PRNGKey(0)
    kx, kp = jax.random.split(key)
    x = jax.random.normal(kx, (N, H, W, C), jnp.float32)
    params = init_params(kp, C)

    fwd = jax.jit(dld_forward_pallas)
    out = jax.block_until_ready(fwd(x, params))
    ref = jax.block_until_ready(dld_forward_reference(x, params))

    out_np, ref_np = np.asarray(out), np.asarray(ref)
    err = float(np.max(np.abs(out_np - ref_np)))
    assert np.allclose(out_np, ref_np, atol=1e-4, rtol=1e-4), f"max abs err = {err}"
    print("KERNEL_OK")
</pallas_src>

<mosaic_0001>
module attributes {stable_mosaic.version = 11 : i64} {
  func.func private @main(%arg0: i32) attributes {dimension_semantics = [#tpu.dimension_semantics<core_parallel>], iteration_bounds = array<i64: 2>, tpu.core_type = #tpu.core_type<sc_scalar_subcore>, window_params = []} {
    return
  }
}

module attributes {stable_mosaic.version = 11 : i64} {
  func.func private @main(%arg0: i32) attributes {dimension_semantics = [#tpu.dimension_semantics<core_parallel>], iteration_bounds = array<i64: 2>, tpu.core_type = #tpu.core_type<sc_scalar_subcore>, window_params = []} {
    return
  }
}

module attributes {stable_mosaic.version = 11 : i64} {
  func.func @_dld_kernel(%arg0: i32, %arg1: memref<2x16x128xf32, #tpu.memory_space<vmem>>, %arg2: memref<9x128x128xf32, #tpu.memory_space<vmem>>, %arg3: memref<3x128xf32, #tpu.memory_space<vmem>>, %arg4: memref<6x128x128xf32, #tpu.memory_space<vmem>>, %arg5: memref<6x128xf32, #tpu.memory_space<vmem>>, %arg6: memref<2x16x128xf32, #tpu.memory_space<vmem>>, %arg7: memref<2x32x128xf32, #tpu.memory_space<vmem>>) attributes {dimension_semantics = [#tpu.dimension_semantics<arbitrary>], iteration_bounds = array<i64: 1>, scalar_prefetch = 0 : i64, scratch_operands = 1 : i64, tpu.core_type = #tpu.core_type<tc>, window_params = [{pipeline_mode = #tpu.pipeline_mode<synchronous>, transform_indices = @transform_0, window_bounds = array<i64: 2, 16, 128>}, {pipeline_mode = #tpu.pipeline_mode<synchronous>, transform_indices = @transform_1, window_bounds = array<i64: 9, 128, 128>}, {pipeline_mode = #tpu.pipeline_mode<synchronous>, transform_indices = @transform_2, window_bounds = array<i64: 3, 128>}, {pipeline_mode = #tpu.pipeline_mode<synchronous>, transform_indices = @transform_3, window_bounds = array<i64: 6, 128, 128>}, {pipeline_mode = #tpu.pipeline_mode<synchronous>, transform_indices = @transform_4, window_bounds = array<i64: 6, 128>}, {pipeline_mode = #tpu.pipeline_mode<synchronous>, transform_indices = @transform_5, window_bounds = array<i64: 2, 16, 128>}]} {
    %cst = arith.constant 0.000000e+00 : f32
    %0 = vector.broadcast %cst : f32 to vector<2x8x128xf32>
    %c0 = arith.constant 0 : index
    %c0_0 = arith.constant 0 : index
    %c0_1 = arith.constant 0 : index
    %1 = vector.load %arg7[%c0, %c0_0, %c0_1] : memref<2x32x128xf32, #tpu.memory_space<vmem>>, vector<2x8x128xf32>
    tpu.vector_store %arg7[%c0, %c0_0, %c0_1], %0 {strides = array<i32>} : memref<2x32x128xf32, #tpu.memory_space<vmem>>, vector<2x8x128xf32>,
    %cst_2 = arith.constant 0.000000e+00 : f32
    %2 = vector.broadcast %cst_2 : f32 to vector<2x8x128xf32>
    %c0_3 = arith.constant 0 : index
    %c24 = arith.constant 24 : index
    %c0_4 = arith.constant 0 : index
    %3 = vector.load %arg7[%c0_3, %c24, %c0_4] : memref<2x32x128xf32, #tpu.memory_space<vmem>>, vector<2x8x128xf32>
    tpu.vector_store %arg7[%c0_3, %c24, %c0_4], %2 {strides = array<i32>} : memref<2x32x128xf32, #tpu.memory_space<vmem>>, vector<2x8x128xf32>,
    %c0_5 = arith.constant 0 : index
    %c0_6 = arith.constant 0 : index
    %c0_7 = arith.constant 0 : index
    %4 = vector.load %arg1[%c0_5, %c0_6, %c0_7] : memref<2x16x128xf32, #tpu.memory_space<vmem>>, vector<2x16x128xf32>
    %5 = vector.shape_cast %4 : vector<2x16x128xf32> to vector<32x128xf32>
    %6 = vector.shape_cast %5 : vector<32x128xf32> to vector<2x16x128xf32>
    %c0_8 = arith.constant 0 : index
    %c8 = arith.constant 8 : index
    %c0_9 = arith.constant 0 : index
    %7 = vector.load %arg7[%c0_8, %c8, %c0_9] : memref<2x32x128xf32, #tpu.memory_space<vmem>>, vector<2x16x128xf32>
    tpu.vector_store %arg7[%c0_8, %c8, %c0_9], %6 {strides = array<i32>} : memref<2x32x128xf32, #tpu.memory_space<vmem>>, vector<2x16x128xf32>,
    %cst_10 = arith.constant 0.000000e+00 : f32
    %8 = vector.broadcast %cst_10 : f32 to vector<32x128xf32>
    %c0_11 = arith.constant 0 : index
    %c6 = arith.constant 6 : index
    %c0_12 = arith.constant 0 : index
    %9 = vector.load %arg7[%c0_11, %c6, %c0_12] : memref<2x32x128xf32, #tpu.memory_space<vmem>>, vector<2x16x128xf32>
    %10 = vector.shape_cast %9 : vector<2x16x128xf32> to vector<32x128xf32>
    %c0_13 = arith.constant 0 : index
    %c0_14 = arith.constant 0 : index
    %c0_15 = arith.constant 0 : index
    %11 = vector.load %arg2[%c0_13, %c0_14, %c0_15] : memref<9x128x128xf32, #tpu.memory_space<vmem>>, vector<1x128x128xf32>
    %12 = vector.shape_cast %11 : vector<1x128x128xf32> to vector<128x128xf32>
    %cst_16 = arith.constant dense<0.000000e+00> : vector<32x128xf32>
    %13 = tpu.matmul %10, %12, %cst_16 {dimension_numbers = #tpu.dot_dimension_numbers<[1], [0], [0], [1], [0, 0, 1, 1], [], []>, precision = #tpu.contract_precision<fp32>} : vector<32x128xf32>, vector<128x128xf32>, vector<32x128xf32> -> vector<32x128xf32>
    %14 = arith.addf %8, %13 : vector<32x128xf32>
    %c0_17 = arith.constant 0 : index
    %c8_18 = arith.constant 8 : index
    %c0_19 = arith.constant 0 : index
    %15 = vector.load %arg7[%c0_17, %c8_18, %c0_19] : memref<2x32x128xf32, #tpu.memory_space<vmem>>, vector<2x16x128xf32>
    %16 = vector.shape_cast %15 : vector<2x16x128xf32> to vector<32x128xf32>
    %c1 = arith.constant 1 : index
    %c0_20 = arith.constant 0 : index
    %c0_21 = arith.constant 0 : index
    %17 = vector.load %arg2[%c1, %c0_20, %c0_21] : memref<9x128x128xf32, #tpu.memory_space<vmem>>, vector<1x128x128xf32>
    %18 = vector.shape_cast %17 : vector<1x128x128xf32> to vector<128x128xf32>
    %cst_22 = arith.constant dense<0.000000e+00> : vector<32x128xf32>
    %19 = tpu.matmul %16, %18, %cst_22 {dimension_numbers = #tpu.dot_dimension_numbers<[1], [0], [0], [1], [0, 0, 1, 1], [], []>, precision = #tpu.contract_precision<fp32>} : vector<32x128xf32>, vector<128x128xf32>, vector<32x128xf32> -> vector<32x128xf32>
    %20 = arith.addf %14, %19 : vector<32x128xf32>
    %c0_23 = arith.constant 0 : index
    %c10 = arith.constant 10 : index
    %c0_24 = arith.constant 0 : index
    %21 = vector.load %arg7[%c0_23, %c10, %c0_24] : memref<2x32x128xf32, #tpu.memory_space<vmem>>, vector<2x16x128xf32>
    %22 = vector.shape_cast %21 : vector<2x16x128xf32> to vector<32x128xf32>
    %c2 = arith.constant 2 : index
    %c0_25 = arith.constant 0 : index
    %c0_26 = arith.constant 0 : index
    %23 = vector.load %arg2[%c2, %c0_25, %c0_26] : memref<9x128x128xf32, #tpu.memory_space<vmem>>, vector<1x128x128xf32>
    %24 = vector.shape_cast %23 : vector<1x128x128xf32> to vector<128x128xf32>
    %cst_27 = arith.constant dense<0.000000e+00> : vector<32x128xf32>
    %25 = tpu.matmul %22, %24, %cst_27 {dimension_numbers = #tpu.dot_dimension_numbers<[1], [0], [0], [1], [0, 0, 1, 1], [], []>, precision = #tpu.contract_precision<fp32>} : vector<32x128xf32>, vector<128x128xf32>, vector<32x128xf32> -> vector<32x128xf32>
    %26 = arith.addf %20, %25 : vector<32x128xf32>
    %c0_28 = arith.constant 0 : index
    %c0_29 = arith.constant 0 : index
    %27 = vector.load %arg3[%c0_28, %c0_29] : memref<3x128xf32, #tpu.memory_space<vmem>>, vector<1x128xf32>
    %28 = vector.broadcast %27 : vector<1x128xf32> to vector<32x128xf32>
    %29 = arith.addf %26, %28 : vector<32x128xf32>
    %cst_30 = arith.constant 0.000000e+00 : f32
    %30 = vector.broadcast %cst_30 : f32 to vector<32x128xf32>
    %31 = arith.maximumf %29, %30 : vector<32x128xf32>
    %c0_31 = arith.constant 0 : index
    %c0_32 = arith.constant 0 : index
    %c0_33 = arith.constant 0 : index
    %32 = vector.load %arg4[%c0_31, %c0_32, %c0_33] : memref<6x128x128xf32, #tpu.memory_space<vmem>>, vector<1x128x128xf32>
    %33 = vector.shape_cast %32 : vector<1x128x128xf32> to vector<128x128xf32>
    %cst_34 = arith.constant dense<0.000000e+00> : vector<32x128xf32>
    %34 = tpu.matmul %31, %33, %cst_34 {dimension_numbers = #tpu.dot_dimension_numbers<[1], [0], [0], [1], [0, 0, 1, 1], [], []>, precision = #tpu.contract_precision<fp32>} : vector<32x128xf32>, vector<128x128xf32>, vector<32x128xf32> -> vector<32x128xf32>
    %c0_35 = arith.constant 0 : index
    %c0_36 = arith.constant 0 : index
    %35 = vector.load %arg5[%c0_35, %c0_36] : memref<6x128xf32, #tpu.memory_space<vmem>>, vector<1x128xf32>
    %36 = vector.broadcast %35 : vector<1x128xf32> to vector<32x128xf32>
    %37 = arith.addf %34, %36 : vector<32x128xf32>
    %cst_37 = arith.constant 0.000000e+00 : f32
    %38 = vector.broadcast %cst_37 : f32 to vector<32x128xf32>
    %39 = arith.maximumf %37, %38 : vector<32x128xf32>
    %40 = arith.addf %5, %39 : vector<32x128xf32>
    %c1_38 = arith.constant 1 : index
    %c0_39 = arith.constant 0 : index
    %c0_40 = arith.constant 0 : index
    %41 = vector.load %arg4[%c1_38, %c0_39, %c0_40] : memref<6x128x128xf32, #tpu.memory_space<vmem>>, vector<1x128x128xf32>
    %42 = vector.shape_cast %41 : vector<1x128x128xf32> to vector<128x128xf32>
    %cst_41 = arith.constant dense<0.000000e+00> : vector<32x128xf32>
    %43 = tpu.matmul %40, %42, %cst_41 {dimension_numbers = #tpu.dot_dimension_numbers<[1], [0], [0], [1], [0, 0, 1, 1], [], []>, precision = #tpu.contract_precision<fp32>} : vector<32x128xf32>, vector<128x128xf32>, vector<32x128xf32> -> vector<32x128xf32>
    %c1_42 = arith.constant 1 : index
    %c0_43 = arith.constant 0 : index
    %44 = vector.load %arg5[%c1_42, %c0_43] : memref<6x128xf32, #tpu.memory_space<vmem>>, vector<1x128xf32>
    %45 = vector.broadcast %44 : vector<1x128xf32> to vector<32x128xf32>
    %46 = arith.addf %43, %45 : vector<32x128xf32>
    %cst_44 = arith.constant 0.000000e+00 : f32
    %47 = vector.broadcast %cst_44 : f32 to vector<32x128xf32>
    %48 = arith.maximumf %46, %47 : vector<32x128xf32>
    %49 = arith.addf %5, %48 : vector<32x128xf32>
    %50 = vector.shape_cast %48 : vector<32x128xf32> to vector<2x16x128xf32>
    %c0_45 = arith.constant 0 : index
    %c8_46 = arith.constant 8 : index
    %c0_47 = arith.constant 0 : index
    %51 = vector.load %arg7[%c0_45, %c8_46, %c0_47] : memref<2x32x128xf32, #tpu.memory_space<vmem>>, vector<2x16x128xf32>
    tpu.vector_store %arg7[%c0_45, %c8_46, %c0_47], %50 {strides = array<i32>} : memref<2x32x128xf32, #tpu.memory_space<vmem>>, vector<2x16x128xf32>,
    %cst_48 = arith.constant 0.000000e+00 : f32
    %52 = vector.broadcast %cst_48 : f32 to vector<32x128xf32>
    %c0_49 = arith.constant 0 : index
    %c4 = arith.constant 4 : index
    %c0_50 = arith.constant 0 : index
    %53 = vector.load %arg7[%c0_49, %c4, %c0_50] : memref<2x32x128xf32, #tpu.memory_space<vmem>>, vector<2x16x128xf32>
    %54 = vector.shape_cast %53 : vector<2x16x128xf32> to vector<32x128xf32>
    %c3 = arith.constant 3 : index
    %c0_51 = arith.constant 0 : index
    %c0_52 = arith.constant 0 : index
    %55 = vector.load %arg2[%c3, %c0_51, %c0_52] : memref<9x128x128xf32, #tpu.memory_space<vmem>>, vector<1x128x128xf32>
    %56 = vector.shape_cast %55 : vector<1x128x128xf32> to vector<128x128xf32>
    %cst_53 = arith.constant dense<0.000000e+00> : vector<32x128xf32>
    %57 = tpu.matmul %54, %56, %cst_53 {dimension_numbers = #tpu.dot_dimension_numbers<[1], [0], [0], [1], [0, 0, 1, 1], [], []>, precision = #tpu.contract_precision<fp32>} : vector<32x128xf32>, vector<128x128xf32>, vector<32x128xf32> -> vector<32x128xf32>
    %58 = arith.addf %52, %57 : vector<32x128xf32>
    %c0_54 = arith.constant 0 : index
    %c8_55 = arith.constant 8 : index
    %c0_56 = arith.constant 0 : index
    %59 = vector.load %arg7[%c0_54, %c8_55, %c0_56] : memref<2x32x128xf32, #tpu.memory_space<vmem>>, vector<2x16x128xf32>
    %60 = vector.shape_cast %59 : vector<2x16x128xf32> to vector<32x128xf32>
    %c4_57 = arith.constant 4 : index
    %c0_58 = arith.constant 0 : index
    %c0_59 = arith.constant 0 : index
    %61 = vector.load %arg2[%c4_57, %c0_58, %c0_59] : memref<9x128x128xf32, #tpu.memory_space<vmem>>, vector<1x128x128xf32>
    %62 = vector.shape_cast %61 : vector<1x128x128xf32> to vector<128x128xf32>
    %cst_60 = arith.constant dense<0.000000e+00> : vector<32x128xf32>
    %63 = tpu.matmul %60, %62, %cst_60 {dimension_numbers = #tpu.dot_dimension_numbers<[1], [0], [0], [1], [0, 0, 1, 1], [], []>, precision = #tpu.contract_precision<fp32>} : vector<32x128xf32>, vector<128x128xf32>, vector<32x128xf32> -> vector<32x128xf32>
    %64 = arith.addf %58, %63 : vector<32x128xf32>
    %c0_61 = arith.constant 0 : index
    %c12 = arith.constant 12 : index
    %c0_62 = arith.constant 0 : index
    %65 = vector.load %arg7[%c0_61, %c12, %c0_62] : memref<2x32x128xf32, #tpu.memory_space<vmem>>, vector<2x16x128xf32>
    %66 = vector.shape_cast %65 : vector<2x16x128xf32> to vector<32x128xf32>
    %c5 = arith.constant 5 : index
    %c0_63 = arith.constant 0 : index
    %c0_64 = arith.constant 0 : index
    %67 = vector.load %arg2[%c5, %c0_63, %c0_64] : memref<9x128x128xf32, #tpu.memory_space<vmem>>, vector<1x128x128xf32>
    %68 = vector.shape_cast %67 : vector<1x128x128xf32> to vector<128x128xf32>
    %cst_65 = arith.constant dense<0.000000e+00> : vector<32x128xf32>
    %69 = tpu.matmul %66, %68, %cst_65 {dimension_numbers = #tpu.dot_dimension_numbers<[1], [0], [0], [1], [0, 0, 1, 1], [], []>, precision = #tpu.contract_precision<fp32>} : vector<32x128xf32>, vector<128x128xf32>, vector<32x128xf32> -> vector<32x128xf32>
    %70 = arith.addf %64, %69 : vector<32x128xf32>
    %c1_66 = arith.constant 1 : index
    %c0_67 = arith.constant 0 : index
    %71 = vector.load %arg3[%c1_66, %c0_67] : memref<3x128xf32, #tpu.memory_space<vmem>>, vector<1x128xf32>
    %72 = vector.broadcast %71 : vector<1x128xf32> to vector<32x128xf32>
    %73 = arith.addf %70, %72 : vector<32x128xf32>
    %cst_68 = arith.constant 0.000000e+00 : f32
    %74 = vector.broadcast %cst_68 : f32 to vector<32x128xf32>
    %75 = arith.maximumf %73, %74 : vector<32x128xf32>
    %c2_69 = arith.constant 2 : index
    %c0_70 = arith.constant 0 : index
    %c0_71 = arith.constant 0 : index
    %76 = vector.load %arg4[%c2_69, %c0_70, %c0_71] : memref<6x128x128xf32, #tpu.memory_space<vmem>>, vector<1x128x128xf32>
    %77 = vector.shape_cast %76 : vector<1x128x128xf32> to vector<128x128xf32>
    %cst_72 = arith.constant dense<0.000000e+00> : vector<32x128xf32>
    %78 = tpu.matmul %75, %77, %cst_72 {dimension_numbers = #tpu.dot_dimension_numbers<[1], [0], [0], [1], [0, 0, 1, 1], [], []>, precision = #tpu.contract_precision<fp32>} : vector<32x128xf32>, vector<128x128xf32>, vector<32x128xf32> -> vector<32x128xf32>
    %c2_73 = arith.constant 2 : index
    %c0_74 = arith.constant 0 : index
    %79 = vector.load %arg5[%c2_73, %c0_74] : memref<6x128xf32, #tpu.memory_space<vmem>>, vector<1x128xf32>
    %80 = vector.broadcast %79 : vector<1x128xf32> to vector<32x128xf32>
    %81 = arith.addf %78, %80 : vector<32x128xf32>
    %cst_75 = arith.constant 0.000000e+00 : f32
    %82 = vector.broadcast %cst_75 : f32 to vector<32x128xf32>
    %83 = arith.maximumf %81, %82 : vector<32x128xf32>
    %84 = arith.addf %49, %83 : vector<32x128xf32>
    %c3_76 = arith.constant 3 : index
    %c0_77 = arith.constant 0 : index
    %c0_78 = arith.constant 0 : index
    %85 = vector.load %arg4[%c3_76, %c0_77, %c0_78] : memref<6x128x128xf32, #tpu.memory_space<vmem>>, vector<1x128x128xf32>
    %86 = vector.shape_cast %85 : vector<1x128x128xf32> to vector<128x128xf32>
    %cst_79 = arith.constant dense<0.000000e+00> : vector<32x128xf32>
    %87 = tpu.matmul %84, %86, %cst_79 {dimension_numbers = #tpu.dot_dimension_numbers<[1], [0], [0], [1], [0, 0, 1, 1], [], []>, precision = #tpu.contract_precision<fp32>} : vector<32x128xf32>, vector<128x128xf32>, vector<32x128xf32> -> vector<32x128xf32>
    %c3_80 = arith.constant 3 : index
    %c0_81 = arith.constant 0 : index
    %88 = vector.load %arg5[%c3_80, %c0_81] : memref<6x128xf32, #tpu.memory_space<vmem>>, vector<1x128xf32>
    %89 = vector.broadcast %88 : vector<1x128xf32> to vector<32x128xf32>
    %90 = arith.addf %87, %89 : vector<32x128xf32>
    %cst_82 = arith.constant 0.000000e+00 : f32
    %91 = vector.broadcast %cst_82 : f32 to vector<32x128xf32>
    %92 = arith.maximumf %90, %91 : vector<32x128xf32>
    %93 = arith.addf %49, %92 : vector<32x128xf32>
    %94 = vector.shape_cast %92 : vector<32x128xf32> to vector<2x16x128xf32>
    %c0_83 = arith.constant 0 : index
    %c8_84 = arith.constant 8 : index
    %c0_85 = arith.constant 0 : index
    %95 = vector.load %arg7[%c0_83, %c8_84, %c0_85] : memref<2x32x128xf32, #tpu.memory_space<vmem>>, vector<2x16x128xf32>
    tpu.vector_store %arg7[%c0_83, %c8_84, %c0_85], %94 {strides = array<i32>} : memref<2x32x128xf32, #tpu.memory_space<vmem>>, vector<2x16x128xf32>,
    %cst_86 = arith.constant 0.000000e+00 : f32
    %96 = vector.broadcast %cst_86 : f32 to vector<32x128xf32>
    %c0_87 = arith.constant 0 : index
    %c2_88 = arith.constant 2 : index
    %c0_89 = arith.constant 0 : index
    %97 = vector.load %arg7[%c0_87, %c2_88, %c0_89] : memref<2x32x128xf32, #tpu.memory_space<vmem>>, vector<2x16x128xf32>
    %98 = vector.shape_cast %97 : vector<2x16x128xf32> to vector<32x128xf32>
    %c6_90 = arith.constant 6 : index
    %c0_91 = arith.constant 0 : index
    %c0_92 = arith.constant 0 : index
    %99 = vector.load %arg2[%c6_90, %c0_91, %c0_92] : memref<9x128x128xf32, #tpu.memory_space<vmem>>, vector<1x128x128xf32>
    %100 = vector.shape_cast %99 : vector<1x128x128xf32> to vector<128x128xf32>
    %cst_93 = arith.constant dense<0.000000e+00> : vector<32x128xf32>
    %101 = tpu.matmul %98, %100, %cst_93 {dimension_numbers = #tpu.dot_dimension_numbers<[1], [0], [0], [1], [0, 0, 1, 1], [], []>, precision = #tpu.contract_precision<fp32>} : vector<32x128xf32>, vector<128x128xf32>, vector<32x128xf32> -> vector<32x128xf32>
    %102 = arith.addf %96, %101 : vector<32x128xf32>
    %c0_94 = arith.constant 0 : index
    %c8_95 = arith.constant 8 : index
    %c0_96 = arith.constant 0 : index
    %103 = vector.load %arg7[%c0_94, %c8_95, %c0_96] : memref<2x32x128xf32, #tpu.memory_space<vmem>>, vector<2x16x128xf32>
    %104 = vector.shape_cast %103 : vector<2x16x128xf32> to vector<32x128xf32>
    %c7 = arith.constant 7 : index
    %c0_97 = arith.constant 0 : index
    %c0_98 = arith.constant 0 : index
    %105 = vector.load %arg2[%c7, %c0_97, %c0_98] : memref<9x128x128xf32, #tpu.memory_space<vmem>>, vector<1x128x128xf32>
    %106 = vector.shape_cast %105 : vector<1x128x128xf32> to vector<128x128xf32>
    %cst_99 = arith.constant dense<0.000000e+00> : vector<32x128xf32>
    %107 = tpu.matmul %104, %106, %cst_99 {dimension_numbers = #tpu.dot_dimension_numbers<[1], [0], [0], [1], [0, 0, 1, 1], [], []>, precision = #tpu.contract_precision<fp32>} : vector<32x128xf32>, vector<128x128xf32>, vector<32x128xf32> -> vector<32x128xf32>
    %108 = arith.addf %102, %107 : vector<32x128xf32>
    %c0_100 = arith.constant 0 : index
    %c14 = arith.constant 14 : index
    %c0_101 = arith.constant 0 : index
    %109 = vector.load %arg7[%c0_100, %c14, %c0_101] : memref<2x32x128xf32, #tpu.memory_space<vmem>>, vector<2x16x128xf32>
    %110 = vector.shape_cast %109 : vector<2x16x128xf32> to vector<32x128xf32>
    %c8_102 = arith.constant 8 : index
    %c0_103 = arith.constant 0 : index
    %c0_104 = arith.constant 0 : index
    %111 = vector.load %arg2[%c8_102, %c0_103, %c0_104] : memref<9x128x128xf32, #tpu.memory_space<vmem>>, vector<1x128x128xf32>
    %112 = vector.shape_cast %111 : vector<1x128x128xf32> to vector<128x128xf32>
    %cst_105 = arith.constant dense<0.000000e+00> : vector<32x128xf32>
    %113 = tpu.matmul %110, %112, %cst_105 {dimension_numbers = #tpu.dot_dimension_numbers<[1], [0], [0], [1], [0, 0, 1, 1], [], []>, precision = #tpu.contract_precision<fp32>} : vector<32x128xf32>, vector<128x128xf32>, vector<32x128xf32> -> vector<32x128xf32>
    %114 = arith.addf %108, %113 : vector<32x128xf32>
    %c2_106 = arith.constant 2 : index
    %c0_107 = arith.constant 0 : index
    %115 = vector.load %arg3[%c2_106, %c0_107] : memref<3x128xf32, #tpu.memory_space<vmem>>, vector<1x128xf32>
    %116 = vector.broadcast %115 : vector<1x128xf32> to vector<32x128xf32>
    %117 = arith.addf %114, %116 : vector<32x128xf32>
    %cst_108 = arith.constant 0.000000e+00 : f32
    %118 = vector.broadcast %cst_108 : f32 to vector<32x128xf32>
    %119 = arith.maximumf %117, %118 : vector<32x128xf32>
    %c4_109 = arith.constant 4 : index
    %c0_110 = arith.constant 0 : index
    %c0_111 = arith.constant 0 : index
    %120 = vector.load %arg4[%c4_109, %c0_110, %c0_111] : memref<6x128x128xf32, #tpu.memory_space<vmem>>, vector<1x128x128xf32>
    %121 = vector.shape_cast %120 : vector<1x128x128xf32> to vector<128x128xf32>
    %cst_112 = arith.constant dense<0.000000e+00> : vector<32x128xf32>
    %122 = tpu.matmul %119, %121, %cst_112 {dimension_numbers = #tpu.dot_dimension_numbers<[1], [0], [0], [1], [0, 0, 1, 1], [], []>, precision = #tpu.contract_precision<fp32>} : vector<32x128xf32>, vector<128x128xf32>, vector<32x128xf32> -> vector<32x128xf32>
    %c4_113 = arith.constant 4 : index
    %c0_114 = arith.constant 0 : index
    %123 = vector.load %arg5[%c4_113, %c0_114] : memref<6x128xf32, #tpu.memory_space<vmem>>, vector<1x128xf32>
    %124 = vector.broadcast %123 : vector<1x128xf32> to vector<32x128xf32>
    %125 = arith.addf %122, %124 : vector<32x128xf32>
    %cst_115 = arith.constant 0.000000e+00 : f32
    %126 = vector.broadcast %cst_115 : f32 to vector<32x128xf32>
    %127 = arith.maximumf %125, %126 : vector<32x128xf32>
    %128 = arith.addf %93, %127 : vector<32x128xf32>
    %c5_116 = arith.constant 5 : index
    %c0_117 = arith.constant 0 : index
    %c0_118 = arith.constant 0 : index
    %129 = vector.load %arg4[%c5_116, %c0_117, %c0_118] : memref<6x128x128xf32, #tpu.memory_space<vmem>>, vector<1x128x128xf32>
    %130 = vector.shape_cast %129 : vector<1x128x128xf32> to vector<128x128xf32>
    %cst_119 = arith.constant dense<0.000000e+00> : vector<32x128xf32>
    %131 = tpu.matmul %128, %130, %cst_119 {dimension_numbers = #tpu.dot_dimension_numbers<[1], [0], [0], [1], [0, 0, 1, 1], [], []>, precision = #tpu.contract_precision<fp32>} : vector<32x128xf32>, vector<128x128xf32>, vector<32x128xf32> -> vector<32x128xf32>
    %c5_120 = arith.constant 5 : index
    %c0_121 = arith.constant 0 : index
    %132 = vector.load %arg5[%c5_120, %c0_121] : memref<6x128xf32, #tpu.memory_space<vmem>>, vector<1x128xf32>
    %133 = vector.broadcast %132 : vector<1x128xf32> to vector<32x128xf32>
    %134 = arith.addf %131, %133 : vector<32x128xf32>
    %cst_122 = arith.constant 0.000000e+00 : f32
    %135 = vector.broadcast %cst_122 : f32 to vector<32x128xf32>
    %136 = arith.maximumf %134, %135 : vector<32x128xf32>
    %137 = vector.shape_cast %136 : vector<32x128xf32> to vector<2x16x128xf32>
    %c0_123 = arith.constant 0 : index
    %c0_124 = arith.constant 0 : index
    %c0_125 = arith.constant 0 : index
    %138 = vector.load %arg6[%c0_123, %c0_124, %c0_125] : memref<2x16x128xf32, #tpu.memory_space<vmem>>, vector<2x16x128xf32>
    tpu.vector_store %arg6[%c0_123, %c0_124, %c0_125], %137 {strides = array<i32>} : memref<2x16x128xf32, #tpu.memory_space<vmem>>, vector<2x16x128xf32>,
    return
  }
  func.func @transform_0(%arg0: i32) -> (i32, i32, i32) {
    %c0_i32 = arith.constant 0 : i32
    %c0_i32_0 = arith.constant 0 : i32
    %c0_i32_1 = arith.constant 0 : i32
    %c0_i32_2 = arith.constant 0 : i32
    return %c0_i32, %c0_i32_0, %c0_i32_1 : i32, i32, i32
  }
  func.func @transform_1(%arg0: i32) -> (i32, i32, i32) {
    %c0_i32 = arith.constant 0 : i32
    %c0_i32_0 = arith.constant 0 : i32
    %c0_i32_1 = arith.constant 0 : i32
    %c0_i32_2 = arith.constant 0 : i32
    return %c0_i32, %c0_i32_0, %c0_i32_1 : i32, i32, i32
  }
  func.func @transform_2(%arg0: i32) -> (i32, i32) {
    %c0_i32 = arith.constant 0 : i32
    %c0_i32_0 = arith.constant 0 : i32
    %c0_i32_1 = arith.constant 0 : i32
    return %c0_i32, %c0_i32_0 : i32, i32
  }
  func.func @transform_3(%arg0: i32) -> (i32, i32, i32) {
    %c0_i32 = arith.constant 0 : i32
    %c0_i32_0 = arith.constant 0 : i32
    %c0_i32_1 = arith.constant 0 : i32
    %c0_i32_2 = arith.constant 0 : i32
    return %c0_i32, %c0_i32_0, %c0_i32_1 : i32, i32, i32
  }
  func.func @transform_4(%arg0: i32) -> (i32, i32) {
    %c0_i32 = arith.constant 0 : i32
    %c0_i32_0 = arith.constant 0 : i32
    %c0_i32_1 = arith.constant 0 : i32
    return %c0_i32, %c0_i32_0 : i32, i32
  }
  func.func @transform_5(%arg0: i32) -> (i32, i32, i32) {
    %c0_i32 = arith.constant 0 : i32
    %c0_i32_0 = arith.constant 0 : i32
    %c0_i32_1 = arith.constant 0 : i32
    %c0_i32_2 = arith.constant 0 : i32
    return %c0_i32, %c0_i32_0, %c0_i32_1 : i32, i32, i32
  }
}

</mosaic_0001>

<bundles_post_ra>
// kernel: tile.63
= control target key start
LH: loop header
LB: loop body
LE: loop exit
PB: predicated region body
PF: predicated region fallthrough
CT: control target
= control target key end

     0   :  { %s28_s0 = inlined_call_operand.vmem [shape: f32[8], index: 0, kind: input, shape index: {}]   ;;  %s29_s1 = inlined_call_operand.vmem [shape: f32[16,8], index: 1, kind: output, shape index: {}]  }
   0x1   :  { %v4_v0 = vld [vmem:[%s28_s0] ss:$0 sm:$0xff] }
   0x2   :  { %5 = vst [vmem:[%s29_s1] sm:$0xff] %v4_v0  ;;  %8 = vst [vmem:[%s29_s1 + $0x8] sm:$0xff] %v4_v0 }

// kernel: tile.84
= control target key start
LH: loop header
LB: loop body
LE: loop exit
PB: predicated region body
PF: predicated region fallthrough
CT: control target
= control target key end

     0   :  { %s133_s10 = smov 120   ;;  %s134_s11 = smov 104   ;;  %vm3_vm0 = vcmask 64512   ;;  %vm9_vm1 = vcmask 1048512   ;;  %vm15_vm2 = vcmask 982912   ;;  %vm21_vm3 = vcmask 917312   ;;  %s209_s0 = inlined_call_operand.vmem [shape: f32[16,8], index: 0, kind: input, shape index: {}]   ;;  %s210_s1 = inlined_call_operand.vmem [shape: f32[1,128], index: 1, kind: output, shape index: {}]  }
   0x1   :  { %v103_v0 = vld [vmem:[%s209_s0 + $0xf] sm:$0x1]   ;;  %v105_v1 = vld [vmem:[%s209_s0 + $0xd] sm:$0x1]   ;;  %v104_v2 = vld [vmem:[%s209_s0 + $0xe] sm:$0x1]  }
   0x2   :  { %7 = vrot.lane.b32.xlu0 %v103_v0, %s133_s10  ;;  %19 = vrot.lane.b32.xlu1 %v105_v1, %s134_s11  ;;  %v106_v3 = vld [vmem:[%s209_s0 + $0xc] sm:$0x1]   ;;  %s135_s16 = smov 112   ;;  %s136_s17 = smov 96   ;;  %v107_v4 = vld [vmem:[%s209_s0 + $0xb] sm:$0x1]  }
   0x3   :  { %v108_v5 = vld [vmem:[%s209_s0 + $0xa] sm:$0x1]   ;;  %v2_v6 = vld [vmem:[%s209_s0] sm:$0x1]   ;;  %s137_s24 = smov 88   ;;  %s138_s25 = smov 80  }
   0x4   :  { %4 = vst.msk [vmem:[#allocation0] sm:$0x1] %vm3_vm0, %v2_v6   ;;  %v109_v7 = vld [vmem:[%s209_s0 + $0x9] sm:$0x1]   ;;  %v110_v8 = vld [vmem:[%s209_s0 + $0x8] sm:$0x1]  }
   0x5   :  { %s139_s30 = smov 72   ;;  %s140_s2 = smov 64   ;;  %v111_v9 = vld [vmem:[%s209_s0 + $0x7] sm:$0x1]   ;;  %v112_v10 = vld [vmem:[%s209_s0 + $0x6] sm:$0x1]  }
   0x6   :  { %13 = vrot.lane.b32.xlu0 %v104_v2, %s135_s16  ;;  %25 = vrot.lane.b32.xlu1 %v106_v3, %s136_s17  ;;  %s141_s7 = smov 56   ;;  %s142_s8 = smov 48   ;;  %v113_v11 = vld [vmem:[%s209_s0 + $0x5] sm:$0x1]   ;;  %v114_v12 = vld [vmem:[%s209_s0 + $0x4] sm:$0x1]  }
   0x7   :  { %s143_s13 = smov 40   ;;  %s144_s14 = smov 32   ;;  %v115_v13 = vld [vmem:[%s209_s0 + $0x3] sm:$0x1]   ;;  %v116_v14 = vld [vmem:[%s209_s0 + $0x2] sm:$0x1]  }
   0x8   :  { %s145_s19 = smov 24   ;;  %s146_s20 = smov 16   ;;  %v117_v15 = vld [vmem:[%s209_s0 + $0x1] sm:$0x1]   ;;  %vm27_vm4 = vcmask 851712   ;;  %vm33_vm5 = vcmask 786112  }
   0x9   :  { %s147_s0 = smov 8   ;;  %vm39_vm6 = vcmask 720512   ;;  %vm45_vm7 = vcmask 654912   ;;  %vm51_vm8 = vcmask 589312   ;;  %vm57_vm9 = vcmask 523712  }
   0xa   :  { %31 = vrot.lane.b32.xlu0 %v107_v4, %s137_s24  ;;  %37 = vrot.lane.b32.xlu1 %v108_v5, %s138_s25  ;;  %vm63_vm10 = vcmask 458112   ;;  %vm69_vm11 = vcmask 392512   ;;  %vm75_vm12 = vcmask 326912   ;;  %vm81_vm13 = vcmask 261312  }
   0xb   :  { %vm87_vm14 = vcmask 195712   ;;  %vm93_vm15 = vcmask 130112  }
   0xe   :  { %43 = vrot.lane.b32.xlu0 %v109_v7, %s139_s30  ;;  %49 = vrot.lane.b32.xlu1 %v110_v8, %s140_s2 }
  0x12   :  { %55 = vrot.lane.b32.xlu0 %v111_v9, %s141_s7  ;;  %61 = vrot.lane.b32.xlu1 %v112_v10, %s142_s8 }
  0x16   :  { %67 = vrot.lane.b32.xlu0 %v113_v11, %s143_s13  ;;  %73 = vrot.lane.b32.xlu1 %v114_v12, %s144_s14 }
  0x1a   :  { %79 = vrot.lane.b32.xlu0 %v115_v13, %s145_s19  ;;  %85 = vrot.lane.b32.xlu1 %v116_v14, %s146_s20 }
  0x1e   :  { %91 = vrot.lane.b32.xlu0 %v117_v15, %s147_s0 }
  0x74   :  { %v8_v16 = vpop.permute.xlu0 %7   ;;  %v20_v17 = vpop.permute.xlu1 %19  }
  0x75   :  { %10 = vst.msk [vmem:[#allocation0] sm:$0x1] %vm9_vm1, %v8_v16  }
  0x78   :  { %v14_v18 = vpop.permute.xlu0 %13   ;;  %v26_v19 = vpop.permute.xlu1 %25  }
  0x79   :  { %16 = vst.msk [vmem:[#allocation0] sm:$0x1] %vm15_vm2, %v14_v18  }
  0x7a   :  { %22 = vst.msk [vmem:[#allocation0] sm:$0x1] %vm21_vm3, %v20_v17  }
  0x7b   :  { %28 = vst.msk [vmem:[#allocation0] sm:$0x1] %vm27_vm4, %v26_v19  }
  0x7c   :  { %v32_v20 = vpop.permute.xlu0 %31   ;;  %v38_v21 = vpop.permute.xlu1 %37  }
  0x7d   :  { %34 = vst.msk [vmem:[#allocation0] sm:$0x1] %vm33_vm5, %v32_v20  }
  0x7e   :  { %40 = vst.msk [vmem:[#allocation0] sm:$0x1] %vm39_vm6, %v38_v21  }
  0x80   :  { %v44_v22 = vpop.permute.xlu0 %43   ;;  %v50_v23 = vpop.permute.xlu1 %49  }
  0x81   :  { %46 = vst.msk [vmem:[#allocation0] sm:$0x1] %vm45_vm7, %v44_v22  }
  0x82   :  { %52 = vst.msk [vmem:[#allocation0] sm:$0x1] %vm51_vm8, %v50_v23  }
  0x84   :  { %v56_v24 = vpop.permute.xlu0 %55   ;;  %v62_v25 = vpop.permute.xlu1 %61  }
  0x85   :  { %58 = vst.msk [vmem:[#allocation0] sm:$0x1] %vm57_vm9, %v56_v24  }
  0x86   :  { %64 = vst.msk [vmem:[#allocation0] sm:$0x1] %vm63_vm10, %v62_v25  }
  0x88   :  { %v68_v26 = vpop.permute.xlu0 %67   ;;  %v74_v27 = vpop.permute.xlu1 %73  }
  0x89   :  { %70 = vst.msk [vmem:[#allocation0] sm:$0x1] %vm69_vm11, %v68_v26  }
  0x8a   :  { %76 = vst.msk [vmem:[#allocation0] sm:$0x1] %vm75_vm12, %v74_v27  }
  0x8c   :  { %v80_v28 = vpop.permute.xlu0 %79   ;;  %v86_v29 = vpop.permute.xlu1 %85  }
  0x8d   :  { %82 = vst.msk [vmem:[#allocation0] sm:$0x1] %vm81_vm13, %v80_v28  }
  0x8e   :  { %88 = vst.msk [vmem:[#allocation0] sm:$0x1] %vm87_vm14, %v86_v29  }
  0x90   :  { %v92_v30 = vpop.permute.xlu0 %91  }
  0x91   :  { %94 = vst.msk [vmem:[#allocation0] sm:$0x1] %vm93_vm15, %v92_v30  }
  0x98   :  { %v99_v31 = vld [vmem:[#allocation0] sm:$0x1] }
  0x99   :  { %102 = vst [vmem:[%s210_s1] sm:$0x1] %v99_v31 }

// kernel: dld_forward_pallas.1
= control target key start
LH: loop header
LB: loop body
LE: loop exit
PB: predicated region body
PF: predicated region fallthrough
CT: control target
= control target key end

     0   :  { %v17462_v3 = vmov 0.0   ;;  %s24067_s1 = inlined_call_operand.vmem [shape: f32[9,128,128], index: 1, kind: input, shape index: {}]   ;;  %s24068_s0 = inlined_call_operand.vmem [shape: f32[2,16,128], index: 0, kind: input, shape index: {}]   ;;  %s24069_s3 = inlined_call_operand.vmem [shape: f32[6,128,128], index: 3, kind: input, shape index: {}]   ;;  %s24070_s2 = inlined_call_operand.vmem [shape: f32[3,128], index: 2, kind: input, shape index: {}]   ;;  %s24071_s4 = inlined_call_operand.vmem [shape: f32[6,128], index: 4, kind: input, shape index: {}]   ;;  %s24072_s5 = inlined_call_operand.vmem [shape: f32[2,16,128], index: 5, kind: output, shape index: {}]  }
   0x1   :  { %v12027_v0 = vld [vmem:[%s24067_s1 + $0xf8] sm:$0xff]  ;;  %v12026_v1 = vld [vmem:[%s24067_s1 + $0xf0] sm:$0xff]  ;;  %v12025_v2 = vld [vmem:[%s24067_s1 + $0xe8] sm:$0xff]  ;;  %20 = vst [vmem:[#allocation2] sm:$0xff] %v17462_v3 }
   0x2   :  { %21 = vst [vmem:[#allocation2 + $0x20] sm:$0xff] %v17462_v3  ;;  %22 = vst [vmem:[#allocation2 + $0x18] sm:$0xff] %v17462_v3  ;;  %v17502_v4 = vand.u32 4294901760, %v12027_v0  ;;  %v17504_v5 = vand.u32 4294901760, %v12026_v1  ;;  %v17506_v6 = vand.u32 4294901760, %v12025_v2  ;;  %v12024_v7 = vld [vmem:[%s24067_s1 + $0xe0] sm:$0xff] }
   0x3   :  { %23 = vst [vmem:[#allocation2 + $0x38] sm:$0xff] %v17462_v3  ;;  %v12023_v8 = vld [vmem:[%s24067_s1 + $0xd8] sm:$0xff]  ;;  %v12022_v9 = vld [vmem:[%s24067_s1 + $0xd0] sm:$0xff]  ;;  %v17517_v10 = vand.u32 4294901760, %v12024_v7  ;;  %v12021_v13 = vld [vmem:[%s24067_s1 + $0xc8] sm:$0xff] }
   0x4   :  { %v17519_v11 = vand.u32 4294901760, %v12023_v8  ;;  %v17521_v12 = vand.u32 4294901760, %v12022_v9  ;;  %v12020_v14 = vld [vmem:[%s24067_s1 + $0xc0] sm:$0xff]  ;;  %14029 = vmatprep.subr.mxu0 %v17502_v4  ;;  %v17531_v15 = vsub.f32 %v12027_v0, %v17502_v4  ;;  %v17534_v16 = vsub.f32 %v12026_v1, %v17504_v5  ;;  %v12019_v19 = vld [vmem:[%s24067_s1 + $0xb8] sm:$0xff]  ;;  %v12018_v26 = vld [vmem:[%s24067_s1 + $0xb0] sm:$0xff] }
   0x5   :  { %v17536_v17 = vand.u32 4294901760, %v12021_v13  ;;  %v17539_v18 = vsub.f32 %v12025_v2, %v17506_v6  ;;  %14030 = vmatpush3.msra.mxu0 %v17502_v4  ;;  %v17546_v20 = vsub.f32 %v12024_v7, %v17517_v10  ;;  %v17561_v25 = vand.u32 4294901760, %v12020_v14  ;;  %v17569_v27 = vld [vmem:[%s24068_s0] sm:$0xff]  ;;  %v17587_v32 = vld [vmem:[%s24068_s0 + $0x8] sm:$0xff]  ;;  %v17592_v33 = vld [vmem:[%s24068_s0 + $0x10] sm:$0xff] }
   0x6   :  { %v17549_v21 = vsub.f32 %v12023_v8, %v17519_v11  ;;  %14031 = vmatprep.subr.mxu0 %v17504_v5  ;;  %v17553_v22 = vand.u32 4294901760, %v17531_v15  ;;  %v17556_v23 = vand.u32 4294901760, %v17534_v16  ;;  %v17575_v29 = vand.u32 4294901760, %v12019_v19  ;;  %28 = vst [vmem:[#allocation2 + $0x8] sm:$0xff] %v17569_v27  ;;  %v17597_v34 = vld [vmem:[%s24068_s0 + $0x18] sm:$0xff]  ;;  %29 = vst [vmem:[#allocation2 + $0x10] sm:$0xff] %v17587_v32 }
   0x7   :  { %v17559_v24 = vand.u32 4294901760, %v17539_v18  ;;  %14032 = vmatpush3.msra.mxu0 %v17504_v5  ;;  %v17573_v28 = vand.u32 4294901760, %v17546_v20  ;;  %v17581_v31 = vsub.f32 %v12022_v9, %v17521_v12  ;;  %v17607_v38 = vsub.f32 %v12021_v13, %v17536_v17  ;;  %30 = vst [vmem:[#allocation2 + $0x28] sm:$0xff] %v17592_v33  ;;  %31 = vst [vmem:[#allocation2 + $0x30] sm:$0xff] %v17597_v34  ;;  %v12017_v40 = vld [vmem:[%s24067_s1 + $0xa8] sm:$0xff]  ;;  %v12016_v45 = vld [vmem:[%s24067_s1 + $0xa0] sm:$0xff] }
   0x8   :  { %v17578_v30 = vand.u32 4294901760, %v17549_v21  ;;  %14033 = vmatprep.subr.mxu0 %v17506_v6  ;;  %v198_v35 = vsub.f32 %v17531_v15, %v17553_v22  ;;  %v205_v36 = vsub.f32 %v17534_v16, %v17556_v23  ;;  %v17613_v39 = vand.u32 4294901760, %v12018_v26  ;;  %v12015_v53 = vld [vmem:[%s24067_s1 + $0x98] sm:$0xff]  ;;  %v12014_v62 = vld [vmem:[%s24067_s1 + $0x90] sm:$0xff]  ;;  %v12013_v8 = vld [vmem:[%s24067_s1 + $0x88] sm:$0xff] }
   0x9   :  { %v212_v37 = vsub.f32 %v17539_v18, %v17559_v24  ;;  %14034 = vmatpush3.msra.mxu0 %v17506_v6  ;;  %v219_v43 = vsub.f32 %v17546_v20, %v17573_v28  ;;  %v17622_v44 = vand.u32 4294901760, %v17581_v31  ;;  %v17631_v47 = vand.u32 4294901760, %v17607_v38 }
   0xa   :  { %14035 = vmatprep.subr.mxu0 %v17517_v10  ;;  %v199_v41 = vand.u32 4294901760, %v198_v35  ;;  %v206_v42 = vand.u32 4294901760, %v205_v36  ;;  %v226_v46 = vsub.f32 %v17549_v21, %v17578_v30  ;;  %v17634_v48 = vsub.f32 %v12020_v14, %v17561_v25  ;;  %v12012_v35 = vld [vmem:[%s24067_s1 + $0x80] sm:$0xff] }
   0xb   :  { %14036 = vmatpush3.msra.mxu0 %v17517_v10  ;;  %v213_v49 = vand.u32 4294901760, %v212_v37  ;;  %v17637_v50 = vand.u32 4294901760, %v12017_v40  ;;  %v17640_v51 = vsub.f32 %v12019_v19, %v17575_v29  ;;  %v17643_v52 = vand.u32 4294901760, %v12016_v45 }
   0xc   :  { %14037 = vmatprep.subr.mxu0 %v17519_v11  ;;  %14067 = vmatprep.subr.mxu1 %v199_v41  ;;  %v220_v54 = vand.u32 4294901760, %v219_v43  ;;  %v233_v55 = vsub.f32 %v17581_v31, %v17622_v44  ;;  %v17652_v56 = vand.u32 4294901760, %v17634_v48  ;;  %v17655_v57 = vsub.f32 %v12018_v26, %v17613_v39 }
   0xd   :  { %14038 = vmatpush3.msra.mxu0 %v17519_v11  ;;  %14068 = vmatpush3.msra.mxu1 %v199_v41  ;;  %v227_v58 = vand.u32 4294901760, %v226_v46  ;;  %v240_v59 = vsub.f32 %v17607_v38, %v17631_v47  ;;  %v17661_v60 = vand.u32 4294901760, %v12015_v53  ;;  %v17664_v61 = vand.u32 4294901760, %v17640_v51 }
   0xe   :  { %14039 = vmatprep.subr.mxu0 %v17521_v12  ;;  %14069 = vmatprep.subr.mxu1 %v206_v42  ;;  %v17670_v63 = vsub.f32 %v12017_v40, %v17637_v50  ;;  %v17673_v0 = vand.u32 4294901760, %v17569_v27  ;;  %v17677_v1 = vand.u32 4294901760, %v17587_v32  ;;  %v234_v2 = vand.u32 4294901760, %v233_v55 }
   0xf   :  { %14040 = vmatpush3.msra.mxu0 %v17521_v12  ;;  %14070 = vmatpush3.msra.mxu1 %v206_v42  ;;  %v247_v3 = vsub.f32 %v17634_v48, %v17652_v56  ;;  %v17683_v7 = vand.u32 4294901760, %v17655_v57  ;;  %v17689_v9 = vsub.f32 %v12016_v45, %v17643_v52  ;;  %v241_v13 = vand.u32 4294901760, %v240_v59 }
  0x10   :  { %14041 = vmatprep.subr.mxu0 %v17536_v17  ;;  %14071 = vmatprep.subr.mxu1 %v213_v49  ;;  %v17692_v14 = vand.u32 4294901760, %v12014_v62  ;;  %v254_v19 = vsub.f32 %v17640_v51, %v17664_v61  ;;  %v17698_v26 = vand.u32 4294901760, %v17670_v63  ;;  %v17705_v36 = vsub.f32 %v17569_v27, %v17673_v0 }
  0x11   :  { %14042 = vmatpush3.msra.mxu0 %v17536_v17  ;;  %14072 = vmatpush3.msra.mxu1 %v213_v49  ;;  %v17708_v37 = vsub.f32 %v12015_v53, %v17661_v60  ;;  %v17711_v40 = vand.u32 4294901760, %v12013_v8  ;;  %v17715_v41 = vsub.f32 %v17587_v32, %v17677_v1  ;;  %v248_v42 = vand.u32 4294901760, %v247_v3 }
  0x12   :  { %14043 = vmatprep.subr.mxu0 %v17561_v25  ;;  %14073 = vmatprep.subr.mxu1 %v220_v54  ;;  %v261_v27 = vsub.f32 %v17655_v57, %v17683_v7  ;;  %v17721_v43 = vand.u32 4294901760, %v17689_v9  ;;  %v17724_v45 = vand.u32 4294901760, %v12012_v35  ;;  %v17727_v46 = vsub.f32 %v12014_v62, %v17692_v14 }
  0x13   :  { %14044 = vmatpush3.msra.mxu0 %v17561_v25  ;;  %14074 = vmatpush3.msra.mxu1 %v220_v54  ;;  %v255_v32 = vand.u32 4294901760, %v254_v19  ;;  %v268_v49 = vsub.f32 %v17670_v63, %v17698_v26  ;;  %v24073_v53 = vand.u32 4294901760, %v17705_v36  ;;  %v17734_v54 = vand.u32 4294901760, %v17708_v37 }
  0x14   :  { %14045 = vmatprep.subr.mxu0 %v17575_v29  ;;  %14075 = vmatprep.subr.mxu1 %v227_v58  ;;  %v24074_v55 = vand.u32 4294901760, %v17715_v41  ;;  %v262_v59 = vand.u32 4294901760, %v261_v27  ;;  %v275_v62 = vsub.f32 %v17689_v9, %v17721_v43  ;;  %v17749_v3 = vsub.f32 %v12012_v35, %v17724_v45 }
  0x15   :  { %14046 = vmatpush3.msra.mxu0 %v17575_v29  ;;  %14076 = vmatpush3.msra.mxu1 %v227_v58  ;;  %24584 = vst [vmem:[#allocation3_spill] sm:$0xff] %v17734_v54  ;;  %v17739_v58 = vsub.f32 %v12013_v8, %v17711_v40  ;;  %v269_v8 = vand.u32 4294901760, %v268_v49  ;;  %v282_v19 = vsub.f32 %v17708_v37, %v17734_v54 }
  0x16   :  { %14047 = vmatprep.subr.mxu0 %v17613_v39  ;;  %14077 = vmatprep.subr.mxu1 %v234_v2  ;;  %v276_v27 = vand.u32 4294901760, %v275_v62 }
  0x17   :  { %14048 = vmatpush3.msra.mxu0 %v17613_v39  ;;  %14078 = vmatpush3.msra.mxu1 %v234_v2  ;;  %v17746_v2 = vand.u32 4294901760, %v17727_v46  ;;  %v17762_v35 = vand.u32 4294901760, %v17739_v58 }
  0x18   :  { %14049 = vmatprep.subr.mxu0 %v17637_v50  ;;  %14079 = vmatprep.subr.mxu1 %v241_v13 }
  0x19   :  { %14050 = vmatpush3.msra.mxu0 %v17637_v50  ;;  %14080 = vmatpush3.msra.mxu1 %v241_v13  ;;  %24585 = vst [vmem:[#allocation4_spill] sm:$0xff] %v17746_v2  ;;  %v157_v13 = vsub.f32 %v17705_v36, %v24073_v53  ;;  %v289_v49 = vsub.f32 %v17727_v46, %v17746_v2  ;;  %v17769_v53 = vand.u32 4294901760, %v17749_v3 }
  0x1a   :  { %14051 = vmatprep.subr.mxu0 %v17643_v52  ;;  %14081 = vmatprep.subr.mxu1 %v248_v42  ;;  %v296_v62 = vsub.f32 %v17739_v58, %v17762_v35 }
  0x1b   :  { %14052 = vmatpush3.msra.mxu0 %v17643_v52  ;;  %14082 = vmatpush3.msra.mxu1 %v248_v42  ;;  %v167_v42 = vsub.f32 %v17715_v41, %v24074_v55  ;;  %v283_v55 = vand.u32 4294901760, %v282_v19  ;;  %v303_v2 = vsub.f32 %v17749_v3, %v17769_v53 }
  0x1c   :  { %14053 = vmatprep.subr.mxu0 %v17661_v60  ;;  %14083 = vmatprep.subr.mxu1 %v255_v32 }
  0x1d   :  { %14054 = vmatpush3.msra.mxu0 %v17661_v60  ;;  %14084 = vmatpush3.msra.mxu1 %v255_v32  ;;  %v158_v32 = vand.u32 4294901760, %v157_v13  ;;  %v168_v54 = vand.u32 4294901760, %v167_v42  ;;  %v304_v13 = vand.u32 4294901760, %v303_v2 }
  0x1e   :  { %14055 = vmatprep.subr.mxu0 %v17692_v14  ;;  %14085 = vmatprep.subr.mxu1 %v262_v59 }
  0x1f   :  { %14056 = vmatpush3.msra.mxu0 %v17692_v14  ;;  %14086 = vmatpush3.msra.mxu1 %v262_v59  ;;  %v290_v59 = vand.u32 4294901760, %v289_v49 }
  0x20   :  { %14057 = vmatprep.subr.mxu0 %v17711_v40  ;;  %14087 = vmatprep.subr.mxu1 %v269_v8 }
  0x21   :  { %14058 = vmatpush3.msra.mxu0 %v17711_v40  ;;  %14088 = vmatpush3.msra.mxu1 %v269_v8  ;;  %v297_v8 = vand.u32 4294901760, %v296_v62 }
  0x22   :  { %14059 = vmatprep.subr.mxu0 %v17724_v45  ;;  %14089 = vmatprep.subr.mxu1 %v276_v27 }
  0x23   :  { %14060 = vmatpush3.msra.mxu0 %v17724_v45  ;;  %14090 = vmatpush3.msra.mxu1 %v276_v27 }
  0x24   :  { %14061 = vmatprep.mubr.f32.mxu0 %v158_v32  ;;  %14091 = vmatprep.subr.mxu1 %v283_v55 }
  0x25   :  { %14105 = vmatprep.subr.mxu0 %v17531_v15  ;;  %14062 = vmatmul.mubr.f32.vlgmr.msra.gmra.mxu0 %v168_v54 }
  0x26   :  { %14092 = vmatpush3.msra.mxu1 %v283_v55  ;;  %14106 = vmatpush3.msra.mxu0 %v17531_v15  ;;  %v17790_v15 = vand.u32 4294901760, %v17592_v33 }
  0x27   :  { %14093 = vmatprep.subr.mxu1 %v290_v59  ;;  %14107 = vmatprep.subr.mxu0 %v17534_v16 }
  0x28   :  { %14094 = vmatpush3.msra.mxu1 %v290_v59  ;;  %14108 = vmatpush3.msra.mxu0 %v17534_v16  ;;  %v17795_v16 = vand.u32 4294901760, %v17597_v34  ;;  %v32_v59 = vld [vmem:[#allocation2 + $0x6] sm:$0xff] }
  0x29   :  { %14095 = vmatprep.subr.mxu1 %v297_v8  ;;  %14109 = vmatprep.subr.mxu0 %v17539_v18 }
  0x2a   :  { %14096 = vmatpush3.msra.mxu1 %v297_v8  ;;  %14110 = vmatpush3.msra.mxu0 %v17539_v18  ;;  %v17805_v18 = vsub.f32 %v17592_v33, %v17790_v15 }
  0x2b   :  { %14097 = vmatprep.subr.mxu1 %v304_v13  ;;  %14111 = vmatprep.subr.mxu0 %v17546_v20 }
  0x2c   :  { %14098 = vmatpush3.msra.mxu1 %v304_v13  ;;  %14099 = vmatprep.mubr.f32.mxu1 %v17673_v0  ;;  %v33_v13 = vld [vmem:[#allocation2 + $0xe] sm:$0xff] }
  0x2d   :  { %14112 = vmatpush3.msra.mxu0 %v17546_v20  ;;  %14100 = vmatmul.mubr.f32.vlgmr.msra.gmra.mxu1 %v17677_v1  ;;  %v17811_v20 = vsub.f32 %v17597_v34, %v17795_v16 }
  0x2e   :  { %14113 = vmatprep.subr.mxu0 %v17549_v21  ;;  %14143 = vmatprep.subr.mxu1 %v17502_v4 }
  0x2f   :  { %14114 = vmatpush3.msra.mxu0 %v17549_v21  ;;  %14144 = vmatpush3.msra.mxu1 %v17502_v4  ;;  %v176_v21 = vand.u32 4294901760, %v17805_v18 }
  0x30   :  { %14115 = vmatprep.subr.mxu0 %v17581_v31  ;;  %14145 = vmatprep.subr.mxu1 %v17504_v5 }
  0x31   :  { %14116 = vmatpush3.msra.mxu0 %v17581_v31  ;;  %14146 = vmatpush3.msra.mxu1 %v17504_v5  ;;  %v186_v31 = vand.u32 4294901760, %v17811_v20  ;;  %v177_v33 = vsub.f32 %v17805_v18, %v176_v21 }
  0x32   :  { %14117 = vmatprep.subr.mxu0 %v17607_v38  ;;  %14147 = vmatprep.subr.mxu1 %v17506_v6 }
  0x33   :  { %14118 = vmatpush3.msra.mxu0 %v17607_v38  ;;  %14148 = vmatpush3.msra.mxu1 %v17506_v6  ;;  %v187_v34 = vsub.f32 %v17811_v20, %v186_v31  ;;  %v178_v38 = vand.u32 4294901760, %v177_v33 }
  0x34   :  { %14119 = vmatprep.subr.mxu0 %v17634_v48  ;;  %14149 = vmatprep.subr.mxu1 %v17517_v10 }
  0x35   :  { %14120 = vmatpush3.msra.mxu0 %v17634_v48  ;;  %14150 = vmatpush3.msra.mxu1 %v17517_v10  ;;  %v188_v48 = vand.u32 4294901760, %v187_v34  ;;  %v18096_v34 = vand.u32 4294901760, %v32_v59 }
  0x36   :  { %14121 = vmatprep.subr.mxu0 %v17640_v51  ;;  %14151 = vmatprep.subr.mxu1 %v17519_v11 }
  0x37   :  { %14122 = vmatpush3.msra.mxu0 %v17640_v51  ;;  %14152 = vmatpush3.msra.mxu1 %v17519_v11  ;;  %v45_v51 = vld [vmem:[%s24067_s1 + $0x48] sm:$0xff] }
  0x38   :  { %14123 = vmatprep.subr.mxu0 %v17655_v57  ;;  %14153 = vmatprep.subr.mxu1 %v17521_v12 }
  0x39   :  { %14124 = vmatpush3.msra.mxu0 %v17655_v57  ;;  %14154 = vmatpush3.msra.mxu1 %v17521_v12 }
  0x3a   :  { %14125 = vmatprep.subr.mxu0 %v17670_v63  ;;  %14155 = vmatprep.subr.mxu1 %v17536_v17 }
  0x3b   :  { %14126 = vmatpush3.msra.mxu0 %v17670_v63  ;;  %14156 = vmatpush3.msra.mxu1 %v17536_v17 }
  0x3c   :  { %14127 = vmatprep.subr.mxu0 %v17689_v9  ;;  %14157 = vmatprep.subr.mxu1 %v17561_v25 }
  0x3d   :  { %14128 = vmatpush3.msra.mxu0 %v17689_v9  ;;  %14158 = vmatpush3.msra.mxu1 %v17561_v25 }
  0x3e   :  { %14129 = vmatprep.subr.mxu0 %v17708_v37  ;;  %14159 = vmatprep.subr.mxu1 %v17575_v29 }
  0x3f   :  { %14130 = vmatpush3.msra.mxu0 %v17708_v37  ;;  %14160 = vmatpush3.msra.mxu1 %v17575_v29  ;;  %v43_v37 = vld [vmem:[%s24067_s1 + $0x38] sm:$0xff] }
  0x40   :  { %14131 = vmatprep.subr.mxu0 %v17727_v46  ;;  %14161 = vmatprep.subr.mxu1 %v17613_v39 }
  0x41   :  { %14064 = vmatprep.mubr.f32.mxu0 %v178_v38  ;;  %14132 = vmatpush3.msra.mxu0 %v17727_v46 }
  0x42   :  { %14162 = vmatpush3.msra.mxu1 %v17613_v39  ;;  %14065 = vmatmul.mubr.f32.gmra.mxu0 %v188_v48 }
  0x43   :  { %14133 = vmatprep.subr.mxu0 %v17739_v58  ;;  %14163 = vmatprep.subr.mxu1 %v17637_v50 }
  0x44   :  { %14134 = vmatpush3.msra.mxu0 %v17739_v58  ;;  %14164 = vmatpush3.msra.mxu1 %v17637_v50  ;;  %v18040_v58 = vand.u32 4294901760, %v43_v37 }
  0x45   :  { %14135 = vmatprep.subr.mxu0 %v17749_v3  ;;  %14165 = vmatprep.subr.mxu1 %v17643_v52 }
  0x46   :  { %14136 = vmatpush3.msra.mxu0 %v17749_v3  ;;  %14137 = vmatprep.mubr.f32.mxu0 %v17705_v36  ;;  %v41_v3 = vld [vmem:[%s24067_s1 + $0x28] sm:$0xff]  ;;  %v18075_v62 = vsub.f32 %v43_v37, %v18040_v58 }
  0x47   :  { %14166 = vmatpush3.msra.mxu1 %v17643_v52  ;;  %14102 = vmatprep.mubr.f32.mxu1 %v17790_v15  ;;  %v18072_v32 = vand.u32 4294901760, %v41_v3 }
  0x48   :  { %14138 = vmatmul.mubr.f32.vlgmr.msra.gmra.mxu0 %v17715_v41  ;;  %14167 = vmatprep.subr.mxu1 %v17661_v60  ;;  %v18100_v48 = vand.u32 4294901760, %v18075_v62 }
  0x49   :  { %14181 = vmatprep.subr.mxu0 %v17553_v22  ;;  %14103 = vmatmul.mubr.f32.gmra.mxu1 %v17795_v16 }
  0x4a   :  { %14168 = vmatpush3.msra.mxu1 %v17661_v60  ;;  %14182 = vmatpush3.msra.mxu0 %v17553_v22  ;;  %v24586_v22 = vand.u32 4294901760, %v17705_v36 }
  0x4b   :  { %14169 = vmatprep.subr.mxu1 %v17692_v14  ;;  %14183 = vmatprep.subr.mxu0 %v17556_v23 }
  0x4c   :  { %14140 = vmatprep.mubr.f32.mxu0 %v17805_v18  ;;  %14170 = vmatpush3.msra.mxu1 %v17692_v14 }
  0x4d   :  { %14184 = vmatpush3.msra.mxu0 %v17556_v23  ;;  %14171 = vmatprep.subr.mxu1 %v17711_v40  ;;  %v24587_v23 = vand.u32 4294901760, %v17715_v41 }
  0x4e   :  { %14141 = vmatmul.mubr.f32.gmra.mxu0 %v17811_v20  ;;  %14185 = vmatprep.subr.mxu0 %v17559_v24 }
  0x4f   :  { %14172 = vmatpush3.msra.mxu1 %v17711_v40  ;;  %14186 = vmatpush3.msra.mxu0 %v17559_v24  ;;  %v48_v24 = vld [vmem:[%s24067_s1 + $0x60] sm:$0xff] }
  0x50   :  { %14173 = vmatprep.subr.mxu1 %v17724_v45  ;;  %14187 = vmatprep.subr.mxu0 %v17573_v28 }
  0x51   :  { %14174 = vmatpush3.msra.mxu1 %v17724_v45  ;;  %14175 = vmatprep.mubr.f32.mxu1 %v24586_v22  ;;  %v38_v22 = vld [vmem:[%s24067_s1 + $0x10] sm:$0xff] }
  0x52   :  { %14188 = vmatpush3.msra.mxu0 %v17573_v28  ;;  %14176 = vmatmul.mubr.f32.vlgmr.msra.gmra.mxu1 %v24587_v23  ;;  %v18106_v23 = vsub.f32 %v41_v3, %v18072_v32 }
  0x53   :  { %14189 = vmatprep.subr.mxu0 %v17578_v30  ;;  %14219 = vmatprep.subr.mxu1 %v17502_v4 }
  0x54   :  { %14190 = vmatpush3.msra.mxu0 %v17578_v30  ;;  %14220 = vmatpush3.msra.mxu1 %v17502_v4  ;;  %v51_v4 = vld [vmem:[%s24067_s1 + $0x78] sm:$0xff]  ;;  %v18135_v37 = vand.u32 4294901760, %v18106_v23 }
  0x55   :  { %14191 = vmatprep.subr.mxu0 %v17622_v44  ;;  %14221 = vmatprep.subr.mxu1 %v17504_v5 }
  0x56   :  { %14178 = vmatprep.mubr.f32.mxu1 %v176_v21  ;;  %14192 = vmatpush3.msra.mxu0 %v17622_v44  ;;  %24592 = vst [vmem:[#allocation5_spill] sm:$0xff] %v18135_v37 }
  0x57   :  { %14222 = vmatpush3.msra.mxu1 %v17504_v5  ;;  %14193 = vmatprep.subr.mxu0 %v17631_v47  ;;  %v50_v5 = vld [vmem:[%s24067_s1 + $0x70] sm:$0xff] }
  0x58   :  { %14179 = vmatmul.mubr.f32.gmra.mxu1 %v186_v31  ;;  %14223 = vmatprep.subr.mxu1 %v17506_v6  ;;  %v39_v31 = vld [vmem:[%s24067_s1 + $0x18] sm:$0xff] }
  0x59   :  { %14194 = vmatpush3.msra.mxu0 %v17631_v47  ;;  %14224 = vmatpush3.msra.mxu1 %v17506_v6  ;;  %v17927_v6 = vand.u32 4294901760, %v51_v4  ;;  %v46_v47 = vld [vmem:[%s24067_s1 + $0x50] sm:$0xff] }
  0x5a   :  { %14195 = vmatprep.subr.mxu0 %v17652_v56  ;;  %14225 = vmatprep.subr.mxu1 %v17517_v10 }
  0x5b   :  { %14196 = vmatpush3.msra.mxu0 %v17652_v56  ;;  %14226 = vmatpush3.msra.mxu1 %v17517_v10  ;;  %v24588_v10 = vld [vmem:[#allocation3_spill] sm:$0xff] }
  0x5c   :  { %14197 = vmatprep.subr.mxu0 %v17664_v61  ;;  %14227 = vmatprep.subr.mxu1 %v17519_v11  ;;  %24590 = vst [vmem:[#allocation3_spill] sm:$0xff] %v18100_v48 }
  0x5d   :  { %14198 = vmatpush3.msra.mxu0 %v17664_v61  ;;  %14228 = vmatpush3.msra.mxu1 %v17519_v11  ;;  %v17933_v11 = vand.u32 4294901760, %v50_v5 }
  0x5e   :  { %14199 = vmatprep.subr.mxu0 %v17683_v7  ;;  %14229 = vmatprep.subr.mxu1 %v17521_v12 }
  0x5f   :  { %14200 = vmatpush3.msra.mxu0 %v17683_v7  ;;  %14230 = vmatpush3.msra.mxu1 %v17521_v12  ;;  %v49_v12 = vld [vmem:[%s24067_s1 + $0x68] sm:$0xff]  ;;  %v17958_v30 = vsub.f32 %v50_v5, %v17933_v11  ;;  %v17998_v7 = vand.u32 4294901760, %v45_v51  ;;  %v18111_v5 = vand.u32 4294901760, %v39_v31 }
  0x60   :  { %14201 = vmatprep.subr.mxu0 %v17698_v26  ;;  %14231 = vmatprep.subr.mxu1 %v17536_v17  ;;  %v17950_v28 = vand.u32 4294901760, %v49_v12 }
  0x61   :  { %14202 = vmatpush3.msra.mxu0 %v17698_v26  ;;  %14232 = vmatpush3.msra.mxu1 %v17536_v17  ;;  %v24589_v17 = vld [vmem:[#allocation4_spill] sm:$0xff]  ;;  %v17985_v57 = vand.u32 4294901760, %v17958_v30  ;;  %v18034_v54 = vsub.f32 %v45_v51, %v17998_v7  ;;  %v18126_v51 = vand.u32 4294901760, %v38_v22  ;;  %v18149_v3 = vsub.f32 %v39_v31, %v18111_v5 }
  0x62   :  { %14203 = vmatprep.subr.mxu0 %v17721_v43  ;;  %14233 = vmatprep.subr.mxu1 %v17561_v25  ;;  %v17980_v56 = vsub.f32 %v49_v12, %v17950_v28  ;;  %v1038_v31 = vsub.f32 %v18106_v23, %v18135_v37 }
  0x63   :  { %14204 = vmatpush3.msra.mxu0 %v17721_v43  ;;  %14234 = vmatpush3.msra.mxu1 %v17561_v25  ;;  %v17946_v25 = vsub.f32 %v51_v4, %v17927_v6  ;;  %v975_v36 = vsub.f32 %v17958_v30, %v17985_v57  ;;  %v18108_v4 = vand.u32 4294901760, %v33_v13 }
  0x64   :  { %14205 = vmatprep.subr.mxu0 %v24588_v10  ;;  %14235 = vmatprep.subr.mxu1 %v17575_v29  ;;  %v18006_v9 = vand.u32 4294901760, %v17980_v56 }
  0x65   :  { %14206 = vmatpush3.msra.mxu0 %v24588_v10  ;;  %14236 = vmatpush3.msra.mxu1 %v17575_v29  ;;  %v47_v29 = vld [vmem:[%s24067_s1 + $0x58] sm:$0xff]  ;;  %v17967_v44 = vand.u32 4294901760, %v17946_v25  ;;  %v976_v2 = vand.u32 4294901760, %v975_v36  ;;  %v1024_v36 = vsub.f32 %v18075_v62, %v18100_v48 }
  0x66   :  { %14207 = vmatprep.subr.mxu0 %v24589_v17  ;;  %14237 = vmatprep.subr.mxu1 %v17613_v39  ;;  %v982_v55 = vsub.f32 %v17980_v56, %v18006_v9 }
  0x67   :  { %14208 = vmatpush3.msra.mxu0 %v24589_v17  ;;  %14238 = vmatpush3.msra.mxu1 %v17613_v39  ;;  %v17962_v39 = vand.u32 4294901760, %v48_v24  ;;  %v968_v63 = vsub.f32 %v17946_v25, %v17967_v44 }
  0x68   :  { %14209 = vmatprep.subr.mxu0 %v17762_v35  ;;  %14239 = vmatprep.subr.mxu1 %v17637_v50  ;;  %v983_v27 = vand.u32 4294901760, %v982_v55 }
  0x69   :  { %14210 = vmatpush3.msra.mxu0 %v17762_v35  ;;  %14240 = vmatpush3.msra.mxu1 %v17637_v50  ;;  %v17974_v50 = vand.u32 4294901760, %v47_v29  ;;  %v17992_v61 = vsub.f32 %v48_v24, %v17962_v39  ;;  %v969_v46 = vand.u32 4294901760, %v968_v63  ;;  %v37_v24 = vld [vmem:[%s24067_s1 + $0x8] sm:$0xff]  ;;  %v18129_v63 = vsub.f32 %v32_v59, %v18096_v34 }
  0x6a   :  { %14211 = vmatprep.subr.mxu0 %v17769_v53  ;;  %14241 = vmatprep.subr.mxu1 %v17643_v52 }
  0x6b   :  { %14212 = vmatpush3.msra.mxu0 %v17769_v53  ;;  %14213 = vmatprep.mubr.f32.mxu0 %v17673_v0  ;;  %v18009_v26 = vsub.f32 %v47_v29, %v17974_v50  ;;  %v18023_v41 = vand.u32 4294901760, %v17992_v61  ;;  %v42_v53 = vld [vmem:[%s24067_s1 + $0x30] sm:$0xff] }
  0x6c   :  { %14242 = vmatpush3.msra.mxu1 %v17643_v52  ;;  %14214 = vmatmul.mubr.f32.vlgmr.msra.gmra.mxu0 %v17677_v1  ;;  %v17989_v52 = vand.u32 4294901760, %v46_v47  ;;  %v18054_v42 = vand.u32 4294901760, %v42_v53 }
  0x6d   :  { %14243 = vmatprep.subr.mxu1 %v17661_v60  ;;  %14257 = vmatprep.subr.mxu0 %v17927_v6  ;;  %v989_v19 = vsub.f32 %v17992_v61, %v18023_v41 }
  0x6e   :  { %14244 = vmatpush3.msra.mxu1 %v17661_v60  ;;  %14258 = vmatpush3.msra.mxu0 %v17927_v6  ;;  %v44_v60 = vld [vmem:[%s24067_s1 + $0x40] sm:$0xff]  ;;  %v18026_v43 = vsub.f32 %v46_v47, %v17989_v52  ;;  %v18091_v33 = vsub.f32 %v42_v53, %v18054_v42  ;;  %v18141_v53 = vsub.f32 %v33_v13, %v18108_v4  ;;  %v24083_v13 = vand.u32 4294901760, %v18129_v63 }
  0x6f   :  { %14245 = vmatprep.subr.mxu1 %v17692_v14  ;;  %14259 = vmatprep.subr.mxu0 %v17933_v11  ;;  %v990_v18 = vand.u32 4294901760, %v989_v19 }
  0x70   :  { %14216 = vmatprep.mubr.f32.mxu0 %v17790_v15  ;;  %14246 = vmatpush3.msra.mxu1 %v17692_v14  ;;  %v18020_v14 = vand.u32 4294901760, %v44_v60  ;;  %v18057_v35 = vand.u32 4294901760, %v18026_v43  ;;  %v18117_v17 = vand.u32 4294901760, %v18091_v33 }
  0x71   :  { %14260 = vmatpush3.msra.mxu0 %v17933_v11  ;;  %14247 = vmatprep.subr.mxu1 %v17711_v40 }
  0x72   :  { %14217 = vmatmul.mubr.f32.gmra.mxu0 %v17795_v16  ;;  %14261 = vmatprep.subr.mxu0 %v17950_v28  ;;  %v1003_v20 = vsub.f32 %v18026_v43, %v18057_v35  ;;  %24591 = vst [vmem:[#allocation4_spill] sm:$0xff] %v18117_v17 }
  0x73   :  { %14248 = vmatpush3.msra.mxu1 %v17711_v40  ;;  %14262 = vmatpush3.msra.mxu0 %v17950_v28  ;;  %v18043_v40 = vand.u32 4294901760, %v18009_v26 }
  0x74   :  { %14249 = vmatprep.subr.mxu1 %v17724_v45  ;;  %14263 = vmatprep.subr.mxu0 %v17962_v39  ;;  %v1004_v10 = vand.u32 4294901760, %v1003_v20  ;;  %v1025_v20 = vand.u32 4294901760, %v1024_v36 }
  0x75   :  { %14250 = vmatpush3.msra.mxu1 %v17724_v45  ;;  %14251 = vmatprep.mubr.f32.mxu1 %v17673_v0  ;;  %v40_v0 = vld [vmem:[%s24067_s1 + $0x20] sm:$0xff]  ;;  %v18063_v45 = vsub.f32 %v44_v60, %v18020_v14  ;;  %v996_v49 = vsub.f32 %v18009_v26, %v18043_v40  ;;  %v35_v60 = vld [vmem:[#allocation2 + $0x2e] sm:$0xff] }
  0x76   :  { %14264 = vmatpush3.msra.mxu0 %v17962_v39  ;;  %14252 = vmatmul.mubr.f32.vlgmr.msra.gmra.mxu1 %v17677_v1  ;;  %v18067_v1 = vand.u32 4294901760, %v18034_v54  ;;  %v18078_v8 = vand.u32 4294901760, %v40_v0 }
  0x77   :  { %14265 = vmatprep.subr.mxu0 %v17974_v50  ;;  %14295 = vmatprep.subr.mxu1 %v969_v46  ;;  %v18085_v21 = vand.u32 4294901760, %v18063_v45  ;;  %v997_v38 = vand.u32 4294901760, %v996_v49  ;;  %v18157_v49 = vand.u32 4294901760, %v35_v60 }
  0x78   :  { %14266 = vmatpush3.msra.mxu0 %v17974_v50  ;;  %14296 = vmatpush3.msra.mxu1 %v969_v46  ;;  %v18123_v29 = vsub.f32 %v40_v0, %v18078_v8  ;;  %v36_v46 = vld [vmem:[%s24067_s1] sm:$0xff]  ;;  %v1031_v0 = vsub.f32 %v18091_v33, %v18117_v17 }
  0x79   :  { %14267 = vmatprep.subr.mxu0 %v17989_v52  ;;  %14297 = vmatprep.subr.mxu1 %v976_v2  ;;  %v1017_v12 = vsub.f32 %v18063_v45, %v18085_v21  ;;  %v18160_v59 = vand.u32 4294901760, %v36_v46 }
  0x7a   :  { %14254 = vmatprep.mubr.f32.mxu1 %v17790_v15  ;;  %14268 = vmatpush3.msra.mxu0 %v17989_v52  ;;  %v1010_v15 = vsub.f32 %v18034_v54, %v18067_v1 }
  0x7b   :  { %14298 = vmatpush3.msra.mxu1 %v976_v2  ;;  %14269 = vmatprep.subr.mxu0 %v17998_v7  ;;  %v18146_v2 = vand.u32 4294901760, %v37_v24  ;;  %v1018_v19 = vand.u32 4294901760, %v1017_v12  ;;  %v1032_v12 = vand.u32 4294901760, %v1031_v0  ;;  %v24595_v0 = vand.u32 4294901760, %v18141_v53 }
  0x7c   :  { %14255 = vmatmul.mubr.f32.gmra.mxu1 %v17795_v16  ;;  %14299 = vmatprep.subr.mxu1 %v983_v27  ;;  %v34_v16 = vld [vmem:[#allocation2 + $0x26] sm:$0xff]  ;;  %v1011_v47 = vand.u32 4294901760, %v1010_v15  ;;  %v18184_v15 = vsub.f32 %v35_v60, %v18157_v49  ;;  %v18199_v37 = vsub.f32 %v36_v46, %v18160_v59 }
  0x7d   :  { %14270 = vmatpush3.msra.mxu0 %v17998_v7  ;;  %14300 = vmatpush3.msra.mxu1 %v983_v27  ;;  %v18143_v55 = vand.u32 4294901760, %v34_v16  ;;  %v18155_v27 = vand.u32 4294901760, %v18123_v29 }
  0x7e   :  { %14271 = vmatprep.subr.mxu0 %v18020_v14  ;;  %14301 = vmatprep.subr.mxu1 %v990_v18  ;;  %v18217_v48 = vand.u32 4294901760, %v18199_v37 }
  0x7f   :  { %14272 = vmatpush3.msra.mxu0 %v18020_v14  ;;  %14302 = vmatpush3.msra.mxu1 %v990_v18  ;;  %24593 = vst [vmem:[#allocation6_spill] sm:$0xff] %v18155_v27  ;;  %v18164_v18 = vsub.f32 %v38_v22, %v18126_v51  ;;  %v18178_v22 = vsub.f32 %v37_v24, %v18146_v2 }
  0x80   :  { %14273 = vmatprep.subr.mxu0 %v18040_v58  ;;  %14303 = vmatprep.subr.mxu1 %v997_v38  ;;  %v1045_v36 = vsub.f32 %v18123_v29, %v18155_v27  ;;  %v937_v27 = vsub.f32 %v18141_v53, %v24595_v0  ;;  %v956_v0 = vand.u32 4294901760, %v18184_v15 }
  0x81   :  { %14274 = vmatpush3.msra.mxu0 %v18040_v58  ;;  %14304 = vmatpush3.msra.mxu1 %v997_v38  ;;  %v18171_v38 = vsub.f32 %v34_v16, %v18143_v55  ;;  %v927_v16 = vsub.f32 %v18129_v63, %v24083_v13  ;;  %v18191_v24 = vand.u32 4294901760, %v18164_v18  ;;  %v18205_v13 = vand.u32 4294901760, %v18178_v22 }
  0x82   :  { %14275 = vmatprep.subr.mxu0 %v18054_v42  ;;  %14305 = vmatprep.subr.mxu1 %v1004_v10 }
  0x83   :  { %14276 = vmatpush3.msra.mxu0 %v18054_v42  ;;  %14306 = vmatpush3.msra.mxu1 %v1004_v10  ;;  %v18175_v10 = vand.u32 4294901760, %v18149_v3  ;;  %24596 = vst [vmem:[#allocation8_spill] sm:$0xff] %v18205_v13  ;;  %v928_v46 = vand.u32 4294901760, %v927_v16  ;;  %v1059_v60 = vsub.f32 %v18164_v18, %v18191_v24 }
  0x84   :  { %14277 = vmatprep.subr.mxu0 %v18072_v32  ;;  %14307 = vmatprep.subr.mxu1 %v1011_v47 }
  0x85   :  { %14278 = vmatpush3.msra.mxu0 %v18072_v32  ;;  %14308 = vmatpush3.msra.mxu1 %v1011_v47  ;;  %24594 = vst [vmem:[#allocation7_spill] sm:$0xff] %v18175_v10  ;;  %v1039_v47 = vand.u32 4294901760, %v1038_v31  ;;  %v1046_v31 = vand.u32 4294901760, %v1045_v36 }
  0x86   :  { %14279 = vmatprep.subr.mxu0 %v18078_v8  ;;  %14309 = vmatprep.subr.mxu1 %v1018_v19 }
  0x87   :  { %14280 = vmatpush3.msra.mxu0 %v18078_v8  ;;  %14310 = vmatpush3.msra.mxu1 %v1018_v19  ;;  %v1052_v19 = vsub.f32 %v18149_v3, %v18175_v10  ;;  %v24597_v10 = vand.u32 4294901760, %v18171_v38 }
  0x88   :  { %14281 = vmatprep.subr.mxu0 %v18111_v5  ;;  %14311 = vmatprep.subr.mxu1 %v1025_v20 }
  0x89   :  { %14282 = vmatpush3.msra.mxu0 %v18111_v5  ;;  %14312 = vmatpush3.msra.mxu1 %v1025_v20  ;;  %v938_v20 = vand.u32 4294901760, %v937_v27  ;;  %v947_v17 = vsub.f32 %v18171_v38, %v24597_v10  ;;  %v1053_v36 = vand.u32 4294901760, %v1052_v19  ;;  %v957_v27 = vsub.f32 %v18184_v15, %v956_v0 }
  0x8a   :  { %14283 = vmatprep.subr.mxu0 %v18126_v51  ;;  %14313 = vmatprep.subr.mxu1 %v1032_v12  ;;  %v1060_v10 = vand.u32 4294901760, %v1059_v60 }
  0x8b   :  { %14284 = vmatpush3.msra.mxu0 %v18126_v51  ;;  %14314 = vmatpush3.msra.mxu1 %v1032_v12  ;;  %v1066_v12 = vsub.f32 %v18178_v22, %v18205_v13  ;;  %v948_v16 = vand.u32 4294901760, %v947_v17  ;;  %v958_v13 = vand.u32 4294901760, %v957_v27 }
  0x8c   :  { %14285 = vmatprep.subr.mxu0 %v18146_v2  ;;  %14315 = vmatprep.subr.mxu1 %v1039_v47 }
  0x8d   :  { %14286 = vmatpush3.msra.mxu0 %v18146_v2  ;;  %14316 = vmatpush3.msra.mxu1 %v1039_v47  ;;  %v1073_v47 = vsub.f32 %v18199_v37, %v18217_v48  ;;  %v1067_v19 = vand.u32 4294901760, %v1066_v12 }
  0x8e   :  { %14287 = vmatprep.subr.mxu0 %v18160_v59  ;;  %14317 = vmatprep.subr.mxu1 %v1046_v31 }
  0x8f   :  { %14288 = vmatpush3.msra.mxu0 %v18160_v59  ;;  %14289 = vmatprep.mubr.f32.mxu0 %v928_v46  ;;  %v1074_v60 = vand.u32 4294901760, %v1073_v47 }
  0x90   :  { %14318 = vmatpush3.msra.mxu1 %v1046_v31  ;;  %14290 = vmatmul.mubr.f32.vlgmr.msra.gmra.mxu0 %v938_v20 }
  0x91   :  { %14319 = vmatprep.subr.mxu1 %v1053_v36  ;;  %14333 = vmatprep.subr.mxu0 %v17946_v25 }
  0x92   :  { %14320 = vmatpush3.msra.mxu1 %v1053_v36  ;;  %14334 = vmatpush3.msra.mxu0 %v17946_v25  ;;  %v24598_v25 = vand.u32 4294901760, %v18129_v63 }
  0x93   :  { %14321 = vmatprep.subr.mxu1 %v1060_v10  ;;  %14335 = vmatprep.subr.mxu0 %v17958_v30 }
  0x94   :  { %14292 = vmatprep.mubr.f32.mxu0 %v948_v16  ;;  %14322 = vmatpush3.msra.mxu1 %v1060_v10  ;;  %v12031_v10 = vld [vmem:[%s24067_s1 + $0x118] sm:$0xff]  ;;  %v1613_v16 = vld [vmem:[#allocation2 + $0xa] sm:$0xff] }
  0x95   :  { %14336 = vmatpush3.msra.mxu0 %v17958_v30  ;;  %14323 = vmatprep.subr.mxu1 %v1067_v19  ;;  %v24599_v30 = vand.u32 4294901760, %v18141_v53 }
  0x96   :  { %14293 = vmatmul.mubr.f32.gmra.mxu0 %v958_v13  ;;  %14337 = vmatprep.subr.mxu0 %v17980_v56  ;;  %v12034_v13 = vld [vmem:[%s24067_s1 + $0x130] sm:$0xff] }
  0x97   :  { %14324 = vmatpush3.msra.mxu1 %v1067_v19  ;;  %14338 = vmatpush3.msra.mxu0 %v17980_v56  ;;  %v12042_v56 = vld [vmem:[%s24067_s1 + $0x170] sm:$0xff]  ;;  %v18482_v31 = vand.u32 4294901760, %v12034_v13 }
  0x98   :  { %14325 = vmatprep.subr.mxu1 %v1074_v60  ;;  %14339 = vmatprep.subr.mxu0 %v17992_v61 }
  0x99   :  { %14326 = vmatpush3.msra.mxu1 %v1074_v60  ;;  %14327 = vmatprep.mubr.f32.mxu1 %v18096_v34 }
  0x9a   :  { %14340 = vmatpush3.msra.mxu0 %v17992_v61  ;;  %14328 = vmatmul.mubr.f32.vlgmr.msra.gmra.mxu1 %v18108_v4  ;;  %v18361_v61 = vand.u32 4294901760, %v12042_v56 }
  0x9b   :  { %14341 = vmatprep.subr.mxu0 %v18009_v26  ;;  %14371 = vmatprep.subr.mxu1 %v17927_v6 }
  0x9c   :  { %14342 = vmatpush3.msra.mxu0 %v18009_v26  ;;  %14372 = vmatpush3.msra.mxu1 %v17927_v6 }
  0x9d   :  { %14343 = vmatprep.subr.mxu0 %v18026_v43  ;;  %14373 = vmatprep.subr.mxu1 %v17933_v11 }
  0x9e   :  { %14330 = vmatprep.mubr.f32.mxu1 %v18143_v55  ;;  %14344 = vmatpush3.msra.mxu0 %v18026_v43  ;;  %v12039_v43 = vld [vmem:[%s24067_s1 + $0x158] sm:$0xff] }
  0x9f   :  { %14374 = vmatpush3.msra.mxu1 %v17933_v11  ;;  %14345 = vmatprep.subr.mxu0 %v18034_v54 }
  0xa0   :  { %14331 = vmatmul.mubr.f32.gmra.mxu1 %v18157_v49  ;;  %14375 = vmatprep.subr.mxu1 %v17950_v28 }
  0xa1   :  { %14346 = vmatpush3.msra.mxu0 %v18034_v54  ;;  %14376 = vmatpush3.msra.mxu1 %v17950_v28 }
  0xa2   :  { %14347 = vmatprep.subr.mxu0 %v18063_v45  ;;  %14377 = vmatprep.subr.mxu1 %v17962_v39 }
  0xa3   :  { %14348 = vmatpush3.msra.mxu0 %v18063_v45  ;;  %14378 = vmatpush3.msra.mxu1 %v17962_v39  ;;  %v12037_v45 = vld [vmem:[%s24067_s1 + $0x148] sm:$0xff] }
  0xa4   :  { %14349 = vmatprep.subr.mxu0 %v18075_v62  ;;  %14379 = vmatprep.subr.mxu1 %v17974_v50 }
  0xa5   :  { %14350 = vmatpush3.msra.mxu0 %v18075_v62  ;;  %14380 = vmatpush3.msra.mxu1 %v17974_v50 }
  0xa6   :  { %14351 = vmatprep.subr.mxu0 %v18091_v33  ;;  %14381 = vmatprep.subr.mxu1 %v17989_v52 }
  0xa7   :  { %14352 = vmatpush3.msra.mxu0 %v18091_v33  ;;  %14382 = vmatpush3.msra.mxu1 %v17989_v52  ;;  %v18426_v33 = vand.u32 4294901760, %v12037_v45 }
  0xa8   :  { %14353 = vmatprep.subr.mxu0 %v18106_v23  ;;  %14383 = vmatprep.subr.mxu1 %v17998_v7 }
  0xa9   :  { %14354 = vmatpush3.msra.mxu0 %v18106_v23  ;;  %14384 = vmatpush3.msra.mxu1 %v17998_v7 }
  0xaa   :  { %14355 = vmatprep.subr.mxu0 %v18123_v29  ;;  %14385 = vmatprep.subr.mxu1 %v18020_v14 }
  0xab   :  { %14356 = vmatpush3.msra.mxu0 %v18123_v29  ;;  %14386 = vmatpush3.msra.mxu1 %v18020_v14 }
  0xac   :  { %14357 = vmatprep.subr.mxu0 %v18149_v3  ;;  %14387 = vmatprep.subr.mxu1 %v18040_v58 }
  0xad   :  { %14358 = vmatpush3.msra.mxu0 %v18149_v3  ;;  %14388 = vmatpush3.msra.mxu1 %v18040_v58 }
  0xae   :  { %14359 = vmatprep.subr.mxu0 %v18164_v18  ;;  %14389 = vmatprep.subr.mxu1 %v18054_v42 }
  0xaf   :  { %14360 = vmatpush3.msra.mxu0 %v18164_v18  ;;  %14390 = vmatpush3.msra.mxu1 %v18054_v42  ;;  %v18465_v18 = vsub.f32 %v12037_v45, %v18426_v33 }
  0xb0   :  { %14361 = vmatprep.subr.mxu0 %v18178_v22  ;;  %14391 = vmatprep.subr.mxu1 %v18072_v32 }
  0xb1   :  { %14362 = vmatpush3.msra.mxu0 %v18178_v22  ;;  %14392 = vmatpush3.msra.mxu1 %v18072_v32  ;;  %v18494_v46 = vand.u32 4294901760, %v18465_v18 }
  0xb2   :  { %14363 = vmatprep.subr.mxu0 %v18199_v37  ;;  %14393 = vmatprep.subr.mxu1 %v18078_v8 }
  0xb3   :  { %14364 = vmatpush3.msra.mxu0 %v18199_v37  ;;  %14365 = vmatprep.mubr.f32.mxu0 %v18129_v63  ;;  %v12035_v63 = vld [vmem:[%s24067_s1 + $0x138] sm:$0xff] }
  0xb4   :  { %14394 = vmatpush3.msra.mxu1 %v18078_v8  ;;  %14366 = vmatmul.mubr.f32.vlgmr.msra.gmra.mxu0 %v18141_v53 }
  0xb5   :  { %14395 = vmatprep.subr.mxu1 %v18111_v5  ;;  %14409 = vmatprep.subr.mxu0 %v17967_v44 }
  0xb6   :  { %14396 = vmatpush3.msra.mxu1 %v18111_v5  ;;  %14410 = vmatpush3.msra.mxu0 %v17967_v44  ;;  %v24600_v44 = vand.u32 4294901760, %v18171_v38 }
  0xb7   :  { %14397 = vmatprep.subr.mxu1 %v18126_v51  ;;  %14411 = vmatprep.subr.mxu0 %v17985_v57 }
  0xb8   :  { %14368 = vmatprep.mubr.f32.mxu0 %v18171_v38  ;;  %14398 = vmatpush3.msra.mxu1 %v18126_v51 }
  0xb9   :  { %14412 = vmatpush3.msra.mxu0 %v17985_v57  ;;  %14399 = vmatprep.subr.mxu1 %v18146_v2 }
  0xba   :  { %14369 = vmatmul.mubr.f32.gmra.mxu0 %v18184_v15  ;;  %14413 = vmatprep.subr.mxu0 %v18006_v9  ;;  %v18471_v15 = vand.u32 4294901760, %v12035_v63 }
  0xbb   :  { %14400 = vmatpush3.msra.mxu1 %v18146_v2  ;;  %14414 = vmatpush3.msra.mxu0 %v18006_v9  ;;  %v12040_v9 = vld [vmem:[%s24067_s1 + $0x160] sm:$0xff] }
  0xbc   :  { %14401 = vmatprep.subr.mxu1 %v18160_v59  ;;  %14415 = vmatprep.subr.mxu0 %v18023_v41  ;;  %v18385_v54 = vand.u32 4294901760, %v12040_v9  ;;  %v18503_v12 = vsub.f32 %v12035_v63, %v18471_v15 }
  0xbd   :  { %14402 = vmatpush3.msra.mxu1 %v18160_v59  ;;  %14403 = vmatprep.mubr.f32.mxu1 %v24598_v25  ;;  %v18519_v25 = vsub.f32 %v12034_v13, %v18482_v31 }
  0xbe   :  { %14416 = vmatpush3.msra.mxu0 %v18023_v41  ;;  %14404 = vmatmul.mubr.f32.vlgmr.msra.gmra.mxu1 %v24599_v30  ;;  %v18416_v62 = vsub.f32 %v12040_v9, %v18385_v54  ;;  %v1614_v30 = vld [vmem:[#allocation2 + $0x12] sm:$0xff]  ;;  %v12029_v9 = vld [vmem:[%s24067_s1 + $0x108] sm:$0xff] }
  0xbf   :  { %14417 = vmatprep.subr.mxu0 %v18043_v40  ;;  %14447 = vmatprep.subr.mxu1 %v17927_v6 }
  0xc0   :  { %14418 = vmatpush3.msra.mxu0 %v18043_v40  ;;  %14448 = vmatpush3.msra.mxu1 %v17927_v6  ;;  %v24601_v6 = vld [vmem:[#allocation3_spill] sm:$0xff]  ;;  %v18394_v40 = vand.u32 4294901760, %v12039_v43  ;;  %v18444_v29 = vand.u32 4294901760, %v18416_v62 }
  0xc1   :  { %14419 = vmatprep.subr.mxu0 %v18057_v35  ;;  %14449 = vmatprep.subr.mxu1 %v17933_v11 }
  0xc2   :  { %14406 = vmatprep.mubr.f32.mxu1 %v24600_v44  ;;  %14420 = vmatpush3.msra.mxu0 %v18057_v35  ;;  %v12038_v35 = vld [vmem:[%s24067_s1 + $0x150] sm:$0xff]  ;;  %v18432_v23 = vsub.f32 %v12039_v43, %v18394_v40  ;;  %v1780_v22 = vsub.f32 %v18416_v62, %v18444_v29 }
  0xc3   :  { %14450 = vmatpush3.msra.mxu1 %v17933_v11  ;;  %14421 = vmatprep.subr.mxu0 %v18067_v1  ;;  %v24602_v11 = vld [vmem:[#allocation4_spill] sm:$0xff] }
  0xc4   :  { %14407 = vmatmul.mubr.f32.gmra.mxu1 %v956_v0  ;;  %14451 = vmatprep.subr.mxu1 %v17950_v28  ;;  %v18459_v3 = vand.u32 4294901760, %v18432_v23  ;;  %v1781_v27 = vand.u32 4294901760, %v1780_v22 }
  0xc5   :  { %14422 = vmatpush3.msra.mxu0 %v18067_v1  ;;  %14452 = vmatpush3.msra.mxu1 %v17950_v28  ;;  %v24603_v28 = vld [vmem:[#allocation5_spill] sm:$0xff] }
  0xc6   :  { %14423 = vmatprep.subr.mxu0 %v18085_v21  ;;  %14453 = vmatprep.subr.mxu1 %v17962_v39 }
  0xc7   :  { %14424 = vmatpush3.msra.mxu0 %v18085_v21  ;;  %14454 = vmatpush3.msra.mxu1 %v17962_v39  ;;  %v12043_v39 = vld [vmem:[%s24067_s1 + $0x178] sm:$0xff] }
  0xc8   :  { %14425 = vmatprep.subr.mxu0 %v24601_v6  ;;  %14455 = vmatprep.subr.mxu1 %v17974_v50  ;;  %v18355_v57 = vand.u32 4294901760, %v12043_v39 }
  0xc9   :  { %14426 = vmatpush3.msra.mxu0 %v24601_v6  ;;  %14456 = vmatpush3.msra.mxu1 %v17974_v50  ;;  %v24604_v50 = vld [vmem:[#allocation6_spill] sm:$0xff]  ;;  %v18525_v6 = vand.u32 4294901760, %v12031_v10 }
  0xca   :  { %14427 = vmatprep.subr.mxu0 %v24602_v11  ;;  %14457 = vmatprep.subr.mxu1 %v17989_v52  ;;  %v18374_v26 = vsub.f32 %v12043_v39, %v18355_v57 }
  0xcb   :  { %14428 = vmatpush3.msra.mxu0 %v24602_v11  ;;  %14458 = vmatpush3.msra.mxu1 %v17989_v52  ;;  %v24605_v52 = vld [vmem:[#allocation7_spill] sm:$0xff]  ;;  %v18528_v11 = vand.u32 4294901760, %v18503_v12  ;;  %v18569_v63 = vsub.f32 %v12031_v10, %v18525_v6 }
  0xcc   :  { %14429 = vmatprep.subr.mxu0 %v24603_v28  ;;  %14459 = vmatprep.subr.mxu1 %v17998_v7 }
  0xcd   :  { %14430 = vmatpush3.msra.mxu0 %v24603_v28  ;;  %14460 = vmatpush3.msra.mxu1 %v17998_v7  ;;  %v12041_v7 = vld [vmem:[%s24067_s1 + $0x168] sm:$0xff]  ;;  %v12030_v28 = vld [vmem:[%s24067_s1 + $0x110] sm:$0xff]  ;;  %v1815_v45 = vsub.f32 %v18503_v12, %v18528_v11  ;;  %v18594_v10 = vand.u32 4294901760, %v18569_v63 }
  0xce   :  { %14431 = vmatprep.subr.mxu0 %v24604_v50  ;;  %14461 = vmatprep.subr.mxu1 %v18020_v14  ;;  %v18378_v41 = vand.u32 4294901760, %v12041_v7 }
  0xcf   :  { %14432 = vmatpush3.msra.mxu0 %v24604_v50  ;;  %14462 = vmatpush3.msra.mxu1 %v18020_v14  ;;  %v24606_v14 = vld [vmem:[#allocation8_spill] sm:$0xff]  ;;  %v18536_v50 = vand.u32 4294901760, %v1613_v16 }
  0xd0   :  { %14433 = vmatprep.subr.mxu0 %v24605_v52  ;;  %14463 = vmatprep.subr.mxu1 %v18040_v58  ;;  %v18408_v1 = vsub.f32 %v12041_v7, %v18378_v41  ;;  %v18545_v7 = vand.u32 4294901760, %v18519_v25 }
  0xd1   :  { %14434 = vmatpush3.msra.mxu0 %v24605_v52  ;;  %14464 = vmatpush3.msra.mxu1 %v18040_v58  ;;  %v18388_v58 = vsub.f32 %v12042_v56, %v18361_v61  ;;  %v18539_v56 = vand.u32 4294901760, %v1614_v30 }
  0xd2   :  { %14435 = vmatprep.subr.mxu0 %v18191_v24  ;;  %14465 = vmatprep.subr.mxu1 %v18054_v42 }
  0xd3   :  { %14436 = vmatpush3.msra.mxu0 %v18191_v24  ;;  %14466 = vmatpush3.msra.mxu1 %v18054_v42  ;;  %v18397_v42 = vand.u32 4294901760, %v18374_v26  ;;  %v12033_v24 = vld [vmem:[%s24067_s1 + $0x128] sm:$0xff]  ;;  %v18575_v13 = vsub.f32 %v1614_v30, %v18539_v56 }
  0xd4   :  { %14437 = vmatprep.subr.mxu0 %v24606_v14  ;;  %14467 = vmatprep.subr.mxu1 %v18072_v32  ;;  %v18500_v36 = vand.u32 4294901760, %v12033_v24 }
  0xd5   :  { %14438 = vmatpush3.msra.mxu0 %v24606_v14  ;;  %14468 = vmatpush3.msra.mxu1 %v18072_v32  ;;  %v18413_v32 = vand.u32 4294901760, %v18388_v58  ;;  %v1759_v21 = vsub.f32 %v18374_v26, %v18397_v42 }
  0xd6   :  { %14439 = vmatprep.subr.mxu0 %v18217_v48  ;;  %14469 = vmatprep.subr.mxu1 %v18078_v8  ;;  %v18534_v39 = vsub.f32 %v12033_v24, %v18500_v36 }
  0xd7   :  { %14440 = vmatpush3.msra.mxu0 %v18217_v48  ;;  %14441 = vmatprep.mubr.f32.mxu0 %v18096_v34  ;;  %v12036_v48 = vld [vmem:[%s24067_s1 + $0x140] sm:$0xff]  ;;  %v1766_v17 = vsub.f32 %v18388_v58, %v18413_v32  ;;  %v1760_v53 = vand.u32 4294901760, %v1759_v21 }
  0xd8   :  { %14470 = vmatpush3.msra.mxu1 %v18078_v8  ;;  %14442 = vmatmul.mubr.f32.vlgmr.msra.gmra.mxu0 %v18108_v4  ;;  %v18420_v8 = vand.u32 4294901760, %v12038_v35  ;;  %v18560_v21 = vand.u32 4294901760, %v18534_v39 }
  0xd9   :  { %14471 = vmatprep.subr.mxu1 %v18111_v5  ;;  %14485 = vmatprep.subr.mxu0 %v18355_v57  ;;  %v1767_v38 = vand.u32 4294901760, %v1766_v17  ;;  %v18566_v17 = vsub.f32 %v1613_v16, %v18536_v50  ;;  %v24092_v16 = vand.u32 4294901760, %v18575_v13 }
  0xda   :  { %14472 = vmatpush3.msra.mxu1 %v18111_v5  ;;  %14486 = vmatpush3.msra.mxu0 %v18355_v57  ;;  %v18437_v5 = vand.u32 4294901760, %v18408_v1  ;;  %v18454_v37 = vsub.f32 %v12038_v35, %v18420_v8  ;;  %v18554_v35 = vand.u32 4294901760, %v12030_v28 }
  0xdb   :  { %14473 = vmatprep.subr.mxu1 %v18126_v51  ;;  %14487 = vmatprep.subr.mxu0 %v18361_v61 }
  0xdc   :  { %14444 = vmatprep.mubr.f32.mxu0 %v18143_v55  ;;  %14474 = vmatpush3.msra.mxu1 %v18126_v51  ;;  %v18451_v51 = vand.u32 4294901760, %v12036_v48  ;;  %v18485_v0 = vand.u32 4294901760, %v18454_v37 }
  0xdd   :  { %14488 = vmatpush3.msra.mxu0 %v18361_v61  ;;  %14475 = vmatprep.subr.mxu1 %v18146_v2 }
  0xde   :  { %14445 = vmatmul.mubr.f32.gmra.mxu0 %v18157_v49  ;;  %14489 = vmatprep.subr.mxu0 %v18378_v41  ;;  %v1794_v47 = vsub.f32 %v18454_v37, %v18485_v0 }
  0xdf   :  { %14476 = vmatpush3.msra.mxu1 %v18146_v2  ;;  %14490 = vmatpush3.msra.mxu0 %v18378_v41  ;;  %v1773_v2 = vsub.f32 %v18408_v1, %v18437_v5 }
  0xe0   :  { %14477 = vmatprep.subr.mxu1 %v18160_v59  ;;  %14491 = vmatprep.subr.mxu0 %v18385_v54 }
  0xe1   :  { %14478 = vmatpush3.msra.mxu1 %v18160_v59  ;;  %14479 = vmatprep.mubr.f32.mxu1 %v18096_v34  ;;  %v18488_v59 = vsub.f32 %v12036_v48, %v18451_v51  ;;  %v1787_v34 = vsub.f32 %v18432_v23, %v18459_v3  ;;  %v1774_v20 = vand.u32 4294901760, %v1773_v2  ;;  %v12028_v48 = vld [vmem:[%s24067_s1 + $0x100] sm:$0xff] }
  0xe2   :  { %14492 = vmatpush3.msra.mxu0 %v18385_v54  ;;  %14480 = vmatmul.mubr.f32.vlgmr.msra.gmra.mxu1 %v18108_v4  ;;  %v12032_v4 = vld [vmem:[%s24067_s1 + $0x120] sm:$0xff]  ;;  %v18584_v24 = vand.u32 4294901760, %v12028_v48 }
  0xe3   :  { %14493 = vmatprep.subr.mxu0 %v18394_v40  ;;  %14523 = vmatprep.subr.mxu1 %v1760_v53  ;;  %v18513_v19 = vand.u32 4294901760, %v12032_v4  ;;  %v18516_v60 = vand.u32 4294901760, %v18488_v59  ;;  %v1788_v44 = vand.u32 4294901760, %v1787_v34  ;;  %v18587_v34 = vsub.f32 %v12030_v28, %v18554_v35 }
  0xe4   :  { %14494 = vmatpush3.msra.mxu0 %v18394_v40  ;;  %14524 = vmatpush3.msra.mxu1 %v1760_v53  ;;  %v18572_v53 = vand.u32 4294901760, %v12029_v9  ;;  %v18609_v28 = vsub.f32 %v12028_v48, %v18584_v24 }
  0xe5   :  { %14495 = vmatprep.subr.mxu0 %v18420_v8  ;;  %14525 = vmatprep.subr.mxu1 %v1767_v38  ;;  %v1808_v52 = vsub.f32 %v18488_v59, %v18516_v60  ;;  %v18551_v14 = vsub.f32 %v12032_v4, %v18513_v19  ;;  %v1816_v4 = vand.u32 4294901760, %v1815_v45 }
  0xe6   :  { %14482 = vmatprep.mubr.f32.mxu1 %v18143_v55  ;;  %14496 = vmatpush3.msra.mxu0 %v18420_v8  ;;  %v1801_v55 = vsub.f32 %v18465_v18, %v18494_v46 }
  0xe7   :  { %14526 = vmatpush3.msra.mxu1 %v1767_v38  ;;  %14497 = vmatprep.subr.mxu0 %v18426_v33  ;;  %v1809_v2 = vand.u32 4294901760, %v1808_v52  ;;  %v1822_v38 = vsub.f32 %v18519_v25, %v18545_v7  ;;  %v18581_v22 = vand.u32 4294901760, %v18551_v14 }
  0xe8   :  { %14483 = vmatmul.mubr.f32.gmra.mxu1 %v18157_v49  ;;  %14527 = vmatprep.subr.mxu1 %v1774_v20  ;;  %v1795_v49 = vand.u32 4294901760, %v1794_v47  ;;  %v1802_v43 = vand.u32 4294901760, %v1801_v55  ;;  %v18599_v47 = vsub.f32 %v12029_v9, %v18572_v53  ;;  %v18606_v55 = vand.u32 4294901760, %v18587_v34 }
  0xe9   :  { %14498 = vmatpush3.msra.mxu0 %v18426_v33  ;;  %14528 = vmatpush3.msra.mxu1 %v1774_v20  ;;  %v1829_v20 = vsub.f32 %v18534_v39, %v18560_v21  ;;  %v1823_v30 = vand.u32 4294901760, %v1822_v38  ;;  %v1843_v9 = vsub.f32 %v18569_v63, %v18594_v10  ;;  %v18629_v38 = vand.u32 4294901760, %v18609_v28 }
  0xea   :  { %14499 = vmatprep.subr.mxu0 %v18451_v51  ;;  %14529 = vmatprep.subr.mxu1 %v1781_v27  ;;  %v18622_v45 = vand.u32 4294901760, %v18599_v47 }
  0xeb   :  { %14500 = vmatpush3.msra.mxu0 %v18451_v51  ;;  %14530 = vmatpush3.msra.mxu1 %v1781_v27  ;;  %v24093_v27 = vand.u32 4294901760, %v18566_v17 }
  0xec   :  { %14501 = vmatprep.subr.mxu0 %v18471_v15  ;;  %14531 = vmatprep.subr.mxu1 %v1788_v44 }
  0xed   :  { %14502 = vmatpush3.msra.mxu0 %v18471_v15  ;;  %14532 = vmatpush3.msra.mxu1 %v1788_v44  ;;  %v1836_v44 = vsub.f32 %v18551_v14, %v18581_v22  ;;  %v1718_v52 = vsub.f32 %v18566_v17, %v24093_v27  ;;  %v1864_v27 = vsub.f32 %v18609_v28, %v18629_v38 }
  0xee   :  { %14503 = vmatprep.subr.mxu0 %v18482_v31  ;;  %14533 = vmatprep.subr.mxu1 %v1795_v49 }
  0xef   :  { %14504 = vmatpush3.msra.mxu0 %v18482_v31  ;;  %14534 = vmatpush3.msra.mxu1 %v1795_v49  ;;  %v1830_v49 = vand.u32 4294901760, %v1829_v20  ;;  %v1837_v48 = vand.u32 4294901760, %v1836_v44  ;;  %v1844_v20 = vand.u32 4294901760, %v1843_v9  ;;  %v1857_v44 = vsub.f32 %v18599_v47, %v18622_v45  ;;  %v1615_v9 = vld [vmem:[#allocation2 + $0x2a] sm:$0xff] }
  0xf0   :  { %14505 = vmatprep.subr.mxu0 %v18500_v36  ;;  %14535 = vmatprep.subr.mxu1 %v1802_v43 }
  0xf1   :  { %14506 = vmatpush3.msra.mxu0 %v18500_v36  ;;  %14536 = vmatpush3.msra.mxu1 %v1802_v43  ;;  %v1728_v43 = vsub.f32 %v18575_v13, %v24092_v16 }
  0xf2   :  { %14507 = vmatprep.subr.mxu0 %v18513_v19  ;;  %14537 = vmatprep.subr.mxu1 %v1809_v2 }
  0xf3   :  { %14508 = vmatpush3.msra.mxu0 %v18513_v19  ;;  %14538 = vmatpush3.msra.mxu1 %v1809_v2  ;;  %v1850_v2 = vsub.f32 %v18587_v34, %v18606_v55  ;;  %v1729_v16 = vand.u32 4294901760, %v1728_v43 }
  0xf4   :  { %14509 = vmatprep.subr.mxu0 %v18525_v6  ;;  %14539 = vmatprep.subr.mxu1 %v1816_v4 }
  0xf5   :  { %14510 = vmatpush3.msra.mxu0 %v18525_v6  ;;  %14540 = vmatpush3.msra.mxu1 %v1816_v4  ;;  %v1719_v4 = vand.u32 4294901760, %v1718_v52  ;;  %v1865_v52 = vand.u32 4294901760, %v1864_v27 }
  0xf6   :  { %14511 = vmatprep.subr.mxu0 %v18554_v35  ;;  %14541 = vmatprep.subr.mxu1 %v1823_v30 }
  0xf7   :  { %14512 = vmatpush3.msra.mxu0 %v18554_v35  ;;  %14542 = vmatpush3.msra.mxu1 %v1823_v30  ;;  %v1851_v30 = vand.u32 4294901760, %v1850_v2 }
  0xf8   :  { %14513 = vmatprep.subr.mxu0 %v18572_v53  ;;  %14543 = vmatprep.subr.mxu1 %v1830_v49 }
  0xf9   :  { %14514 = vmatpush3.msra.mxu0 %v18572_v53  ;;  %14544 = vmatpush3.msra.mxu1 %v1830_v49  ;;  %v1858_v49 = vand.u32 4294901760, %v1857_v44 }
  0xfa   :  { %14515 = vmatprep.subr.mxu0 %v18584_v24  ;;  %14545 = vmatprep.subr.mxu1 %v1837_v48 }
  0xfb   :  { %14516 = vmatpush3.msra.mxu0 %v18584_v24  ;;  %14546 = vmatpush3.msra.mxu1 %v1837_v48 }
  0xfc   :  { %14517 = vmatprep.mubr.f32.mxu0 %v1719_v4  ;;  %14547 = vmatprep.subr.mxu1 %v1844_v20 }
  0xfd   :  { %14561 = vmatprep.subr.mxu0 %v18374_v26  ;;  %14518 = vmatmul.mubr.f32.vlgmr.msra.gmra.mxu0 %v1729_v16  ;;  %v1616_v16 = vld [vmem:[#allocation2 + $0x32] sm:$0xff] }
  0xfe   :  { %14548 = vmatpush3.msra.mxu1 %v1844_v20  ;;  %14562 = vmatpush3.msra.mxu0 %v18374_v26  ;;  %v18649_v26 = vand.u32 4294901760, %v1615_v9  ;;  %v2427_v20 = vld [vmem:[%s24069_s3 + $0x30] sm:$0xff] }
  0xff   :  { %14549 = vmatprep.subr.mxu1 %v1851_v30  ;;  %14563 = vmatprep.subr.mxu0 %v18388_v58 }
 0x100   :  { %14550 = vmatpush3.msra.mxu1 %v1851_v30  ;;  %14564 = vmatpush3.msra.mxu0 %v18388_v58  ;;  %v18653_v58 = vand.u32 4294901760, %v1616_v16 }
 0x101   :  { %14551 = vmatprep.subr.mxu1 %v1858_v49  ;;  %14565 = vmatprep.subr.mxu0 %v18408_v1 }
 0x102   :  { %14552 = vmatpush3.msra.mxu1 %v1858_v49  ;;  %14566 = vmatpush3.msra.mxu0 %v18408_v1  ;;  %v18662_v1 = vsub.f32 %v1615_v9, %v18649_v26  ;;  %v2426_v9 = vld [vmem:[%s24069_s3 + $0x28] sm:$0xff] }
 0x103   :  { %14553 = vmatprep.subr.mxu1 %v1865_v52  ;;  %14567 = vmatprep.subr.mxu0 %v18416_v62 }
 0x104   :  { %14554 = vmatpush3.msra.mxu1 %v1865_v52  ;;  %14555 = vmatprep.mubr.f32.mxu1 %v18536_v50  ;;  %v18938_v52 = vand.u32 4294901760, %v2427_v20 }
 0x105   :  { %14568 = vmatpush3.msra.mxu0 %v18416_v62  ;;  %14556 = vmatmul.mubr.f32.vlgmr.msra.gmra.mxu1 %v18539_v56  ;;  %v18667_v62 = vsub.f32 %v1616_v16, %v18653_v58 }
 0x106   :  { %14569 = vmatprep.subr.mxu0 %v18432_v23  ;;  %14599 = vmatprep.subr.mxu1 %v18355_v57  ;;  %24635 = vst [vmem:[#allocation29_spill] sm:$0xff] %v18938_v52 }
 0x107   :  { %14570 = vmatpush3.msra.mxu0 %v18432_v23  ;;  %14600 = vmatpush3.msra.mxu1 %v18355_v57  ;;  %v1737_v23 = vand.u32 4294901760, %v18662_v1 }
 0x108   :  { %14571 = vmatprep.subr.mxu0 %v18454_v37  ;;  %14601 = vmatprep.subr.mxu1 %v18361_v61 }
 0x109   :  { %14572 = vmatpush3.msra.mxu0 %v18454_v37  ;;  %14602 = vmatpush3.msra.mxu1 %v18361_v61  ;;  %v1747_v37 = vand.u32 4294901760, %v18667_v62 }
 0x10a   :  { %14573 = vmatprep.subr.mxu0 %v18465_v18  ;;  %14603 = vmatprep.subr.mxu1 %v18378_v41 }
 0x10b   :  { %14574 = vmatpush3.msra.mxu0 %v18465_v18  ;;  %14604 = vmatpush3.msra.mxu1 %v18378_v41  ;;  %v1738_v18 = vsub.f32 %v18662_v1, %v1737_v23 }
 0x10c   :  { %14575 = vmatprep.subr.mxu0 %v18488_v59  ;;  %14605 = vmatprep.subr.mxu1 %v18385_v54 }
 0x10d   :  { %14576 = vmatpush3.msra.mxu0 %v18488_v59  ;;  %14606 = vmatpush3.msra.mxu1 %v18385_v54  ;;  %v1748_v59 = vsub.f32 %v18667_v62, %v1747_v37 }
 0x10e   :  { %14577 = vmatprep.subr.mxu0 %v18503_v12  ;;  %14607 = vmatprep.subr.mxu1 %v18394_v40 }
 0x10f   :  { %14578 = vmatpush3.msra.mxu0 %v18503_v12  ;;  %14608 = vmatpush3.msra.mxu1 %v18394_v40  ;;  %v1739_v12 = vand.u32 4294901760, %v1738_v18 }
 0x110   :  { %14579 = vmatprep.subr.mxu0 %v18519_v25  ;;  %14609 = vmatprep.subr.mxu1 %v18420_v8 }
 0x111   :  { %14580 = vmatpush3.msra.mxu0 %v18519_v25  ;;  %14610 = vmatpush3.msra.mxu1 %v18420_v8  ;;  %v1749_v25 = vand.u32 4294901760, %v1748_v59 }
 0x112   :  { %14581 = vmatprep.subr.mxu0 %v18534_v39  ;;  %14611 = vmatprep.subr.mxu1 %v18426_v33 }
 0x113   :  { %14582 = vmatpush3.msra.mxu0 %v18534_v39  ;;  %14612 = vmatpush3.msra.mxu1 %v18426_v33 }
 0x114   :  { %14583 = vmatprep.subr.mxu0 %v18551_v14  ;;  %14613 = vmatprep.subr.mxu1 %v18451_v51 }
 0x115   :  { %14584 = vmatpush3.msra.mxu0 %v18551_v14  ;;  %14614 = vmatpush3.msra.mxu1 %v18451_v51 }
 0x116   :  { %14585 = vmatprep.subr.mxu0 %v18569_v63  ;;  %14615 = vmatprep.subr.mxu1 %v18471_v15 }
 0x117   :  { %14586 = vmatpush3.msra.mxu0 %v18569_v63  ;;  %14616 = vmatpush3.msra.mxu1 %v18471_v15 }
 0x118   :  { %14587 = vmatprep.subr.mxu0 %v18587_v34  ;;  %14617 = vmatprep.subr.mxu1 %v18482_v31 }
 0x119   :  { %14520 = vmatprep.mubr.f32.mxu0 %v1739_v12  ;;  %14588 = vmatpush3.msra.mxu0 %v18587_v34 }
 0x11a   :  { %14618 = vmatpush3.msra.mxu1 %v18482_v31  ;;  %14521 = vmatmul.mubr.f32.gmra.mxu0 %v1749_v25 }
 0x11b   :  { %14589 = vmatprep.subr.mxu0 %v18599_v47  ;;  %14619 = vmatprep.subr.mxu1 %v18500_v36 }
 0x11c   :  { %14590 = vmatpush3.msra.mxu0 %v18599_v47  ;;  %14620 = vmatpush3.msra.mxu1 %v18500_v36  ;;  %v2429_v47 = vld [vmem:[%s24069_s3 + $0x40] sm:$0xff] }
 0x11d   :  { %14591 = vmatprep.subr.mxu0 %v18609_v28  ;;  %14621 = vmatprep.subr.mxu1 %v18513_v19  ;;  %v18910_v43 = vand.u32 4294901760, %v2429_v47 }
 0x11e   :  { %14592 = vmatpush3.msra.mxu0 %v18609_v28  ;;  %14593 = vmatprep.mubr.f32.mxu0 %v18566_v17 }
 0x11f   :  { %14622 = vmatpush3.msra.mxu1 %v18513_v19  ;;  %14558 = vmatprep.mubr.f32.mxu1 %v18649_v26  ;;  %24629 = vst [vmem:[#allocation23_spill] sm:$0xff] %v18910_v43 }
 0x120   :  { %14594 = vmatmul.mubr.f32.vlgmr.msra.gmra.mxu0 %v18575_v13  ;;  %14623 = vmatprep.subr.mxu1 %v18525_v6 }
 0x121   :  { %14637 = vmatprep.subr.mxu0 %v18397_v42  ;;  %14559 = vmatmul.mubr.f32.gmra.mxu1 %v18653_v58 }
 0x122   :  { %14624 = vmatpush3.msra.mxu1 %v18525_v6  ;;  %14638 = vmatpush3.msra.mxu0 %v18397_v42  ;;  %v24607_v42 = vand.u32 4294901760, %v18566_v17 }
 0x123   :  { %14625 = vmatprep.subr.mxu1 %v18554_v35  ;;  %14639 = vmatprep.subr.mxu0 %v18413_v32 }
 0x124   :  { %14596 = vmatprep.mubr.f32.mxu0 %v18662_v1  ;;  %14626 = vmatpush3.msra.mxu1 %v18554_v35  ;;  %v18951_v1 = vsub.f32 %v2427_v20, %v18938_v52 }
 0x125   :  { %14640 = vmatpush3.msra.mxu0 %v18413_v32  ;;  %14627 = vmatprep.subr.mxu1 %v18572_v53  ;;  %v24608_v32 = vand.u32 4294901760, %v18575_v13 }
 0x126   :  { %14597 = vmatmul.mubr.f32.gmra.mxu0 %v18667_v62  ;;  %14641 = vmatprep.subr.mxu0 %v18437_v5  ;;  %24637 = vst [vmem:[#allocation31_spill] sm:$0xff] %v18951_v1  ;;  %v18954_v62 = vand.u32 4294901760, %v2426_v9  ;;  %v18963_v59 = vand.u32 4294901760, %v18951_v1 }
 0x127   :  { %14628 = vmatpush3.msra.mxu1 %v18572_v53  ;;  %14642 = vmatpush3.msra.mxu0 %v18437_v5  ;;  %v2432_v5 = vld [vmem:[%s24069_s3 + $0x58] sm:$0xff] }
 0x128   :  { %14629 = vmatprep.subr.mxu1 %v18584_v24  ;;  %14643 = vmatprep.subr.mxu0 %v18444_v29  ;;  %24638 = vst [vmem:[#allocation32_spill] sm:$0xff] %v18954_v62  ;;  %24639 = vst [vmem:[#allocation33_spill] sm:$0xff] %v18963_v59  ;;  %v18968_v25 = vsub.f32 %v2426_v9, %v18954_v62 }
 0x129   :  { %14630 = vmatpush3.msra.mxu1 %v18584_v24  ;;  %14631 = vmatprep.mubr.f32.mxu1 %v24607_v42  ;;  %v2424_v42 = vld [vmem:[%s24069_s3 + $0x18] sm:$0xff] }
 0x12a   :  { %14644 = vmatpush3.msra.mxu0 %v18444_v29  ;;  %14632 = vmatmul.mubr.f32.vlgmr.msra.gmra.mxu1 %v24608_v32  ;;  %24641 = vst [vmem:[#allocation35_spill] sm:$0xff] %v18968_v25 }
 0x12b   :  { %14645 = vmatprep.subr.mxu0 %v18459_v3  ;;  %14675 = vmatprep.subr.mxu1 %v18355_v57 }
 0x12c   :  { %14646 = vmatpush3.msra.mxu0 %v18459_v3  ;;  %14676 = vmatpush3.msra.mxu1 %v18355_v57  ;;  %v2436_v57 = vld [vmem:[%s24069_s3 + $0x78] sm:$0xff] }
 0x12d   :  { %14647 = vmatprep.subr.mxu0 %v18485_v0  ;;  %14677 = vmatprep.subr.mxu1 %v18361_v61 }
 0x12e   :  { %14634 = vmatprep.mubr.f32.mxu1 %v1737_v23  ;;  %14648 = vmatpush3.msra.mxu0 %v18485_v0  ;;  %v18847_v0 = vand.u32 4294901760, %v2432_v5  ;;  %v2425_v23 = vld [vmem:[%s24069_s3 + $0x20] sm:$0xff] }
 0x12f   :  { %14678 = vmatpush3.msra.mxu1 %v18361_v61  ;;  %14649 = vmatprep.subr.mxu0 %v18494_v46  ;;  %v18812_v61 = vand.u32 4294901760, %v2436_v57  ;;  %v18965_v12 = vand.u32 4294901760, %v2425_v23 }
 0x130   :  { %14635 = vmatmul.mubr.f32.gmra.mxu1 %v1747_v37  ;;  %14679 = vmatprep.subr.mxu1 %v18378_v41  ;;  %24616 = vst [vmem:[#allocation10_spill] sm:$0xff] %v18847_v0 }
 0x131   :  { %14650 = vmatpush3.msra.mxu0 %v18494_v46  ;;  %14680 = vmatpush3.msra.mxu1 %v18378_v41  ;;  %24609 = vst [vmem:[#allocation3_spill] sm:$0xff] %v18812_v61  ;;  %v2435_v41 = vld [vmem:[%s24069_s3 + $0x70] sm:$0xff]  ;;  %24640 = vst [vmem:[#allocation34_spill] sm:$0xff] %v18965_v12 }
 0x132   :  { %14651 = vmatprep.subr.mxu0 %v18516_v60  ;;  %14681 = vmatprep.subr.mxu1 %v18385_v54 }
 0x133   :  { %14652 = vmatpush3.msra.mxu0 %v18516_v60  ;;  %14682 = vmatpush3.msra.mxu1 %v18385_v54  ;;  %v18818_v54 = vsub.f32 %v2436_v57, %v18812_v61  ;;  %v2630_v57 = vsub.f32 %v18951_v1, %v18963_v59 }
 0x134   :  { %14653 = vmatprep.subr.mxu0 %v18528_v11  ;;  %14683 = vmatprep.subr.mxu1 %v18394_v40 }
 0x135   :  { %14654 = vmatpush3.msra.mxu0 %v18528_v11  ;;  %14684 = vmatpush3.msra.mxu1 %v18394_v40  ;;  %24610 = vst [vmem:[#allocation4_spill] sm:$0xff] %v18818_v54  ;;  %v18820_v40 = vand.u32 4294901760, %v2435_v41  ;;  %v18834_v29 = vand.u32 4294901760, %v18818_v54  ;;  %v18865_v11 = vsub.f32 %v2432_v5, %v18847_v0  ;;  %v2423_v5 = vld [vmem:[%s24069_s3 + $0x10] sm:$0xff] }
 0x136   :  { %14655 = vmatprep.subr.mxu0 %v18545_v7  ;;  %14685 = vmatprep.subr.mxu1 %v18420_v8 }
 0x137   :  { %14656 = vmatpush3.msra.mxu0 %v18545_v7  ;;  %14686 = vmatpush3.msra.mxu1 %v18420_v8  ;;  %24611 = vst [vmem:[#allocation5_spill] sm:$0xff] %v18820_v40  ;;  %v2434_v8 = vld [vmem:[%s24069_s3 + $0x68] sm:$0xff]  ;;  %24612 = vst [vmem:[#allocation6_spill] sm:$0xff] %v18834_v29 }
 0x138   :  { %14657 = vmatprep.subr.mxu0 %v18560_v21  ;;  %14687 = vmatprep.subr.mxu1 %v18426_v33  ;;  %v18839_v3 = vand.u32 4294901760, %v2434_v8  ;;  %24621 = vst [vmem:[#allocation15_spill] sm:$0xff] %v18865_v11 }
 0x139   :  { %14658 = vmatpush3.msra.mxu0 %v18560_v21  ;;  %14688 = vmatpush3.msra.mxu1 %v18426_v33  ;;  %v2433_v33 = vld [vmem:[%s24069_s3 + $0x60] sm:$0xff] }
 0x13a   :  { %14659 = vmatprep.subr.mxu0 %v18581_v22  ;;  %14689 = vmatprep.subr.mxu1 %v18451_v51  ;;  %24614 = vst [vmem:[#allocation8_spill] sm:$0xff] %v18839_v3  ;;  %v18858_v60 = vsub.f32 %v2434_v8, %v18839_v3  ;;  %v18979_v8 = vand.u32 4294901760, %v2424_v42 }
 0x13b   :  { %14660 = vmatpush3.msra.mxu0 %v18581_v22  ;;  %14690 = vmatpush3.msra.mxu1 %v18451_v51  ;;  %v18837_v51 = vsub.f32 %v2435_v41, %v18820_v40  ;;  %v2430_v22 = vld [vmem:[%s24069_s3 + $0x48] sm:$0xff]  ;;  %v18977_v41 = vsub.f32 %v2425_v23, %v18965_v12 }
 0x13c   :  { %14661 = vmatprep.subr.mxu0 %v18594_v10  ;;  %14691 = vmatprep.subr.mxu1 %v18471_v15  ;;  %24619 = vst [vmem:[#allocation13_spill] sm:$0xff] %v18858_v60  ;;  %v18874_v7 = vand.u32 4294901760, %v18858_v60  ;;  %24643 = vst [vmem:[#allocation37_spill] sm:$0xff] %v18979_v8 }
 0x13d   :  { %14662 = vmatpush3.msra.mxu0 %v18594_v10  ;;  %14692 = vmatpush3.msra.mxu1 %v18471_v15  ;;  %24613 = vst [vmem:[#allocation7_spill] sm:$0xff] %v18837_v51  ;;  %v18841_v15 = vand.u32 4294901760, %v2433_v33  ;;  %v18900_v10 = vand.u32 4294901760, %v2430_v22  ;;  %24642 = vst [vmem:[#allocation36_spill] sm:$0xff] %v18977_v41 }
 0x13e   :  { %14663 = vmatprep.subr.mxu0 %v18606_v55  ;;  %14693 = vmatprep.subr.mxu1 %v18482_v31  ;;  %24623 = vst [vmem:[#allocation17_spill] sm:$0xff] %v18874_v7  ;;  %v2581_v63 = vsub.f32 %v18858_v60, %v18874_v7 }
 0x13f   :  { %14664 = vmatpush3.msra.mxu0 %v18606_v55  ;;  %14694 = vmatpush3.msra.mxu1 %v18482_v31  ;;  %24615 = vst [vmem:[#allocation9_spill] sm:$0xff] %v18841_v15  ;;  %v2431_v31 = vld [vmem:[%s24069_s3 + $0x50] sm:$0xff]  ;;  %24627 = vst [vmem:[#allocation21_spill] sm:$0xff] %v18900_v10  ;;  %v18908_v28 = vsub.f32 %v2430_v22, %v18900_v10 }
 0x140   :  { %14665 = vmatprep.subr.mxu0 %v18622_v45  ;;  %14695 = vmatprep.subr.mxu1 %v18500_v36  ;;  %v18849_v46 = vand.u32 4294901760, %v2431_v31 }
 0x141   :  { %14666 = vmatpush3.msra.mxu0 %v18622_v45  ;;  %14696 = vmatpush3.msra.mxu1 %v18500_v36  ;;  %v2567_v36 = vsub.f32 %v18818_v54, %v18834_v29  ;;  %24628 = vst [vmem:[#allocation22_spill] sm:$0xff] %v18908_v28  ;;  %v2428_v45 = vld [vmem:[%s24069_s3 + $0x38] sm:$0xff]  ;;  %v18918_v2 = vand.u32 4294901760, %v18908_v28 }
 0x142   :  { %14667 = vmatprep.subr.mxu0 %v18629_v38  ;;  %14697 = vmatprep.subr.mxu1 %v18513_v19  ;;  %24617 = vst [vmem:[#allocation11_spill] sm:$0xff] %v18849_v46  ;;  %v18868_v39 = vsub.f32 %v2431_v31, %v18849_v46  ;;  %v18923_v4 = vand.u32 4294901760, %v2428_v45  ;;  %v2631_v31 = vand.u32 4294901760, %v2630_v57 }
 0x143   :  { %14668 = vmatpush3.msra.mxu0 %v18629_v38  ;;  %14669 = vmatprep.mubr.f32.mxu0 %v18536_v50  ;;  %24630 = vst [vmem:[#allocation24_spill] sm:$0xff] %v18918_v2  ;;  %v18921_v38 = vsub.f32 %v2429_v47, %v18910_v43  ;;  %v2609_v44 = vsub.f32 %v18908_v28, %v18918_v2 }
 0x144   :  { %14698 = vmatpush3.msra.mxu1 %v18513_v19  ;;  %14670 = vmatmul.mubr.f32.vlgmr.msra.gmra.mxu0 %v18539_v56  ;;  %v18855_v19 = vand.u32 4294901760, %v18837_v51  ;;  %24622 = vst [vmem:[#allocation16_spill] sm:$0xff] %v18868_v39  ;;  %v18884_v21 = vand.u32 4294901760, %v18868_v39  ;;  %24632 = vst [vmem:[#allocation26_spill] sm:$0xff] %v18923_v4  ;;  %v18936_v49 = vsub.f32 %v2428_v45, %v18923_v4 }
 0x145   :  { %14699 = vmatprep.subr.mxu1 %v18525_v6  ;;  %14672 = vmatprep.mubr.f32.mxu0 %v18649_v26  ;;  %24631 = vst [vmem:[#allocation25_spill] sm:$0xff] %v18921_v38  ;;  %v18933_v30 = vand.u32 4294901760, %v18921_v38  ;;  %v2610_v16 = vand.u32 4294901760, %v2609_v44 }
 0x146   :  { %14700 = vmatpush3.msra.mxu1 %v18525_v6  ;;  %14707 = vmatprep.mubr.f32.mxu1 %v18536_v50  ;;  %24618 = vst [vmem:[#allocation12_spill] sm:$0xff] %v18855_v19  ;;  %v18861_v6 = vsub.f32 %v2433_v33, %v18841_v15  ;;  %v2568_v50 = vand.u32 4294901760, %v2567_v36  ;;  %24626 = vst [vmem:[#allocation20_spill] sm:$0xff] %v18884_v21  ;;  %v2602_v27 = vsub.f32 %v18868_v39, %v18884_v21 }
 0x147   :  { %14701 = vmatprep.subr.mxu1 %v18554_v35  ;;  %14713 = vmatprep.subr.mxu0 %v18812_v61  ;;  %24633 = vst [vmem:[#allocation27_spill] sm:$0xff] %v18933_v30  ;;  %24634 = vst [vmem:[#allocation28_spill] sm:$0xff] %v18936_v49  ;;  %v18983_v33 = vand.u32 4294901760, %v18968_v25  ;;  %v18990_v36 = vand.u32 4294901760, %v18977_v41 }
 0x148   :  { %14702 = vmatpush3.msra.mxu1 %v18554_v35  ;;  %14673 = vmatmul.mubr.f32.gmra.mxu0 %v18653_v58  ;;  %24620 = vst [vmem:[#allocation14_spill] sm:$0xff] %v18861_v6  ;;  %v18877_v14 = vand.u32 4294901760, %v18861_v6  ;;  %v18881_v35 = vand.u32 4294901760, %v18865_v11  ;;  %v2603_v48 = vand.u32 4294901760, %v2602_v27  ;;  %v2421_v27 = vld [vmem:[%s24069_s3] sm:$0xff] }
 0x149   :  { %14703 = vmatprep.subr.mxu1 %v18572_v53  ;;  %14714 = vmatpush3.msra.mxu0 %v18812_v61  ;;  %24644 = vst [vmem:[#allocation38_spill] sm:$0xff] %v18983_v33  ;;  %24645 = vst [vmem:[#allocation39_spill] sm:$0xff] %v18990_v36  ;;  %v19028_v20 = vand.u32 4294901760, %v2421_v27 }
 0x14a   :  { %14704 = vmatpush3.msra.mxu1 %v18572_v53  ;;  %14715 = vmatprep.subr.mxu0 %v18820_v40  ;;  %24624 = vst [vmem:[#allocation18_spill] sm:$0xff] %v18877_v14  ;;  %24625 = vst [vmem:[#allocation19_spill] sm:$0xff] %v18881_v35  ;;  %v2588_v53 = vsub.f32 %v18861_v6, %v18877_v14  ;;  %v2595_v13 = vsub.f32 %v18865_v11, %v18881_v35 }
 0x14b   :  { %14705 = vmatprep.subr.mxu1 %v18584_v24  ;;  %14716 = vmatpush3.msra.mxu0 %v18820_v40  ;;  %24653 = vst [vmem:[#allocation47_spill] sm:$0xff] %v19028_v20 }
 0x14c   :  { %14706 = vmatpush3.msra.mxu1 %v18584_v24  ;;  %14717 = vmatprep.subr.mxu0 %v18839_v3  ;;  %v2582_v24 = vand.u32 4294901760, %v2581_v63  ;;  %v2589_v34 = vand.u32 4294901760, %v2588_v53  ;;  %v2596_v55 = vand.u32 4294901760, %v2595_v13  ;;  %v2422_v63 = vld [vmem:[%s24069_s3 + $0x8] sm:$0xff]  ;;  %v2644_v53 = vsub.f32 %v18977_v41, %v18990_v36 }
 0x14d   :  { %14708 = vmatmul.mubr.f32.vlgmr.msra.gmra.mxu1 %v18539_v56  ;;  %14718 = vmatpush3.msra.mxu0 %v18839_v3  ;;  %v2574_v56 = vsub.f32 %v18837_v51, %v18855_v19 }
 0x14e   :  { %14710 = vmatprep.mubr.f32.mxu1 %v18649_v26  ;;  %14719 = vmatprep.subr.mxu0 %v18841_v15  ;;  %v2616_v26 = vsub.f32 %v18921_v38, %v18933_v30  ;;  %v2645_v47 = vand.u32 4294901760, %v2644_v53  ;;  %v14101_v53 = vpop.f32.mrf.mxu1 }
 0x14f   :  { %14720 = vmatpush3.msra.mxu0 %v18841_v15  ;;  %14751 = vmatprep.subr.mxu1 %v2568_v50  ;;  %v2575_v17 = vand.u32 4294901760, %v2574_v56  ;;  %v18995_v56 = vand.u32 4294901760, %v2423_v5 }
 0x150   :  { %14721 = vmatprep.subr.mxu0 %v18847_v0  ;;  %14752 = vmatpush3.msra.mxu1 %v2568_v50  ;;  %v2617_v37 = vand.u32 4294901760, %v2616_v26  ;;  %v18993_v50 = vsub.f32 %v2424_v42, %v18979_v8  ;;  %v19038_v26 = vsub.f32 %v2421_v27, %v19028_v20  ;;  %v19048_v42 = vpop.f32.mrf.mxu0  ;;  %v341_v27 = vpop.f32.mrf.mxu1 }
 0x151   :  { %14711 = vmatmul.mubr.f32.gmra.mxu1 %v18653_v58  ;;  %14722 = vmatpush3.msra.mxu0 %v18847_v0  ;;  %v18948_v58 = vand.u32 4294901760, %v18936_v49  ;;  %24647 = vst [vmem:[#allocation41_spill] sm:$0xff] %v18995_v56  ;;  %v19010_v22 = vsub.f32 %v2423_v5, %v18995_v56  ;;  %v348_v60 = vadd.f32 %v14101_v53, %v19048_v42 }
 0x152   :  { %14753 = vmatprep.subr.mxu1 %v2575_v17  ;;  %14723 = vmatprep.subr.mxu0 %v18849_v46  ;;  %24646 = vst [vmem:[#allocation40_spill] sm:$0xff] %v18993_v50  ;;  %v19007_v13 = vand.u32 4294901760, %v18993_v50  ;;  %24655 = vst [vmem:[#allocation49_spill] sm:$0xff] %v19038_v26 }
 0x153   :  { %14754 = vmatpush3.msra.mxu1 %v2575_v17  ;;  %14724 = vmatpush3.msra.mxu0 %v18849_v46  ;;  %24636 = vst [vmem:[#allocation30_spill] sm:$0xff] %v18948_v58  ;;  %v2623_v18 = vsub.f32 %v18936_v49, %v18948_v58  ;;  %v2637_v17 = vsub.f32 %v18968_v25, %v18983_v33  ;;  %24649 = vst [vmem:[#allocation43_spill] sm:$0xff] %v19010_v22  ;;  %v19022_v45 = vand.u32 4294901760, %v19010_v22 }
 0x154   :  { %14755 = vmatprep.subr.mxu1 %v2582_v24  ;;  %14725 = vmatprep.subr.mxu0 %v18900_v10  ;;  %24648 = vst [vmem:[#allocation42_spill] sm:$0xff] %v19007_v13 }
 0x155   :  { %14756 = vmatpush3.msra.mxu1 %v2582_v24  ;;  %14726 = vmatpush3.msra.mxu0 %v18900_v10  ;;  %v2624_v32 = vand.u32 4294901760, %v2623_v18  ;;  %v19012_v24 = vand.u32 4294901760, %v2422_v63  ;;  %24651 = vst [vmem:[#allocation45_spill] sm:$0xff] %v19022_v45  ;;  %v2658_v9 = vsub.f32 %v19010_v22, %v19022_v45  ;;  %v19045_v18 = vand.u32 4294901760, %v19038_v26 }
 0x156   :  { %14757 = vmatprep.subr.mxu1 %v2589_v34  ;;  %14727 = vmatprep.subr.mxu0 %v18910_v43 }
 0x157   :  { %14758 = vmatpush3.msra.mxu1 %v2589_v34  ;;  %14728 = vmatpush3.msra.mxu0 %v18910_v43  ;;  %24650 = vst [vmem:[#allocation44_spill] sm:$0xff] %v19012_v24  ;;  %v2638_v34 = vand.u32 4294901760, %v2637_v17  ;;  %v2659_v23 = vand.u32 4294901760, %v2658_v9  ;;  %24656 = vst [vmem:[#allocation50_spill] sm:$0xff] %v19045_v18  ;;  %v2672_v57 = vsub.f32 %v19038_v26, %v19045_v18 }
 0x158   :  { %14759 = vmatprep.subr.mxu1 %v2596_v55  ;;  %14729 = vmatprep.subr.mxu0 %v18923_v4 }
 0x159   :  { %14760 = vmatpush3.msra.mxu1 %v2596_v55  ;;  %14730 = vmatpush3.msra.mxu0 %v18923_v4  ;;  %v2651_v55 = vsub.f32 %v18993_v50, %v19007_v13  ;;  %v2673_v5 = vand.u32 4294901760, %v2672_v57 }
 0x15a   :  { %14761 = vmatprep.subr.mxu1 %v2603_v48  ;;  %14731 = vmatprep.subr.mxu0 %v18938_v52 }
 0x15b   :  { %14762 = vmatpush3.msra.mxu1 %v2603_v48  ;;  %14732 = vmatpush3.msra.mxu0 %v18938_v52  ;;  %v19025_v48 = vsub.f32 %v2422_v63, %v19012_v24  ;;  %v2652_v44 = vand.u32 4294901760, %v2651_v55  ;;  %v14104_v55 = vpop.f32.mrf.mxu1 }
 0x15c   :  { %14763 = vmatprep.subr.mxu1 %v2610_v16  ;;  %14733 = vmatprep.subr.mxu0 %v18954_v62 }
 0x15d   :  { %14764 = vmatpush3.msra.mxu1 %v2610_v16  ;;  %14734 = vmatpush3.msra.mxu0 %v18954_v62  ;;  %24652 = vst [vmem:[#allocation46_spill] sm:$0xff] %v19025_v48  ;;  %v19034_v16 = vand.u32 4294901760, %v19025_v48  ;;  %v353_v9 = vpop.f32.mrf.mxu1 }
 0x15e   :  { %14765 = vmatprep.subr.mxu1 %v2617_v37  ;;  %14735 = vmatprep.subr.mxu0 %v18965_v12 }
 0x15f   :  { %14766 = vmatpush3.msra.mxu1 %v2617_v37  ;;  %14736 = vmatpush3.msra.mxu0 %v18965_v12  ;;  %24654 = vst [vmem:[#allocation48_spill] sm:$0xff] %v19034_v16  ;;  %v2665_v37 = vsub.f32 %v19025_v48, %v19034_v16 }
 0x160   :  { %14767 = vmatprep.subr.mxu1 %v2624_v32  ;;  %14737 = vmatprep.subr.mxu0 %v18979_v8 }
 0x161   :  { %14768 = vmatpush3.msra.mxu1 %v2624_v32  ;;  %14738 = vmatpush3.msra.mxu0 %v18979_v8  ;;  %v2666_v32 = vand.u32 4294901760, %v2665_v37  ;;  %v14177_v37 = vpop.f32.mrf.mxu1 }
 0x162   :  { %14769 = vmatprep.subr.mxu1 %v2631_v31  ;;  %14739 = vmatprep.subr.mxu0 %v18995_v56 }
 0x163   :  { %14770 = vmatpush3.msra.mxu1 %v2631_v31  ;;  %14740 = vmatpush3.msra.mxu0 %v18995_v56  ;;  %v160_v31 = vpop.f32.mrf.mxu0  ;;  %v573_v16 = vpop.f32.mrf.mxu1 }
 0x164   :  { %14771 = vmatprep.subr.mxu1 %v2638_v34  ;;  %14741 = vmatprep.subr.mxu0 %v19012_v24 }
 0x165   :  { %14772 = vmatpush3.msra.mxu1 %v2638_v34  ;;  %14742 = vmatpush3.msra.mxu0 %v19012_v24  ;;  %v14066_v17 = vpop.f32.mrf.mxu0  ;;  %v14180_v45 = vpop.f32.mrf.mxu1 }
 0x166   :  { %14773 = vmatprep.subr.mxu1 %v2645_v47  ;;  %14743 = vmatprep.subr.mxu0 %v19028_v20  ;;  %v360_v15 = vadd.f32 %v14104_v55, %v14066_v17 }
 0x167   :  { %14774 = vmatpush3.msra.mxu1 %v2645_v47  ;;  %14744 = vmatpush3.msra.mxu0 %v19028_v20  ;;  %v180_v63 = vpop.f32.mrf.mxu0  ;;  %v589_v13 = vpop.f32.mrf.mxu1 }
 0x168   :  { %14775 = vmatprep.subr.mxu1 %v2652_v44  ;;  %14789 = vmatprep.subr.mxu0 %v18818_v54  ;;  %v342_v54 = vadd.f32 %v341_v27, %v160_v31  ;;  %v354_v40 = vadd.f32 %v353_v9, %v180_v63  ;;  %v12044_v9 = vld [vmem:[%s24070_s2] ss:$0 sm:$0xff] }
 0x169   :  { %14776 = vmatpush3.msra.mxu1 %v2652_v44  ;;  %v14139_v34 = vpop.f32.mrf.mxu0  ;;  %v14253_v36 = vpop.f32.mrf.mxu1 }
 0x16a   :  { %14777 = vmatprep.subr.mxu1 %v2659_v23  ;;  %v471_v0 = vadd.f32 %v14139_v34, %v348_v60 }
 0x16b   :  { %14778 = vmatpush3.msra.mxu1 %v2659_v23  ;;  %v463_v47 = vpop.f32.mrf.mxu0  ;;  %v821_v59 = vpop.f32.mrf.mxu1 }
 0x16c   :  { %14779 = vmatprep.subr.mxu1 %v2666_v32  ;;  %v464_v3 = vadd.f32 %v463_v47, %v342_v54 }
 0x16d   :  { %14780 = vmatpush3.msra.mxu1 %v2666_v32  ;;  %v14142_v44 = vpop.f32.mrf.mxu0  ;;  %v14256_v30 = vpop.f32.mrf.mxu1 }
 0x16e   :  { %14781 = vmatprep.subr.mxu1 %v2673_v5 }
 0x16f   :  { %14782 = vmatpush3.msra.mxu1 %v2673_v5  ;;  %v477_v18 = vpop.f32.mrf.mxu0  ;;  %v833_v21 = vpop.f32.mrf.mxu1 }
 0x170   :  { %14827 = vmatprep.subr.mxu1 %v18812_v61  ;;  %v582_v61 = vadd.f32 %v14177_v37, %v471_v0 }
 0x171   :  { %v14215_v23 = vpop.f32.mrf.mxu0  ;;  %v14329_v35 = vpop.f32.mrf.mxu1 }
 0x173   :  { %v716_v57 = vpop.f32.mrf.mxu0  ;;  %v1111_v19 = vpop.f32.mrf.mxu1 }
 0x175   :  { %v14218_v32 = vpop.f32.mrf.mxu0  ;;  %v19057_v26 = vpop.f32.mrf.mxu1 }
 0x177   :  { %v728_v5 = vpop.f32.mrf.mxu0  ;;  %v19061_v22 = vpop.f32.mrf.mxu1 }
 0x179   :  { %v14291_v33 = vpop.f32.mrf.mxu0 }
 0x17b   :  { %v930_v58 = vpop.f32.mrf.mxu0 }
 0x17d   :  { %v14294_v2 = vpop.f32.mrf.mxu0 }
 0x17e   :  { %v19063_v50 = vpop.f32.mrf.mxu1 }
 0x17f   :  { %v19053_v14 = vpop.f32.mrf.mxu0 }
 0x180   :  { %v19069_v24 = vpop.f32.mrf.mxu1 }
 0x181   :  { %v14367_v7 = vpop.f32.mrf.mxu0  ;;  %24659 = vst [vmem:[#allocation53_spill] sm:$0xff] %v19069_v24 }
 0x183   :  { %v19055_v29 = vpop.f32.mrf.mxu0 }
 0x184   :  { %v19073_v56 = vpop.f32.mrf.mxu1 }
 0x185   :  { %v19059_v48 = vpop.f32.mrf.mxu0  ;;  %24661 = vst [vmem:[#allocation55_spill] sm:$0xff] %v19073_v56 }
 0x186   :  { %v19077_v8 = vpop.f32.mrf.mxu1 }
 0x187   :  { %v19065_v20 = vpop.f32.mrf.mxu0  ;;  %24663 = vst [vmem:[#allocation57_spill] sm:$0xff] %v19077_v8  ;;  %v723_v8 = vadd.f32 %v14215_v23, %v582_v61 }
 0x188   :  { %24657 = vst [vmem:[#allocation51_spill] sm:$0xff] %v19065_v20 }
 0x189   :  { %v828_v20 = vadd.f32 %v14253_v36, %v723_v8 }
 0x18b   :  { %v941_v31 = vadd.f32 %v14291_v33, %v828_v20 }
 0x18d   :  { %v1118_v34 = vadd.f32 %v14329_v35, %v941_v31 }
 0x18e   :  { %v24675_v20 = vld [vmem:[#allocation57_spill] sm:$0xff] }
 0x18f   :  { %v24671_v33 = vld [vmem:[#allocation51_spill] sm:$0xff] }
 0x198   :  { %v19067_v41 = vpop.f32.mrf.mxu0 }
 0x199   :  { %24658 = vst [vmem:[#allocation52_spill] sm:$0xff] %v19067_v41 }
 0x19a   :  { %v19071_v25 = vpop.f32.mrf.mxu0 }
 0x19b   :  { %24660 = vst [vmem:[#allocation54_spill] sm:$0xff] %v19071_v25 }
 0x19e   :  { %v19075_v1 = vpop.f32.mrf.mxu0 }
 0x19f   :  { %24662 = vst [vmem:[#allocation56_spill] sm:$0xff] %v19075_v1  ;;  %v574_v1 = vadd.f32 %v573_v16, %v464_v3  ;;  %v1241_v16 = vadd.f32 %v14367_v7, %v1118_v34  ;;  %v24669_v7 = vld [vmem:[#allocation53_spill] sm:$0xff] }
 0x1a0   :  { %v19081_v12 = vpop.f32.mrf.mxu0 }
 0x1a1   :  { %24665 = vst [vmem:[#allocation59_spill] sm:$0xff] %v19081_v12  ;;  %v717_v56 = vadd.f32 %v716_v57, %v574_v1 }
 0x1a2   :  { %v19079_v49 = vpop.f32.mrf.mxu1 }
 0x1a3   :  { %24664 = vst [vmem:[#allocation58_spill] sm:$0xff] %v19079_v49  ;;  %v478_v49 = vadd.f32 %v477_v18, %v354_v40  ;;  %v822_v24 = vadd.f32 %v821_v59, %v717_v56  ;;  %v24672_v56 = vld [vmem:[#allocation55_spill] sm:$0xff] }
 0x1a4   :  { %v19083_v62 = vpop.f32.mrf.mxu1 }
 0x1a5   :  { %24666 = vst [vmem:[#allocation60_spill] sm:$0xff] %v19083_v62  ;;  %v590_v42 = vadd.f32 %v589_v13, %v478_v49  ;;  %v931_v0 = vadd.f32 %v930_v58, %v822_v24 }
 0x1a6   :  { %v24676_v18 = vld [vmem:[#allocation56_spill] sm:$0xff] }
 0x1a7   :  { %v729_v54 = vadd.f32 %v728_v5, %v590_v42  ;;  %v1112_v61 = vadd.f32 %v1111_v19, %v931_v0 }
 0x1a8   :  { %v19085_v52 = vpop.f32.mrf.mxu1 }
 0x1a9   :  { %24667 = vst [vmem:[#allocation61_spill] sm:$0xff] %v19085_v52  ;;  %v485_v52 = vadd.f32 %v14142_v44, %v360_v15  ;;  %v834_v15 = vadd.f32 %v833_v21, %v729_v54 }
 0x1aa   :  { %v19087_v4 = vpop.f32.mrf.mxu1 }
 0x1ab   :  { %24668 = vst [vmem:[#allocation62_spill] sm:$0xff] %v19087_v4  ;;  %v598_v25 = vadd.f32 %v14180_v45, %v485_v52  ;;  %v951_v49 = vadd.f32 %v19053_v14, %v834_v15 }
 0x1ad   :  { %v735_v53 = vadd.f32 %v14218_v32, %v598_v25  ;;  %v1234_v25 = vadd.f32 %v19055_v29, %v1112_v61  ;;  %v1124_v21 = vadd.f32 %v19061_v22, %v951_v49 }
 0x1af   :  { %v840_v63 = vadd.f32 %v14256_v30, %v735_v53  ;;  %v1352_v30 = vadd.f32 %v19063_v50, %v1241_v16  ;;  %v1248_v29 = vadd.f32 %v24671_v33, %v1124_v21 }
 0x1b0   :  { %v24679_v53 = vld [vmem:[#allocation61_spill] sm:$0xff] }
 0x1b1   :  { %v961_v3 = vadd.f32 %v14294_v2, %v840_v63  ;;  %v1344_v2 = vadd.f32 %v24669_v7, %v1234_v25  ;;  %v24681_v7 = vld [vmem:[#allocation3_spill] sm:$0xff] }
 0x1b2   :  { %v24680_v34 = vld [vmem:[#allocation62_spill] sm:$0xff] }
 0x1b3   :  { %v1130_v59 = vadd.f32 %v19057_v26, %v961_v3  ;;  %v1360_v26 = vadd.f32 %v24675_v20, %v1248_v29  ;;  %v24690_v20 = vld [vmem:[#allocation21_spill] sm:$0xff] }
 0x1b5   :  { %v1255_v19 = vadd.f32 %v19059_v48, %v1130_v59 }
 0x1b7   :  { %v1368_v50 = vadd.f32 %v24672_v56, %v1255_v19  ;;  %v24684_v56 = vld [vmem:[#allocation9_spill] sm:$0xff] }
 0x1b9   :  { %v1505_v47 = vadd.f32 %v24676_v18, %v1368_v50  ;;  %v24692_v18 = vld [vmem:[#allocation23_spill] sm:$0xff] }
 0x1bb   :  { %v1610_v31 = vadd.f32 %v24679_v53, %v1505_v47  ;;  %v24693_v47 = vld [vmem:[#allocation15_spill] sm:$0xff] }
 0x1bc   :  { %v24705_v53 = vld [vmem:[#allocation35_spill] sm:$0xff] }
 0x1bd   :  { %v14519_v38 = vpop.f32.mrf.mxu0 }
 0x1bf   :  { %v1721_v28 = vpop.f32.mrf.mxu0 }
 0x1c5   :  { %v14557_v43 = vpop.f32.mrf.mxu1 }
 0x1c6   :  { %v1909_v27 = vadd.f32 %v14557_v43, %v14519_v38 }
 0x1c7   :  { %v1902_v10 = vpop.f32.mrf.mxu1 }
 0x1c8   :  { %v1903_v1 = vadd.f32 %v1902_v10, %v1721_v28  ;;  %v24670_v10 = vld [vmem:[#allocation52_spill] sm:$0xff] }
 0x1da   :  { %v14522_v39 = vpop.f32.mrf.mxu0 }
 0x1dc   :  { %v1741_v11 = vpop.f32.mrf.mxu0 }
 0x1e0   :  { %v14595_v6 = vpop.f32.mrf.mxu0 }
 0x1e1   :  { %v14560_v46 = vpop.f32.mrf.mxu1  ;;  %v2032_v8 = vadd.f32 %v14595_v6, %v1909_v27  ;;  %v1493_v6 = vadd.f32 %v24670_v10, %v1352_v30 }
 0x1e2   :  { %v2024_v51 = vpop.f32.mrf.mxu0  ;;  %v1921_v36 = vadd.f32 %v14560_v46, %v14522_v39 }
 0x1e3   :  { %v1914_v12 = vpop.f32.mrf.mxu1  ;;  %v2025_v58 = vadd.f32 %v2024_v51, %v1903_v1  ;;  %v24673_v51 = vld [vmem:[#allocation54_spill] sm:$0xff] }
 0x1e4   :  { %v1915_v35 = vadd.f32 %v1914_v12, %v1741_v11  ;;  %v1487_v11 = vadd.f32 %v24673_v51, %v1344_v2 }
 0x1e6   :  { %v14598_v62 = vpop.f32.mrf.mxu0 }
 0x1e7   :  { %v2046_v14 = vadd.f32 %v14598_v62, %v1921_v36  ;;  %v24677_v62 = vld [vmem:[#allocation60_spill] sm:$0xff] }
 0x1e8   :  { %v2038_v41 = vpop.f32.mrf.mxu0  ;;  %v1592_v55 = vadd.f32 %v24677_v62, %v1487_v11  ;;  %v24694_v62 = vld [vmem:[#allocation26_spill] sm:$0xff] }
 0x1e9   :  { %v2039_v22 = vadd.f32 %v2038_v41, %v1915_v35  ;;  %v24678_v41 = vld [vmem:[#allocation59_spill] sm:$0xff] }
 0x1ea   :  { %v14633_v4 = vpop.f32.mrf.mxu1  ;;  %v1499_v42 = vadd.f32 %v24678_v41, %v1360_v26  ;;  %v24691_v26 = vld [vmem:[#allocation14_spill] sm:$0xff]  ;;  %v24703_v41 = vld [vmem:[#allocation31_spill] sm:$0xff] }
 0x1eb   :  { %v2143_v43 = vadd.f32 %v14633_v4, %v2032_v8  ;;  %v24674_v4 = vld [vmem:[#allocation58_spill] sm:$0xff] }
 0x1ec   :  { %v2134_v60 = vpop.f32.mrf.mxu1  ;;  %v1598_v12 = vadd.f32 %v24674_v4, %v1493_v6  ;;  %v1604_v27 = vadd.f32 %v24680_v34, %v1499_v42  ;;  %v24685_v4 = vld [vmem:[#allocation10_spill] sm:$0xff]  ;;  %v24704_v42 = vld [vmem:[#allocation41_spill] sm:$0xff] }
 0x1ed   :  { %v2135_v28 = vadd.f32 %v2134_v60, %v2025_v58  ;;  %v24712_v34 = vld [vmem:[#allocation49_spill] sm:$0xff] }
 0x1f0   :  { %v14636_v40 = vpop.f32.mrf.mxu1 }
 0x1f1   :  { %v2159_v24 = vadd.f32 %v14636_v40, %v2046_v14 }
 0x1f2   :  { %v2150_v46 = vpop.f32.mrf.mxu1 }
 0x1f3   :  { %v2151_v23 = vadd.f32 %v2150_v46, %v2039_v22  ;;  %v24682_v46 = vld [vmem:[#allocation5_spill] sm:$0xff]  ;;  %v24687_v22 = vld [vmem:[#allocation7_spill] sm:$0xff] }
 0x204   :  { %v14671_v17 = vpop.f32.mrf.mxu0 }
 0x205   :  { %v2284_v38 = vadd.f32 %v14671_v17, %v2143_v43 }
 0x206   :  { %v2277_v52 = vpop.f32.mrf.mxu0 }
 0x207   :  { %v2278_v45 = vadd.f32 %v2277_v52, %v2135_v28 }
 0x208   :  { %v14674_v39 = vpop.f32.mrf.mxu0 }
 0x209   :  { %v2296_v57 = vadd.f32 %v14674_v39, %v2159_v24  ;;  %v24688_v24 = vld [vmem:[#allocation11_spill] sm:$0xff] }
 0x20a   :  { %v2289_v44 = vpop.f32.mrf.mxu0 }
 0x20b   :  { %v2290_v17 = vadd.f32 %v2289_v44, %v2151_v23  ;;  %v24696_v44 = vld [vmem:[#allocation29_spill] sm:$0xff] }
 0x20c   :  { %v24699_v23 = vld [vmem:[#allocation25_spill] sm:$0xff] }
 0x20d   :  { %v14709_v13 = vpop.f32.mrf.mxu1 }
 0x20e   :  { %v2389_v48 = vadd.f32 %v14709_v13, %v2284_v38  ;;  %v24683_v38 = vld [vmem:[#allocation8_spill] sm:$0xff] }
 0x20f   :  { %v2382_v37 = vpop.f32.mrf.mxu1 }
 0x210   :  { %v2405_v32 = vadd.f32 %v2389_v48, %v1598_v12  ;;  %v2383_v5 = vadd.f32 %v2382_v37, %v2278_v45  ;;  %v24686_v12 = vld [vmem:[#allocation4_spill] sm:$0xff]  ;;  %v24689_v48 = vld [vmem:[#allocation13_spill] sm:$0xff] }
 0x211   :  { %v14712_v60 = vpop.f32.mrf.mxu1  ;;  %v24698_v37 = vld [vmem:[#allocation32_spill] sm:$0xff] }
 0x212   :  { %v2414_v54 = vadd.f32 %v12044_v9, %v2405_v32  ;;  %v2404_v63 = vadd.f32 %v2383_v5, %v1592_v55  ;;  %v2401_v0 = vadd.f32 %v14712_v60, %v2296_v57  ;;  %v24695_v55 = vld [vmem:[#allocation16_spill] sm:$0xff]  ;;  %v24700_v57 = vld [vmem:[#allocation34_spill] sm:$0xff]  ;;  %v24702_v5 = vld [vmem:[#allocation37_spill] sm:$0xff] }
 0x213   :  { %v2394_v15 = vpop.f32.mrf.mxu1  ;;  %v24701_v32 = vld [vmem:[#allocation28_spill] sm:$0xff] }
 0x214   :  { %v2418_v3 = vmax.f32 %v2414_v54, 0.0  ;;  %v2413_v61 = vadd.f32 %v12044_v9, %v2404_v63  ;;  %v2407_v16 = vadd.f32 %v2401_v0, %v1610_v31  ;;  %v2395_v40 = vadd.f32 %v2394_v15, %v2290_v17  ;;  %v24706_v31 = vld [vmem:[#allocation44_spill] sm:$0xff]  ;;  %v24708_v17 = vld [vmem:[#allocation47_spill] sm:$0xff]  ;;  %v24711_v0 = vld [vmem:[#allocation46_spill] sm:$0xff] }
 0x215   :  { %v24707_v60 = vld [vmem:[#allocation36_spill] sm:$0xff]  ;;  %v24710_v63 = vld [vmem:[#allocation43_spill] sm:$0xff] }
 0x216   :  { %v19111_v52 = vand.u32 4294901760, %v2418_v3  ;;  %v2417_v1 = vmax.f32 %v2413_v61, 0.0  ;;  %v2416_v8 = vadd.f32 %v12044_v9, %v2407_v16  ;;  %v2406_v36 = vadd.f32 %v2395_v40, %v1604_v27  ;;  %v24709_v54 = vld [vmem:[#allocation40_spill] sm:$0xff]  ;;  %v24713_v27 = vld [vmem:[#allocation6_spill] sm:$0xff]  ;;  %v24717_v16 = vld [vmem:[#allocation19_spill] sm:$0xff] }
 0x217   :  { %v24714_v15 = vld [vmem:[#allocation12_spill] sm:$0xff]  ;;  %v24716_v61 = vld [vmem:[#allocation18_spill] sm:$0xff] }
 0x218   :  { %v19114_v49 = vsub.f32 %v2418_v3, %v19111_v52  ;;  %v2420_v59 = vmax.f32 %v2416_v8, 0.0  ;;  %v2415_v25 = vadd.f32 %v12044_v9, %v2406_v36  ;;  %v19116_v30 = vand.u32 4294901760, %v2417_v1  ;;  %v24697_v9 = vld [vmem:[#allocation22_spill] sm:$0xff]  ;;  %v24715_v3 = vld [vmem:[#allocation17_spill] sm:$0xff]  ;;  %v24718_v40 = vld [vmem:[#allocation20_spill] sm:$0xff] }
 0x219   :  { %v24720_v8 = vld [vmem:[#allocation27_spill] sm:$0xff]  ;;  %v24721_v36 = vld [vmem:[#allocation30_spill] sm:$0xff] }
 0x21a   :  { %v2535_v58 = vand.u32 4294901760, %v19114_v49  ;;  %v19119_v35 = vand.u32 4294901760, %v2420_v59  ;;  %v2419_v43 = vmax.f32 %v2415_v25, 0.0  ;;  %14783 = vmatprep.mubr.f32.mxu1 %v19116_v30  ;;  %v2524_v21 = vsub.f32 %v2417_v1, %v19116_v30  ;;  %v24719_v1 = vld [vmem:[#allocation24_spill] sm:$0xff]  ;;  %v24724_v25 = vld [vmem:[#allocation39_spill] sm:$0xff] }
 0x21b   :  { %14784 = vmatmul.mubr.f32.vlgmr.msra.gmra.mxu1 %v19111_v52 }
 0x21c   :  { %v19125_v19 = vsub.f32 %v2420_v59, %v19119_v35  ;;  %14828 = vmatpush3.msra.mxu1 %v24681_v7  ;;  %v19128_v2 = vand.u32 4294901760, %v2419_v43  ;;  %v2525_v10 = vand.u32 4294901760, %v2524_v21  ;;  %v2536_v6 = vsub.f32 %v19114_v49, %v2535_v58  ;;  %v24723_v59 = vld [vmem:[#allocation38_spill] sm:$0xff] }
 0x21d   :  { %14829 = vmatprep.subr.mxu1 %v24682_v46 }
 0x21e   :  { %14830 = vmatpush3.msra.mxu1 %v24682_v46  ;;  %14786 = vmatprep.mubr.f32.mxu1 %v19128_v2  ;;  %v2526_v39 = vsub.f32 %v2524_v21, %v2525_v10  ;;  %v19137_v14 = vsub.f32 %v2419_v43, %v19128_v2  ;;  %v2555_v28 = vand.u32 4294901760, %v19125_v19  ;;  %v2537_v50 = vand.u32 4294901760, %v2536_v6  ;;  %v24727_v43 = vld [vmem:[#allocation48_spill] sm:$0xff] }
 0x21f   :  { %14831 = vmatprep.subr.mxu1 %v24683_v38  ;;  %14787 = vmatmul.mubr.f32.gmra.mxu1 %v19119_v35 }
 0x220   :  { %14832 = vmatpush3.msra.mxu1 %v24683_v38  ;;  %14859 = vmatprep.mubr.f32.mxu1 %v2525_v10  ;;  %v2527_v33 = vand.u32 4294901760, %v2526_v39  ;;  %v2545_v29 = vand.u32 4294901760, %v19137_v14  ;;  %v2556_v11 = vsub.f32 %v19125_v19, %v2555_v28  ;;  %v12060_v10 = vld [vmem:[%s24069_s3 + $0xf0] sm:$0xff] }
 0x221   :  { %14833 = vmatprep.subr.mxu1 %v24684_v56 }
 0x222   :  { %14834 = vmatpush3.msra.mxu1 %v24684_v56  ;;  %14745 = vmatprep.mubr.f32.mxu0 %v2527_v33  ;;  %v2546_v51 = vsub.f32 %v19137_v14, %v2545_v29  ;;  %v2557_v45 = vand.u32 4294901760, %v2556_v11 }
 0x223   :  { %14835 = vmatprep.subr.mxu1 %v24685_v4  ;;  %14746 = vmatmul.mubr.f32.vlgmr.msra.gmra.mxu0 %v2537_v50 }
 0x224   :  { %14790 = vmatpush3.msra.mxu0 %v24686_v12  ;;  %14836 = vmatpush3.msra.mxu1 %v24685_v4  ;;  %v2547_v13 = vand.u32 4294901760, %v2546_v51 }
 0x225   :  { %14791 = vmatprep.subr.mxu0 %v24687_v22  ;;  %14837 = vmatprep.subr.mxu1 %v24688_v24 }
 0x226   :  { %14792 = vmatpush3.msra.mxu0 %v24687_v22  ;;  %14838 = vmatpush3.msra.mxu1 %v24688_v24 }
 0x227   :  { %14748 = vmatprep.mubr.f32.mxu0 %v2547_v13  ;;  %14793 = vmatprep.subr.mxu0 %v24689_v48 }
 0x228   :  { %14839 = vmatprep.subr.mxu1 %v24690_v20  ;;  %14749 = vmatmul.mubr.f32.gmra.mxu0 %v2557_v45 }
 0x229   :  { %14794 = vmatpush3.msra.mxu0 %v24689_v48  ;;  %14840 = vmatpush3.msra.mxu1 %v24690_v20 }
 0x22a   :  { %14795 = vmatprep.subr.mxu0 %v24691_v26  ;;  %14821 = vmatprep.mubr.f32.mxu0 %v2524_v21  ;;  %v24728_v21 = vld [vmem:[#allocation50_spill] sm:$0xff] }
 0x22b   :  { %14841 = vmatprep.subr.mxu1 %v24692_v18  ;;  %14796 = vmatpush3.msra.mxu0 %v24691_v26 }
 0x22c   :  { %14842 = vmatpush3.msra.mxu1 %v24692_v18  ;;  %14797 = vmatprep.subr.mxu0 %v24693_v47 }
 0x22d   :  { %14843 = vmatprep.subr.mxu1 %v24694_v62  ;;  %14798 = vmatpush3.msra.mxu0 %v24693_v47 }
 0x22e   :  { %14844 = vmatpush3.msra.mxu1 %v24694_v62  ;;  %14799 = vmatprep.subr.mxu0 %v24695_v55 }
 0x22f   :  { %14845 = vmatprep.subr.mxu1 %v24696_v44  ;;  %14800 = vmatpush3.msra.mxu0 %v24695_v55 }
 0x230   :  { %14846 = vmatpush3.msra.mxu1 %v24696_v44  ;;  %14801 = vmatprep.subr.mxu0 %v24697_v9 }
 0x231   :  { %14847 = vmatprep.subr.mxu1 %v24698_v37  ;;  %14802 = vmatpush3.msra.mxu0 %v24697_v9  ;;  %v12055_v9 = vld [vmem:[%s24069_s3 + $0xc8] sm:$0xff] }
 0x232   :  { %14848 = vmatpush3.msra.mxu1 %v24698_v37  ;;  %14803 = vmatprep.subr.mxu0 %v24699_v23 }
 0x233   :  { %14849 = vmatprep.subr.mxu1 %v24700_v57  ;;  %14804 = vmatpush3.msra.mxu0 %v24699_v23 }
 0x234   :  { %14850 = vmatpush3.msra.mxu1 %v24700_v57  ;;  %14805 = vmatprep.subr.mxu0 %v24701_v32 }
 0x235   :  { %14851 = vmatprep.subr.mxu1 %v24702_v5  ;;  %14806 = vmatpush3.msra.mxu0 %v24701_v32  ;;  %v12054_v32 = vld [vmem:[%s24069_s3 + $0xc0] sm:$0xff] }
 0x236   :  { %14852 = vmatpush3.msra.mxu1 %v24702_v5  ;;  %14807 = vmatprep.subr.mxu0 %v24703_v41 }
 0x237   :  { %14853 = vmatprep.subr.mxu1 %v24704_v42  ;;  %14808 = vmatpush3.msra.mxu0 %v24703_v41 }
 0x238   :  { %14854 = vmatpush3.msra.mxu1 %v24704_v42  ;;  %14809 = vmatprep.subr.mxu0 %v24705_v53 }
 0x239   :  { %14855 = vmatprep.subr.mxu1 %v24706_v31  ;;  %14810 = vmatpush3.msra.mxu0 %v24705_v53  ;;  %v12053_v53 = vld [vmem:[%s24069_s3 + $0xb8] sm:$0xff] }
 0x23a   :  { %14856 = vmatpush3.msra.mxu1 %v24706_v31  ;;  %14811 = vmatprep.subr.mxu0 %v24707_v60 }
 0x23b   :  { %14857 = vmatprep.subr.mxu1 %v24708_v17  ;;  %14812 = vmatpush3.msra.mxu0 %v24707_v60 }
 0x23c   :  { %14858 = vmatpush3.msra.mxu1 %v24708_v17  ;;  %14813 = vmatprep.subr.mxu0 %v24709_v54 }
 0x23d   :  { %14860 = vmatmul.mubr.f32.vlgmr.msra.gmra.mxu1 %v2535_v58  ;;  %14903 = vmatprep.subr.mxu1 %v24681_v7  ;;  %v24726_v58 = vld [vmem:[#allocation45_spill] sm:$0xff] }
 0x23e   :  { %14814 = vmatpush3.msra.mxu0 %v24709_v54  ;;  %14862 = vmatprep.mubr.f32.mxu1 %v2545_v29  ;;  %v19402_v54 = vand.u32 4294901760, %v12053_v53 }
 0x23f   :  { %14904 = vmatpush3.msra.mxu1 %v24681_v7  ;;  %14815 = vmatprep.subr.mxu0 %v24710_v63 }
 0x240   :  { %14905 = vmatprep.subr.mxu1 %v24682_v46  ;;  %14816 = vmatpush3.msra.mxu0 %v24710_v63  ;;  %v12052_v63 = vld [vmem:[%s24069_s3 + $0xb0] sm:$0xff] }
 0x241   :  { %14906 = vmatpush3.msra.mxu1 %v24682_v46  ;;  %14817 = vmatprep.subr.mxu0 %v24711_v0  ;;  %v19299_v46 = vand.u32 4294901760, %v12060_v10 }
 0x242   :  { %14863 = vmatmul.mubr.f32.gmra.mxu1 %v2555_v28  ;;  %14907 = vmatprep.subr.mxu1 %v24683_v38 }
 0x243   :  { %14818 = vmatpush3.msra.mxu0 %v24711_v0  ;;  %14908 = vmatpush3.msra.mxu1 %v24683_v38  ;;  %v12056_v38 = vld [vmem:[%s24069_s3 + $0xd0] sm:$0xff]  ;;  %v19325_v29 = vsub.f32 %v12060_v10, %v19299_v46 }
 0x244   :  { %14935 = vmatprep.mubr.f32.mxu1 %v19116_v30  ;;  %14819 = vmatprep.subr.mxu0 %v24712_v34 }
 0x245   :  { %14909 = vmatprep.subr.mxu1 %v24684_v56  ;;  %14820 = vmatpush3.msra.mxu0 %v24712_v34  ;;  %v19343_v12 = vand.u32 4294901760, %v19325_v29 }
 0x246   :  { %14910 = vmatpush3.msra.mxu1 %v24684_v56  ;;  %14822 = vmatmul.mubr.f32.vlgmr.msra.gmra.mxu0 %v19114_v49  ;;  %v24722_v49 = vld [vmem:[#allocation33_spill] sm:$0xff]  ;;  %v19328_v56 = vand.u32 4294901760, %v12056_v38 }
 0x247   :  { %14865 = vmatprep.subr.mxu0 %v24713_v27  ;;  %14911 = vmatprep.subr.mxu1 %v24685_v4  ;;  %24730 = vst [vmem:[#allocation52_spill] sm:$0xff] %v19343_v12 }
 0x248   :  { %14824 = vmatprep.mubr.f32.mxu0 %v19137_v14  ;;  %14866 = vmatpush3.msra.mxu0 %v24713_v27  ;;  %v19346_v13 = vsub.f32 %v12056_v38, %v19328_v56  ;;  %v19415_v27 = vsub.f32 %v12053_v53, %v19402_v54 }
 0x249   :  { %14912 = vmatpush3.msra.mxu1 %v24685_v4  ;;  %14867 = vmatprep.subr.mxu0 %v24714_v15 }
 0x24a   :  { %14913 = vmatprep.subr.mxu1 %v24688_v24  ;;  %14868 = vmatpush3.msra.mxu0 %v24714_v15  ;;  %v19362_v26 = vand.u32 4294901760, %v19346_v13  ;;  %v19417_v15 = vand.u32 4294901760, %v12052_v63 }
 0x24b   :  { %14914 = vmatpush3.msra.mxu1 %v24688_v24  ;;  %14825 = vmatmul.mubr.f32.gmra.mxu0 %v19125_v19  ;;  %v12061_v19 = vld [vmem:[%s24069_s3 + $0xf8] sm:$0xff] }
 0x24c   :  { %14869 = vmatprep.subr.mxu0 %v24715_v3  ;;  %14915 = vmatprep.subr.mxu1 %v24690_v20  ;;  %v19291_v7 = vand.u32 4294901760, %v12061_v19  ;;  %24734 = vst [vmem:[#allocation58_spill] sm:$0xff] %v19362_v26  ;;  %v3402_v23 = vsub.f32 %v19346_v13, %v19362_v26 }
 0x24d   :  { %14870 = vmatpush3.msra.mxu0 %v24715_v3  ;;  %14897 = vmatprep.mubr.f32.mxu0 %v19116_v30  ;;  %v24725_v30 = vld [vmem:[#allocation42_spill] sm:$0xff]  ;;  %v12051_v3 = vld [vmem:[%s24069_s3 + $0xa8] sm:$0xff] }
 0x24e   :  { %14916 = vmatpush3.msra.mxu1 %v24690_v20  ;;  %14871 = vmatprep.subr.mxu0 %v24716_v61  ;;  %v19297_v6 = vsub.f32 %v12061_v19, %v19291_v7  ;;  %v3374_v20 = vsub.f32 %v19325_v29, %v19343_v12 }
 0x24f   :  { %14917 = vmatprep.subr.mxu1 %v24692_v18  ;;  %14872 = vmatpush3.msra.mxu0 %v24716_v61 }
 0x250   :  { %14918 = vmatpush3.msra.mxu1 %v24692_v18  ;;  %14873 = vmatprep.subr.mxu0 %v24717_v16  ;;  %v19322_v33 = vand.u32 4294901760, %v19297_v6 }
 0x251   :  { %14919 = vmatprep.subr.mxu1 %v24694_v62  ;;  %14874 = vmatpush3.msra.mxu0 %v24717_v16 }
 0x252   :  { %14920 = vmatpush3.msra.mxu1 %v24694_v62  ;;  %14875 = vmatprep.subr.mxu0 %v24718_v40  ;;  %24729 = vst [vmem:[#allocation53_spill] sm:$0xff] %v19322_v33  ;;  %v3367_v4 = vsub.f32 %v19297_v6, %v19322_v33  ;;  %v3375_v62 = vand.u32 4294901760, %v3374_v20 }
 0x253   :  { %14921 = vmatprep.subr.mxu1 %v24696_v44  ;;  %14876 = vmatpush3.msra.mxu0 %v24718_v40  ;;  %v19427_v40 = vand.u32 4294901760, %v19415_v27 }
 0x254   :  { %14922 = vmatpush3.msra.mxu1 %v24696_v44  ;;  %14877 = vmatprep.subr.mxu0 %v24719_v1  ;;  %v3368_v48 = vand.u32 4294901760, %v3367_v4 }
 0x255   :  { %14923 = vmatprep.subr.mxu1 %v24698_v37  ;;  %14878 = vmatpush3.msra.mxu0 %v24719_v1  ;;  %24737 = vst [vmem:[#allocation60_spill] sm:$0xff] %v19427_v40  ;;  %v19430_v1 = vsub.f32 %v12052_v63, %v19417_v15 }
 0x256   :  { %14924 = vmatpush3.msra.mxu1 %v24698_v37  ;;  %14879 = vmatprep.subr.mxu0 %v24720_v8 }
 0x257   :  { %14925 = vmatprep.subr.mxu1 %v24700_v57  ;;  %14880 = vmatpush3.msra.mxu0 %v24720_v8  ;;  %v19433_v8 = vand.u32 4294901760, %v12051_v3 }
 0x258   :  { %14926 = vmatpush3.msra.mxu1 %v24700_v57  ;;  %14881 = vmatprep.subr.mxu0 %v24721_v36  ;;  %v19379_v57 = vand.u32 4294901760, %v12055_v9 }
 0x259   :  { %14927 = vmatprep.subr.mxu1 %v24702_v5  ;;  %14882 = vmatpush3.msra.mxu0 %v24721_v36  ;;  %v12050_v36 = vld [vmem:[%s24069_s3 + $0xa0] sm:$0xff] }
 0x25a   :  { %14928 = vmatpush3.msra.mxu1 %v24702_v5  ;;  %14883 = vmatprep.subr.mxu0 %v24722_v49  ;;  %v19387_v41 = vsub.f32 %v12055_v9, %v19379_v57 }
 0x25b   :  { %14929 = vmatprep.subr.mxu1 %v24704_v42  ;;  %14884 = vmatpush3.msra.mxu0 %v24722_v49 }
 0x25c   :  { %14930 = vmatpush3.msra.mxu1 %v24704_v42  ;;  %14885 = vmatprep.subr.mxu0 %v24723_v59  ;;  %v19389_v42 = vand.u32 4294901760, %v12054_v32  ;;  %v19397_v60 = vand.u32 4294901760, %v19387_v41 }
 0x25d   :  { %14931 = vmatprep.subr.mxu1 %v24706_v31  ;;  %14886 = vmatpush3.msra.mxu0 %v24723_v59  ;;  %v3423_v59 = vsub.f32 %v19415_v27, %v19427_v40 }
 0x25e   :  { %14932 = vmatpush3.msra.mxu1 %v24706_v31  ;;  %14887 = vmatprep.subr.mxu0 %v24724_v25  ;;  %v3403_v31 = vand.u32 4294901760, %v3402_v23  ;;  %24735 = vst [vmem:[#allocation57_spill] sm:$0xff] %v19397_v60  ;;  %v3409_v0 = vsub.f32 %v19387_v41, %v19397_v60  ;;  %v12046_v23 = vld [vmem:[%s24069_s3 + $0x80] sm:$0xff] }
 0x25f   :  { %14933 = vmatprep.subr.mxu1 %v24708_v17  ;;  %14888 = vmatpush3.msra.mxu0 %v24724_v25  ;;  %v19442_v25 = vand.u32 4294901760, %v19430_v1  ;;  %v19507_v63 = vand.u32 4294901760, %v12046_v23 }
 0x260   :  { %14934 = vmatpush3.msra.mxu1 %v24708_v17  ;;  %14889 = vmatprep.subr.mxu0 %v24725_v30  ;;  %v19400_v17 = vsub.f32 %v12054_v32, %v19389_v42  ;;  %v3410_v61 = vand.u32 4294901760, %v3409_v0 }
 0x261   :  { %14936 = vmatmul.mubr.f32.vlgmr.msra.gmra.mxu1 %v19111_v52  ;;  %14890 = vmatpush3.msra.mxu0 %v24725_v30  ;;  %24738 = vst [vmem:[#allocation59_spill] sm:$0xff] %v19442_v25  ;;  %v19444_v30 = vand.u32 4294901760, %v12050_v36  ;;  %v3430_v19 = vsub.f32 %v19430_v1, %v19442_v25 }
 0x262   :  { %14938 = vmatprep.mubr.f32.mxu1 %v19128_v2  ;;  %14891 = vmatprep.subr.mxu0 %v24726_v58  ;;  %v19412_v34 = vand.u32 4294901760, %v19400_v17 }
 0x263   :  { %14892 = vmatpush3.msra.mxu0 %v24726_v58  ;;  %14979 = vmatprep.subr.mxu1 %v3368_v48  ;;  %v19447_v58 = vsub.f32 %v12051_v3, %v19433_v8  ;;  %v19456_v10 = vsub.f32 %v12050_v36, %v19444_v30  ;;  %v3431_v38 = vand.u32 4294901760, %v3430_v19 }
 0x264   :  { %14893 = vmatprep.subr.mxu0 %v24727_v43  ;;  %14980 = vmatpush3.msra.mxu1 %v3368_v48  ;;  %24736 = vst [vmem:[#allocation56_spill] sm:$0xff] %v19412_v34  ;;  %v3416_v16 = vsub.f32 %v19400_v17, %v19412_v34 }
 0x265   :  { %14939 = vmatmul.mubr.f32.gmra.mxu1 %v19119_v35  ;;  %14894 = vmatpush3.msra.mxu0 %v24727_v43  ;;  %v12049_v43 = vld [vmem:[%s24069_s3 + $0x98] sm:$0xff]  ;;  %v19469_v4 = vand.u32 4294901760, %v19456_v10 }
 0x266   :  { %14895 = vmatprep.subr.mxu0 %v24728_v21  ;;  %14981 = vmatprep.subr.mxu1 %v3375_v62  ;;  %v3417_v49 = vand.u32 4294901760, %v3416_v16  ;;  %v19517_v16 = vsub.f32 %v12046_v23, %v19507_v63 }
 0x267   :  { %14896 = vmatpush3.msra.mxu0 %v24728_v21  ;;  %14982 = vmatpush3.msra.mxu1 %v3375_v62  ;;  %v3424_v21 = vand.u32 4294901760, %v3423_v59  ;;  %24740 = vst [vmem:[#allocation62_spill] sm:$0xff] %v19469_v4  ;;  %v3444_v62 = vsub.f32 %v19456_v10, %v19469_v4 }
 0x268   :  { %14898 = vmatmul.mubr.f32.vlgmr.msra.gmra.mxu0 %v19111_v52  ;;  %v12059_v52 = vld [vmem:[%s24069_s3 + $0xe8] sm:$0xff]  ;;  %14941 = vmatprep.subr.mxu0 %v19291_v7  ;;  %24746 = vst [vmem:[#allocation4_spill] sm:$0xff] %v19517_v16  ;;  %v19524_v59 = vand.u32 4294901760, %v19517_v16 }
 0x269   :  { %14900 = vmatprep.mubr.f32.mxu0 %v19128_v2  ;;  %v12057_v2 = vld [vmem:[%s24069_s3 + $0xd8] sm:$0xff]  ;;  %v19311_v39 = vand.u32 4294901760, %v12059_v52  ;;  %14942 = vmatpush3.msra.mxu0 %v19291_v7  ;;  %v3445_v32 = vand.u32 4294901760, %v3444_v62 }
 0x26a   :  { %v19315_v28 = vand.u32 4294901760, %v12057_v2  ;;  %14943 = vmatprep.subr.mxu0 %v19299_v46  ;;  %24747 = vst [vmem:[#allocation7_spill] sm:$0xff] %v19524_v59 }
 0x26b   :  { %v19331_v50 = vsub.f32 %v12059_v52, %v19311_v39  ;;  %14944 = vmatpush3.msra.mxu0 %v19299_v46  ;;  %v19458_v52 = vand.u32 4294901760, %v12049_v43 }
 0x26c   :  { %14901 = vmatmul.mubr.f32.gmra.mxu0 %v19119_v35  ;;  %v12058_v35 = vld [vmem:[%s24069_s3 + $0xe0] sm:$0xff]  ;;  %v19337_v11 = vsub.f32 %v12057_v2, %v19315_v28  ;;  %14945 = vmatprep.subr.mxu0 %v19311_v39  ;;  %v12048_v2 = vld [vmem:[%s24069_s3 + $0x90] sm:$0xff] }
 0x26d   :  { %v19313_v14 = vand.u32 4294901760, %v12058_v35  ;;  %v19350_v22 = vand.u32 4294901760, %v19331_v50  ;;  %14946 = vmatpush3.msra.mxu0 %v19311_v39  ;;  %v19472_v48 = vsub.f32 %v12049_v43, %v19458_v52  ;;  %v19474_v20 = vand.u32 4294901760, %v12048_v2 }
 0x26e   :  { %v19356_v45 = vand.u32 4294901760, %v19337_v11 }
 0x26f   :  { %v19334_v51 = vsub.f32 %v12058_v35, %v19313_v14  ;;  %24731 = vst [vmem:[#allocation51_spill] sm:$0xff] %v19350_v22  ;;  %14947 = vmatprep.subr.mxu0 %v19313_v14  ;;  %v3381_v18 = vsub.f32 %v19331_v50, %v19350_v22  ;;  %v19462_v35 = vand.u32 4294901760, %v19447_v58 }
 0x270   :  { %24733 = vst [vmem:[#allocation54_spill] sm:$0xff] %v19356_v45  ;;  %14948 = vmatpush3.msra.mxu0 %v19313_v14  ;;  %v3395_v55 = vsub.f32 %v19337_v11, %v19356_v45 }
 0x271   :  { %v19353_v24 = vand.u32 4294901760, %v19334_v51  ;;  %14949 = vmatprep.subr.mxu0 %v19315_v28  ;;  %v3382_v44 = vand.u32 4294901760, %v3381_v18  ;;  %24739 = vst [vmem:[#allocation61_spill] sm:$0xff] %v19462_v35  ;;  %v3437_v18 = vsub.f32 %v19447_v58, %v19462_v35 }
 0x272   :  { %14950 = vmatpush3.msra.mxu0 %v19315_v28  ;;  %v3396_v5 = vand.u32 4294901760, %v3395_v55  ;;  %v19486_v55 = vand.u32 4294901760, %v19472_v48 }
 0x273   :  { %24732 = vst [vmem:[#allocation55_spill] sm:$0xff] %v19353_v24  ;;  %v3388_v47 = vsub.f32 %v19334_v51, %v19353_v24  ;;  %14951 = vmatprep.subr.mxu0 %v19328_v56  ;;  %14983 = vmatprep.subr.mxu1 %v3382_v44 }
 0x274   :  { %14952 = vmatpush3.msra.mxu0 %v19328_v56  ;;  %14984 = vmatpush3.msra.mxu1 %v3382_v44  ;;  %24741 = vst [vmem:[#allocation3_spill] sm:$0xff] %v19486_v55  ;;  %v19489_v44 = vsub.f32 %v12048_v2, %v19474_v20 }
 0x275   :  { %v3389_v37 = vand.u32 4294901760, %v3388_v47  ;;  %14953 = vmatprep.subr.mxu0 %v19379_v57  ;;  %v12047_v47 = vld [vmem:[%s24069_s3 + $0x88] sm:$0xff] }
 0x276   :  { %14954 = vmatpush3.msra.mxu0 %v19379_v57  ;;  %24742 = vst [vmem:[#allocation5_spill] sm:$0xff] %v19489_v44  ;;  %v19491_v9 = vand.u32 4294901760, %v12047_v47  ;;  %v19501_v53 = vand.u32 4294901760, %v19489_v44 }
 0x277   :  { %14985 = vmatprep.subr.mxu1 %v3389_v37  ;;  %14955 = vmatprep.subr.mxu0 %v19389_v42 }
 0x278   :  { %14986 = vmatpush3.msra.mxu1 %v3389_v37  ;;  %14956 = vmatpush3.msra.mxu0 %v19389_v42  ;;  %v3438_v37 = vand.u32 4294901760, %v3437_v18  ;;  %24743 = vst [vmem:[#allocation8_spill] sm:$0xff] %v19501_v53  ;;  %v3458_v3 = vsub.f32 %v19489_v44, %v19501_v53 }
 0x279   :  { %14987 = vmatprep.subr.mxu1 %v3396_v5  ;;  %14957 = vmatprep.subr.mxu0 %v19402_v54 }
 0x27a   :  { %14988 = vmatpush3.msra.mxu1 %v3396_v5  ;;  %14958 = vmatpush3.msra.mxu0 %v19402_v54  ;;  %v3451_v5 = vsub.f32 %v19472_v48, %v19486_v55  ;;  %v3459_v36 = vand.u32 4294901760, %v3458_v3 }
 0x27b   :  { %14989 = vmatprep.subr.mxu1 %v3403_v31  ;;  %14959 = vmatprep.subr.mxu0 %v19417_v15 }
 0x27c   :  { %14990 = vmatpush3.msra.mxu1 %v3403_v31  ;;  %14960 = vmatpush3.msra.mxu0 %v19417_v15  ;;  %v19504_v31 = vsub.f32 %v12047_v47, %v19491_v9  ;;  %v3452_v0 = vand.u32 4294901760, %v3451_v5 }
 0x27d   :  { %14991 = vmatprep.subr.mxu1 %v3410_v61  ;;  %14961 = vmatprep.subr.mxu0 %v19433_v8 }
 0x27e   :  { %14992 = vmatpush3.msra.mxu1 %v3410_v61  ;;  %14962 = vmatpush3.msra.mxu0 %v19433_v8  ;;  %24744 = vst [vmem:[#allocation9_spill] sm:$0xff] %v19504_v31  ;;  %v19513_v61 = vand.u32 4294901760, %v19504_v31 }
 0x27f   :  { %14993 = vmatprep.subr.mxu1 %v3417_v49  ;;  %14963 = vmatprep.subr.mxu0 %v19444_v30 }
 0x280   :  { %14994 = vmatpush3.msra.mxu1 %v3417_v49  ;;  %14964 = vmatpush3.msra.mxu0 %v19444_v30  ;;  %24745 = vst [vmem:[#allocation10_spill] sm:$0xff] %v19513_v61  ;;  %v3465_v49 = vsub.f32 %v19504_v31, %v19513_v61 }
 0x281   :  { %14995 = vmatprep.subr.mxu1 %v3424_v21  ;;  %14965 = vmatprep.subr.mxu0 %v19458_v52 }
 0x282   :  { %14996 = vmatpush3.msra.mxu1 %v3424_v21  ;;  %14966 = vmatpush3.msra.mxu0 %v19458_v52  ;;  %v3466_v43 = vand.u32 4294901760, %v3465_v49  ;;  %v3472_v21 = vsub.f32 %v19517_v16, %v19524_v59 }
 0x283   :  { %14997 = vmatprep.subr.mxu1 %v3431_v38  ;;  %14967 = vmatprep.subr.mxu0 %v19474_v20 }
 0x284   :  { %14998 = vmatpush3.msra.mxu1 %v3431_v38  ;;  %14968 = vmatpush3.msra.mxu0 %v19474_v20  ;;  %v3473_v19 = vand.u32 4294901760, %v3472_v21 }
 0x285   :  { %14999 = vmatprep.subr.mxu1 %v3438_v37  ;;  %14969 = vmatprep.subr.mxu0 %v19491_v9 }
 0x286   :  { %15000 = vmatpush3.msra.mxu1 %v3438_v37  ;;  %14970 = vmatpush3.msra.mxu0 %v19491_v9 }
 0x287   :  { %15001 = vmatprep.subr.mxu1 %v3445_v32  ;;  %14971 = vmatprep.subr.mxu0 %v19507_v63 }
 0x288   :  { %15002 = vmatpush3.msra.mxu1 %v3445_v32  ;;  %14972 = vmatpush3.msra.mxu0 %v19507_v63 }
 0x289   :  { %15003 = vmatprep.subr.mxu1 %v3452_v0  ;;  %15017 = vmatprep.subr.mxu0 %v19297_v6 }
 0x28a   :  { %15004 = vmatpush3.msra.mxu1 %v3452_v0  ;;  %v12045_v0 = vld [vmem:[%s24071_s4] ss:$0 sm:$0xff] }
 0x28b   :  { %15005 = vmatprep.subr.mxu1 %v3459_v36 }
 0x28c   :  { %15006 = vmatpush3.msra.mxu1 %v3459_v36 }
 0x28d   :  { %15007 = vmatprep.subr.mxu1 %v3466_v43 }
 0x28e   :  { %15008 = vmatpush3.msra.mxu1 %v3466_v43 }
 0x28f   :  { %15009 = vmatprep.subr.mxu1 %v3473_v19 }
 0x290   :  { %15010 = vmatpush3.msra.mxu1 %v3473_v19 }
 0x291   :  { %15055 = vmatprep.subr.mxu1 %v19291_v7 }
 0x2db   :  { %v14785_v2 = vpop.f32.mrf.mxu1 }
 0x2dd   :  { %v2710_v38 = vpop.f32.mrf.mxu1 }
 0x2df   :  { %v14788_v47 = vpop.f32.mrf.mxu1 }
 0x2e1   :  { %v2722_v37 = vpop.f32.mrf.mxu1 }
 0x2e3   :  { %v14747_v18 = vpop.f32.mrf.mxu0 }
 0x2e4   :  { %v2540_v49 = vadd.f32 %v14747_v18, %v12045_v0 }
 0x2e5   :  { %v2529_v62 = vpop.f32.mrf.mxu0 }
 0x2e6   :  { %v2530_v19 = vadd.f32 %v12045_v0, %v2529_v62  ;;  %v2717_v61 = vadd.f32 %v14785_v2, %v2540_v49 }
 0x2e8   :  { %v14750_v23 = vpop.f32.mrf.mxu0  ;;  %v2711_v25 = vadd.f32 %v2710_v38, %v2530_v19 }
 0x2e9   :  { %v2560_v59 = vadd.f32 %v14750_v23, %v12045_v0 }
 0x2ea   :  { %v2549_v5 = vpop.f32.mrf.mxu0 }
 0x2eb   :  { %v2550_v4 = vadd.f32 %v12045_v0, %v2549_v5  ;;  %v2729_v60 = vadd.f32 %v14788_v47, %v2560_v59  ;;  %v19533_v47 = vld [vmem:[#allocation2 + $0x10] sm:$0xff] }
 0x2ec   :  { %24748 = vst [vmem:[#allocation11_spill] sm:$0xff] %v19533_v47 }
 0x2ed   :  { %v2723_v24 = vadd.f32 %v2722_v37, %v2550_v4 }
 0x2fd   :  { %v14861_v32 = vpop.f32.mrf.mxu1 }
 0x2ff   :  { %v2942_v3 = vpop.f32.mrf.mxu1 }
 0x302   :  { %v14864_v43 = vpop.f32.mrf.mxu1 }
 0x304   :  { %v2958_v53 = vpop.f32.mrf.mxu1 }
 0x306   :  { %v14823_v36 = vpop.f32.mrf.mxu0 }
 0x307   :  { %v2840_v35 = vadd.f32 %v14823_v36, %v2717_v61 }
 0x308   :  { %v2832_v21 = vpop.f32.mrf.mxu0 }
 0x309   :  { %v2833_v34 = vadd.f32 %v2832_v21, %v2711_v25  ;;  %v2951_v22 = vadd.f32 %v14861_v32, %v2840_v35  ;;  %v19552_v32 = vld [vmem:[#allocation2 + $0x28] sm:$0xff] }
 0x30a   :  { %24751 = vst [vmem:[#allocation14_spill] sm:$0xff] %v19552_v32 }
 0x30b   :  { %v14826_v55 = vpop.f32.mrf.mxu0  ;;  %v2943_v31 = vadd.f32 %v2942_v3, %v2833_v34 }
 0x30c   :  { %v2854_v45 = vadd.f32 %v14826_v55, %v2729_v60  ;;  %v19544_v55 = vld [vmem:[#allocation2 + $0x30] sm:$0xff] }
 0x30d   :  { %v2846_v26 = vpop.f32.mrf.mxu0  ;;  %24750 = vst [vmem:[#allocation21_spill] sm:$0xff] %v19544_v55 }
 0x30e   :  { %v2847_v18 = vadd.f32 %v2846_v26, %v2723_v24  ;;  %v2967_v49 = vadd.f32 %v14864_v43, %v2854_v45  ;;  %v19538_v26 = vld [vmem:[#allocation2 + $0x8] sm:$0xff] }
 0x30f   :  { %24749 = vst [vmem:[#allocation13_spill] sm:$0xff] %v19538_v26 }
 0x310   :  { %v2959_v25 = vadd.f32 %v2958_v53, %v2847_v18 }
 0x321   :  { %v14937_v40 = vpop.f32.mrf.mxu1 }
 0x323   :  { %v3190_v12 = vpop.f32.mrf.mxu1 }
 0x325   :  { %v14940_v44 = vpop.f32.mrf.mxu1 }
 0x328   :  { %v14899_v33 = vpop.f32.mrf.mxu0 }
 0x329   :  { %v3092_v16 = vadd.f32 %v14899_v33, %v2951_v22  ;;  %v3202_v33 = vpop.f32.mrf.mxu1 }
 0x32a   :  { %v3085_v62 = vpop.f32.mrf.mxu0 }
 0x32b   :  { %v3197_v23 = vadd.f32 %v14937_v40, %v3092_v16  ;;  %v3086_v2 = vadd.f32 %v3085_v62, %v2943_v31 }
 0x32c   :  { %v14902_v5 = vpop.f32.mrf.mxu0 }
 0x32d   :  { %v3213_v61 = vmax.f32 %v3197_v23, 0.0  ;;  %v3191_v38 = vadd.f32 %v3190_v12, %v3086_v2  ;;  %v3104_v0 = vadd.f32 %v14902_v5, %v2967_v49 }
 0x32e   :  { %v3097_v59 = vpop.f32.mrf.mxu0 }
 0x32f   :  { %v3217_v60 = vadd.f32 %v19533_v47, %v3213_v61  ;;  %v3212_v35 = vmax.f32 %v3191_v38, 0.0  ;;  %v3209_v4 = vadd.f32 %v14940_v44, %v3104_v0  ;;  %v3098_v24 = vadd.f32 %v3097_v59, %v2959_v25 }
 0x331   :  { %v19536_v22 = vand.u32 4294901760, %v3217_v60  ;;  %v3216_v45 = vadd.f32 %v19538_v26, %v3212_v35  ;;  %v3215_v34 = vmax.f32 %v3209_v4, 0.0  ;;  %v3203_v40 = vadd.f32 %v3202_v33, %v3098_v24  ;;  %v12090_v33 = vld [vmem:[%s24067_s1 + $0x258] sm:$0xff] }
 0x333   :  { %v19542_v12 = vsub.f32 %v3217_v60, %v19536_v22  ;;  %v3219_v53 = vadd.f32 %v19544_v55, %v3215_v34  ;;  %v3214_v31 = vmax.f32 %v3203_v40, 0.0  ;;  %v19547_v16 = vand.u32 4294901760, %v3216_v45 }
 0x335   :  { %v3335_v44 = vand.u32 4294901760, %v19542_v12  ;;  %v19550_v37 = vand.u32 4294901760, %v3219_v53  ;;  %v3218_v3 = vadd.f32 %v19552_v32, %v3214_v31  ;;  %15011 = vmatprep.mubr.f32.mxu1 %v19547_v16  ;;  %v3324_v36 = vsub.f32 %v3216_v45, %v19547_v16 }
 0x336   :  { %15012 = vmatmul.mubr.f32.vlgmr.msra.gmra.mxu1 %v19536_v22 }
 0x337   :  { %v19559_v43 = vsub.f32 %v3219_v53, %v19550_v37  ;;  %15056 = vmatpush3.msra.mxu1 %v19291_v7  ;;  %v19562_v21 = vand.u32 4294901760, %v3218_v3  ;;  %v3325_v19 = vand.u32 4294901760, %v3324_v36  ;;  %v3336_v18 = vsub.f32 %v19542_v12, %v3335_v44  ;;  %v12089_v53 = vld [vmem:[%s24067_s1 + $0x250] sm:$0xff] }
 0x338   :  { %15057 = vmatprep.subr.mxu1 %v19299_v46 }
 0x339   :  { %15058 = vmatpush3.msra.mxu1 %v19299_v46  ;;  %15014 = vmatprep.mubr.f32.mxu1 %v19562_v21  ;;  %v3326_v62 = vsub.f32 %v3324_v36, %v3325_v19  ;;  %v19571_v23 = vsub.f32 %v3218_v3, %v19562_v21  ;;  %v3355_v2 = vand.u32 4294901760, %v19559_v43  ;;  %v3337_v61 = vand.u32 4294901760, %v3336_v18 }
 0x33a   :  { %15059 = vmatprep.subr.mxu1 %v19311_v39  ;;  %15015 = vmatmul.mubr.f32.gmra.mxu1 %v19550_v37 }
 0x33b   :  { %15060 = vmatpush3.msra.mxu1 %v19311_v39  ;;  %15087 = vmatprep.mubr.f32.mxu1 %v3325_v19  ;;  %v3327_v49 = vand.u32 4294901760, %v3326_v62  ;;  %v3345_v5 = vand.u32 4294901760, %v19571_v23  ;;  %v3356_v0 = vsub.f32 %v19559_v43, %v3355_v2 }
 0x33c   :  { %15061 = vmatprep.subr.mxu1 %v19313_v14 }
 0x33d   :  { %15062 = vmatpush3.msra.mxu1 %v19313_v14  ;;  %14973 = vmatprep.mubr.f32.mxu0 %v3327_v49  ;;  %v3346_v38 = vsub.f32 %v19571_v23, %v3345_v5  ;;  %v3357_v59 = vand.u32 4294901760, %v3356_v0  ;;  %v12086_v0 = vld [vmem:[%s24067_s1 + $0x238] sm:$0xff] }
 0x33e   :  { %15063 = vmatprep.subr.mxu1 %v19315_v28  ;;  %14974 = vmatmul.mubr.f32.vlgmr.msra.gmra.mxu0 %v3337_v61 }
 0x33f   :  { %15018 = vmatpush3.msra.mxu0 %v19297_v6  ;;  %15064 = vmatpush3.msra.mxu1 %v19315_v28  ;;  %v3347_v25 = vand.u32 4294901760, %v3346_v38  ;;  %v24752_v6 = vld [vmem:[#allocation5_spill] sm:$0xff] }
 0x340   :  { %15019 = vmatprep.subr.mxu0 %v19325_v29  ;;  %15065 = vmatprep.subr.mxu1 %v19328_v56 }
 0x341   :  { %15020 = vmatpush3.msra.mxu0 %v19325_v29  ;;  %15066 = vmatpush3.msra.mxu1 %v19328_v56  ;;  %v24753_v29 = vld [vmem:[#allocation9_spill] sm:$0xff] }
 0x342   :  { %14976 = vmatprep.mubr.f32.mxu0 %v3347_v25  ;;  %15021 = vmatprep.subr.mxu0 %v19331_v50 }
 0x343   :  { %15067 = vmatprep.subr.mxu1 %v19379_v57  ;;  %14977 = vmatmul.mubr.f32.gmra.mxu0 %v3357_v59 }
 0x344   :  { %15022 = vmatpush3.msra.mxu0 %v19331_v50  ;;  %15068 = vmatpush3.msra.mxu1 %v19379_v57  ;;  %v24760_v50 = vld [vmem:[#allocation58_spill] sm:$0xff] }
 0x345   :  { %15023 = vmatprep.subr.mxu0 %v19334_v51  ;;  %15049 = vmatprep.mubr.f32.mxu0 %v3324_v36  ;;  %v12088_v36 = vld [vmem:[%s24067_s1 + $0x248] sm:$0xff] }
 0x346   :  { %15069 = vmatprep.subr.mxu1 %v19389_v42  ;;  %15024 = vmatpush3.msra.mxu0 %v19334_v51  ;;  %v24761_v51 = vld [vmem:[#allocation57_spill] sm:$0xff]  ;;  %v19802_v18 = vand.u32 4294901760, %v12088_v36 }
 0x347   :  { %15070 = vmatpush3.msra.mxu1 %v19389_v42  ;;  %15025 = vmatprep.subr.mxu0 %v19337_v11 }
 0x348   :  { %15071 = vmatprep.subr.mxu1 %v19402_v54  ;;  %15026 = vmatpush3.msra.mxu0 %v19337_v11  ;;  %v24762_v11 = vld [vmem:[#allocation56_spill] sm:$0xff] }
 0x349   :  { %15072 = vmatpush3.msra.mxu1 %v19402_v54  ;;  %15027 = vmatprep.subr.mxu0 %v19346_v13 }
 0x34a   :  { %15073 = vmatprep.subr.mxu1 %v19417_v15  ;;  %15028 = vmatpush3.msra.mxu0 %v19346_v13  ;;  %v24763_v13 = vld [vmem:[#allocation60_spill] sm:$0xff] }
 0x34b   :  { %15074 = vmatpush3.msra.mxu1 %v19417_v15  ;;  %15029 = vmatprep.subr.mxu0 %v19387_v41 }
 0x34c   :  { %15075 = vmatprep.subr.mxu1 %v19433_v8  ;;  %15030 = vmatpush3.msra.mxu0 %v19387_v41  ;;  %v24765_v41 = vld [vmem:[#allocation61_spill] sm:$0xff] }
 0x34d   :  { %15076 = vmatpush3.msra.mxu1 %v19433_v8  ;;  %15031 = vmatprep.subr.mxu0 %v19400_v17 }
 0x34e   :  { %15077 = vmatprep.subr.mxu1 %v19444_v30  ;;  %15032 = vmatpush3.msra.mxu0 %v19400_v17  ;;  %v24767_v17 = vld [vmem:[#allocation3_spill] sm:$0xff] }
 0x34f   :  { %15078 = vmatpush3.msra.mxu1 %v19444_v30  ;;  %15033 = vmatprep.subr.mxu0 %v19415_v27 }
 0x350   :  { %15079 = vmatprep.subr.mxu1 %v19458_v52  ;;  %15034 = vmatpush3.msra.mxu0 %v19415_v27  ;;  %v24769_v27 = vld [vmem:[#allocation10_spill] sm:$0xff] }
 0x351   :  { %15080 = vmatpush3.msra.mxu1 %v19458_v52  ;;  %15035 = vmatprep.subr.mxu0 %v19430_v1 }
 0x352   :  { %15081 = vmatprep.subr.mxu1 %v19474_v20  ;;  %15036 = vmatpush3.msra.mxu0 %v19430_v1  ;;  %v12094_v1 = vld [vmem:[%s24067_s1 + $0x278] sm:$0xff] }
 0x353   :  { %15082 = vmatpush3.msra.mxu1 %v19474_v20  ;;  %15037 = vmatprep.subr.mxu0 %v19447_v58 }
 0x354   :  { %15083 = vmatprep.subr.mxu1 %v19491_v9  ;;  %15038 = vmatpush3.msra.mxu0 %v19447_v58 }
 0x355   :  { %15084 = vmatpush3.msra.mxu1 %v19491_v9  ;;  %15039 = vmatprep.subr.mxu0 %v19456_v10 }
 0x356   :  { %15085 = vmatprep.subr.mxu1 %v19507_v63  ;;  %15040 = vmatpush3.msra.mxu0 %v19456_v10 }
 0x357   :  { %15086 = vmatpush3.msra.mxu1 %v19507_v63  ;;  %15041 = vmatprep.subr.mxu0 %v19472_v48 }
 0x358   :  { %15088 = vmatmul.mubr.f32.vlgmr.msra.gmra.mxu1 %v3335_v44  ;;  %15131 = vmatprep.subr.mxu1 %v19291_v7 }
 0x359   :  { %15042 = vmatpush3.msra.mxu0 %v19472_v48  ;;  %15090 = vmatprep.mubr.f32.mxu1 %v3345_v5  ;;  %v19816_v5 = vsub.f32 %v12088_v36, %v19802_v18 }
 0x35a   :  { %15132 = vmatpush3.msra.mxu1 %v19291_v7  ;;  %15043 = vmatprep.subr.mxu0 %v24752_v6  ;;  %v24754_v7 = vld [vmem:[#allocation4_spill] sm:$0xff] }
 0x35b   :  { %15133 = vmatprep.subr.mxu1 %v19299_v46  ;;  %15044 = vmatpush3.msra.mxu0 %v24752_v6  ;;  %v19830_v59 = vand.u32 4294901760, %v19816_v5 }
 0x35c   :  { %15134 = vmatpush3.msra.mxu1 %v19299_v46  ;;  %15045 = vmatprep.subr.mxu0 %v24753_v29  ;;  %v24755_v46 = vld [vmem:[#allocation53_spill] sm:$0xff] }
 0x35d   :  { %15091 = vmatmul.mubr.f32.gmra.mxu1 %v3355_v2  ;;  %15135 = vmatprep.subr.mxu1 %v19311_v39  ;;  %24777 = vst [vmem:[#allocation32_spill] sm:$0xff] %v19830_v59 }
 0x35e   :  { %15046 = vmatpush3.msra.mxu0 %v24753_v29  ;;  %15136 = vmatpush3.msra.mxu1 %v19311_v39  ;;  %v24756_v39 = vld [vmem:[#allocation52_spill] sm:$0xff]  ;;  %v19835_v29 = vand.u32 4294901760, %v12086_v0 }
 0x35f   :  { %15163 = vmatprep.mubr.f32.mxu1 %v19547_v16  ;;  %15047 = vmatprep.subr.mxu0 %v24754_v7 }
 0x360   :  { %15137 = vmatprep.subr.mxu1 %v19313_v14  ;;  %15048 = vmatpush3.msra.mxu0 %v24754_v7 }
 0x361   :  { %15138 = vmatpush3.msra.mxu1 %v19313_v14  ;;  %15050 = vmatmul.mubr.f32.vlgmr.msra.gmra.mxu0 %v19542_v12  ;;  %v24757_v14 = vld [vmem:[#allocation51_spill] sm:$0xff]  ;;  %v19777_v12 = vand.u32 4294901760, %v12090_v33 }
 0x362   :  { %15093 = vmatprep.subr.mxu0 %v24755_v46  ;;  %15139 = vmatprep.subr.mxu1 %v19315_v28 }
 0x363   :  { %15052 = vmatprep.mubr.f32.mxu0 %v19571_v23  ;;  %15094 = vmatpush3.msra.mxu0 %v24755_v46  ;;  %v19791_v3 = vsub.f32 %v12090_v33, %v19777_v12  ;;  %v12087_v23 = vld [vmem:[%s24067_s1 + $0x240] sm:$0xff]  ;;  %v12085_v46 = vld [vmem:[%s24067_s1 + $0x230] sm:$0xff] }
 0x364   :  { %15140 = vmatpush3.msra.mxu1 %v19315_v28  ;;  %15095 = vmatprep.subr.mxu0 %v24756_v39  ;;  %v24758_v28 = vld [vmem:[#allocation55_spill] sm:$0xff]  ;;  %v19818_v61 = vand.u32 4294901760, %v12087_v23 }
 0x365   :  { %15141 = vmatprep.subr.mxu1 %v19328_v56  ;;  %15096 = vmatpush3.msra.mxu0 %v24756_v39  ;;  %v19806_v62 = vand.u32 4294901760, %v19791_v3 }
 0x366   :  { %15142 = vmatpush3.msra.mxu1 %v19328_v56  ;;  %15053 = vmatmul.mubr.f32.gmra.mxu0 %v19559_v43  ;;  %v24759_v56 = vld [vmem:[#allocation54_spill] sm:$0xff]  ;;  %v19833_v6 = vsub.f32 %v12087_v23, %v19818_v61  ;;  %v12080_v23 = vld [vmem:[%s24067_s1 + $0x208] sm:$0xff] }
 0x367   :  { %15097 = vmatprep.subr.mxu0 %v24757_v14  ;;  %15143 = vmatprep.subr.mxu1 %v19379_v57  ;;  %24775 = vst [vmem:[#allocation29_spill] sm:$0xff] %v19806_v62  ;;  %v4219_v38 = vsub.f32 %v19791_v3, %v19806_v62 }
 0x368   :  { %15098 = vmatpush3.msra.mxu0 %v24757_v14  ;;  %15125 = vmatprep.mubr.f32.mxu0 %v19547_v16  ;;  %v4233_v14 = vsub.f32 %v19816_v5, %v19830_v59 }
 0x369   :  { %15144 = vmatpush3.msra.mxu1 %v19379_v57  ;;  %15099 = vmatprep.subr.mxu0 %v24758_v28  ;;  %v24764_v57 = vld [vmem:[#allocation59_spill] sm:$0xff]  ;;  %v4220_v7 = vand.u32 4294901760, %v4219_v38 }
 0x36a   :  { %15145 = vmatprep.subr.mxu1 %v19389_v42  ;;  %15100 = vmatpush3.msra.mxu0 %v24758_v28  ;;  %v19845_v28 = vand.u32 4294901760, %v19833_v6 }
 0x36b   :  { %15146 = vmatpush3.msra.mxu1 %v19389_v42  ;;  %15101 = vmatprep.subr.mxu0 %v24759_v56  ;;  %v24766_v42 = vld [vmem:[#allocation62_spill] sm:$0xff] }
 0x36c   :  { %15147 = vmatprep.subr.mxu1 %v19402_v54  ;;  %15102 = vmatpush3.msra.mxu0 %v24759_v56  ;;  %24778 = vst [vmem:[#allocation25_spill] sm:$0xff] %v19845_v28  ;;  %v19848_v56 = vsub.f32 %v12086_v0, %v19835_v29 }
 0x36d   :  { %15148 = vmatpush3.msra.mxu1 %v19402_v54  ;;  %15103 = vmatprep.subr.mxu0 %v24760_v50  ;;  %v24768_v54 = vld [vmem:[#allocation8_spill] sm:$0xff] }
 0x36e   :  { %15149 = vmatprep.subr.mxu1 %v19417_v15  ;;  %15104 = vmatpush3.msra.mxu0 %v24760_v50  ;;  %v19851_v50 = vand.u32 4294901760, %v12085_v46 }
 0x36f   :  { %15150 = vmatpush3.msra.mxu1 %v19417_v15  ;;  %15105 = vmatprep.subr.mxu0 %v24761_v51  ;;  %v24770_v15 = vld [vmem:[#allocation7_spill] sm:$0xff] }
 0x370   :  { %15151 = vmatprep.subr.mxu1 %v19433_v8  ;;  %15106 = vmatpush3.msra.mxu0 %v24761_v51  ;;  %v12084_v51 = vld [vmem:[%s24067_s1 + $0x228] sm:$0xff] }
 0x371   :  { %15152 = vmatpush3.msra.mxu1 %v19433_v8  ;;  %15107 = vmatprep.subr.mxu0 %v24762_v11  ;;  %v19725_v8 = vand.u32 4294901760, %v12094_v1 }
 0x372   :  { %15153 = vmatprep.subr.mxu1 %v19444_v30  ;;  %15108 = vmatpush3.msra.mxu0 %v24762_v11  ;;  %v4234_v11 = vand.u32 4294901760, %v4233_v14 }
 0x373   :  { %15154 = vmatpush3.msra.mxu1 %v19444_v30  ;;  %15109 = vmatprep.subr.mxu0 %v24763_v13  ;;  %v12093_v30 = vld [vmem:[%s24067_s1 + $0x270] sm:$0xff]  ;;  %v19731_v58 = vsub.f32 %v12094_v1, %v19725_v8 }
 0x374   :  { %15155 = vmatprep.subr.mxu1 %v19458_v52  ;;  %15110 = vmatpush3.msra.mxu0 %v24763_v13  ;;  %v19733_v10 = vand.u32 4294901760, %v12093_v30  ;;  %v4240_v13 = vsub.f32 %v19833_v6, %v19845_v28 }
 0x375   :  { %15156 = vmatpush3.msra.mxu1 %v19458_v52  ;;  %15111 = vmatprep.subr.mxu0 %v24764_v57  ;;  %v12092_v52 = vld [vmem:[%s24067_s1 + $0x268] sm:$0xff]  ;;  %v19741_v48 = vand.u32 4294901760, %v19731_v58 }
 0x376   :  { %15157 = vmatprep.subr.mxu1 %v19474_v20  ;;  %15112 = vmatpush3.msra.mxu0 %v24764_v57  ;;  %v19860_v57 = vand.u32 4294901760, %v19848_v56 }
 0x377   :  { %15158 = vmatpush3.msra.mxu1 %v19474_v20  ;;  %15113 = vmatprep.subr.mxu0 %v24765_v41  ;;  %24771 = vst [vmem:[#allocation23_spill] sm:$0xff] %v19741_v48  ;;  %v19744_v20 = vsub.f32 %v12093_v30, %v19733_v10  ;;  %v4191_v60 = vsub.f32 %v19731_v58, %v19741_v48 }
 0x378   :  { %15159 = vmatprep.subr.mxu1 %v19491_v9  ;;  %15114 = vmatpush3.msra.mxu0 %v24765_v41  ;;  %24779 = vst [vmem:[#allocation34_spill] sm:$0xff] %v19860_v57  ;;  %v19862_v41 = vand.u32 4294901760, %v12084_v51 }
 0x379   :  { %15160 = vmatpush3.msra.mxu1 %v19491_v9  ;;  %15115 = vmatprep.subr.mxu0 %v24766_v42  ;;  %v19746_v9 = vand.u32 4294901760, %v12092_v52  ;;  %v19756_v35 = vand.u32 4294901760, %v19744_v20 }
 0x37a   :  { %15161 = vmatprep.subr.mxu1 %v19507_v63  ;;  %15116 = vmatpush3.msra.mxu0 %v24766_v42  ;;  %v19866_v42 = vsub.f32 %v12085_v46, %v19851_v50  ;;  %v12079_v46 = vld [vmem:[%s24067_s1 + $0x200] sm:$0xff] }
 0x37b   :  { %15162 = vmatpush3.msra.mxu1 %v19507_v63  ;;  %15117 = vmatprep.subr.mxu0 %v24767_v17  ;;  %v12091_v63 = vld [vmem:[%s24067_s1 + $0x260] sm:$0xff]  ;;  %24772 = vst [vmem:[#allocation15_spill] sm:$0xff] %v19756_v35  ;;  %v19759_v4 = vsub.f32 %v12092_v52, %v19746_v9  ;;  %v4198_v45 = vsub.f32 %v19744_v20, %v19756_v35  ;;  %v12082_v52 = vld [vmem:[%s24067_s1 + $0x218] sm:$0xff] }
 0x37c   :  { %15164 = vmatmul.mubr.f32.vlgmr.msra.gmra.mxu1 %v19536_v22  ;;  %15118 = vmatpush3.msra.mxu0 %v24767_v17  ;;  %v19761_v24 = vand.u32 4294901760, %v12091_v63  ;;  %v12083_v17 = vld [vmem:[%s24067_s1 + $0x220] sm:$0xff]  ;;  %v19881_v30 = vand.u32 4294901760, %v19866_v42 }
 0x37d   :  { %15166 = vmatprep.mubr.f32.mxu1 %v19562_v21  ;;  %15119 = vmatprep.subr.mxu0 %v24768_v54  ;;  %v19771_v34 = vand.u32 4294901760, %v19759_v4  ;;  %v4199_v31 = vand.u32 4294901760, %v4198_v45  ;;  %v19877_v1 = vand.u32 4294901760, %v12083_v17 }
 0x37e   :  { %15120 = vmatpush3.msra.mxu0 %v24768_v54  ;;  %v19774_v40 = vsub.f32 %v12091_v63, %v19761_v24  ;;  %v4241_v54 = vand.u32 4294901760, %v4240_v13  ;;  %24780 = vst [vmem:[#allocation28_spill] sm:$0xff] %v19881_v30  ;;  %v4254_v45 = vsub.f32 %v19866_v42, %v19881_v30 }
 0x37f   :  { %15121 = vmatprep.subr.mxu0 %v24769_v27  ;;  %24773 = vst [vmem:[#allocation26_spill] sm:$0xff] %v19771_v34  ;;  %v4205_v16 = vsub.f32 %v19759_v4, %v19771_v34  ;;  %v19891_v33 = vsub.f32 %v12083_v17, %v19877_v1 }
 0x380   :  { %15167 = vmatmul.mubr.f32.gmra.mxu1 %v19550_v37  ;;  %15122 = vmatpush3.msra.mxu0 %v24769_v27  ;;  %v19786_v44 = vand.u32 4294901760, %v19774_v40  ;;  %v4247_v27 = vsub.f32 %v19848_v56, %v19860_v57 }
 0x381   :  { %15123 = vmatprep.subr.mxu0 %v24770_v15  ;;  %v4206_v43 = vand.u32 4294901760, %v4205_v16  ;;  %v19905_v16 = vand.u32 4294901760, %v19891_v33 }
 0x382   :  { %15124 = vmatpush3.msra.mxu0 %v24770_v15  ;;  %24774 = vst [vmem:[#allocation16_spill] sm:$0xff] %v19786_v44  ;;  %v19875_v15 = vsub.f32 %v12084_v51, %v19862_v41  ;;  %v4248_v63 = vand.u32 4294901760, %v4247_v27 }
 0x383   :  { %15126 = vmatmul.mubr.f32.vlgmr.msra.gmra.mxu0 %v19536_v22  ;;  %15169 = vmatprep.subr.mxu0 %v19725_v8  ;;  %v4192_v22 = vand.u32 4294901760, %v4191_v60  ;;  %24782 = vst [vmem:[#allocation31_spill] sm:$0xff] %v19905_v16  ;;  %v4268_v38 = vsub.f32 %v19891_v33, %v19905_v16 }
 0x384   :  { %15128 = vmatprep.mubr.f32.mxu0 %v19562_v21  ;;  %15170 = vmatpush3.msra.mxu0 %v19725_v8  ;;  %v4212_v21 = vsub.f32 %v19774_v40, %v19786_v44  ;;  %v19888_v60 = vand.u32 4294901760, %v19875_v15 }
 0x385   :  { %15171 = vmatprep.subr.mxu0 %v19733_v10  ;;  %15207 = vmatprep.subr.mxu1 %v4192_v22 }
 0x386   :  { %15172 = vmatpush3.msra.mxu0 %v19733_v10  ;;  %15208 = vmatpush3.msra.mxu1 %v4192_v22  ;;  %v4213_v2 = vand.u32 4294901760, %v4212_v21  ;;  %24781 = vst [vmem:[#allocation37_spill] sm:$0xff] %v19888_v60  ;;  %v19893_v22 = vand.u32 4294901760, %v12082_v52  ;;  %v4255_v21 = vand.u32 4294901760, %v4254_v45 }
 0x387   :  { %15129 = vmatmul.mubr.f32.gmra.mxu0 %v19550_v37  ;;  %15173 = vmatprep.subr.mxu0 %v19746_v9  ;;  %v19788_v37 = vand.u32 4294901760, %v12089_v53 }
 0x388   :  { %15174 = vmatpush3.msra.mxu0 %v19746_v9  ;;  %15209 = vmatprep.subr.mxu1 %v4199_v31  ;;  %v19908_v36 = vsub.f32 %v12082_v52, %v19893_v22 }
 0x389   :  { %15175 = vmatprep.subr.mxu0 %v19761_v24  ;;  %v19800_v19 = vsub.f32 %v12089_v53, %v19788_v37  ;;  %15210 = vmatpush3.msra.mxu1 %v4199_v31  ;;  %v12081_v53 = vld [vmem:[%s24067_s1 + $0x210] sm:$0xff]  ;;  %v4261_v31 = vsub.f32 %v19875_v15, %v19888_v60 }
 0x38a   :  { %15176 = vmatpush3.msra.mxu0 %v19761_v24  ;;  %15211 = vmatprep.subr.mxu1 %v4206_v43  ;;  %v19920_v0 = vand.u32 4294901760, %v19908_v36 }
 0x38b   :  { %15177 = vmatprep.subr.mxu0 %v19777_v12  ;;  %v19813_v49 = vand.u32 4294901760, %v19800_v19  ;;  %15212 = vmatpush3.msra.mxu1 %v4206_v43  ;;  %v19910_v43 = vand.u32 4294901760, %v12081_v53 }
 0x38c   :  { %15178 = vmatpush3.msra.mxu0 %v19777_v12  ;;  %15213 = vmatprep.subr.mxu1 %v4213_v2  ;;  %24783 = vst [vmem:[#allocation41_spill] sm:$0xff] %v19920_v0  ;;  %v4275_v14 = vsub.f32 %v19908_v36, %v19920_v0 }
 0x38d   :  { %15179 = vmatprep.subr.mxu0 %v19788_v37  ;;  %24776 = vst [vmem:[#allocation22_spill] sm:$0xff] %v19813_v49  ;;  %v4226_v25 = vsub.f32 %v19800_v19, %v19813_v49  ;;  %15214 = vmatpush3.msra.mxu1 %v4213_v2  ;;  %v4262_v2 = vand.u32 4294901760, %v4261_v31 }
 0x38e   :  { %15180 = vmatpush3.msra.mxu0 %v19788_v37  ;;  %15215 = vmatprep.subr.mxu1 %v4220_v7  ;;  %v4276_v17 = vand.u32 4294901760, %v4275_v14 }
 0x38f   :  { %15181 = vmatprep.subr.mxu0 %v19802_v18  ;;  %v4227_v39 = vand.u32 4294901760, %v4226_v25  ;;  %15216 = vmatpush3.msra.mxu1 %v4220_v7  ;;  %v19923_v25 = vsub.f32 %v12081_v53, %v19910_v43  ;;  %v19926_v7 = vand.u32 4294901760, %v12080_v23 }
 0x390   :  { %15182 = vmatpush3.msra.mxu0 %v19802_v18 }
 0x391   :  { %15183 = vmatprep.subr.mxu0 %v19818_v61  ;;  %15217 = vmatprep.subr.mxu1 %v4227_v39  ;;  %24784 = vst [vmem:[#allocation35_spill] sm:$0xff] %v19923_v25  ;;  %v19935_v51 = vand.u32 4294901760, %v19923_v25  ;;  %v19941_v13 = vsub.f32 %v12080_v23, %v19926_v7 }
 0x392   :  { %15184 = vmatpush3.msra.mxu0 %v19818_v61  ;;  %15218 = vmatpush3.msra.mxu1 %v4227_v39  ;;  %v4269_v39 = vand.u32 4294901760, %v4268_v38 }
 0x393   :  { %15185 = vmatprep.subr.mxu0 %v19835_v29  ;;  %15219 = vmatprep.subr.mxu1 %v4234_v11  ;;  %24785 = vst [vmem:[#allocation44_spill] sm:$0xff] %v19935_v51  ;;  %24786 = vst [vmem:[#allocation36_spill] sm:$0xff] %v19941_v13  ;;  %v19951_v52 = vand.u32 4294901760, %v19941_v13 }
 0x394   :  { %15186 = vmatpush3.msra.mxu0 %v19835_v29  ;;  %15220 = vmatpush3.msra.mxu1 %v4234_v11  ;;  %v19937_v11 = vand.u32 4294901760, %v12079_v46 }
 0x395   :  { %15187 = vmatprep.subr.mxu0 %v19851_v50  ;;  %15221 = vmatprep.subr.mxu1 %v4241_v54  ;;  %24788 = vst [vmem:[#allocation40_spill] sm:$0xff] %v19951_v52  ;;  %v4289_v53 = vsub.f32 %v19941_v13, %v19951_v52 }
 0x396   :  { %15188 = vmatpush3.msra.mxu0 %v19851_v50  ;;  %15222 = vmatpush3.msra.mxu1 %v4241_v54  ;;  %v4282_v54 = vsub.f32 %v19923_v25, %v19935_v51  ;;  %v19947_v27 = vsub.f32 %v12079_v46, %v19937_v11 }
 0x397   :  { %15189 = vmatprep.subr.mxu0 %v19862_v41  ;;  %15223 = vmatprep.subr.mxu1 %v4248_v63 }
 0x398   :  { %15190 = vmatpush3.msra.mxu0 %v19862_v41  ;;  %15224 = vmatpush3.msra.mxu1 %v4248_v63  ;;  %24787 = vst [vmem:[#allocation47_spill] sm:$0xff] %v19947_v27  ;;  %v4283_v63 = vand.u32 4294901760, %v4282_v54  ;;  %v19955_v45 = vand.u32 4294901760, %v19947_v27 }
 0x399   :  { %15191 = vmatprep.subr.mxu0 %v19877_v1  ;;  %15225 = vmatprep.subr.mxu1 %v4255_v21 }
 0x39a   :  { %15192 = vmatpush3.msra.mxu0 %v19877_v1  ;;  %15226 = vmatpush3.msra.mxu1 %v4255_v21  ;;  %24789 = vst [vmem:[#allocation43_spill] sm:$0xff] %v19955_v45  ;;  %v4296_v31 = vsub.f32 %v19947_v27, %v19955_v45  ;;  %v4290_v21 = vand.u32 4294901760, %v4289_v53 }
 0x39b   :  { %15193 = vmatprep.subr.mxu0 %v19893_v22  ;;  %15227 = vmatprep.subr.mxu1 %v4262_v2 }
 0x39c   :  { %15194 = vmatpush3.msra.mxu0 %v19893_v22  ;;  %15228 = vmatpush3.msra.mxu1 %v4262_v2  ;;  %v4297_v23 = vand.u32 4294901760, %v4296_v31 }
 0x39d   :  { %15195 = vmatprep.subr.mxu0 %v19910_v43  ;;  %15229 = vmatprep.subr.mxu1 %v4269_v39 }
 0x39e   :  { %15196 = vmatpush3.msra.mxu0 %v19910_v43  ;;  %15230 = vmatpush3.msra.mxu1 %v4269_v39 }
 0x39f   :  { %15197 = vmatprep.subr.mxu0 %v19926_v7  ;;  %15231 = vmatprep.subr.mxu1 %v4276_v17 }
 0x3a0   :  { %15198 = vmatpush3.msra.mxu0 %v19926_v7  ;;  %15232 = vmatpush3.msra.mxu1 %v4276_v17 }
 0x3a1   :  { %15199 = vmatprep.subr.mxu0 %v19937_v11  ;;  %15233 = vmatprep.subr.mxu1 %v4283_v63 }
 0x3a2   :  { %15200 = vmatpush3.msra.mxu0 %v19937_v11  ;;  %15234 = vmatpush3.msra.mxu1 %v4283_v63  ;;  %v12062_v63 = vld [vmem:[%s24071_s4 + $0x1] ss:$0 sm:$0xff] }
 0x3a3   :  { %15245 = vmatprep.subr.mxu0 %v19731_v58  ;;  %15235 = vmatprep.subr.mxu1 %v4290_v21 }
 0x3a4   :  { %15236 = vmatpush3.msra.mxu1 %v4290_v21 }
 0x3a5   :  { %15237 = vmatprep.subr.mxu1 %v4297_v23 }
 0x3a6   :  { %15238 = vmatpush3.msra.mxu1 %v4297_v23 }
 0x3a7   :  { %15283 = vmatprep.subr.mxu1 %v19725_v8 }
 0x3f6   :  { %v15013_v2 = vpop.f32.mrf.mxu1 }
 0x3f8   :  { %v3510_v38 = vpop.f32.mrf.mxu1 }
 0x3fa   :  { %v15016_v39 = vpop.f32.mrf.mxu1 }
 0x3fc   :  { %v3522_v54 = vpop.f32.mrf.mxu1 }
 0x3fe   :  { %v14975_v46 = vpop.f32.mrf.mxu0 }
 0x3ff   :  { %v3340_v21 = vadd.f32 %v14975_v46, %v12062_v63 }
 0x400   :  { %v3329_v14 = vpop.f32.mrf.mxu0 }
 0x401   :  { %v3330_v47 = vadd.f32 %v12062_v63, %v3329_v14  ;;  %v3517_v52 = vadd.f32 %v15013_v2, %v3340_v21 }
 0x403   :  { %v14978_v17 = vpop.f32.mrf.mxu0  ;;  %v3511_v30 = vadd.f32 %v3510_v38, %v3330_v47 }
 0x404   :  { %v3360_v45 = vadd.f32 %v14978_v17, %v12062_v63 }
 0x405   :  { %v3349_v55 = vpop.f32.mrf.mxu0 }
 0x406   :  { %v3350_v16 = vadd.f32 %v12062_v63, %v3349_v55  ;;  %v3529_v59 = vadd.f32 %v15016_v39, %v3360_v45 }
 0x408   :  { %v3523_v44 = vadd.f32 %v3522_v54, %v3350_v16 }
 0x418   :  { %v15089_v32 = vpop.f32.mrf.mxu1 }
 0x41a   :  { %v3742_v53 = vpop.f32.mrf.mxu1 }
 0x41d   :  { %v15092_v26 = vpop.f32.mrf.mxu1 }
 0x41f   :  { %v3758_v51 = vpop.f32.mrf.mxu1 }
 0x421   :  { %v15051_v31 = vpop.f32.mrf.mxu0 }
 0x422   :  { %v3640_v60 = vadd.f32 %v15051_v31, %v3517_v52 }
 0x423   :  { %v3632_v23 = vpop.f32.mrf.mxu0 }
 0x424   :  { %v3633_v28 = vadd.f32 %v3632_v23, %v3511_v30  ;;  %v3751_v34 = vadd.f32 %v15089_v32, %v3640_v60 }
 0x426   :  { %v15054_v0 = vpop.f32.mrf.mxu0  ;;  %v3743_v13 = vadd.f32 %v3742_v53, %v3633_v28 }
 0x427   :  { %v3654_v62 = vadd.f32 %v15054_v0, %v3529_v59 }
 0x428   :  { %v3646_v49 = vpop.f32.mrf.mxu0 }
 0x429   :  { %v3647_v46 = vadd.f32 %v3646_v49, %v3523_v44  ;;  %v3767_v21 = vadd.f32 %v15092_v26, %v3654_v62 }
 0x42b   :  { %v3759_v30 = vadd.f32 %v3758_v51, %v3647_v46 }
 0x43c   :  { %v15165_v57 = vpop.f32.mrf.mxu1 }
 0x43e   :  { %v3990_v35 = vpop.f32.mrf.mxu1 }
 0x440   :  { %v15168_v25 = vpop.f32.mrf.mxu1 }
 0x442   :  { %v4002_v60 = vpop.f32.mrf.mxu1 }
 0x443   :  { %v15127_v48 = vpop.f32.mrf.mxu0 }
 0x444   :  { %v3892_v27 = vadd.f32 %v15127_v48, %v3751_v34 }
 0x445   :  { %v3885_v14 = vpop.f32.mrf.mxu0 }
 0x446   :  { %v3997_v17 = vadd.f32 %v15165_v57, %v3892_v27  ;;  %v3886_v2 = vadd.f32 %v3885_v14, %v3743_v13 }
 0x447   :  { %v15130_v55 = vpop.f32.mrf.mxu0 }
 0x448   :  { %v4013_v52 = vmax.f32 %v3997_v17, 0.0  ;;  %v3991_v47 = vadd.f32 %v3990_v35, %v3886_v2  ;;  %v3904_v38 = vadd.f32 %v15130_v55, %v3767_v21  ;;  %v12073_v55 = vld [vmem:[%s24067_s1 + $0x1d0] sm:$0xff] }
 0x449   :  { %v3897_v45 = vpop.f32.mrf.mxu0 }
 0x44a   :  { %4021 = vst [vmem:[#allocation2 + $0x10] sm:$0xff] %v4013_v52  ;;  %v4012_v59 = vmax.f32 %v3991_v47, 0.0  ;;  %v4009_v16 = vadd.f32 %v15168_v25, %v3904_v38  ;;  %v3898_v32 = vadd.f32 %v3897_v45, %v3759_v30  ;;  %v19967_v0 = vand.u32 4294901760, %v4013_v52  ;;  %v12072_v30 = vld [vmem:[%s24067_s1 + $0x1c8] sm:$0xff] }
 0x44c   :  { %4020 = vst [vmem:[#allocation2 + $0x8] sm:$0xff] %v4012_v59  ;;  %v4015_v48 = vmax.f32 %v4009_v16, 0.0  ;;  %v4003_v34 = vadd.f32 %v4002_v60, %v3898_v32  ;;  %v19969_v44 = vand.u32 4294901760, %v4012_v59  ;;  %v19972_v26 = vsub.f32 %v4013_v52, %v19967_v0  ;;  %v24801_v52 = vld [vmem:[#allocation34_spill] sm:$0xff]  ;;  %v12071_v32 = vld [vmem:[%s24067_s1 + $0x1c0] sm:$0xff] }
 0x44e   :  { %4023 = vst [vmem:[#allocation2 + $0x30] sm:$0xff] %v4015_v48  ;;  %v4014_v35 = vmax.f32 %v4003_v34, 0.0  ;;  %15239 = vmatprep.mubr.f32.mxu1 %v19969_v44  ;;  %v19975_v62 = vand.u32 4294901760, %v4015_v48  ;;  %v4148_v49 = vsub.f32 %v4012_v59, %v19969_v44  ;;  %v4159_v28 = vand.u32 4294901760, %v19972_v26 }
 0x44f   :  { %15240 = vmatmul.mubr.f32.vlgmr.msra.gmra.mxu1 %v19967_v0  ;;  %v20173_v59 = vand.u32 4294901760, %v12073_v55  ;;  %v20187_v34 = vand.u32 4294901760, %v12072_v30 }
 0x450   :  { %4022 = vst [vmem:[#allocation2 + $0x28] sm:$0xff] %v4014_v35  ;;  %15284 = vmatpush3.msra.mxu1 %v19725_v8  ;;  %v19981_v57 = vand.u32 4294901760, %v4014_v35  ;;  %v4149_v25 = vand.u32 4294901760, %v4148_v49  ;;  %v19984_v51 = vsub.f32 %v4015_v48, %v19975_v62  ;;  %v4160_v13 = vsub.f32 %v19972_v26, %v4159_v28 }
 0x451   :  { %15285 = vmatprep.subr.mxu1 %v19733_v10 }
 0x452   :  { %15286 = vmatpush3.msra.mxu1 %v19733_v10  ;;  %15242 = vmatprep.mubr.f32.mxu1 %v19981_v57  ;;  %v4150_v27 = vsub.f32 %v4148_v49, %v4149_v25  ;;  %v19993_v39 = vsub.f32 %v4014_v35, %v19981_v57  ;;  %v4179_v54 = vand.u32 4294901760, %v19984_v51  ;;  %v4161_v31 = vand.u32 4294901760, %v4160_v13  ;;  %v24804_v35 = vld [vmem:[#allocation31_spill] sm:$0xff]  ;;  %v12069_v13 = vld [vmem:[%s24067_s1 + $0x1b0] sm:$0xff] }
 0x453   :  { %15287 = vmatprep.subr.mxu1 %v19746_v9  ;;  %15243 = vmatmul.mubr.f32.gmra.mxu1 %v19975_v62  ;;  %v4024_v48 = vld [vmem:[#allocation2 + $0x4] sm:$0xff] }
 0x454   :  { %15288 = vmatpush3.msra.mxu1 %v19746_v9  ;;  %15315 = vmatprep.mubr.f32.mxu1 %v4149_v25  ;;  %v4151_v63 = vand.u32 4294901760, %v4150_v27  ;;  %v4169_v53 = vand.u32 4294901760, %v19993_v39  ;;  %v4180_v46 = vsub.f32 %v19984_v51, %v4179_v54  ;;  %v12070_v25 = vld [vmem:[%s24067_s1 + $0x1b8] sm:$0xff]  ;;  %v24805_v27 = vld [vmem:[#allocation41_spill] sm:$0xff] }
 0x455   :  { %15289 = vmatprep.subr.mxu1 %v19761_v24 }
 0x456   :  { %15290 = vmatpush3.msra.mxu1 %v19761_v24  ;;  %15201 = vmatprep.mubr.f32.mxu0 %v4151_v63  ;;  %v4170_v23 = vsub.f32 %v19993_v39, %v4169_v53  ;;  %v4181_v17 = vand.u32 4294901760, %v4180_v46  ;;  %v20234_v46 = vand.u32 4294901760, %v12069_v13 }
 0x457   :  { %15291 = vmatprep.subr.mxu1 %v19777_v12  ;;  %15202 = vmatmul.mubr.f32.vlgmr.msra.gmra.mxu0 %v4161_v31 }
 0x458   :  { %15246 = vmatpush3.msra.mxu0 %v19731_v58  ;;  %15292 = vmatpush3.msra.mxu1 %v19777_v12  ;;  %v4171_v14 = vand.u32 4294901760, %v4170_v23  ;;  %v24790_v58 = vld [vmem:[#allocation35_spill] sm:$0xff] }
 0x459   :  { %15247 = vmatprep.subr.mxu0 %v19744_v20  ;;  %15293 = vmatprep.subr.mxu1 %v19788_v37 }
 0x45a   :  { %15248 = vmatpush3.msra.mxu0 %v19744_v20  ;;  %15294 = vmatpush3.msra.mxu1 %v19788_v37  ;;  %v24791_v20 = vld [vmem:[#allocation36_spill] sm:$0xff] }
 0x45b   :  { %15204 = vmatprep.mubr.f32.mxu0 %v4171_v14  ;;  %15249 = vmatprep.subr.mxu0 %v19759_v4  ;;  %v12068_v14 = vld [vmem:[%s24067_s1 + $0x1a8] sm:$0xff] }
 0x45c   :  { %15295 = vmatprep.subr.mxu1 %v19802_v18  ;;  %15205 = vmatmul.mubr.f32.gmra.mxu0 %v4181_v17  ;;  %v24806_v17 = vld [vmem:[#allocation44_spill] sm:$0xff] }
 0x45d   :  { %15250 = vmatpush3.msra.mxu0 %v19759_v4  ;;  %15296 = vmatpush3.msra.mxu1 %v19802_v18  ;;  %v12078_v4 = vld [vmem:[%s24067_s1 + $0x1f8] sm:$0xff] }
 0x45e   :  { %15251 = vmatprep.subr.mxu0 %v19774_v40  ;;  %15277 = vmatprep.mubr.f32.mxu0 %v4148_v49  ;;  %v20199_v49 = vsub.f32 %v12073_v55, %v20173_v59 }
 0x45f   :  { %15297 = vmatprep.subr.mxu1 %v19818_v61  ;;  %15252 = vmatpush3.msra.mxu0 %v19774_v40  ;;  %v20096_v40 = vand.u32 4294901760, %v12078_v4 }
 0x460   :  { %15298 = vmatpush3.msra.mxu1 %v19818_v61  ;;  %15253 = vmatprep.subr.mxu0 %v19791_v3 }
 0x461   :  { %15299 = vmatprep.subr.mxu1 %v19835_v29  ;;  %15254 = vmatpush3.msra.mxu0 %v19791_v3  ;;  %v24796_v3 = vld [vmem:[#allocation16_spill] sm:$0xff] }
 0x462   :  { %15300 = vmatpush3.msra.mxu1 %v19835_v29  ;;  %15255 = vmatprep.subr.mxu0 %v19800_v19 }
 0x463   :  { %15301 = vmatprep.subr.mxu1 %v19851_v50  ;;  %15256 = vmatpush3.msra.mxu0 %v19800_v19  ;;  %v24797_v19 = vld [vmem:[#allocation29_spill] sm:$0xff] }
 0x464   :  { %15302 = vmatpush3.msra.mxu1 %v19851_v50  ;;  %15257 = vmatprep.subr.mxu0 %v19816_v5 }
 0x465   :  { %15303 = vmatprep.subr.mxu1 %v19862_v41  ;;  %15258 = vmatpush3.msra.mxu0 %v19816_v5 }
 0x466   :  { %15304 = vmatpush3.msra.mxu1 %v19862_v41  ;;  %15259 = vmatprep.subr.mxu0 %v19833_v6 }
 0x467   :  { %15305 = vmatprep.subr.mxu1 %v19877_v1  ;;  %15260 = vmatpush3.msra.mxu0 %v19833_v6  ;;  %v24798_v6 = vld [vmem:[#allocation22_spill] sm:$0xff] }
 0x468   :  { %15306 = vmatpush3.msra.mxu1 %v19877_v1  ;;  %15261 = vmatprep.subr.mxu0 %v19848_v56 }
 0x469   :  { %15307 = vmatprep.subr.mxu1 %v19893_v22  ;;  %15262 = vmatpush3.msra.mxu0 %v19848_v56 }
 0x46a   :  { %15308 = vmatpush3.msra.mxu1 %v19893_v22  ;;  %15263 = vmatprep.subr.mxu0 %v19866_v42 }
 0x46b   :  { %15309 = vmatprep.subr.mxu1 %v19910_v43  ;;  %15264 = vmatpush3.msra.mxu0 %v19866_v42  ;;  %v24799_v42 = vld [vmem:[#allocation32_spill] sm:$0xff] }
 0x46c   :  { %15310 = vmatpush3.msra.mxu1 %v19910_v43  ;;  %15265 = vmatprep.subr.mxu0 %v19875_v15 }
 0x46d   :  { %15311 = vmatprep.subr.mxu1 %v19926_v7  ;;  %15266 = vmatpush3.msra.mxu0 %v19875_v15 }
 0x46e   :  { %15312 = vmatpush3.msra.mxu1 %v19926_v7  ;;  %15267 = vmatprep.subr.mxu0 %v19891_v33 }
 0x46f   :  { %15313 = vmatprep.subr.mxu1 %v19937_v11  ;;  %15268 = vmatpush3.msra.mxu0 %v19891_v33 }
 0x470   :  { %15314 = vmatpush3.msra.mxu1 %v19937_v11  ;;  %15269 = vmatprep.subr.mxu0 %v19908_v36 }
 0x471   :  { %15316 = vmatmul.mubr.f32.vlgmr.msra.gmra.mxu1 %v4159_v28  ;;  %15359 = vmatprep.subr.mxu1 %v19725_v8  ;;  %v20201_v28 = vand.u32 4294901760, %v12071_v32 }
 0x472   :  { %15270 = vmatpush3.msra.mxu0 %v19908_v36  ;;  %15318 = vmatprep.mubr.f32.mxu1 %v4169_v53  ;;  %v20224_v53 = vand.u32 4294901760, %v12070_v25 }
 0x473   :  { %15360 = vmatpush3.msra.mxu1 %v19725_v8  ;;  %15271 = vmatprep.subr.mxu0 %v24790_v58  ;;  %v24792_v8 = vld [vmem:[#allocation47_spill] sm:$0xff]  ;;  %v20232_v23 = vsub.f32 %v12071_v32, %v20201_v28 }
 0x474   :  { %15361 = vmatprep.subr.mxu1 %v19733_v10  ;;  %15272 = vmatpush3.msra.mxu0 %v24790_v58 }
 0x475   :  { %15362 = vmatpush3.msra.mxu1 %v19733_v10  ;;  %15273 = vmatprep.subr.mxu0 %v24791_v20  ;;  %v24793_v10 = vld [vmem:[#allocation23_spill] sm:$0xff] }
 0x476   :  { %15319 = vmatmul.mubr.f32.gmra.mxu1 %v4179_v54  ;;  %15363 = vmatprep.subr.mxu1 %v19746_v9  ;;  %v20219_v54 = vsub.f32 %v12072_v30, %v20187_v34 }
 0x477   :  { %15274 = vmatpush3.msra.mxu0 %v24791_v20  ;;  %15364 = vmatpush3.msra.mxu1 %v19746_v9  ;;  %v24794_v9 = vld [vmem:[#allocation15_spill] sm:$0xff] }
 0x478   :  { %15391 = vmatprep.mubr.f32.mxu1 %v19969_v44  ;;  %15275 = vmatprep.subr.mxu0 %v24792_v8 }
 0x479   :  { %15365 = vmatprep.subr.mxu1 %v19761_v24  ;;  %15276 = vmatpush3.msra.mxu0 %v24792_v8  ;;  %v20247_v8 = vand.u32 4294901760, %v20219_v54 }
 0x47a   :  { %15366 = vmatpush3.msra.mxu1 %v19761_v24  ;;  %15278 = vmatmul.mubr.f32.vlgmr.msra.gmra.mxu0 %v19972_v26  ;;  %v24795_v24 = vld [vmem:[#allocation26_spill] sm:$0xff] }
 0x47b   :  { %15321 = vmatprep.subr.mxu0 %v24793_v10  ;;  %15367 = vmatprep.subr.mxu1 %v19777_v12  ;;  %v5003_v55 = vsub.f32 %v20219_v54, %v20247_v8 }
 0x47c   :  { %15280 = vmatprep.mubr.f32.mxu0 %v19993_v39  ;;  %15322 = vmatpush3.msra.mxu0 %v24793_v10  ;;  %v12067_v10 = vld [vmem:[%s24067_s1 + $0x1a0] sm:$0xff] }
 0x47d   :  { %15368 = vmatpush3.msra.mxu1 %v19777_v12  ;;  %15323 = vmatprep.subr.mxu0 %v24794_v9  ;;  %v12077_v12 = vld [vmem:[%s24067_s1 + $0x1f0] sm:$0xff] }
 0x47e   :  { %15369 = vmatprep.subr.mxu1 %v19788_v37  ;;  %15324 = vmatpush3.msra.mxu0 %v24794_v9  ;;  %v20110_v5 = vand.u32 4294901760, %v12077_v12  ;;  %v24807_v9 = vld [vmem:[#allocation40_spill] sm:$0xff] }
 0x47f   :  { %15370 = vmatpush3.msra.mxu1 %v19788_v37  ;;  %15281 = vmatmul.mubr.f32.gmra.mxu0 %v19984_v51  ;;  %v12076_v37 = vld [vmem:[%s24067_s1 + $0x1e8] sm:$0xff]  ;;  %v20208_v51 = vand.u32 4294901760, %v4024_v48 }
 0x480   :  { %15325 = vmatprep.subr.mxu0 %v24795_v24  ;;  %15371 = vmatprep.subr.mxu1 %v19802_v18  ;;  %v20119_v56 = vand.u32 4294901760, %v12076_v37  ;;  %v20129_v15 = vsub.f32 %v12077_v12, %v20110_v5  ;;  %v20256_v12 = vand.u32 4294901760, %v12068_v14 }
 0x481   :  { %15326 = vmatpush3.msra.mxu0 %v24795_v24  ;;  %15353 = vmatprep.mubr.f32.mxu0 %v19969_v44  ;;  %v20243_v20 = vsub.f32 %v4024_v48, %v20208_v51  ;;  %v20254_v24 = vsub.f32 %v12070_v25, %v20224_v53  ;;  %v12064_v48 = vld [vmem:[%s24067_s1 + $0x188] sm:$0xff]  ;;  %v12063_v25 = vld [vmem:[%s24067_s1 + $0x180] sm:$0xff] }
 0x482   :  { %15372 = vmatpush3.msra.mxu1 %v19802_v18  ;;  %15327 = vmatprep.subr.mxu0 %v24796_v3  ;;  %v20115_v18 = vsub.f32 %v12078_v4, %v20096_v40  ;;  %v20144_v2 = vsub.f32 %v12076_v37, %v20119_v56  ;;  %v20262_v37 = vand.u32 4294901760, %v20232_v23  ;;  %v20286_v30 = vsub.f32 %v12068_v14, %v20256_v12 }
 0x483   :  { %15373 = vmatprep.subr.mxu1 %v19818_v61  ;;  %15328 = vmatpush3.msra.mxu0 %v24796_v3 }
 0x484   :  { %15374 = vmatpush3.msra.mxu1 %v19818_v61  ;;  %15329 = vmatprep.subr.mxu0 %v24797_v19  ;;  %v12075_v61 = vld [vmem:[%s24067_s1 + $0x1e0] sm:$0xff]  ;;  %v20137_v33 = vand.u32 4294901760, %v20115_v18  ;;  %v20171_v45 = vand.u32 4294901760, %v20144_v2 }
 0x485   :  { %15375 = vmatprep.subr.mxu1 %v19835_v29  ;;  %15330 = vmatpush3.msra.mxu0 %v24797_v19  ;;  %v20139_v36 = vand.u32 4294901760, %v12075_v61  ;;  %v20265_v19 = vsub.f32 %v12069_v13, %v20234_v46 }
 0x486   :  { %15376 = vmatpush3.msra.mxu1 %v19835_v29  ;;  %15331 = vmatprep.subr.mxu0 %v24798_v6  ;;  %v12074_v29 = vld [vmem:[%s24067_s1 + $0x1d8] sm:$0xff]  ;;  %v4961_v47 = vsub.f32 %v20115_v18, %v20137_v33 }
 0x487   :  { %15377 = vmatprep.subr.mxu1 %v19851_v50  ;;  %15332 = vmatpush3.msra.mxu0 %v24798_v6  ;;  %v20148_v21 = vand.u32 4294901760, %v12074_v29  ;;  %v20163_v38 = vsub.f32 %v12075_v61, %v20139_v36  ;;  %v12066_v6 = vld [vmem:[%s24067_s1 + $0x198] sm:$0xff] }
 0x488   :  { %15378 = vmatpush3.msra.mxu1 %v19851_v50  ;;  %15333 = vmatprep.subr.mxu0 %v24799_v42  ;;  %v24800_v50 = vld [vmem:[#allocation25_spill] sm:$0xff]  ;;  %v4962_v44 = vand.u32 4294901760, %v4961_v47  ;;  %v20283_v47 = vand.u32 4294901760, %v20254_v24 }
 0x489   :  { %15379 = vmatprep.subr.mxu1 %v19862_v41  ;;  %15334 = vmatpush3.msra.mxu0 %v24799_v42  ;;  %v20178_v16 = vsub.f32 %v12074_v29, %v20148_v21  ;;  %v20192_v26 = vand.u32 4294901760, %v20163_v38  ;;  %v4919_v42 = vand.u32 4294901760, %v20243_v20  ;;  %v20272_v29 = vand.u32 4294901760, %v12067_v10 }
 0x48a   :  { %15380 = vmatpush3.msra.mxu1 %v19862_v41  ;;  %15335 = vmatprep.subr.mxu0 %v24800_v50  ;;  %v20156_v41 = vand.u32 4294901760, %v20129_v15  ;;  %v5017_v13 = vsub.f32 %v20254_v24, %v20283_v47 }
 0x48b   :  { %15381 = vmatprep.subr.mxu1 %v19877_v1  ;;  %15336 = vmatpush3.msra.mxu0 %v24800_v50  ;;  %v4982_v63 = vsub.f32 %v20163_v38, %v20192_v26  ;;  %v24808_v50 = vld [vmem:[#allocation43_spill] sm:$0xff] }
 0x48c   :  { %15382 = vmatpush3.msra.mxu1 %v19877_v1  ;;  %15337 = vmatprep.subr.mxu0 %v24801_v52  ;;  %v24802_v1 = vld [vmem:[#allocation28_spill] sm:$0xff]  ;;  %v4968_v60 = vsub.f32 %v20129_v15, %v20156_v41 }
 0x48d   :  { %15383 = vmatprep.subr.mxu1 %v19893_v22  ;;  %15338 = vmatpush3.msra.mxu0 %v24801_v52  ;;  %v4983_v4 = vand.u32 4294901760, %v4982_v63  ;;  %v12065_v52 = vld [vmem:[%s24067_s1 + $0x190] sm:$0xff] }
 0x48e   :  { %15384 = vmatpush3.msra.mxu1 %v19893_v22  ;;  %15339 = vmatprep.subr.mxu0 %v24802_v1  ;;  %v24803_v22 = vld [vmem:[#allocation37_spill] sm:$0xff]  ;;  %v4969_v39 = vand.u32 4294901760, %v4968_v60  ;;  %v20294_v60 = vand.u32 4294901760, %v20265_v19 }
 0x48f   :  { %15385 = vmatprep.subr.mxu1 %v19910_v43  ;;  %15340 = vmatpush3.msra.mxu0 %v24802_v1  ;;  %v20288_v1 = vand.u32 4294901760, %v12066_v6 }
 0x490   :  { %15386 = vmatpush3.msra.mxu1 %v19910_v43  ;;  %15341 = vmatprep.subr.mxu0 %v24803_v22  ;;  %v4975_v43 = vsub.f32 %v20144_v2, %v20171_v45 }
 0x491   :  { %15387 = vmatprep.subr.mxu1 %v19926_v7  ;;  %15342 = vmatpush3.msra.mxu0 %v24803_v22  ;;  %v5010_v22 = vsub.f32 %v20232_v23, %v20262_v37 }
 0x492   :  { %15388 = vmatpush3.msra.mxu1 %v19926_v7  ;;  %15343 = vmatprep.subr.mxu0 %v24804_v35  ;;  %v20211_v7 = vand.u32 4294901760, %v20178_v16  ;;  %v4976_v31 = vand.u32 4294901760, %v4975_v43  ;;  %v5004_v43 = vand.u32 4294901760, %v5003_v55 }
 0x493   :  { %15389 = vmatprep.subr.mxu1 %v19937_v11  ;;  %15344 = vmatpush3.msra.mxu0 %v24804_v35  ;;  %v20306_v35 = vand.u32 4294901760, %v12065_v52  ;;  %v5011_v63 = vand.u32 4294901760, %v5010_v22 }
 0x494   :  { %15390 = vmatpush3.msra.mxu1 %v19937_v11  ;;  %15345 = vmatprep.subr.mxu0 %v24805_v27  ;;  %v20229_v11 = vand.u32 4294901760, %v20199_v49  ;;  %v4989_v58 = vsub.f32 %v20178_v16, %v20211_v7 }
 0x495   :  { %15392 = vmatmul.mubr.f32.vlgmr.msra.gmra.mxu1 %v19967_v0  ;;  %15435 = vmatprep.subr.mxu1 %v4962_v44 }
 0x496   :  { %15346 = vmatpush3.msra.mxu0 %v24805_v27  ;;  %15394 = vmatprep.mubr.f32.mxu1 %v19981_v57  ;;  %v4996_v3 = vsub.f32 %v20199_v49, %v20229_v11  ;;  %v4990_v61 = vand.u32 4294901760, %v4989_v58  ;;  %v20317_v27 = vand.u32 4294901760, %v20286_v30  ;;  %v20332_v58 = vsub.f32 %v12065_v52, %v20306_v35 }
 0x497   :  { %15436 = vmatpush3.msra.mxu1 %v4962_v44  ;;  %15347 = vmatprep.subr.mxu0 %v24806_v17  ;;  %v4920_v44 = vsub.f32 %v20243_v20, %v4919_v42 }
 0x498   :  { %15437 = vmatprep.subr.mxu1 %v4969_v39  ;;  %15348 = vmatpush3.msra.mxu0 %v24806_v17  ;;  %v4997_v32 = vand.u32 4294901760, %v4996_v3 }
 0x499   :  { %15438 = vmatpush3.msra.mxu1 %v4969_v39  ;;  %15349 = vmatprep.subr.mxu0 %v24807_v9  ;;  %v20320_v39 = vsub.f32 %v12066_v6, %v20288_v1  ;;  %v4921_v14 = vand.u32 4294901760, %v4920_v44 }
 0x49a   :  { %15395 = vmatmul.mubr.f32.gmra.mxu1 %v19975_v62  ;;  %15439 = vmatprep.subr.mxu1 %v4976_v31 }
 0x49b   :  { %15350 = vmatpush3.msra.mxu0 %v24807_v9  ;;  %15440 = vmatpush3.msra.mxu1 %v4976_v31  ;;  %v5024_v31 = vsub.f32 %v20265_v19, %v20294_v60  ;;  %v5018_v9 = vand.u32 4294901760, %v5017_v13 }
 0x49c   :  { %15467 = vmatprep.mubr.f32.mxu1 %v20208_v51  ;;  %15351 = vmatprep.subr.mxu0 %v24808_v50 }
 0x49d   :  { %15441 = vmatprep.subr.mxu1 %v4983_v4  ;;  %15352 = vmatpush3.msra.mxu0 %v24808_v50  ;;  %v5025_v6 = vand.u32 4294901760, %v5024_v31  ;;  %v20351_v50 = vand.u32 4294901760, %v20332_v58 }
 0x49e   :  { %15442 = vmatpush3.msra.mxu1 %v4983_v4  ;;  %15354 = vmatmul.mubr.f32.vlgmr.msra.gmra.mxu0 %v19967_v0  ;;  %v20304_v0 = vsub.f32 %v12067_v10, %v20272_v29  ;;  %v20334_v10 = vand.u32 4294901760, %v12063_v25  ;;  %v5031_v4 = vsub.f32 %v20286_v30, %v20317_v27 }
 0x49f   :  { %15397 = vmatprep.subr.mxu0 %v20096_v40  ;;  %15443 = vmatprep.subr.mxu1 %v4990_v61  ;;  %v5052_v44 = vsub.f32 %v20332_v58, %v20351_v50 }
 0x4a0   :  { %15356 = vmatprep.mubr.f32.mxu0 %v19981_v57  ;;  %15398 = vmatpush3.msra.mxu0 %v20096_v40  ;;  %v20322_v57 = vand.u32 4294901760, %v12064_v48  ;;  %v20329_v17 = vand.u32 4294901760, %v20304_v0  ;;  %v20354_v55 = vsub.f32 %v12063_v25, %v20334_v10  ;;  %v5032_v52 = vand.u32 4294901760, %v5031_v4 }
 0x4a1   :  { %15444 = vmatpush3.msra.mxu1 %v4990_v61  ;;  %15399 = vmatprep.subr.mxu0 %v20110_v5  ;;  %v5053_v31 = vand.u32 4294901760, %v5052_v44 }
 0x4a2   :  { %15445 = vmatprep.subr.mxu1 %v4997_v32  ;;  %15400 = vmatpush3.msra.mxu0 %v20110_v5  ;;  %v20344_v3 = vsub.f32 %v12064_v48, %v20322_v57  ;;  %v5038_v61 = vsub.f32 %v20304_v0, %v20329_v17 }
 0x4a3   :  { %15446 = vmatpush3.msra.mxu1 %v4997_v32  ;;  %15357 = vmatmul.mubr.f32.gmra.mxu0 %v19975_v62  ;;  %v20341_v62 = vand.u32 4294901760, %v20320_v39 }
 0x4a4   :  { %15401 = vmatprep.subr.mxu0 %v20119_v56  ;;  %15447 = vmatprep.subr.mxu1 %v5004_v43  ;;  %v20361_v22 = vand.u32 4294901760, %v20344_v3  ;;  %v5039_v48 = vand.u32 4294901760, %v5038_v61 }
 0x4a5   :  { %15402 = vmatpush3.msra.mxu0 %v20119_v56  ;;  %15429 = vmatprep.mubr.f32.mxu0 %v4921_v14  ;;  %v5045_v32 = vsub.f32 %v20320_v39, %v20341_v62 }
 0x4a6   :  { %15448 = vmatpush3.msra.mxu1 %v5004_v43  ;;  %15403 = vmatprep.subr.mxu0 %v20139_v36  ;;  %v20368_v43 = vand.u32 4294901760, %v20354_v55  ;;  %v5059_v13 = vsub.f32 %v20344_v3, %v20361_v22 }
 0x4a7   :  { %15449 = vmatprep.subr.mxu1 %v5011_v63  ;;  %15404 = vmatpush3.msra.mxu0 %v20139_v36  ;;  %v5046_v25 = vand.u32 4294901760, %v5045_v32 }
 0x4a8   :  { %15450 = vmatpush3.msra.mxu1 %v5011_v63  ;;  %15405 = vmatprep.subr.mxu0 %v20148_v21  ;;  %v4025_v63 = vld [vmem:[#allocation2 + $0xc] sm:$0xff]  ;;  %v5066_v14 = vsub.f32 %v20354_v55, %v20368_v43 }
 0x4a9   :  { %15451 = vmatprep.subr.mxu1 %v5018_v9  ;;  %15406 = vmatpush3.msra.mxu0 %v20148_v21  ;;  %v20379_v4 = vand.u32 4294901760, %v4025_v63 }
 0x4aa   :  { %15452 = vmatpush3.msra.mxu1 %v5018_v9  ;;  %15407 = vmatprep.subr.mxu0 %v20173_v59  ;;  %v4026_v9 = vld [vmem:[#allocation2 + $0x24] sm:$0xff]  ;;  %v5067_v32 = vand.u32 4294901760, %v5066_v14 }
 0x4ab   :  { %15453 = vmatprep.subr.mxu1 %v5025_v6  ;;  %15408 = vmatpush3.msra.mxu0 %v20173_v59  ;;  %v20383_v61 = vand.u32 4294901760, %v4026_v9 }
 0x4ac   :  { %15454 = vmatpush3.msra.mxu1 %v5025_v6  ;;  %15409 = vmatprep.subr.mxu0 %v20187_v34  ;;  %v5060_v6 = vand.u32 4294901760, %v5059_v13 }
 0x4ad   :  { %15455 = vmatprep.subr.mxu1 %v5032_v52  ;;  %15410 = vmatpush3.msra.mxu0 %v20187_v34 }
 0x4ae   :  { %15456 = vmatpush3.msra.mxu1 %v5032_v52  ;;  %15411 = vmatprep.subr.mxu0 %v20201_v28  ;;  %v4027_v52 = vld [vmem:[#allocation2 + $0x2c] sm:$0xff] }
 0x4af   :  { %15457 = vmatprep.subr.mxu1 %v5039_v48  ;;  %15412 = vmatpush3.msra.mxu0 %v20201_v28  ;;  %v20391_v44 = vand.u32 4294901760, %v4027_v52 }
 0x4b0   :  { %15458 = vmatpush3.msra.mxu1 %v5039_v48  ;;  %15413 = vmatprep.subr.mxu0 %v20224_v53  ;;  %v20388_v48 = vsub.f32 %v4025_v63, %v20379_v4 }
 0x4b1   :  { %15459 = vmatprep.subr.mxu1 %v5046_v25  ;;  %15414 = vmatpush3.msra.mxu0 %v20224_v53  ;;  %v20405_v63 = vsub.f32 %v4027_v52, %v20391_v44 }
 0x4b2   :  { %15460 = vmatpush3.msra.mxu1 %v5046_v25  ;;  %15415 = vmatprep.subr.mxu0 %v20234_v46  ;;  %v20395_v25 = vsub.f32 %v4026_v9, %v20383_v61  ;;  %v20400_v13 = vand.u32 4294901760, %v20388_v48 }
 0x4b3   :  { %15461 = vmatprep.subr.mxu1 %v5053_v31  ;;  %15416 = vmatpush3.msra.mxu0 %v20234_v46  ;;  %v20419_v9 = vand.u32 4294901760, %v20405_v63 }
 0x4b4   :  { %15462 = vmatpush3.msra.mxu1 %v5053_v31  ;;  %15417 = vmatprep.subr.mxu0 %v20256_v12  ;;  %v24269_v31 = vand.u32 4294901760, %v20395_v25  ;;  %v4930_v14 = vsub.f32 %v20388_v48, %v20400_v13 }
 0x4b5   :  { %15463 = vmatprep.subr.mxu1 %v5060_v6  ;;  %15418 = vmatpush3.msra.mxu0 %v20256_v12 }
 0x4b6   :  { %15464 = vmatpush3.msra.mxu1 %v5060_v6  ;;  %15419 = vmatprep.subr.mxu0 %v20272_v29  ;;  %v4940_v6 = vsub.f32 %v20395_v25, %v24269_v31  ;;  %v20431_v52 = vand.u32 4294901760, %v4930_v14 }
 0x4b7   :  { %15465 = vmatprep.subr.mxu1 %v5067_v32  ;;  %15420 = vmatpush3.msra.mxu0 %v20272_v29 }
 0x4b8   :  { %15466 = vmatpush3.msra.mxu1 %v5067_v32  ;;  %15421 = vmatprep.subr.mxu0 %v20288_v1  ;;  %v4950_v32 = vsub.f32 %v20405_v63, %v20419_v9  ;;  %v4941_v31 = vand.u32 4294901760, %v4940_v6  ;;  %v12098_v6 = vld [vmem:[%s24067_s1 + $0x298] sm:$0xff] }
 0x4b9   :  { %15468 = vmatmul.mubr.f32.vlgmr.msra.gmra.mxu1 %v20379_v4  ;;  %15511 = vmatprep.subr.mxu1 %v20096_v40 }
 0x4ba   :  { %15422 = vmatpush3.msra.mxu0 %v20288_v1  ;;  %15470 = vmatprep.mubr.f32.mxu1 %v20383_v61 }
 0x4bb   :  { %15512 = vmatpush3.msra.mxu1 %v20096_v40  ;;  %15423 = vmatprep.subr.mxu0 %v20306_v35 }
 0x4bc   :  { %15513 = vmatprep.subr.mxu1 %v20110_v5  ;;  %15424 = vmatpush3.msra.mxu0 %v20306_v35 }
 0x4bd   :  { %15514 = vmatpush3.msra.mxu1 %v20110_v5  ;;  %15425 = vmatprep.subr.mxu0 %v20322_v57 }
 0x4be   :  { %15471 = vmatmul.mubr.f32.gmra.mxu1 %v20391_v44  ;;  %15515 = vmatprep.subr.mxu1 %v20119_v56 }
 0x4bf   :  { %15426 = vmatpush3.msra.mxu0 %v20322_v57  ;;  %15516 = vmatpush3.msra.mxu1 %v20119_v56 }
 0x4c0   :  { %15543 = vmatprep.mubr.f32.mxu1 %v4919_v42  ;;  %15427 = vmatprep.subr.mxu0 %v20334_v10  ;;  %v20444_v42 = vand.u32 4294901760, %v4950_v32 }
 0x4c1   :  { %15517 = vmatprep.subr.mxu1 %v20139_v36  ;;  %15428 = vmatpush3.msra.mxu0 %v20334_v10 }
 0x4c2   :  { %15518 = vmatpush3.msra.mxu1 %v20139_v36  ;;  %15430 = vmatmul.mubr.f32.vlgmr.msra.gmra.mxu0 %v20431_v52 }
 0x4c3   :  { %15473 = vmatprep.subr.mxu0 %v20115_v18  ;;  %15519 = vmatprep.subr.mxu1 %v20148_v21 }
 0x4c4   :  { %15432 = vmatprep.mubr.f32.mxu0 %v4941_v31  ;;  %15474 = vmatpush3.msra.mxu0 %v20115_v18  ;;  %v24809_v18 = vand.u32 4294901760, %v20395_v25 }
 0x4c5   :  { %15520 = vmatpush3.msra.mxu1 %v20148_v21  ;;  %15475 = vmatprep.subr.mxu0 %v20129_v15 }
 0x4c6   :  { %15521 = vmatprep.subr.mxu1 %v20173_v59  ;;  %15476 = vmatpush3.msra.mxu0 %v20129_v15  ;;  %v12108_v15 = vld [vmem:[%s24067_s1 + $0x2e8] sm:$0xff] }
 0x4c7   :  { %15522 = vmatpush3.msra.mxu1 %v20173_v59  ;;  %15433 = vmatmul.mubr.f32.gmra.mxu0 %v20444_v42 }
 0x4c8   :  { %15477 = vmatprep.subr.mxu0 %v20144_v2  ;;  %15523 = vmatprep.subr.mxu1 %v20187_v34 }
 0x4c9   :  { %15478 = vmatpush3.msra.mxu0 %v20144_v2  ;;  %15505 = vmatprep.mubr.f32.mxu0 %v20243_v20  ;;  %v20553_v2 = vand.u32 4294901760, %v12108_v15 }
 0x4ca   :  { %15524 = vmatpush3.msra.mxu1 %v20187_v34  ;;  %15479 = vmatprep.subr.mxu0 %v20163_v38 }
 0x4cb   :  { %15525 = vmatprep.subr.mxu1 %v20201_v28  ;;  %15480 = vmatpush3.msra.mxu0 %v20163_v38  ;;  %v12106_v38 = vld [vmem:[%s24067_s1 + $0x2d8] sm:$0xff] }
 0x4cc   :  { %15526 = vmatpush3.msra.mxu1 %v20201_v28  ;;  %15481 = vmatprep.subr.mxu0 %v20178_v16 }
 0x4cd   :  { %15527 = vmatprep.subr.mxu1 %v20224_v53  ;;  %15482 = vmatpush3.msra.mxu0 %v20178_v16  ;;  %v20578_v16 = vsub.f32 %v12108_v15, %v20553_v2  ;;  %v12097_v15 = vld [vmem:[%s24067_s1 + $0x290] sm:$0xff] }
 0x4ce   :  { %15528 = vmatpush3.msra.mxu1 %v20224_v53  ;;  %15483 = vmatprep.subr.mxu0 %v20199_v49 }
 0x4cf   :  { %15529 = vmatprep.subr.mxu1 %v20234_v46  ;;  %15484 = vmatpush3.msra.mxu0 %v20199_v49 }
 0x4d0   :  { %15530 = vmatpush3.msra.mxu1 %v20234_v46  ;;  %15485 = vmatprep.subr.mxu0 %v20219_v54 }
 0x4d1   :  { %15531 = vmatprep.subr.mxu1 %v20256_v12  ;;  %15486 = vmatpush3.msra.mxu0 %v20219_v54  ;;  %v20605_v54 = vand.u32 4294901760, %v20578_v16 }
 0x4d2   :  { %15532 = vmatpush3.msra.mxu1 %v20256_v12  ;;  %15487 = vmatprep.subr.mxu0 %v20232_v23 }
 0x4d3   :  { %15533 = vmatprep.subr.mxu1 %v20272_v29  ;;  %15488 = vmatpush3.msra.mxu0 %v20232_v23  ;;  %v12103_v23 = vld [vmem:[%s24067_s1 + $0x2c0] sm:$0xff] }
 0x4d4   :  { %15534 = vmatpush3.msra.mxu1 %v20272_v29  ;;  %15489 = vmatprep.subr.mxu0 %v20254_v24 }
 0x4d5   :  { %15535 = vmatprep.subr.mxu1 %v20288_v1  ;;  %15490 = vmatpush3.msra.mxu0 %v20254_v24 }
 0x4d6   :  { %15536 = vmatpush3.msra.mxu1 %v20288_v1  ;;  %15491 = vmatprep.subr.mxu0 %v20265_v19 }
 0x4d7   :  { %15537 = vmatprep.subr.mxu1 %v20306_v35  ;;  %15492 = vmatpush3.msra.mxu0 %v20265_v19  ;;  %v20635_v19 = vand.u32 4294901760, %v12103_v23 }
 0x4d8   :  { %15538 = vmatpush3.msra.mxu1 %v20306_v35  ;;  %15493 = vmatprep.subr.mxu0 %v20286_v30 }
 0x4d9   :  { %15539 = vmatprep.subr.mxu1 %v20322_v57  ;;  %15494 = vmatpush3.msra.mxu0 %v20286_v30 }
 0x4da   :  { %15540 = vmatpush3.msra.mxu1 %v20322_v57  ;;  %15495 = vmatprep.subr.mxu0 %v20304_v0 }
 0x4db   :  { %15541 = vmatprep.subr.mxu1 %v20334_v10  ;;  %15496 = vmatpush3.msra.mxu0 %v20304_v0 }
 0x4dc   :  { %15542 = vmatpush3.msra.mxu1 %v20334_v10  ;;  %15497 = vmatprep.subr.mxu0 %v20320_v39 }
 0x4dd   :  { %15544 = vmatmul.mubr.f32.vlgmr.msra.gmra.mxu1 %v20400_v13  ;;  %15587 = vmatprep.subr.mxu1 %v20096_v40 }
 0x4de   :  { %15498 = vmatpush3.msra.mxu0 %v20320_v39  ;;  %15546 = vmatprep.mubr.f32.mxu1 %v24809_v18 }
 0x4df   :  { %15588 = vmatpush3.msra.mxu1 %v20096_v40  ;;  %15499 = vmatprep.subr.mxu0 %v20332_v58  ;;  %v12110_v40 = vld [vmem:[%s24067_s1 + $0x2f8] sm:$0xff] }
 0x4e0   :  { %15589 = vmatprep.subr.mxu1 %v20110_v5  ;;  %15500 = vmatpush3.msra.mxu0 %v20332_v58 }
 0x4e1   :  { %15590 = vmatpush3.msra.mxu1 %v20110_v5  ;;  %15501 = vmatprep.subr.mxu0 %v20344_v3  ;;  %v20530_v5 = vand.u32 4294901760, %v12110_v40 }
 0x4e2   :  { %15547 = vmatmul.mubr.f32.gmra.mxu1 %v20419_v9  ;;  %15591 = vmatprep.subr.mxu1 %v20119_v56 }
 0x4e3   :  { %15502 = vmatpush3.msra.mxu0 %v20344_v3  ;;  %15592 = vmatpush3.msra.mxu1 %v20119_v56  ;;  %v12109_v56 = vld [vmem:[%s24067_s1 + $0x2f0] sm:$0xff]  ;;  %v12099_v3 = vld [vmem:[%s24067_s1 + $0x2a0] sm:$0xff] }
 0x4e4   :  { %15619 = vmatprep.mubr.f32.mxu1 %v20208_v51  ;;  %15503 = vmatprep.subr.mxu0 %v20354_v55 }
 0x4e5   :  { %15593 = vmatprep.subr.mxu1 %v20139_v36  ;;  %15504 = vmatpush3.msra.mxu0 %v20354_v55 }
 0x4e6   :  { %15594 = vmatpush3.msra.mxu1 %v20139_v36  ;;  %15506 = vmatmul.mubr.f32.vlgmr.msra.gmra.mxu0 %v20388_v48  ;;  %v20549_v36 = vsub.f32 %v12110_v40, %v20530_v5  ;;  %v20700_v40 = vand.u32 4294901760, %v12099_v3 }
 0x4e7   :  { %15549 = vmatprep.subr.mxu0 %v20137_v33  ;;  %15595 = vmatprep.subr.mxu1 %v20148_v21 }
 0x4e8   :  { %15508 = vmatprep.mubr.f32.mxu0 %v20395_v25  ;;  %15550 = vmatpush3.msra.mxu0 %v20137_v33  ;;  %v20544_v33 = vand.u32 4294901760, %v12109_v56 }
 0x4e9   :  { %15596 = vmatpush3.msra.mxu1 %v20148_v21  ;;  %15551 = vmatprep.subr.mxu0 %v20156_v41  ;;  %v12107_v21 = vld [vmem:[%s24067_s1 + $0x2e0] sm:$0xff] }
 0x4ea   :  { %15597 = vmatprep.subr.mxu1 %v20173_v59  ;;  %15552 = vmatpush3.msra.mxu0 %v20156_v41  ;;  %v20563_v41 = vsub.f32 %v12109_v56, %v20544_v33 }
 0x4eb   :  { %15598 = vmatpush3.msra.mxu1 %v20173_v59  ;;  %15509 = vmatmul.mubr.f32.gmra.mxu0 %v20405_v63  ;;  %v20573_v59 = vand.u32 4294901760, %v12107_v21 }
 0x4ec   :  { %15553 = vmatprep.subr.mxu0 %v20171_v45  ;;  %15599 = vmatprep.subr.mxu1 %v20187_v34  ;;  %v20590_v49 = vand.u32 4294901760, %v20563_v41 }
 0x4ed   :  { %15554 = vmatpush3.msra.mxu0 %v20171_v45  ;;  %15581 = vmatprep.mubr.f32.mxu0 %v20208_v51  ;;  %v20571_v45 = vand.u32 4294901760, %v20549_v36  ;;  %v20597_v51 = vsub.f32 %v12107_v21, %v20573_v59 }
 0x4ee   :  { %15600 = vmatpush3.msra.mxu1 %v20187_v34  ;;  %15555 = vmatprep.subr.mxu0 %v20192_v26  ;;  %v20582_v34 = vand.u32 4294901760, %v12106_v38 }
 0x4ef   :  { %15601 = vmatprep.subr.mxu1 %v20201_v28  ;;  %15556 = vmatpush3.msra.mxu0 %v20192_v26  ;;  %v12105_v26 = vld [vmem:[%s24067_s1 + $0x2d0] sm:$0xff]  ;;  %v20626_v24 = vand.u32 4294901760, %v20597_v51 }
 0x4f0   :  { %15602 = vmatpush3.msra.mxu1 %v20201_v28  ;;  %15557 = vmatprep.subr.mxu0 %v20211_v7  ;;  %v5752_v28 = vsub.f32 %v20549_v36, %v20571_v45 }
 0x4f1   :  { %15603 = vmatprep.subr.mxu1 %v20224_v53  ;;  %15558 = vmatpush3.msra.mxu0 %v20211_v7  ;;  %v12104_v7 = vld [vmem:[%s24067_s1 + $0x2c8] sm:$0xff]  ;;  %v5773_v0 = vsub.f32 %v20597_v51, %v20626_v24 }
 0x4f2   :  { %15604 = vmatpush3.msra.mxu1 %v20224_v53  ;;  %15559 = vmatprep.subr.mxu0 %v20229_v11  ;;  %v20607_v53 = vand.u32 4294901760, %v12105_v26  ;;  %v20621_v20 = vand.u32 4294901760, %v12104_v7 }
 0x4f3   :  { %15605 = vmatprep.subr.mxu1 %v20234_v46  ;;  %15560 = vmatpush3.msra.mxu0 %v20229_v11  ;;  %v20612_v11 = vsub.f32 %v12106_v38, %v20582_v34  ;;  %v5774_v55 = vand.u32 4294901760, %v5773_v0  ;;  %v20716_v38 = vand.u32 4294901760, %v12098_v6 }
 0x4f4   :  { %15606 = vmatpush3.msra.mxu1 %v20234_v46  ;;  %15561 = vmatprep.subr.mxu0 %v20247_v8  ;;  %v5759_v46 = vsub.f32 %v20563_v41, %v20590_v49 }
 0x4f5   :  { %15607 = vmatprep.subr.mxu1 %v20256_v12  ;;  %15562 = vmatpush3.msra.mxu0 %v20247_v8  ;;  %v5753_v8 = vand.u32 4294901760, %v5752_v28 }
 0x4f6   :  { %15608 = vmatpush3.msra.mxu1 %v20256_v12  ;;  %15563 = vmatprep.subr.mxu0 %v20262_v37  ;;  %v5766_v12 = vsub.f32 %v20578_v16, %v20605_v54  ;;  %v5760_v30 = vand.u32 4294901760, %v5759_v46  ;;  %v20731_v46 = vand.u32 4294901760, %v12097_v15 }
 0x4f7   :  { %15609 = vmatprep.subr.mxu1 %v20272_v29  ;;  %15564 = vmatpush3.msra.mxu0 %v20262_v37  ;;  %v20633_v37 = vsub.f32 %v12105_v26, %v20607_v53 }
 0x4f8   :  { %15610 = vmatpush3.msra.mxu1 %v20272_v29  ;;  %15565 = vmatprep.subr.mxu0 %v20283_v47  ;;  %v12102_v29 = vld [vmem:[%s24067_s1 + $0x2b8] sm:$0xff] }
 0x4f9   :  { %15611 = vmatprep.subr.mxu1 %v20288_v1  ;;  %15566 = vmatpush3.msra.mxu0 %v20283_v47  ;;  %v20643_v47 = vand.u32 4294901760, %v20612_v11  ;;  %v20661_v39 = vand.u32 4294901760, %v20633_v37 }
 0x4fa   :  { %15612 = vmatpush3.msra.mxu1 %v20288_v1  ;;  %15567 = vmatprep.subr.mxu0 %v20294_v60  ;;  %v20648_v1 = vsub.f32 %v12104_v7, %v20621_v20  ;;  %v12096_v7 = vld [vmem:[%s24067_s1 + $0x288] sm:$0xff] }
 0x4fb   :  { %15613 = vmatprep.subr.mxu1 %v20306_v35  ;;  %15568 = vmatpush3.msra.mxu0 %v20294_v60  ;;  %v12101_v60 = vld [vmem:[%s24067_s1 + $0x2b0] sm:$0xff]  ;;  %v5780_v58 = vsub.f32 %v20612_v11, %v20643_v47 }
 0x4fc   :  { %15614 = vmatpush3.msra.mxu1 %v20306_v35  ;;  %15569 = vmatprep.subr.mxu0 %v20317_v27  ;;  %v20656_v35 = vand.u32 4294901760, %v12102_v29 }
 0x4fd   :  { %15615 = vmatprep.subr.mxu1 %v20322_v57  ;;  %15570 = vmatpush3.msra.mxu0 %v20317_v27  ;;  %v5767_v27 = vand.u32 4294901760, %v5766_v12  ;;  %v5781_v32 = vand.u32 4294901760, %v5780_v58  ;;  %v12095_v12 = vld [vmem:[%s24067_s1 + $0x280] sm:$0xff]  ;;  %v20757_v58 = vsub.f32 %v12097_v15, %v20731_v46 }
 0x4fe   :  { %15616 = vmatpush3.msra.mxu1 %v20322_v57  ;;  %15571 = vmatprep.subr.mxu0 %v20329_v17  ;;  %v20664_v57 = vsub.f32 %v12103_v23, %v20635_v19  ;;  %v20683_v25 = vsub.f32 %v12102_v29, %v20656_v35  ;;  %v20729_v23 = vsub.f32 %v12099_v3, %v20700_v40  ;;  %v20759_v3 = vand.u32 4294901760, %v12095_v12 }
 0x4ff   :  { %15617 = vmatprep.subr.mxu1 %v20334_v10  ;;  %15572 = vmatpush3.msra.mxu0 %v20329_v17  ;;  %v12100_v17 = vld [vmem:[%s24067_s1 + $0x2a8] sm:$0xff]  ;;  %v20777_v15 = vand.u32 4294901760, %v20757_v58 }
 0x500   :  { %15618 = vmatpush3.msra.mxu1 %v20334_v10  ;;  %15573 = vmatprep.subr.mxu0 %v20341_v62  ;;  %v20672_v10 = vand.u32 4294901760, %v12101_v60  ;;  %v20685_v31 = vand.u32 4294901760, %v12100_v17  ;;  %v20691_v14 = vand.u32 4294901760, %v20664_v57 }
 0x501   :  { %15620 = vmatmul.mubr.f32.vlgmr.msra.gmra.mxu1 %v20379_v4  ;;  %15663 = vmatprep.subr.mxu1 %v5753_v8  ;;  %24810 = vst [vmem:[#allocation46_spill] sm:$0xff] %v20777_v15 }
 0x502   :  { %15574 = vmatpush3.msra.mxu0 %v20341_v62  ;;  %15622 = vmatprep.mubr.f32.mxu1 %v20383_v61  ;;  %v20676_v62 = vand.u32 4294901760, %v20648_v1  ;;  %v20698_v18 = vsub.f32 %v12101_v60, %v20672_v10  ;;  %v20714_v21 = vsub.f32 %v12100_v17, %v20685_v31  ;;  %v5801_v28 = vsub.f32 %v20664_v57, %v20691_v14 }
 0x503   :  { %15664 = vmatpush3.msra.mxu1 %v5753_v8  ;;  %15575 = vmatprep.subr.mxu0 %v20351_v50  ;;  %v20745_v60 = vsub.f32 %v12098_v6, %v20716_v38  ;;  %v20754_v17 = vand.u32 4294901760, %v20729_v23 }
 0x504   :  { %15665 = vmatprep.subr.mxu1 %v5760_v30  ;;  %15576 = vmatpush3.msra.mxu0 %v20351_v50  ;;  %v5787_v50 = vsub.f32 %v20633_v37, %v20661_v39  ;;  %v5794_v56 = vsub.f32 %v20648_v1, %v20676_v62  ;;  %v5802_v0 = vand.u32 4294901760, %v5801_v28 }
 0x505   :  { %15666 = vmatpush3.msra.mxu1 %v5760_v30  ;;  %15577 = vmatprep.subr.mxu0 %v20361_v22  ;;  %v20742_v30 = vand.u32 4294901760, %v20714_v21  ;;  %v20767_v6 = vand.u32 4294901760, %v20745_v60 }
 0x506   :  { %15623 = vmatmul.mubr.f32.gmra.mxu1 %v20391_v44  ;;  %15667 = vmatprep.subr.mxu1 %v5767_v27  ;;  %v5788_v26 = vand.u32 4294901760, %v5787_v50  ;;  %v5795_v8 = vand.u32 4294901760, %v5794_v56 }
 0x507   :  { %15578 = vmatpush3.msra.mxu0 %v20361_v22  ;;  %15668 = vmatpush3.msra.mxu1 %v5767_v27  ;;  %v20711_v22 = vand.u32 4294901760, %v20683_v25  ;;  %v5822_v50 = vsub.f32 %v20714_v21, %v20742_v30 }
 0x508   :  { %15695 = vmatprep.mubr.f32.mxu1 %v20379_v4  ;;  %15579 = vmatprep.subr.mxu0 %v20368_v43 }
 0x509   :  { %15669 = vmatprep.subr.mxu1 %v5774_v55  ;;  %15580 = vmatpush3.msra.mxu0 %v20368_v43  ;;  %v20726_v43 = vand.u32 4294901760, %v20698_v18  ;;  %v5808_v29 = vsub.f32 %v20683_v25, %v20711_v22  ;;  %v5823_v28 = vand.u32 4294901760, %v5822_v50  ;;  %v5607_v50 = vld [vmem:[#allocation2 + $0x14] sm:$0xff] }
 0x50a   :  { %15670 = vmatpush3.msra.mxu1 %v5774_v55  ;;  %15582 = vmatmul.mubr.f32.vlgmr.msra.gmra.mxu0 %v20379_v4 }
 0x50b   :  { %15625 = vmatprep.subr.mxu0 %v20530_v5  ;;  %15671 = vmatprep.subr.mxu1 %v5781_v32  ;;  %v5815_v27 = vsub.f32 %v20698_v18, %v20726_v43  ;;  %v5809_v55 = vand.u32 4294901760, %v5808_v29  ;;  %v5843_v29 = vsub.f32 %v20757_v58, %v20777_v15  ;;  %v20805_v15 = vand.u32 4294901760, %v5607_v50 }
 0x50c   :  { %15584 = vmatprep.mubr.f32.mxu0 %v20383_v61  ;;  %15626 = vmatpush3.msra.mxu0 %v20530_v5  ;;  %v20747_v61 = vand.u32 4294901760, %v12096_v7 }
 0x50d   :  { %15672 = vmatpush3.msra.mxu1 %v5781_v32  ;;  %15627 = vmatprep.subr.mxu0 %v20544_v33  ;;  %v5816_v56 = vand.u32 4294901760, %v5815_v27 }
 0x50e   :  { %15673 = vmatprep.subr.mxu1 %v5788_v26  ;;  %15628 = vmatpush3.msra.mxu0 %v20544_v33  ;;  %v20770_v32 = vsub.f32 %v12096_v7, %v20747_v61  ;;  %v5836_v7 = vsub.f32 %v20745_v60, %v20767_v6 }
 0x50f   :  { %15674 = vmatpush3.msra.mxu1 %v5788_v26  ;;  %15585 = vmatmul.mubr.f32.gmra.mxu0 %v20391_v44  ;;  %v20780_v26 = vsub.f32 %v12095_v12, %v20759_v3 }
 0x510   :  { %15629 = vmatprep.subr.mxu0 %v20553_v2  ;;  %15675 = vmatprep.subr.mxu1 %v5795_v8  ;;  %v5837_v27 = vand.u32 4294901760, %v5836_v7 }
 0x511   :  { %15630 = vmatpush3.msra.mxu0 %v20553_v2  ;;  %15657 = vmatprep.mubr.f32.mxu0 %v20431_v52  ;;  %v5829_v52 = vsub.f32 %v20729_v23, %v20754_v17 }
 0x512   :  { %15676 = vmatpush3.msra.mxu1 %v5795_v8  ;;  %15631 = vmatprep.subr.mxu0 %v20573_v59  ;;  %v20787_v8 = vand.u32 4294901760, %v20770_v32 }
 0x513   :  { %15677 = vmatprep.subr.mxu1 %v5802_v0  ;;  %15632 = vmatpush3.msra.mxu0 %v20573_v59  ;;  %v5830_v12 = vand.u32 4294901760, %v5829_v52  ;;  %v5844_v52 = vand.u32 4294901760, %v5843_v29 }
 0x514   :  { %15678 = vmatpush3.msra.mxu1 %v5802_v0  ;;  %15633 = vmatprep.subr.mxu0 %v20582_v34  ;;  %v20794_v0 = vand.u32 4294901760, %v20780_v26 }
 0x515   :  { %15679 = vmatprep.subr.mxu1 %v5809_v55  ;;  %15634 = vmatpush3.msra.mxu0 %v20582_v34 }
 0x516   :  { %15680 = vmatpush3.msra.mxu1 %v5809_v55  ;;  %15635 = vmatprep.subr.mxu0 %v20607_v53  ;;  %24811 = vst [vmem:[#allocation49_spill] sm:$0xff] %v20794_v0  ;;  %v5850_v55 = vsub.f32 %v20770_v32, %v20787_v8 }
 0x517   :  { %15681 = vmatprep.subr.mxu1 %v5816_v56  ;;  %15636 = vmatpush3.msra.mxu0 %v20607_v53 }
 0x518   :  { %15682 = vmatpush3.msra.mxu1 %v5816_v56  ;;  %15637 = vmatprep.subr.mxu0 %v20621_v20  ;;  %v5857_v56 = vsub.f32 %v20780_v26, %v20794_v0  ;;  %v5851_v7 = vand.u32 4294901760, %v5850_v55 }
 0x519   :  { %15683 = vmatprep.subr.mxu1 %v5823_v28  ;;  %15638 = vmatpush3.msra.mxu0 %v20621_v20 }
 0x51a   :  { %15684 = vmatpush3.msra.mxu1 %v5823_v28  ;;  %15639 = vmatprep.subr.mxu0 %v20635_v19  ;;  %v5609_v28 = vld [vmem:[#allocation2 + $0x34] sm:$0xff]  ;;  %v5858_v29 = vand.u32 4294901760, %v5857_v56 }
 0x51b   :  { %15685 = vmatprep.subr.mxu1 %v5830_v12  ;;  %15640 = vmatpush3.msra.mxu0 %v20635_v19  ;;  %v20815_v0 = vand.u32 4294901760, %v5609_v28 }
 0x51c   :  { %15686 = vmatpush3.msra.mxu1 %v5830_v12  ;;  %15641 = vmatprep.subr.mxu0 %v20656_v35  ;;  %v20812_v12 = vsub.f32 %v5607_v50, %v20805_v15 }
 0x51d   :  { %15687 = vmatprep.subr.mxu1 %v5837_v27  ;;  %15642 = vmatpush3.msra.mxu0 %v20656_v35  ;;  %v20824_v55 = vsub.f32 %v5609_v28, %v20815_v0 }
 0x51e   :  { %15688 = vmatpush3.msra.mxu1 %v5837_v27  ;;  %15643 = vmatprep.subr.mxu0 %v20672_v10  ;;  %v5720_v27 = vand.u32 4294901760, %v20812_v12 }
 0x51f   :  { %15689 = vmatprep.subr.mxu1 %v5844_v52  ;;  %15644 = vmatpush3.msra.mxu0 %v20672_v10 }
 0x520   :  { %15690 = vmatpush3.msra.mxu1 %v5844_v52  ;;  %15645 = vmatprep.subr.mxu0 %v20685_v31  ;;  %v5721_v50 = vsub.f32 %v20812_v12, %v5720_v27  ;;  %v5740_v52 = vand.u32 4294901760, %v20824_v55 }
 0x521   :  { %15691 = vmatprep.subr.mxu1 %v5851_v7  ;;  %15646 = vmatpush3.msra.mxu0 %v20685_v31 }
 0x522   :  { %15692 = vmatpush3.msra.mxu1 %v5851_v7  ;;  %15647 = vmatprep.subr.mxu0 %v20700_v40  ;;  %v5722_v56 = vand.u32 4294901760, %v5721_v50  ;;  %v5741_v7 = vsub.f32 %v20824_v55, %v5740_v52 }
 0x523   :  { %15693 = vmatprep.subr.mxu1 %v5858_v29  ;;  %15648 = vmatpush3.msra.mxu0 %v20700_v40 }
 0x524   :  { %15694 = vmatpush3.msra.mxu1 %v5858_v29  ;;  %15649 = vmatprep.subr.mxu0 %v20716_v38 }
 0x525   :  { %15696 = vmatmul.mubr.f32.vlgmr.msra.gmra.mxu1 %v20805_v15  ;;  %15739 = vmatprep.subr.mxu1 %v20530_v5 }
 0x526   :  { %15650 = vmatpush3.msra.mxu0 %v20716_v38  ;;  %15698 = vmatprep.mubr.f32.mxu1 %v20391_v44 }
 0x527   :  { %15740 = vmatpush3.msra.mxu1 %v20530_v5  ;;  %15651 = vmatprep.subr.mxu0 %v20731_v46 }
 0x528   :  { %15741 = vmatprep.subr.mxu1 %v20544_v33  ;;  %15652 = vmatpush3.msra.mxu0 %v20731_v46 }
 0x529   :  { %15742 = vmatpush3.msra.mxu1 %v20544_v33  ;;  %15653 = vmatprep.subr.mxu0 %v20747_v61 }
 0x52a   :  { %15699 = vmatmul.mubr.f32.gmra.mxu1 %v20815_v0  ;;  %15743 = vmatprep.subr.mxu1 %v20553_v2 }
 0x52b   :  { %15654 = vmatpush3.msra.mxu0 %v20747_v61  ;;  %15744 = vmatpush3.msra.mxu1 %v20553_v2 }
 0x52c   :  { %15771 = vmatprep.mubr.f32.mxu1 %v20400_v13  ;;  %15655 = vmatprep.subr.mxu0 %v20759_v3  ;;  %v5742_v13 = vand.u32 4294901760, %v5741_v7 }
 0x52d   :  { %15745 = vmatprep.subr.mxu1 %v20573_v59  ;;  %15656 = vmatpush3.msra.mxu0 %v20759_v3 }
 0x52e   :  { %15746 = vmatpush3.msra.mxu1 %v20573_v59  ;;  %15658 = vmatmul.mubr.f32.vlgmr.msra.gmra.mxu0 %v5722_v56 }
 0x52f   :  { %15701 = vmatprep.subr.mxu0 %v20549_v36  ;;  %15747 = vmatprep.subr.mxu1 %v20582_v34 }
 0x530   :  { %15660 = vmatprep.mubr.f32.mxu0 %v20444_v42  ;;  %15702 = vmatpush3.msra.mxu0 %v20549_v36  ;;  %v12126_v42 = vld [vmem:[%s24069_s3 + $0x170] sm:$0xff] }
 0x531   :  { %15748 = vmatpush3.msra.mxu1 %v20582_v34  ;;  %15703 = vmatprep.subr.mxu0 %v20563_v41 }
 0x532   :  { %15749 = vmatprep.subr.mxu1 %v20607_v53  ;;  %15704 = vmatpush3.msra.mxu0 %v20563_v41  ;;  %v12123_v41 = vld [vmem:[%s24069_s3 + $0x158] sm:$0xff] }
 0x533   :  { %15750 = vmatpush3.msra.mxu1 %v20607_v53  ;;  %15661 = vmatmul.mubr.f32.gmra.mxu0 %v5742_v13 }
 0x534   :  { %15705 = vmatprep.subr.mxu0 %v20578_v16  ;;  %15751 = vmatprep.subr.mxu1 %v20621_v20 }
 0x535   :  { %15706 = vmatpush3.msra.mxu0 %v20578_v16  ;;  %15733 = vmatprep.mubr.f32.mxu0 %v20388_v48  ;;  %v24813_v48 = vld [vmem:[#allocation49_spill] sm:$0xff] }
 0x536   :  { %15752 = vmatpush3.msra.mxu1 %v20621_v20  ;;  %15707 = vmatprep.subr.mxu0 %v20597_v51 }
 0x537   :  { %15753 = vmatprep.subr.mxu1 %v20635_v19  ;;  %15708 = vmatpush3.msra.mxu0 %v20597_v51 }
 0x538   :  { %15754 = vmatpush3.msra.mxu1 %v20635_v19  ;;  %15709 = vmatprep.subr.mxu0 %v20612_v11 }
 0x539   :  { %15755 = vmatprep.subr.mxu1 %v20656_v35  ;;  %15710 = vmatpush3.msra.mxu0 %v20612_v11 }
 0x53a   :  { %15756 = vmatpush3.msra.mxu1 %v20656_v35  ;;  %15711 = vmatprep.subr.mxu0 %v20633_v37 }
 0x53b   :  { %15757 = vmatprep.subr.mxu1 %v20672_v10  ;;  %15712 = vmatpush3.msra.mxu0 %v20633_v37 }
 0x53c   :  { %15758 = vmatpush3.msra.mxu1 %v20672_v10  ;;  %15713 = vmatprep.subr.mxu0 %v20648_v1 }
 0x53d   :  { %15759 = vmatprep.subr.mxu1 %v20685_v31  ;;  %15714 = vmatpush3.msra.mxu0 %v20648_v1 }
 0x53e   :  { %15760 = vmatpush3.msra.mxu1 %v20685_v31  ;;  %15715 = vmatprep.subr.mxu0 %v20664_v57 }
 0x53f   :  { %15761 = vmatprep.subr.mxu1 %v20700_v40  ;;  %15716 = vmatpush3.msra.mxu0 %v20664_v57  ;;  %v12122_v57 = vld [vmem:[%s24069_s3 + $0x150] sm:$0xff] }
 0x540   :  { %15762 = vmatpush3.msra.mxu1 %v20700_v40  ;;  %15717 = vmatprep.subr.mxu0 %v20683_v25 }
 0x541   :  { %15763 = vmatprep.subr.mxu1 %v20716_v38  ;;  %15718 = vmatpush3.msra.mxu0 %v20683_v25  ;;  %v21064_v25 = vand.u32 4294901760, %v12122_v57 }
 0x542   :  { %15764 = vmatpush3.msra.mxu1 %v20716_v38  ;;  %15719 = vmatprep.subr.mxu0 %v20698_v18 }
 0x543   :  { %15765 = vmatprep.subr.mxu1 %v20731_v46  ;;  %15720 = vmatpush3.msra.mxu0 %v20698_v18  ;;  %24829 = vst [vmem:[#allocation50_spill] sm:$0xff] %v21064_v25  ;;  %v21072_v18 = vsub.f32 %v12122_v57, %v21064_v25 }
 0x544   :  { %15766 = vmatpush3.msra.mxu1 %v20731_v46  ;;  %15721 = vmatprep.subr.mxu0 %v20714_v21 }
 0x545   :  { %15767 = vmatprep.subr.mxu1 %v20747_v61  ;;  %15722 = vmatpush3.msra.mxu0 %v20714_v21  ;;  %24830 = vst [vmem:[#allocation5_spill] sm:$0xff] %v21072_v18 }
 0x546   :  { %15768 = vmatpush3.msra.mxu1 %v20747_v61  ;;  %15723 = vmatprep.subr.mxu0 %v20729_v23 }
 0x547   :  { %15769 = vmatprep.subr.mxu1 %v20759_v3  ;;  %15724 = vmatpush3.msra.mxu0 %v20729_v23 }
 0x548   :  { %15770 = vmatpush3.msra.mxu1 %v20759_v3  ;;  %15725 = vmatprep.subr.mxu0 %v20745_v60 }
 0x549   :  { %15772 = vmatmul.mubr.f32.vlgmr.msra.gmra.mxu1 %v5720_v27  ;;  %15815 = vmatprep.subr.mxu1 %v20530_v5 }
 0x54a   :  { %15726 = vmatpush3.msra.mxu0 %v20745_v60  ;;  %15774 = vmatprep.mubr.f32.mxu1 %v20419_v9 }
 0x54b   :  { %15816 = vmatpush3.msra.mxu1 %v20530_v5  ;;  %15727 = vmatprep.subr.mxu0 %v20757_v58  ;;  %v12125_v5 = vld [vmem:[%s24069_s3 + $0x168] sm:$0xff] }
 0x54c   :  { %15817 = vmatprep.subr.mxu1 %v20544_v33  ;;  %15728 = vmatpush3.msra.mxu0 %v20757_v58  ;;  %v21004_v36 = vand.u32 4294901760, %v12125_v5  ;;  %v12118_v58 = vld [vmem:[%s24069_s3 + $0x130] sm:$0xff] }
 0x54d   :  { %15818 = vmatpush3.msra.mxu1 %v20544_v33  ;;  %15729 = vmatprep.subr.mxu0 %v20770_v32  ;;  %v21002_v33 = vand.u32 4294901760, %v12126_v42 }
 0x54e   :  { %15775 = vmatmul.mubr.f32.gmra.mxu1 %v5740_v52  ;;  %15819 = vmatprep.subr.mxu1 %v20553_v2  ;;  %24816 = vst [vmem:[#allocation17_spill] sm:$0xff] %v21004_v36 }
 0x54f   :  { %15730 = vmatpush3.msra.mxu0 %v20770_v32  ;;  %15820 = vmatpush3.msra.mxu1 %v20553_v2  ;;  %24815 = vst [vmem:[#allocation12_spill] sm:$0xff] %v21002_v33  ;;  %v21018_v16 = vsub.f32 %v12126_v42, %v21002_v33 }
 0x550   :  { %15847 = vmatprep.mubr.f32.mxu1 %v20379_v4  ;;  %15731 = vmatprep.subr.mxu0 %v20780_v26 }
 0x551   :  { %15821 = vmatprep.subr.mxu1 %v20573_v59  ;;  %15732 = vmatpush3.msra.mxu0 %v20780_v26  ;;  %24820 = vst [vmem:[#allocation24_spill] sm:$0xff] %v21018_v16  ;;  %v21118_v26 = vand.u32 4294901760, %v12118_v58 }
 0x552   :  { %15822 = vmatpush3.msra.mxu1 %v20573_v59  ;;  %15734 = vmatmul.mubr.f32.vlgmr.msra.gmra.mxu0 %v20812_v12  ;;  %v21015_v59 = vand.u32 4294901760, %v12123_v41 }
 0x553   :  { %15777 = vmatprep.subr.mxu0 %v20571_v45  ;;  %15823 = vmatprep.subr.mxu1 %v20582_v34  ;;  %24840 = vst [vmem:[#allocation56_spill] sm:$0xff] %v21118_v26  ;;  %v21130_v12 = vsub.f32 %v12118_v58, %v21118_v26 }
 0x554   :  { %15736 = vmatprep.mubr.f32.mxu0 %v20405_v63  ;;  %15778 = vmatpush3.msra.mxu0 %v20571_v45  ;;  %v12127_v63 = vld [vmem:[%s24069_s3 + $0x178] sm:$0xff]  ;;  %24819 = vst [vmem:[#allocation20_spill] sm:$0xff] %v21015_v59 }
 0x555   :  { %15824 = vmatpush3.msra.mxu1 %v20582_v34  ;;  %15779 = vmatprep.subr.mxu0 %v20590_v49  ;;  %v20991_v9 = vand.u32 4294901760, %v12127_v63  ;;  %v21021_v34 = vsub.f32 %v12125_v5, %v21004_v36  ;;  %24842 = vst [vmem:[#allocation59_spill] sm:$0xff] %v21130_v12  ;;  %v21144_v7 = vand.u32 4294901760, %v21130_v12 }
 0x556   :  { %15825 = vmatprep.subr.mxu1 %v20607_v53  ;;  %15780 = vmatpush3.msra.mxu0 %v20590_v49 }
 0x557   :  { %15826 = vmatpush3.msra.mxu1 %v20607_v53  ;;  %15737 = vmatmul.mubr.f32.gmra.mxu0 %v20824_v55  ;;  %24814 = vst [vmem:[#allocation6_spill] sm:$0xff] %v20991_v9  ;;  %v21012_v45 = vsub.f32 %v12127_v63, %v20991_v9  ;;  %24821 = vst [vmem:[#allocation27_spill] sm:$0xff] %v21021_v34  ;;  %v21035_v53 = vand.u32 4294901760, %v21018_v16  ;;  %v21038_v11 = vand.u32 4294901760, %v21021_v34  ;;  %v12116_v55 = vld [vmem:[%s24069_s3 + $0x120] sm:$0xff] }
 0x558   :  { %15781 = vmatprep.subr.mxu0 %v20605_v54  ;;  %15827 = vmatprep.subr.mxu1 %v20621_v20  ;;  %v21138_v52 = vand.u32 4294901760, %v12116_v55  ;;  %24845 = vst [vmem:[#allocation3_spill] sm:$0xff] %v21144_v7  ;;  %v6624_v5 = vsub.f32 %v21130_v12, %v21144_v7 }
 0x559   :  { %15782 = vmatpush3.msra.mxu0 %v20605_v54  ;;  %15809 = vmatprep.mubr.f32.mxu0 %v20379_v4  ;;  %v24812_v4 = vld [vmem:[#allocation46_spill] sm:$0xff]  ;;  %24818 = vst [vmem:[#allocation19_spill] sm:$0xff] %v21012_v45  ;;  %v21028_v51 = vand.u32 4294901760, %v21012_v45  ;;  %v21031_v54 = vsub.f32 %v12123_v41, %v21015_v59  ;;  %24825 = vst [vmem:[#allocation39_spill] sm:$0xff] %v21035_v53  ;;  %v12114_v41 = vld [vmem:[%s24069_s3 + $0x110] sm:$0xff] }
 0x55a   :  { %15828 = vmatpush3.msra.mxu1 %v20621_v20  ;;  %15783 = vmatprep.subr.mxu0 %v20626_v24  ;;  %24826 = vst [vmem:[#allocation42_spill] sm:$0xff] %v21038_v11  ;;  %24844 = vst [vmem:[#allocation62_spill] sm:$0xff] %v21138_v52 }
 0x55b   :  { %15829 = vmatprep.subr.mxu1 %v20635_v19  ;;  %15784 = vmatpush3.msra.mxu0 %v20626_v24  ;;  %24823 = vst [vmem:[#allocation33_spill] sm:$0xff] %v21028_v51  ;;  %24824 = vst [vmem:[#allocation38_spill] sm:$0xff] %v21031_v54  ;;  %v6561_v24 = vsub.f32 %v21012_v45, %v21028_v51  ;;  %v21047_v37 = vand.u32 4294901760, %v21031_v54 }
 0x55c   :  { %15830 = vmatpush3.msra.mxu1 %v20635_v19  ;;  %15785 = vmatprep.subr.mxu0 %v20643_v47  ;;  %v6568_v19 = vsub.f32 %v21018_v16, %v21035_v53 }
 0x55d   :  { %15831 = vmatprep.subr.mxu1 %v20656_v35  ;;  %15786 = vmatpush3.msra.mxu0 %v20643_v47  ;;  %24828 = vst [vmem:[#allocation48_spill] sm:$0xff] %v21047_v37  ;;  %v6575_v47 = vsub.f32 %v21021_v34, %v21038_v11  ;;  %v6562_v1 = vand.u32 4294901760, %v6561_v24 }
 0x55e   :  { %15832 = vmatpush3.msra.mxu1 %v20656_v35  ;;  %15787 = vmatprep.subr.mxu0 %v20661_v39 }
 0x55f   :  { %15833 = vmatprep.subr.mxu1 %v20672_v10  ;;  %15788 = vmatpush3.msra.mxu0 %v20661_v39  ;;  %v6569_v39 = vand.u32 4294901760, %v6568_v19 }
 0x560   :  { %15834 = vmatpush3.msra.mxu1 %v20672_v10  ;;  %15789 = vmatprep.subr.mxu0 %v20676_v62  ;;  %v6576_v10 = vand.u32 4294901760, %v6575_v47  ;;  %v21174_v47 = vand.u32 4294901760, %v12114_v41 }
 0x561   :  { %15835 = vmatprep.subr.mxu1 %v20685_v31  ;;  %15790 = vmatpush3.msra.mxu0 %v20676_v62  ;;  %v6589_v62 = vsub.f32 %v21031_v54, %v21047_v37 }
 0x562   :  { %15836 = vmatpush3.msra.mxu1 %v20685_v31  ;;  %15791 = vmatprep.subr.mxu0 %v20691_v14  ;;  %v12121_v31 = vld [vmem:[%s24069_s3 + $0x148] sm:$0xff]  ;;  %24852 = vst [vmem:[#allocation23_spill] sm:$0xff] %v21174_v47 }
 0x563   :  { %15837 = vmatprep.subr.mxu1 %v20700_v40  ;;  %15792 = vmatpush3.msra.mxu0 %v20691_v14  ;;  %v6590_v21 = vand.u32 4294901760, %v6589_v62  ;;  %v21189_v62 = vsub.f32 %v12114_v41, %v21174_v47 }
 0x564   :  { %15838 = vmatpush3.msra.mxu1 %v20700_v40  ;;  %15793 = vmatprep.subr.mxu0 %v20711_v22  ;;  %v21074_v40 = vand.u32 4294901760, %v12121_v31 }
 0x565   :  { %15839 = vmatprep.subr.mxu1 %v20716_v38  ;;  %15794 = vmatpush3.msra.mxu0 %v20711_v22  ;;  %v12120_v22 = vld [vmem:[%s24069_s3 + $0x140] sm:$0xff]  ;;  %24854 = vst [vmem:[#allocation26_spill] sm:$0xff] %v21189_v62 }
 0x566   :  { %15840 = vmatpush3.msra.mxu1 %v20716_v38  ;;  %15795 = vmatprep.subr.mxu0 %v20726_v43  ;;  %24831 = vst [vmem:[#allocation9_spill] sm:$0xff] %v21074_v40  ;;  %v21082_v38 = vand.u32 4294901760, %v21072_v18  ;;  %v21087_v23 = vand.u32 4294901760, %v12120_v22 }
 0x567   :  { %15841 = vmatprep.subr.mxu1 %v20731_v46  ;;  %15796 = vmatpush3.msra.mxu0 %v20726_v43  ;;  %v21085_v43 = vsub.f32 %v12121_v31, %v21074_v40 }
 0x568   :  { %15842 = vmatpush3.msra.mxu1 %v20731_v46  ;;  %15797 = vmatprep.subr.mxu0 %v20742_v30  ;;  %24832 = vst [vmem:[#allocation4_spill] sm:$0xff] %v21082_v38  ;;  %24834 = vst [vmem:[#allocation52_spill] sm:$0xff] %v21087_v23  ;;  %v12119_v46 = vld [vmem:[%s24069_s3 + $0x138] sm:$0xff] }
 0x569   :  { %15843 = vmatprep.subr.mxu1 %v20747_v61  ;;  %15798 = vmatpush3.msra.mxu0 %v20742_v30  ;;  %24833 = vst [vmem:[#allocation53_spill] sm:$0xff] %v21085_v43  ;;  %v6596_v30 = vsub.f32 %v21072_v18, %v21082_v38  ;;  %v21097_v60 = vand.u32 4294901760, %v21085_v43 }
 0x56a   :  { %15844 = vmatpush3.msra.mxu1 %v20747_v61  ;;  %15799 = vmatprep.subr.mxu0 %v20754_v17  ;;  %v21100_v61 = vsub.f32 %v12120_v22, %v21087_v23  ;;  %v12112_v22 = vld [vmem:[%s24069_s3 + $0x100] sm:$0xff] }
 0x56b   :  { %15845 = vmatprep.subr.mxu1 %v20759_v3  ;;  %15800 = vmatpush3.msra.mxu0 %v20754_v17  ;;  %24835 = vst [vmem:[#allocation51_spill] sm:$0xff] %v21097_v60  ;;  %v21102_v17 = vand.u32 4294901760, %v12119_v46 }
 0x56c   :  { %15846 = vmatpush3.msra.mxu1 %v20759_v3  ;;  %15801 = vmatprep.subr.mxu0 %v20767_v6  ;;  %24836 = vst [vmem:[#allocation55_spill] sm:$0xff] %v21100_v61  ;;  %v6597_v3 = vand.u32 4294901760, %v6596_v30  ;;  %v21112_v32 = vand.u32 4294901760, %v21100_v61  ;;  %v21201_v30 = vand.u32 4294901760, %v21189_v62 }
 0x56d   :  { %15848 = vmatmul.mubr.f32.vlgmr.msra.gmra.mxu1 %v20805_v15  ;;  %15802 = vmatpush3.msra.mxu0 %v20767_v6  ;;  %24837 = vst [vmem:[#allocation54_spill] sm:$0xff] %v21102_v17  ;;  %v6603_v6 = vsub.f32 %v21085_v43, %v21097_v60 }
 0x56e   :  { %15850 = vmatprep.mubr.f32.mxu1 %v20391_v44  ;;  %15803 = vmatprep.subr.mxu0 %v24812_v4  ;;  %24838 = vst [vmem:[#allocation58_spill] sm:$0xff] %v21112_v32  ;;  %v6610_v28 = vsub.f32 %v21100_v61, %v21112_v32  ;;  %24856 = vst [vmem:[#allocation29_spill] sm:$0xff] %v21201_v30 }
 0x56f   :  { %15804 = vmatpush3.msra.mxu0 %v24812_v4  ;;  %15891 = vmatprep.subr.mxu1 %v6562_v1  ;;  %v12115_v4 = vld [vmem:[%s24069_s3 + $0x118] sm:$0xff] }
 0x570   :  { %15805 = vmatprep.subr.mxu0 %v20787_v8  ;;  %15892 = vmatpush3.msra.mxu1 %v6562_v1  ;;  %v6611_v50 = vand.u32 4294901760, %v6610_v28  ;;  %v21156_v63 = vand.u32 4294901760, %v12115_v4  ;;  %v6625_v1 = vand.u32 4294901760, %v6624_v5  ;;  %v15241_v5 = vpop.f32.mrf.mxu1 }
 0x571   :  { %15851 = vmatmul.mubr.f32.gmra.mxu1 %v20815_v0  ;;  %15806 = vmatpush3.msra.mxu0 %v20787_v8  ;;  %v12117_v8 = vld [vmem:[%s24069_s3 + $0x128] sm:$0xff] }
 0x572   :  { %15807 = vmatprep.subr.mxu0 %v24813_v48  ;;  %15893 = vmatprep.subr.mxu1 %v6569_v39  ;;  %v21132_v27 = vand.u32 4294901760, %v12117_v8  ;;  %24848 = vst [vmem:[#allocation7_spill] sm:$0xff] %v21156_v63  ;;  %v21172_v19 = vsub.f32 %v12115_v4, %v21156_v63 }
 0x573   :  { %15808 = vmatpush3.msra.mxu0 %v24813_v48  ;;  %15894 = vmatpush3.msra.mxu1 %v6569_v39  ;;  %v21154_v48 = vsub.f32 %v12116_v55, %v21138_v52  ;;  %v12113_v39 = vld [vmem:[%s24069_s3 + $0x108] sm:$0xff] }
 0x574   :  { %15810 = vmatmul.mubr.f32.vlgmr.msra.gmra.mxu0 %v20805_v15  ;;  %15853 = vmatprep.subr.mxu0 %v20991_v9  ;;  %v21116_v15 = vsub.f32 %v12119_v46, %v21102_v17  ;;  %24843 = vst [vmem:[#allocation61_spill] sm:$0xff] %v21132_v27  ;;  %v21147_v13 = vsub.f32 %v12117_v8, %v21132_v27  ;;  %24851 = vst [vmem:[#allocation47_spill] sm:$0xff] %v21172_v19  ;;  %v21191_v31 = vand.u32 4294901760, %v12113_v39 }
 0x575   :  { %15812 = vmatprep.mubr.f32.mxu0 %v20391_v44  ;;  %v12124_v44 = vld [vmem:[%s24069_s3 + $0x160] sm:$0xff]  ;;  %15854 = vmatpush3.msra.mxu0 %v20991_v9  ;;  %24847 = vst [vmem:[#allocation10_spill] sm:$0xff] %v21154_v48  ;;  %v21169_v24 = vand.u32 4294901760, %v21154_v48  ;;  %v6652_v8 = vsub.f32 %v21189_v62, %v21201_v30 }
 0x576   :  { %v21006_v2 = vand.u32 4294901760, %v12124_v44  ;;  %15855 = vmatprep.subr.mxu0 %v21002_v33  ;;  %15895 = vmatprep.subr.mxu1 %v6576_v10  ;;  %24839 = vst [vmem:[#allocation57_spill] sm:$0xff] %v21116_v15  ;;  %v21127_v29 = vand.u32 4294901760, %v21116_v15  ;;  %24846 = vst [vmem:[#allocation8_spill] sm:$0xff] %v21147_v13  ;;  %v21204_v58 = vsub.f32 %v12113_v39, %v21191_v31 }
 0x577   :  { %15856 = vmatpush3.msra.mxu0 %v21002_v33  ;;  %15896 = vmatpush3.msra.mxu1 %v6576_v10  ;;  %24850 = vst [vmem:[#allocation36_spill] sm:$0xff] %v21169_v24  ;;  %v6638_v57 = vsub.f32 %v21154_v48, %v21169_v24  ;;  %v21186_v10 = vand.u32 4294901760, %v21172_v19  ;;  %24855 = vst [vmem:[#allocation16_spill] sm:$0xff] %v21191_v31  ;;  %v6653_v55 = vand.u32 4294901760, %v6652_v8 }
 0x578   :  { %15813 = vmatmul.mubr.f32.gmra.mxu0 %v20815_v0  ;;  %24817 = vst [vmem:[#allocation18_spill] sm:$0xff] %v21006_v2  ;;  %v21024_v49 = vsub.f32 %v12124_v44, %v21006_v2  ;;  %15857 = vmatprep.subr.mxu0 %v21004_v36  ;;  %v6604_v0 = vand.u32 4294901760, %v6603_v6  ;;  %24841 = vst [vmem:[#allocation60_spill] sm:$0xff] %v21127_v29  ;;  %v6617_v56 = vsub.f32 %v21116_v15, %v21127_v29 }
 0x579   :  { %15858 = vmatpush3.msra.mxu0 %v21004_v36  ;;  %v21162_v44 = vand.u32 4294901760, %v21147_v13  ;;  %24853 = vst [vmem:[#allocation15_spill] sm:$0xff] %v21186_v10  ;;  %v6645_v46 = vsub.f32 %v21172_v19, %v21186_v10  ;;  %24857 = vst [vmem:[#allocation22_spill] sm:$0xff] %v21204_v58 }
 0x57a   :  { %24822 = vst [vmem:[#allocation30_spill] sm:$0xff] %v21024_v49  ;;  %v21041_v20 = vand.u32 4294901760, %v21024_v49  ;;  %15859 = vmatprep.subr.mxu0 %v21006_v2  ;;  %v6618_v42 = vand.u32 4294901760, %v6617_v56 }
 0x57b   :  { %15860 = vmatpush3.msra.mxu0 %v21006_v2  ;;  %24849 = vst [vmem:[#allocation35_spill] sm:$0xff] %v21162_v44  ;;  %v6646_v6 = vand.u32 4294901760, %v6645_v46 }
 0x57c   :  { %24827 = vst [vmem:[#allocation45_spill] sm:$0xff] %v21041_v20  ;;  %v6582_v35 = vsub.f32 %v21024_v49, %v21041_v20  ;;  %15861 = vmatprep.subr.mxu0 %v21015_v59 }
 0x57d   :  { %15862 = vmatpush3.msra.mxu0 %v21015_v59 }
 0x57e   :  { %v6583_v14 = vand.u32 4294901760, %v6582_v35  ;;  %15863 = vmatprep.subr.mxu0 %v21064_v25  ;;  %v6631_v35 = vsub.f32 %v21147_v13, %v21162_v44 }
 0x57f   :  { %15864 = vmatpush3.msra.mxu0 %v21064_v25 }
 0x580   :  { %15865 = vmatprep.subr.mxu0 %v21074_v40  ;;  %15897 = vmatprep.subr.mxu1 %v6583_v14 }
 0x581   :  { %15866 = vmatpush3.msra.mxu0 %v21074_v40  ;;  %15898 = vmatpush3.msra.mxu1 %v6583_v14  ;;  %v6632_v14 = vand.u32 4294901760, %v6631_v35  ;;  %v15203_v35 = vpop.f32.mrf.mxu0 }
 0x582   :  { %15867 = vmatprep.subr.mxu0 %v21087_v23  ;;  %15899 = vmatprep.subr.mxu1 %v6590_v21  ;;  %v4341_v54 = vadd.f32 %v15241_v5, %v15203_v35 }
 0x583   :  { %15868 = vmatpush3.msra.mxu0 %v21087_v23  ;;  %15900 = vmatpush3.msra.mxu1 %v6590_v21  ;;  %v6639_v21 = vand.u32 4294901760, %v6638_v57  ;;  %v4153_v57 = vpop.f32.mrf.mxu0 }
 0x584   :  { %15869 = vmatprep.subr.mxu0 %v21102_v17  ;;  %15901 = vmatprep.subr.mxu1 %v6597_v3 }
 0x585   :  { %15870 = vmatpush3.msra.mxu0 %v21102_v17  ;;  %15902 = vmatpush3.msra.mxu1 %v6597_v3  ;;  %v21207_v3 = vand.u32 4294901760, %v12112_v22 }
 0x586   :  { %15871 = vmatprep.subr.mxu0 %v21118_v26  ;;  %15903 = vmatprep.subr.mxu1 %v6604_v0 }
 0x587   :  { %15872 = vmatpush3.msra.mxu0 %v21118_v26  ;;  %15904 = vmatpush3.msra.mxu1 %v6604_v0  ;;  %24858 = vst [vmem:[#allocation32_spill] sm:$0xff] %v21207_v3  ;;  %v21213_v0 = vand.u32 4294901760, %v21204_v58  ;;  %v21217_v28 = vsub.f32 %v12112_v22, %v21207_v3  ;;  %v15206_v22 = vpop.f32.mrf.mxu0 }
 0x588   :  { %15873 = vmatprep.subr.mxu0 %v21132_v27  ;;  %15905 = vmatprep.subr.mxu1 %v6611_v50 }
 0x589   :  { %15874 = vmatpush3.msra.mxu0 %v21132_v27  ;;  %15906 = vmatpush3.msra.mxu1 %v6611_v50  ;;  %24859 = vst [vmem:[#allocation25_spill] sm:$0xff] %v21213_v0  ;;  %24860 = vst [vmem:[#allocation34_spill] sm:$0xff] %v21217_v28  ;;  %v6659_v50 = vsub.f32 %v21204_v58, %v21213_v0  ;;  %v21224_v56 = vand.u32 4294901760, %v21217_v28  ;;  %v4173_v46 = vpop.f32.mrf.mxu0 }
 0x58a   :  { %15875 = vmatprep.subr.mxu0 %v21138_v52  ;;  %15907 = vmatprep.subr.mxu1 %v6618_v42 }
 0x58b   :  { %15876 = vmatpush3.msra.mxu0 %v21138_v52  ;;  %15908 = vmatpush3.msra.mxu1 %v6618_v42  ;;  %24861 = vst [vmem:[#allocation28_spill] sm:$0xff] %v21224_v56  ;;  %v6660_v4 = vand.u32 4294901760, %v6659_v50  ;;  %v6666_v42 = vsub.f32 %v21217_v28, %v21224_v56  ;;  %v15279_v8 = vpop.f32.mrf.mxu0 }
 0x58c   :  { %15877 = vmatprep.subr.mxu0 %v21156_v63  ;;  %15909 = vmatprep.subr.mxu1 %v6625_v1  ;;  %v4464_v49 = vadd.f32 %v15279_v8, %v4341_v54 }
 0x58d   :  { %15878 = vmatpush3.msra.mxu0 %v21156_v63  ;;  %15910 = vmatpush3.msra.mxu1 %v6625_v1  ;;  %v6667_v41 = vand.u32 4294901760, %v6666_v42  ;;  %v4334_v1 = vpop.f32.mrf.mxu1  ;;  %v4456_v56 = vpop.f32.mrf.mxu0 }
 0x58e   :  { %15879 = vmatprep.subr.mxu0 %v21174_v47  ;;  %15911 = vmatprep.subr.mxu1 %v6632_v14  ;;  %v4335_v23 = vadd.f32 %v4334_v1, %v4153_v57 }
 0x58f   :  { %15880 = vmatpush3.msra.mxu0 %v21174_v47  ;;  %15912 = vmatpush3.msra.mxu1 %v6632_v14  ;;  %v15244_v39 = vpop.f32.mrf.mxu1  ;;  %v15282_v0 = vpop.f32.mrf.mxu0 }
 0x590   :  { %15881 = vmatprep.subr.mxu0 %v21191_v31  ;;  %15913 = vmatprep.subr.mxu1 %v6639_v21  ;;  %v4353_v40 = vadd.f32 %v15244_v39, %v15206_v22  ;;  %v4457_v34 = vadd.f32 %v4456_v56, %v4335_v23 }
 0x591   :  { %15882 = vmatpush3.msra.mxu0 %v21191_v31  ;;  %15914 = vmatpush3.msra.mxu1 %v6639_v21  ;;  %v4346_v14 = vpop.f32.mrf.mxu1 }
 0x592   :  { %15883 = vmatprep.subr.mxu0 %v21207_v3  ;;  %15915 = vmatprep.subr.mxu1 %v6646_v6  ;;  %v4478_v59 = vadd.f32 %v15282_v0, %v4353_v40 }
 0x593   :  { %15884 = vmatpush3.msra.mxu0 %v21207_v3  ;;  %15916 = vmatpush3.msra.mxu1 %v6646_v6  ;;  %v15317_v21 = vpop.f32.mrf.mxu1 }
 0x594   :  { %15929 = vmatprep.subr.mxu0 %v21012_v45  ;;  %15917 = vmatprep.subr.mxu1 %v6653_v55  ;;  %v4347_v45 = vadd.f32 %v4346_v14, %v4173_v46  ;;  %v4575_v2 = vadd.f32 %v15317_v21, %v4464_v49 }
 0x595   :  { %15918 = vmatpush3.msra.mxu1 %v6653_v55  ;;  %v4566_v6 = vpop.f32.mrf.mxu1 }
 0x596   :  { %15919 = vmatprep.subr.mxu1 %v6660_v4  ;;  %v4567_v33 = vadd.f32 %v4566_v6, %v4457_v34 }
 0x597   :  { %15920 = vmatpush3.msra.mxu1 %v6660_v4  ;;  %v15320_v50 = vpop.f32.mrf.mxu1  ;;  %v4470_v4 = vpop.f32.mrf.mxu0 }
 0x598   :  { %15921 = vmatprep.subr.mxu1 %v6667_v41  ;;  %v4471_v36 = vadd.f32 %v4470_v4, %v4347_v45 }
 0x599   :  { %15922 = vmatpush3.msra.mxu1 %v6667_v41  ;;  %v4582_v55 = vpop.f32.mrf.mxu1  ;;  %v15355_v10 = vpop.f32.mrf.mxu0 }
 0x59a   :  { %15967 = vmatprep.subr.mxu1 %v20991_v9 }
 0x59b   :  { %v15393_v42 = vpop.f32.mrf.mxu1  ;;  %v4709_v41 = vpop.f32.mrf.mxu0 }
 0x59d   :  { %v4814_v30 = vpop.f32.mrf.mxu1  ;;  %v15358_v7 = vpop.f32.mrf.mxu0 }
 0x59f   :  { %v15396_v24 = vpop.f32.mrf.mxu1  ;;  %v4721_v32 = vpop.f32.mrf.mxu0 }
 0x5a1   :  { %v4826_v44 = vpop.f32.mrf.mxu1  ;;  %v15431_v38 = vpop.f32.mrf.mxu0 }
 0x5a3   :  { %v15469_v29 = vpop.f32.mrf.mxu1  ;;  %v4923_v20 = vpop.f32.mrf.mxu0 }
 0x5a5   :  { %v5104_v60 = vpop.f32.mrf.mxu1  ;;  %v15434_v53 = vpop.f32.mrf.mxu0 }
 0x5a7   :  { %v21230_v37 = vpop.f32.mrf.mxu1  ;;  %v4943_v28 = vpop.f32.mrf.mxu0 }
 0x5a9   :  { %v21232_v11 = vpop.f32.mrf.mxu1  ;;  %v15507_v62 = vpop.f32.mrf.mxu0 }
 0x5ab   :  { %v21234_v51 = vpop.f32.mrf.mxu1  ;;  %v5226_v3 = vpop.f32.mrf.mxu0 }
 0x5ad   :  { %v21236_v58 = vpop.f32.mrf.mxu1  ;;  %v15510_v31 = vpop.f32.mrf.mxu0 }
 0x5af   :  { %v21238_v19 = vpop.f32.mrf.mxu1  ;;  %v5240_v47 = vpop.f32.mrf.mxu0 }
 0x5b1   :  { %v21240_v48 = vpop.f32.mrf.mxu1 }
 0x5b2   :  { %24862 = vst [vmem:[#allocation37_spill] sm:$0xff] %v21240_v48 }
 0x5c1   :  { %v21242_v13 = vpop.f32.mrf.mxu1 }
 0x5c2   :  { %24863 = vst [vmem:[#allocation31_spill] sm:$0xff] %v21242_v13  ;;  %v4591_v13 = vadd.f32 %v15320_v50, %v4478_v59  ;;  %v12111_v50 = vld [vmem:[%s24070_s2 + $0x1] ss:$0 sm:$0xff] }
 0x5c3   :  { %v21244_v12 = vpop.f32.mrf.mxu1 }
 0x5c4   :  { %24864 = vst [vmem:[#allocation41_spill] sm:$0xff] %v21244_v12  ;;  %v4710_v12 = vadd.f32 %v4709_v41, %v4567_v33  ;;  %v4728_v48 = vadd.f32 %v15358_v7, %v4591_v13 }
 0x5c6   :  { %v21246_v15 = vpop.f32.mrf.mxu1  ;;  %v4815_v35 = vadd.f32 %v4814_v30, %v4710_v12  ;;  %v4833_v40 = vadd.f32 %v15396_v24, %v4728_v48 }
 0x5c7   :  { %24865 = vst [vmem:[#allocation44_spill] sm:$0xff] %v21246_v15  ;;  %v4716_v15 = vadd.f32 %v15355_v10, %v4575_v2 }
 0x5c8   :  { %v21250_v61 = vpop.f32.mrf.mxu1  ;;  %v4924_v57 = vadd.f32 %v4923_v20, %v4815_v35  ;;  %v4954_v49 = vadd.f32 %v15434_v53, %v4833_v40 }
 0x5c9   :  { %24866 = vst [vmem:[#allocation40_spill] sm:$0xff] %v21250_v61  ;;  %v4821_v1 = vadd.f32 %v15393_v42, %v4716_v15 }
 0x5ca   :  { %v15583_v63 = vpop.f32.mrf.mxu0  ;;  %v5105_v33 = vadd.f32 %v5104_v60, %v4924_v57 }
 0x5cb   :  { %v4934_v39 = vadd.f32 %v15431_v38, %v4821_v1 }
 0x5cc   :  { %v21248_v52 = vpop.f32.mrf.mxu0  ;;  %v5227_v7 = vadd.f32 %v5226_v3, %v5105_v33 }
 0x5cd   :  { %v5111_v14 = vadd.f32 %v15469_v29, %v4934_v39 }
 0x5ce   :  { %v5337_v60 = vadd.f32 %v21236_v58, %v5227_v7  ;;  %v24871_v58 = vld [vmem:[#allocation31_spill] sm:$0xff]  ;;  %v24874_v1 = vld [vmem:[#allocation44_spill] sm:$0xff] }
 0x5cf   :  { %v21252_v27 = vpop.f32.mrf.mxu0  ;;  %v5234_v59 = vadd.f32 %v15507_v62, %v5111_v14 }
 0x5d0   :  { %24867 = vst [vmem:[#allocation43_spill] sm:$0xff] %v21252_v27  ;;  %v4583_v27 = vadd.f32 %v4582_v55, %v4471_v36  ;;  %v5123_v36 = vadd.f32 %v21230_v37, %v4954_v49  ;;  %v5480_v30 = vadd.f32 %v21248_v52, %v5337_v60  ;;  %v24875_v40 = vld [vmem:[#allocation40_spill] sm:$0xff] }
 0x5d1   :  { %v21254_v26 = vpop.f32.mrf.mxu0  ;;  %v5345_v53 = vadd.f32 %v21234_v51, %v5234_v59  ;;  %v24877_v60 = vld [vmem:[#allocation12_spill] sm:$0xff] }
 0x5d2   :  { %24868 = vst [vmem:[#allocation46_spill] sm:$0xff] %v21254_v26  ;;  %v4722_v54 = vadd.f32 %v4721_v32, %v4583_v27  ;;  %v5248_v13 = vadd.f32 %v15510_v31, %v5123_v36 }
 0x5d4   :  { %v4827_v45 = vadd.f32 %v4826_v44, %v4722_v54 }
 0x5d6   :  { %v4944_v2 = vadd.f32 %v4943_v28, %v4827_v45 }
 0x5d7   :  { %v24869_v51 = vld [vmem:[#allocation43_spill] sm:$0xff] }
 0x5d8   :  { %v5117_v20 = vadd.f32 %v21232_v11, %v4944_v2 }
 0x5d9   :  { %v24873_v52 = vld [vmem:[#allocation46_spill] sm:$0xff] }
 0x5da   :  { %v5241_v29 = vadd.f32 %v5240_v47, %v5117_v20 }
 0x5e5   :  { %v15697_v43 = vpop.f32.mrf.mxu1 }
 0x5e7   :  { %v5895_v18 = vpop.f32.mrf.mxu1 }
 0x5ea   :  { %v15700_v25 = vpop.f32.mrf.mxu1 }
 0x5ec   :  { %v5907_v9 = vpop.f32.mrf.mxu1 }
 0x5ee   :  { %v15659_v17 = vpop.f32.mrf.mxu0 }
 0x5ef   :  { %v5902_v10 = vadd.f32 %v15697_v43, %v15659_v17  ;;  %v5486_v43 = vadd.f32 %v15583_v63, %v5345_v53  ;;  %v24876_v53 = vld [vmem:[#allocation6_spill] sm:$0xff] }
 0x5f0   :  { %v5714_v16 = vpop.f32.mrf.mxu0 }
 0x5f1   :  { %v5896_v12 = vadd.f32 %v5895_v18, %v5714_v16  ;;  %v5361_v16 = vadd.f32 %v21238_v19, %v5248_v13  ;;  %v5591_v21 = vadd.f32 %v24871_v58, %v5486_v43  ;;  %v24884_v58 = vld [vmem:[#allocation27_spill] sm:$0xff] }
 0x5f3   :  { %v15662_v61 = vpop.f32.mrf.mxu0 }
 0x5f4   :  { %v5914_v48 = vadd.f32 %v15700_v25, %v15662_v61  ;;  %v5498_v25 = vadd.f32 %v24869_v51, %v5361_v16  ;;  %v24870_v61 = vld [vmem:[#allocation37_spill] sm:$0xff]  ;;  %v24881_v51 = vld [vmem:[#allocation19_spill] sm:$0xff] }
 0x5f5   :  { %v5734_v5 = vpop.f32.mrf.mxu0  ;;  %v5353_v47 = vadd.f32 %v24870_v61, %v5241_v29  ;;  %v24882_v61 = vld [vmem:[#allocation24_spill] sm:$0xff] }
 0x5f6   :  { %v5908_v17 = vadd.f32 %v5907_v9, %v5734_v5  ;;  %v5603_v54 = vadd.f32 %v24874_v1, %v5498_v25  ;;  %v24900_v1 = vld [vmem:[#allocation8_spill] sm:$0xff] }
 0x5f7   :  { %v5492_v8 = vadd.f32 %v24873_v52, %v5353_v47  ;;  %v24883_v47 = vld [vmem:[#allocation50_spill] sm:$0xff]  ;;  %v24891_v52 = vld [vmem:[#allocation56_spill] sm:$0xff] }
 0x5f9   :  { %v5597_v49 = vadd.f32 %v24875_v40, %v5492_v8  ;;  %v24892_v8 = vld [vmem:[#allocation53_spill] sm:$0xff]  ;;  %v24907_v40 = vld [vmem:[#allocation34_spill] sm:$0xff] }
 0x609   :  { %v15773_v26 = vpop.f32.mrf.mxu1 }
 0x60b   :  { %v6127_v23 = vpop.f32.mrf.mxu1 }
 0x60e   :  { %v15776_v34 = vpop.f32.mrf.mxu1 }
 0x610   :  { %v6143_v15 = vpop.f32.mrf.mxu1 }
 0x612   :  { %v15735_v56 = vpop.f32.mrf.mxu0 }
 0x613   :  { %v6025_v27 = vadd.f32 %v15735_v56, %v5902_v10 }
 0x614   :  { %v6017_v0 = vpop.f32.mrf.mxu0 }
 0x615   :  { %v6018_v44 = vadd.f32 %v6017_v0, %v5896_v12  ;;  %v6136_v37 = vadd.f32 %v15773_v26, %v6025_v27  ;;  %v24872_v26 = vld [vmem:[#allocation41_spill] sm:$0xff] }
 0x616   :  { %v5585_v6 = vadd.f32 %v24872_v26, %v5480_v30  ;;  %v24889_v26 = vld [vmem:[#allocation54_spill] sm:$0xff] }
 0x617   :  { %v15738_v32 = vpop.f32.mrf.mxu0  ;;  %v6128_v28 = vadd.f32 %v6127_v23, %v6018_v44 }
 0x618   :  { %v6039_v62 = vadd.f32 %v15738_v32, %v5914_v48 }
 0x619   :  { %v6031_v24 = vpop.f32.mrf.mxu0 }
 0x61a   :  { %v6032_v11 = vadd.f32 %v6031_v24, %v5908_v17  ;;  %v6152_v46 = vadd.f32 %v15776_v34, %v6039_v62 }
 0x61c   :  { %v6144_v5 = vadd.f32 %v6143_v15, %v6032_v11 }
 0x62d   :  { %v15849_v38 = vpop.f32.mrf.mxu1 }
 0x62f   :  { %v6375_v18 = vpop.f32.mrf.mxu1 }
 0x631   :  { %v15852_v19 = vpop.f32.mrf.mxu1 }
 0x633   :  { %v6387_v45 = vpop.f32.mrf.mxu1 }
 0x634   :  { %v15811_v31 = vpop.f32.mrf.mxu0 }
 0x635   :  { %v6277_v3 = vadd.f32 %v15811_v31, %v6136_v37  ;;  %v24878_v37 = vld [vmem:[#allocation17_spill] sm:$0xff] }
 0x636   :  { %v6270_v22 = vpop.f32.mrf.mxu0 }
 0x637   :  { %v6382_v63 = vadd.f32 %v15849_v38, %v6277_v3  ;;  %v6271_v9 = vadd.f32 %v6270_v22, %v6128_v28  ;;  %v24880_v28 = vld [vmem:[#allocation20_spill] sm:$0xff] }
 0x638   :  { %v15814_v55 = vpop.f32.mrf.mxu0 }
 0x639   :  { %v6398_v42 = vadd.f32 %v6382_v63, %v5591_v21  ;;  %v6376_v4 = vadd.f32 %v6375_v18, %v6271_v9  ;;  %v6289_v41 = vadd.f32 %v15814_v55, %v6152_v46  ;;  %v24879_v18 = vld [vmem:[#allocation18_spill] sm:$0xff]  ;;  %v24885_v21 = vld [vmem:[#allocation9_spill] sm:$0xff]  ;;  %v24887_v9 = vld [vmem:[#allocation52_spill] sm:$0xff] }
 0x63a   :  { %v6282_v35 = vpop.f32.mrf.mxu0  ;;  %v24886_v63 = vld [vmem:[#allocation30_spill] sm:$0xff] }
 0x63b   :  { %v6407_v23 = vadd.f32 %v12111_v50, %v6398_v42  ;;  %v6397_v56 = vadd.f32 %v6376_v4, %v5585_v6  ;;  %v6394_v39 = vadd.f32 %v15852_v19, %v6289_v41  ;;  %v6283_v57 = vadd.f32 %v6282_v35, %v6144_v5  ;;  %v24888_v46 = vld [vmem:[#allocation38_spill] sm:$0xff]  ;;  %v24890_v6 = vld [vmem:[#allocation5_spill] sm:$0xff]  ;;  %v24897_v4 = vld [vmem:[#allocation7_spill] sm:$0xff] }
 0x63c   :  { %v24893_v19 = vld [vmem:[#allocation61_spill] sm:$0xff]  ;;  %v24895_v55 = vld [vmem:[#allocation62_spill] sm:$0xff]  ;;  %v24898_v41 = vld [vmem:[#allocation59_spill] sm:$0xff] }
 0x63d   :  { %v6411_v34 = vmax.f32 %v6407_v23, 0.0  ;;  %v6406_v0 = vadd.f32 %v12111_v50, %v6397_v56  ;;  %v6400_v14 = vadd.f32 %v6394_v39, %v5603_v54  ;;  %v6388_v2 = vadd.f32 %v6387_v45, %v6283_v57  ;;  %v24896_v42 = vld [vmem:[#allocation57_spill] sm:$0xff]  ;;  %v24899_v5 = vld [vmem:[#allocation23_spill] sm:$0xff]  ;;  %v24901_v54 = vld [vmem:[#allocation16_spill] sm:$0xff] }
 0x63e   :  { %v24902_v35 = vld [vmem:[#allocation10_spill] sm:$0xff]  ;;  %v24903_v23 = vld [vmem:[#allocation32_spill] sm:$0xff]  ;;  %v24904_v56 = vld [vmem:[#allocation47_spill] sm:$0xff] }
 0x63f   :  { %v21272_v33 = vand.u32 4294901760, %v6411_v34  ;;  %v6410_v59 = vmax.f32 %v6406_v0, 0.0  ;;  %v6409_v10 = vadd.f32 %v12111_v50, %v6400_v14  ;;  %v6399_v7 = vadd.f32 %v6388_v2, %v5597_v49  ;;  %v24905_v39 = vld [vmem:[#allocation26_spill] sm:$0xff]  ;;  %v24908_v49 = vld [vmem:[#allocation33_spill] sm:$0xff]  ;;  %v24909_v45 = vld [vmem:[#allocation39_spill] sm:$0xff] }
 0x640   :  { %v24906_v57 = vld [vmem:[#allocation22_spill] sm:$0xff]  ;;  %v24911_v0 = vld [vmem:[#allocation45_spill] sm:$0xff]  ;;  %v24912_v14 = vld [vmem:[#allocation48_spill] sm:$0xff] }
 0x641   :  { %v21275_v36 = vsub.f32 %v6411_v34, %v21272_v33  ;;  %v6413_v15 = vmax.f32 %v6409_v10, 0.0  ;;  %v6408_v32 = vadd.f32 %v12111_v50, %v6399_v7  ;;  %v21277_v12 = vand.u32 4294901760, %v6410_v59  ;;  %v24894_v50 = vld [vmem:[#allocation55_spill] sm:$0xff]  ;;  %v24910_v34 = vld [vmem:[#allocation42_spill] sm:$0xff]  ;;  %v24913_v2 = vld [vmem:[#allocation4_spill] sm:$0xff] }
 0x642   :  { %v24915_v10 = vld [vmem:[#allocation58_spill] sm:$0xff]  ;;  %v24916_v7 = vld [vmem:[#allocation60_spill] sm:$0xff] }
 0x643   :  { %v6529_v27 = vand.u32 4294901760, %v21275_v36  ;;  %v6412_v13 = vmax.f32 %v6408_v32, 0.0  ;;  %15923 = vmatprep.mubr.f32.mxu1 %v21277_v12  ;;  %v21281_v20 = vand.u32 4294901760, %v6413_v15  ;;  %v6518_v38 = vsub.f32 %v6410_v59, %v21277_v12  ;;  %v24914_v59 = vld [vmem:[#allocation51_spill] sm:$0xff]  ;;  %v24919_v32 = vld [vmem:[#allocation36_spill] sm:$0xff] }
 0x644   :  { %15924 = vmatmul.mubr.f32.vlgmr.msra.gmra.mxu1 %v21272_v33 }
 0x645   :  { %15968 = vmatpush3.msra.mxu1 %v24876_v53  ;;  %v21286_v48 = vand.u32 4294901760, %v6412_v13  ;;  %v6519_v44 = vand.u32 4294901760, %v6518_v38  ;;  %v21289_v29 = vsub.f32 %v6413_v15, %v21281_v20  ;;  %v6530_v24 = vsub.f32 %v21275_v36, %v6529_v27  ;;  %v24918_v15 = vld [vmem:[#allocation35_spill] sm:$0xff] }
 0x646   :  { %15969 = vmatprep.subr.mxu1 %v24877_v60 }
 0x647   :  { %15970 = vmatpush3.msra.mxu1 %v24877_v60  ;;  %15926 = vmatprep.mubr.f32.mxu1 %v21286_v48  ;;  %v6520_v43 = vsub.f32 %v6518_v38, %v6519_v44  ;;  %v21298_v17 = vsub.f32 %v6412_v13, %v21286_v48  ;;  %v6549_v62 = vand.u32 4294901760, %v21289_v29  ;;  %v6531_v31 = vand.u32 4294901760, %v6530_v24  ;;  %v24922_v13 = vld [vmem:[#allocation25_spill] sm:$0xff] }
 0x648   :  { %15971 = vmatprep.subr.mxu1 %v24878_v37  ;;  %15927 = vmatmul.mubr.f32.gmra.mxu1 %v21281_v20 }
 0x649   :  { %15972 = vmatpush3.msra.mxu1 %v24878_v37  ;;  %15999 = vmatprep.mubr.f32.mxu1 %v6519_v44  ;;  %v6521_v30 = vand.u32 4294901760, %v6520_v43  ;;  %v6539_v16 = vand.u32 4294901760, %v21298_v17  ;;  %v6550_v3 = vsub.f32 %v21289_v29, %v6549_v62 }
 0x64a   :  { %15973 = vmatprep.subr.mxu1 %v24879_v18 }
 0x64b   :  { %15974 = vmatpush3.msra.mxu1 %v24879_v18  ;;  %15885 = vmatprep.mubr.f32.mxu0 %v6521_v30  ;;  %v6540_v11 = vsub.f32 %v21298_v17, %v6539_v16  ;;  %v6551_v22 = vand.u32 4294901760, %v6550_v3 }
 0x64c   :  { %15975 = vmatprep.subr.mxu1 %v24880_v28  ;;  %15886 = vmatmul.mubr.f32.vlgmr.msra.gmra.mxu0 %v6531_v31 }
 0x64d   :  { %15930 = vmatpush3.msra.mxu0 %v24881_v51  ;;  %15976 = vmatpush3.msra.mxu1 %v24880_v28  ;;  %v6541_v25 = vand.u32 4294901760, %v6540_v11 }
 0x64e   :  { %15931 = vmatprep.subr.mxu0 %v24882_v61  ;;  %15977 = vmatprep.subr.mxu1 %v24883_v47 }
 0x64f   :  { %15932 = vmatpush3.msra.mxu0 %v24882_v61  ;;  %15978 = vmatpush3.msra.mxu1 %v24883_v47 }
 0x650   :  { %15888 = vmatprep.mubr.f32.mxu0 %v6541_v25  ;;  %15933 = vmatprep.subr.mxu0 %v24884_v58 }
 0x651   :  { %15979 = vmatprep.subr.mxu1 %v24885_v21  ;;  %15889 = vmatmul.mubr.f32.gmra.mxu0 %v6551_v22 }
 0x652   :  { %15934 = vmatpush3.msra.mxu0 %v24884_v58  ;;  %15980 = vmatpush3.msra.mxu1 %v24885_v21 }
 0x653   :  { %15935 = vmatprep.subr.mxu0 %v24886_v63  ;;  %15961 = vmatprep.mubr.f32.mxu0 %v6518_v38  ;;  %v24923_v38 = vld [vmem:[#allocation28_spill] sm:$0xff] }
 0x654   :  { %15981 = vmatprep.subr.mxu1 %v24887_v9  ;;  %15936 = vmatpush3.msra.mxu0 %v24886_v63 }
 0x655   :  { %15982 = vmatpush3.msra.mxu1 %v24887_v9  ;;  %15937 = vmatprep.subr.mxu0 %v24888_v46 }
 0x656   :  { %15983 = vmatprep.subr.mxu1 %v24889_v26  ;;  %15938 = vmatpush3.msra.mxu0 %v24888_v46 }
 0x657   :  { %15984 = vmatpush3.msra.mxu1 %v24889_v26  ;;  %15939 = vmatprep.subr.mxu0 %v24890_v6 }
 0x658   :  { %15985 = vmatprep.subr.mxu1 %v24891_v52  ;;  %15940 = vmatpush3.msra.mxu0 %v24890_v6 }
 0x659   :  { %15986 = vmatpush3.msra.mxu1 %v24891_v52  ;;  %15941 = vmatprep.subr.mxu0 %v24892_v8 }
 0x65a   :  { %15987 = vmatprep.subr.mxu1 %v24893_v19  ;;  %15942 = vmatpush3.msra.mxu0 %v24892_v8  ;;  %v12138_v8 = vld [vmem:[%s24069_s3 + $0x1c8] sm:$0xff] }
 0x65b   :  { %15988 = vmatpush3.msra.mxu1 %v24893_v19  ;;  %15943 = vmatprep.subr.mxu0 %v24894_v50 }
 0x65c   :  { %15989 = vmatprep.subr.mxu1 %v24895_v55  ;;  %15944 = vmatpush3.msra.mxu0 %v24894_v50 }
 0x65d   :  { %15990 = vmatpush3.msra.mxu1 %v24895_v55  ;;  %15945 = vmatprep.subr.mxu0 %v24896_v42 }
 0x65e   :  { %15991 = vmatprep.subr.mxu1 %v24897_v4  ;;  %15946 = vmatpush3.msra.mxu0 %v24896_v42  ;;  %v12137_v42 = vld [vmem:[%s24069_s3 + $0x1c0] sm:$0xff] }
 0x65f   :  { %15992 = vmatpush3.msra.mxu1 %v24897_v4  ;;  %15947 = vmatprep.subr.mxu0 %v24898_v41 }
 0x660   :  { %15993 = vmatprep.subr.mxu1 %v24899_v5  ;;  %15948 = vmatpush3.msra.mxu0 %v24898_v41 }
 0x661   :  { %15994 = vmatpush3.msra.mxu1 %v24899_v5  ;;  %15949 = vmatprep.subr.mxu0 %v24900_v1 }
 0x662   :  { %15995 = vmatprep.subr.mxu1 %v24901_v54  ;;  %15950 = vmatpush3.msra.mxu0 %v24900_v1  ;;  %v12136_v1 = vld [vmem:[%s24069_s3 + $0x1b8] sm:$0xff] }
 0x663   :  { %15996 = vmatpush3.msra.mxu1 %v24901_v54  ;;  %15951 = vmatprep.subr.mxu0 %v24902_v35 }
 0x664   :  { %15997 = vmatprep.subr.mxu1 %v24903_v23  ;;  %15952 = vmatpush3.msra.mxu0 %v24902_v35 }
 0x665   :  { %15998 = vmatpush3.msra.mxu1 %v24903_v23  ;;  %15953 = vmatprep.subr.mxu0 %v24904_v56 }
 0x666   :  { %16000 = vmatmul.mubr.f32.vlgmr.msra.gmra.mxu1 %v6529_v27  ;;  %16043 = vmatprep.subr.mxu1 %v24876_v53  ;;  %v24921_v27 = vld [vmem:[#allocation29_spill] sm:$0xff] }
 0x667   :  { %15954 = vmatpush3.msra.mxu0 %v24904_v56  ;;  %16002 = vmatprep.mubr.f32.mxu1 %v6539_v16  ;;  %v21563_v56 = vand.u32 4294901760, %v12136_v1 }
 0x668   :  { %16044 = vmatpush3.msra.mxu1 %v24876_v53  ;;  %15955 = vmatprep.subr.mxu0 %v24905_v39  ;;  %v12144_v53 = vld [vmem:[%s24069_s3 + $0x1f8] sm:$0xff] }
 0x669   :  { %16045 = vmatprep.subr.mxu1 %v24877_v60  ;;  %15956 = vmatpush3.msra.mxu0 %v24905_v39  ;;  %v21452_v44 = vand.u32 4294901760, %v12144_v53  ;;  %v12135_v39 = vld [vmem:[%s24069_s3 + $0x1b0] sm:$0xff] }
 0x66a   :  { %16046 = vmatpush3.msra.mxu1 %v24877_v60  ;;  %15957 = vmatprep.subr.mxu0 %v24906_v57 }
 0x66b   :  { %16003 = vmatmul.mubr.f32.gmra.mxu1 %v6549_v62  ;;  %16047 = vmatprep.subr.mxu1 %v24878_v37  ;;  %v21458_v60 = vsub.f32 %v12144_v53, %v21452_v44 }
 0x66c   :  { %15958 = vmatpush3.msra.mxu0 %v24906_v57  ;;  %16048 = vmatpush3.msra.mxu1 %v24878_v37  ;;  %v12139_v37 = vld [vmem:[%s24069_s3 + $0x1d0] sm:$0xff] }
 0x66d   :  { %16075 = vmatprep.mubr.f32.mxu1 %v21277_v12  ;;  %15959 = vmatprep.subr.mxu0 %v24907_v40  ;;  %v21483_v30 = vand.u32 4294901760, %v21458_v60 }
 0x66e   :  { %16049 = vmatprep.subr.mxu1 %v24879_v18  ;;  %15960 = vmatpush3.msra.mxu0 %v24907_v40 }
 0x66f   :  { %16050 = vmatpush3.msra.mxu1 %v24879_v18  ;;  %15962 = vmatmul.mubr.f32.vlgmr.msra.gmra.mxu0 %v21275_v36  ;;  %v24917_v36 = vld [vmem:[#allocation3_spill] sm:$0xff]  ;;  %24924 = vst [vmem:[#allocation49_spill] sm:$0xff] %v21483_v30  ;;  %v21489_v18 = vand.u32 4294901760, %v12139_v37 }
 0x670   :  { %16005 = vmatprep.subr.mxu0 %v24908_v49  ;;  %16051 = vmatprep.subr.mxu1 %v24880_v28 }
 0x671   :  { %15964 = vmatprep.mubr.f32.mxu0 %v21298_v17  ;;  %16006 = vmatpush3.msra.mxu0 %v24908_v49  ;;  %v21507_v25 = vsub.f32 %v12139_v37, %v21489_v18  ;;  %v21576_v49 = vsub.f32 %v12136_v1, %v21563_v56 }
 0x672   :  { %16052 = vmatpush3.msra.mxu1 %v24880_v28  ;;  %16007 = vmatprep.subr.mxu0 %v24909_v45  ;;  %v7361_v28 = vsub.f32 %v21458_v60, %v21483_v30 }
 0x673   :  { %16053 = vmatprep.subr.mxu1 %v24883_v47  ;;  %16008 = vmatpush3.msra.mxu0 %v24909_v45  ;;  %v21523_v63 = vand.u32 4294901760, %v21507_v25  ;;  %v21578_v45 = vand.u32 4294901760, %v12135_v39 }
 0x674   :  { %16054 = vmatpush3.msra.mxu1 %v24883_v47  ;;  %15965 = vmatmul.mubr.f32.gmra.mxu0 %v21289_v29  ;;  %v12143_v29 = vld [vmem:[%s24069_s3 + $0x1f0] sm:$0xff]  ;;  %v7362_v58 = vand.u32 4294901760, %v7361_v28 }
 0x675   :  { %16009 = vmatprep.subr.mxu0 %v24910_v34  ;;  %16055 = vmatprep.subr.mxu1 %v24885_v21  ;;  %v21460_v24 = vand.u32 4294901760, %v12143_v29  ;;  %24929 = vst [vmem:[#allocation46_spill] sm:$0xff] %v21523_v63  ;;  %v7396_v50 = vsub.f32 %v21507_v25, %v21523_v63 }
 0x676   :  { %16010 = vmatpush3.msra.mxu0 %v24910_v34  ;;  %16037 = vmatprep.mubr.f32.mxu0 %v21277_v12  ;;  %v24920_v12 = vld [vmem:[#allocation15_spill] sm:$0xff]  ;;  %v12134_v34 = vld [vmem:[%s24069_s3 + $0x1a8] sm:$0xff] }
 0x677   :  { %16056 = vmatpush3.msra.mxu1 %v24885_v21  ;;  %16011 = vmatprep.subr.mxu0 %v24911_v0  ;;  %v21486_v16 = vsub.f32 %v12143_v29, %v21460_v24 }
 0x678   :  { %16057 = vmatprep.subr.mxu1 %v24887_v9  ;;  %16012 = vmatpush3.msra.mxu0 %v24911_v0 }
 0x679   :  { %16058 = vmatpush3.msra.mxu1 %v24887_v9  ;;  %16013 = vmatprep.subr.mxu0 %v24912_v14  ;;  %v21504_v51 = vand.u32 4294901760, %v21486_v16 }
 0x67a   :  { %16059 = vmatprep.subr.mxu1 %v24889_v26  ;;  %16014 = vmatpush3.msra.mxu0 %v24912_v14 }
 0x67b   :  { %16060 = vmatpush3.msra.mxu1 %v24889_v26  ;;  %16015 = vmatprep.subr.mxu0 %v24913_v2  ;;  %24925 = vst [vmem:[#allocation43_spill] sm:$0xff] %v21504_v51  ;;  %v7368_v21 = vsub.f32 %v21486_v16, %v21504_v51 }
 0x67c   :  { %16061 = vmatprep.subr.mxu1 %v24891_v52  ;;  %16016 = vmatpush3.msra.mxu0 %v24913_v2  ;;  %v21588_v2 = vand.u32 4294901760, %v21576_v49 }
 0x67d   :  { %16062 = vmatpush3.msra.mxu1 %v24891_v52  ;;  %16017 = vmatprep.subr.mxu0 %v24914_v59  ;;  %v7369_v26 = vand.u32 4294901760, %v7368_v21 }
 0x67e   :  { %16063 = vmatprep.subr.mxu1 %v24893_v19  ;;  %16018 = vmatpush3.msra.mxu0 %v24914_v59  ;;  %24932 = vst [vmem:[#allocation6_spill] sm:$0xff] %v21588_v2  ;;  %v21591_v59 = vsub.f32 %v12135_v39, %v21578_v45 }
 0x67f   :  { %16064 = vmatpush3.msra.mxu1 %v24893_v19  ;;  %16019 = vmatprep.subr.mxu0 %v24915_v10 }
 0x680   :  { %16065 = vmatprep.subr.mxu1 %v24895_v55  ;;  %16020 = vmatpush3.msra.mxu0 %v24915_v10  ;;  %v21594_v10 = vand.u32 4294901760, %v12134_v34 }
 0x681   :  { %16066 = vmatpush3.msra.mxu1 %v24895_v55  ;;  %16021 = vmatprep.subr.mxu0 %v24916_v7  ;;  %v21540_v55 = vand.u32 4294901760, %v12138_v8 }
 0x682   :  { %16067 = vmatprep.subr.mxu1 %v24897_v4  ;;  %16022 = vmatpush3.msra.mxu0 %v24916_v7  ;;  %v12133_v7 = vld [vmem:[%s24069_s3 + $0x1a0] sm:$0xff] }
 0x683   :  { %16068 = vmatpush3.msra.mxu1 %v24897_v4  ;;  %16023 = vmatprep.subr.mxu0 %v24917_v36  ;;  %v21548_v41 = vsub.f32 %v12138_v8, %v21540_v55 }
 0x684   :  { %16069 = vmatprep.subr.mxu1 %v24899_v5  ;;  %16024 = vmatpush3.msra.mxu0 %v24917_v36 }
 0x685   :  { %16070 = vmatpush3.msra.mxu1 %v24899_v5  ;;  %16025 = vmatprep.subr.mxu0 %v24918_v15  ;;  %v21550_v5 = vand.u32 4294901760, %v12137_v42  ;;  %v21558_v35 = vand.u32 4294901760, %v21548_v41 }
 0x686   :  { %16071 = vmatprep.subr.mxu1 %v24901_v54  ;;  %16026 = vmatpush3.msra.mxu0 %v24918_v15  ;;  %v7417_v15 = vsub.f32 %v21576_v49, %v21588_v2 }
 0x687   :  { %16072 = vmatpush3.msra.mxu1 %v24901_v54  ;;  %16027 = vmatprep.subr.mxu0 %v24919_v32  ;;  %v7397_v54 = vand.u32 4294901760, %v7396_v50  ;;  %24930 = vst [vmem:[#allocation44_spill] sm:$0xff] %v21558_v35  ;;  %v7403_v57 = vsub.f32 %v21548_v41, %v21558_v35  ;;  %v12129_v50 = vld [vmem:[%s24069_s3 + $0x180] sm:$0xff] }
 0x688   :  { %16073 = vmatprep.subr.mxu1 %v24903_v23  ;;  %16028 = vmatpush3.msra.mxu0 %v24919_v32  ;;  %v21603_v32 = vand.u32 4294901760, %v21591_v59  ;;  %v21668_v39 = vand.u32 4294901760, %v12129_v50 }
 0x689   :  { %16074 = vmatpush3.msra.mxu1 %v24903_v23  ;;  %16029 = vmatprep.subr.mxu0 %v24920_v12  ;;  %v21561_v23 = vsub.f32 %v12137_v42, %v21550_v5  ;;  %v7404_v0 = vand.u32 4294901760, %v7403_v57 }
 0x68a   :  { %16076 = vmatmul.mubr.f32.vlgmr.msra.gmra.mxu1 %v21272_v33  ;;  %16030 = vmatpush3.msra.mxu0 %v24920_v12  ;;  %24933 = vst [vmem:[#allocation12_spill] sm:$0xff] %v21603_v32  ;;  %v21605_v12 = vand.u32 4294901760, %v12133_v7  ;;  %v7424_v53 = vsub.f32 %v21591_v59, %v21603_v32 }
 0x68b   :  { %16078 = vmatprep.mubr.f32.mxu1 %v21286_v48  ;;  %16031 = vmatprep.subr.mxu0 %v24921_v27  ;;  %v21573_v40 = vand.u32 4294901760, %v21561_v23 }
 0x68c   :  { %16032 = vmatpush3.msra.mxu0 %v24921_v27  ;;  %16119 = vmatprep.subr.mxu1 %v7362_v58  ;;  %v21608_v27 = vsub.f32 %v12134_v34, %v21594_v10  ;;  %v21617_v29 = vsub.f32 %v12133_v7, %v21605_v12  ;;  %v7425_v37 = vand.u32 4294901760, %v7424_v53 }
 0x68d   :  { %16033 = vmatprep.subr.mxu0 %v24922_v13  ;;  %16120 = vmatpush3.msra.mxu1 %v7362_v58  ;;  %24931 = vst [vmem:[#allocation40_spill] sm:$0xff] %v21573_v40  ;;  %v7410_v14 = vsub.f32 %v21561_v23, %v21573_v40 }
 0x68e   :  { %16079 = vmatmul.mubr.f32.gmra.mxu1 %v21281_v20  ;;  %16034 = vmatpush3.msra.mxu0 %v24922_v13  ;;  %v12132_v13 = vld [vmem:[%s24069_s3 + $0x198] sm:$0xff]  ;;  %v21630_v28 = vand.u32 4294901760, %v21617_v29 }
 0x68f   :  { %16035 = vmatprep.subr.mxu0 %v24923_v38  ;;  %16121 = vmatprep.subr.mxu1 %v7369_v26  ;;  %v7411_v36 = vand.u32 4294901760, %v7410_v14  ;;  %v21678_v14 = vsub.f32 %v12129_v50, %v21668_v39 }
 0x690   :  { %16036 = vmatpush3.msra.mxu0 %v24923_v38  ;;  %16122 = vmatpush3.msra.mxu1 %v7369_v26  ;;  %v7418_v38 = vand.u32 4294901760, %v7417_v15  ;;  %24935 = vst [vmem:[#allocation18_spill] sm:$0xff] %v21630_v28  ;;  %v7438_v26 = vsub.f32 %v21617_v29, %v21630_v28 }
 0x691   :  { %16038 = vmatmul.mubr.f32.vlgmr.msra.gmra.mxu0 %v21272_v33  ;;  %v12142_v33 = vld [vmem:[%s24069_s3 + $0x1e8] sm:$0xff]  ;;  %16081 = vmatprep.subr.mxu0 %v21452_v44  ;;  %24941 = vst [vmem:[#allocation9_spill] sm:$0xff] %v21678_v14  ;;  %v21685_v15 = vand.u32 4294901760, %v21678_v14 }
 0x692   :  { %16040 = vmatprep.mubr.f32.mxu0 %v21286_v48  ;;  %v12140_v48 = vld [vmem:[%s24069_s3 + $0x1d8] sm:$0xff]  ;;  %v21472_v43 = vand.u32 4294901760, %v12142_v33  ;;  %16082 = vmatpush3.msra.mxu0 %v21452_v44  ;;  %v7439_v42 = vand.u32 4294901760, %v7438_v26 }
 0x693   :  { %v21476_v62 = vand.u32 4294901760, %v12140_v48  ;;  %16083 = vmatprep.subr.mxu0 %v21460_v24  ;;  %24942 = vst [vmem:[#allocation30_spill] sm:$0xff] %v21685_v15 }
 0x694   :  { %v21492_v31 = vsub.f32 %v12142_v33, %v21472_v43  ;;  %16084 = vmatpush3.msra.mxu0 %v21460_v24  ;;  %v21619_v33 = vand.u32 4294901760, %v12132_v13 }
 0x695   :  { %16041 = vmatmul.mubr.f32.gmra.mxu0 %v21281_v20  ;;  %v12141_v20 = vld [vmem:[%s24069_s3 + $0x1e0] sm:$0xff]  ;;  %v21498_v3 = vsub.f32 %v12140_v48, %v21476_v62  ;;  %16085 = vmatprep.subr.mxu0 %v21472_v43  ;;  %v12131_v48 = vld [vmem:[%s24069_s3 + $0x190] sm:$0xff] }
 0x696   :  { %v21474_v17 = vand.u32 4294901760, %v12141_v20  ;;  %v21511_v61 = vand.u32 4294901760, %v21492_v31  ;;  %16086 = vmatpush3.msra.mxu0 %v21472_v43  ;;  %v21633_v58 = vsub.f32 %v12132_v13, %v21619_v33  ;;  %v21635_v21 = vand.u32 4294901760, %v12131_v48 }
 0x697   :  { %v21517_v22 = vand.u32 4294901760, %v21498_v3 }
 0x698   :  { %v21495_v11 = vsub.f32 %v12141_v20, %v21474_v17  ;;  %24926 = vst [vmem:[#allocation37_spill] sm:$0xff] %v21511_v61  ;;  %16087 = vmatprep.subr.mxu0 %v21474_v17  ;;  %v7375_v9 = vsub.f32 %v21492_v31, %v21511_v61  ;;  %v21623_v20 = vand.u32 4294901760, %v21608_v27 }
 0x699   :  { %24928 = vst [vmem:[#allocation41_spill] sm:$0xff] %v21517_v22  ;;  %16088 = vmatpush3.msra.mxu0 %v21474_v17  ;;  %v7389_v6 = vsub.f32 %v21498_v3, %v21517_v22 }
 0x69a   :  { %v21514_v47 = vand.u32 4294901760, %v21495_v11  ;;  %16089 = vmatprep.subr.mxu0 %v21476_v62  ;;  %v7376_v52 = vand.u32 4294901760, %v7375_v9  ;;  %24934 = vst [vmem:[#allocation17_spill] sm:$0xff] %v21623_v20  ;;  %v7431_v9 = vsub.f32 %v21608_v27, %v21623_v20 }
 0x69b   :  { %16090 = vmatpush3.msra.mxu0 %v21476_v62  ;;  %v7390_v4 = vand.u32 4294901760, %v7389_v6  ;;  %v21647_v6 = vand.u32 4294901760, %v21633_v58 }
 0x69c   :  { %24927 = vst [vmem:[#allocation31_spill] sm:$0xff] %v21514_v47  ;;  %v7382_v46 = vsub.f32 %v21495_v11, %v21514_v47  ;;  %16091 = vmatprep.subr.mxu0 %v21489_v18  ;;  %16123 = vmatprep.subr.mxu1 %v7376_v52 }
 0x69d   :  { %16092 = vmatpush3.msra.mxu0 %v21489_v18  ;;  %16124 = vmatpush3.msra.mxu1 %v7376_v52  ;;  %24936 = vst [vmem:[#allocation20_spill] sm:$0xff] %v21647_v6  ;;  %v21650_v52 = vsub.f32 %v12131_v48, %v21635_v21 }
 0x69e   :  { %v7383_v19 = vand.u32 4294901760, %v7382_v46  ;;  %16093 = vmatprep.subr.mxu0 %v21540_v55  ;;  %v12130_v46 = vld [vmem:[%s24069_s3 + $0x188] sm:$0xff] }
 0x69f   :  { %16094 = vmatpush3.msra.mxu0 %v21540_v55  ;;  %24937 = vst [vmem:[#allocation19_spill] sm:$0xff] %v21650_v52  ;;  %v21652_v8 = vand.u32 4294901760, %v12130_v46  ;;  %v21662_v1 = vand.u32 4294901760, %v21650_v52 }
 0x6a0   :  { %16125 = vmatprep.subr.mxu1 %v7383_v19  ;;  %16095 = vmatprep.subr.mxu0 %v21550_v5 }
 0x6a1   :  { %16126 = vmatpush3.msra.mxu1 %v7383_v19  ;;  %16096 = vmatpush3.msra.mxu0 %v21550_v5  ;;  %v7432_v19 = vand.u32 4294901760, %v7431_v9  ;;  %24938 = vst [vmem:[#allocation24_spill] sm:$0xff] %v21662_v1  ;;  %v7452_v34 = vsub.f32 %v21650_v52, %v21662_v1  ;;  %v17454_v52 = vld [vmem:[#allocation2 + $0x10] sm:$0xff] }
 0x6a2   :  { %16127 = vmatprep.subr.mxu1 %v7390_v4  ;;  %16097 = vmatprep.subr.mxu0 %v21563_v56 }
 0x6a3   :  { %16128 = vmatpush3.msra.mxu1 %v7390_v4  ;;  %16098 = vmatpush3.msra.mxu0 %v21563_v56  ;;  %v7445_v4 = vsub.f32 %v21633_v58, %v21647_v6  ;;  %v7453_v7 = vand.u32 4294901760, %v7452_v34 }
 0x6a4   :  { %16129 = vmatprep.subr.mxu1 %v7397_v54  ;;  %16099 = vmatprep.subr.mxu0 %v21578_v45 }
 0x6a5   :  { %16130 = vmatpush3.msra.mxu1 %v7397_v54  ;;  %16100 = vmatpush3.msra.mxu0 %v21578_v45  ;;  %v21665_v54 = vsub.f32 %v12130_v46, %v21652_v8  ;;  %v7446_v57 = vand.u32 4294901760, %v7445_v4 }
 0x6a6   :  { %16131 = vmatprep.subr.mxu1 %v7404_v0  ;;  %16101 = vmatprep.subr.mxu0 %v21594_v10 }
 0x6a7   :  { %16132 = vmatpush3.msra.mxu1 %v7404_v0  ;;  %16102 = vmatpush3.msra.mxu0 %v21594_v10  ;;  %24939 = vst [vmem:[#allocation50_spill] sm:$0xff] %v21665_v54  ;;  %v21674_v0 = vand.u32 4294901760, %v21665_v54 }
 0x6a8   :  { %16133 = vmatprep.subr.mxu1 %v7411_v36  ;;  %16103 = vmatprep.subr.mxu0 %v21605_v12 }
 0x6a9   :  { %16134 = vmatpush3.msra.mxu1 %v7411_v36  ;;  %16104 = vmatpush3.msra.mxu0 %v21605_v12  ;;  %24940 = vst [vmem:[#allocation27_spill] sm:$0xff] %v21674_v0  ;;  %v7459_v36 = vsub.f32 %v21665_v54, %v21674_v0 }
 0x6aa   :  { %16135 = vmatprep.subr.mxu1 %v7418_v38  ;;  %16105 = vmatprep.subr.mxu0 %v21619_v33 }
 0x6ab   :  { %16136 = vmatpush3.msra.mxu1 %v7418_v38  ;;  %16106 = vmatpush3.msra.mxu0 %v21619_v33  ;;  %v7460_v13 = vand.u32 4294901760, %v7459_v36  ;;  %v7466_v38 = vsub.f32 %v21678_v14, %v21685_v15 }
 0x6ac   :  { %16137 = vmatprep.subr.mxu1 %v7425_v37  ;;  %16107 = vmatprep.subr.mxu0 %v21635_v21 }
 0x6ad   :  { %16138 = vmatpush3.msra.mxu1 %v7425_v37  ;;  %16108 = vmatpush3.msra.mxu0 %v21635_v21  ;;  %v7467_v53 = vand.u32 4294901760, %v7466_v38 }
 0x6ae   :  { %16139 = vmatprep.subr.mxu1 %v7432_v19  ;;  %16109 = vmatprep.subr.mxu0 %v21652_v8 }
 0x6af   :  { %16140 = vmatpush3.msra.mxu1 %v7432_v19  ;;  %16110 = vmatpush3.msra.mxu0 %v21652_v8 }
 0x6b0   :  { %16141 = vmatprep.subr.mxu1 %v7439_v42  ;;  %16111 = vmatprep.subr.mxu0 %v21668_v39 }
 0x6b1   :  { %16142 = vmatpush3.msra.mxu1 %v7439_v42  ;;  %16112 = vmatpush3.msra.mxu0 %v21668_v39 }
 0x6b2   :  { %16143 = vmatprep.subr.mxu1 %v7446_v57  ;;  %16157 = vmatprep.subr.mxu0 %v21458_v60 }
 0x6b3   :  { %16144 = vmatpush3.msra.mxu1 %v7446_v57  ;;  %v12128_v57 = vld [vmem:[%s24071_s4 + $0x2] ss:$0 sm:$0xff] }
 0x6b4   :  { %16145 = vmatprep.subr.mxu1 %v7453_v7 }
 0x6b5   :  { %16146 = vmatpush3.msra.mxu1 %v7453_v7 }
 0x6b6   :  { %16147 = vmatprep.subr.mxu1 %v7460_v13 }
 0x6b7   :  { %16148 = vmatpush3.msra.mxu1 %v7460_v13 }
 0x6b8   :  { %16149 = vmatprep.subr.mxu1 %v7467_v53 }
 0x6b9   :  { %16150 = vmatpush3.msra.mxu1 %v7467_v53 }
 0x6ba   :  { %16195 = vmatprep.subr.mxu1 %v21452_v44 }
 0x704   :  { %v15925_v48 = vpop.f32.mrf.mxu1 }
 0x706   :  { %v6704_v37 = vpop.f32.mrf.mxu1 }
 0x708   :  { %v15928_v46 = vpop.f32.mrf.mxu1 }
 0x70a   :  { %v6716_v19 = vpop.f32.mrf.mxu1 }
 0x70c   :  { %v15887_v9 = vpop.f32.mrf.mxu0 }
 0x70d   :  { %v6534_v36 = vadd.f32 %v15887_v9, %v12128_v57 }
 0x70e   :  { %v6523_v26 = vpop.f32.mrf.mxu0 }
 0x70f   :  { %v6524_v53 = vadd.f32 %v12128_v57, %v6523_v26  ;;  %v6711_v0 = vadd.f32 %v15925_v48, %v6534_v36 }
 0x711   :  { %v15890_v50 = vpop.f32.mrf.mxu0  ;;  %v6705_v32 = vadd.f32 %v6704_v37, %v6524_v53 }
 0x712   :  { %v6554_v15 = vadd.f32 %v15890_v50, %v12128_v57 }
 0x713   :  { %v6543_v4 = vpop.f32.mrf.mxu0 }
 0x714   :  { %v6544_v28 = vadd.f32 %v12128_v57, %v6543_v4  ;;  %v6723_v35 = vadd.f32 %v15928_v46, %v6554_v15  ;;  %v24943_v4 = vld [vmem:[#allocation11_spill] sm:$0xff]  ;;  %v17457_v57 = vld [vmem:[#allocation2 + $0x28] sm:$0xff] }
 0x716   :  { %v6717_v47 = vadd.f32 %v6716_v19, %v6544_v28 }
 0x726   :  { %v16001_v42 = vpop.f32.mrf.mxu1 }
 0x728   :  { %v6936_v34 = vpop.f32.mrf.mxu1 }
 0x72b   :  { %v16004_v13 = vpop.f32.mrf.mxu1 }
 0x72d   :  { %v6952_v1 = vpop.f32.mrf.mxu1 }
 0x72f   :  { %v15963_v7 = vpop.f32.mrf.mxu0 }
 0x730   :  { %v6834_v20 = vadd.f32 %v15963_v7, %v6711_v0  ;;  %v21695_v0 = vadd.f32 %v17454_v52, %v24943_v4 }
 0x731   :  { %v6826_v38 = vpop.f32.mrf.mxu0 }
 0x732   :  { %v6827_v40 = vadd.f32 %v6826_v38, %v6705_v32  ;;  %v6945_v61 = vadd.f32 %v16001_v42, %v6834_v20  ;;  %24944 = vst [vmem:[#allocation52_spill] sm:$0xff] %v21695_v0  ;;  %v17455_v20 = vld [vmem:[#allocation2 + $0x8] sm:$0xff] }
 0x734   :  { %v15966_v6 = vpop.f32.mrf.mxu0  ;;  %v6937_v54 = vadd.f32 %v6936_v34, %v6827_v40  ;;  %v17456_v40 = vld [vmem:[#allocation2 + $0x30] sm:$0xff]  ;;  %v24949_v34 = vld [vmem:[#allocation14_spill] sm:$0xff] }
 0x735   :  { %v6848_v22 = vadd.f32 %v15966_v6, %v6723_v35  ;;  %v24945_v6 = vld [vmem:[#allocation13_spill] sm:$0xff]  ;;  %v21708_v7 = vadd.f32 %v17457_v57, %v24949_v34 }
 0x736   :  { %v6840_v63 = vpop.f32.mrf.mxu0  ;;  %v21698_v19 = vadd.f32 %v17455_v20, %v24945_v6 }
 0x737   :  { %v6841_v9 = vadd.f32 %v6840_v63, %v6717_v47  ;;  %v6961_v36 = vadd.f32 %v16004_v13, %v6848_v22  ;;  %24950 = vst [vmem:[#allocation5_spill] sm:$0xff] %v21708_v7 }
 0x738   :  { %24946 = vst [vmem:[#allocation38_spill] sm:$0xff] %v21698_v19 }
 0x739   :  { %v6953_v28 = vadd.f32 %v6952_v1, %v6841_v9 }
 0x74a   :  { %v16077_v2 = vpop.f32.mrf.mxu1 }
 0x74c   :  { %v7184_v51 = vpop.f32.mrf.mxu1 }
 0x74e   :  { %v16080_v37 = vpop.f32.mrf.mxu1 }
 0x751   :  { %v16039_v30 = vpop.f32.mrf.mxu0 }
 0x752   :  { %v7086_v14 = vadd.f32 %v16039_v30, %v6945_v61 }
 0x753   :  { %v7079_v26 = vpop.f32.mrf.mxu0 }
 0x754   :  { %v7191_v50 = vadd.f32 %v16077_v2, %v7086_v14  ;;  %v7080_v48 = vadd.f32 %v7079_v26, %v6937_v54  ;;  %v24947_v2 = vld [vmem:[#allocation21_spill] sm:$0xff]  ;;  %v7196_v54 = vpop.f32.mrf.mxu1 }
 0x755   :  { %v16042_v32 = vpop.f32.mrf.mxu0  ;;  %v21702_v52 = vadd.f32 %v17456_v40, %v24947_v2 }
 0x756   :  { %v7207_v15 = vmax.f32 %v7191_v50, 0.0  ;;  %v7185_v46 = vadd.f32 %v7184_v51, %v7080_v48  ;;  %v7098_v35 = vadd.f32 %v16042_v32, %v6961_v36 }
 0x757   :  { %v7091_v30 = vpop.f32.mrf.mxu0  ;;  %24948 = vst [vmem:[#allocation54_spill] sm:$0xff] %v21702_v52 }
 0x758   :  { %v7211_v61 = vadd.f32 %v7207_v15, %v21695_v0  ;;  %v7206_v47 = vmax.f32 %v7185_v46, 0.0  ;;  %v7203_v63 = vadd.f32 %v16080_v37, %v7098_v35  ;;  %v7092_v22 = vadd.f32 %v7091_v30, %v6953_v28 }
 0x75a   :  { %v21704_v14 = vand.u32 4294901760, %v7211_v61  ;;  %v7210_v51 = vadd.f32 %v7206_v47, %v21698_v19  ;;  %v7209_v1 = vmax.f32 %v7203_v63, 0.0  ;;  %v7197_v42 = vadd.f32 %v7196_v54, %v7092_v22 }
 0x75c   :  { %v21711_v13 = vsub.f32 %v7211_v61, %v21704_v14  ;;  %v21713_v38 = vand.u32 4294901760, %v7210_v51  ;;  %v7213_v53 = vadd.f32 %v7209_v1, %v21702_v52  ;;  %v7208_v9 = vmax.f32 %v7197_v42, 0.0 }
 0x75e   :  { %v7329_v26 = vand.u32 4294901760, %v21711_v13  ;;  %v7318_v50 = vsub.f32 %v7210_v51, %v21713_v38  ;;  %v21718_v48 = vand.u32 4294901760, %v7213_v53  ;;  %v7212_v36 = vadd.f32 %v7208_v9, %v21708_v7  ;;  %16151 = vmatprep.mubr.f32.mxu1 %v21713_v38  ;;  %v12173_v51 = vld [vmem:[%s24067_s1 + $0x3d8] sm:$0xff] }
 0x75f   :  { %16152 = vmatmul.mubr.f32.vlgmr.msra.gmra.mxu1 %v21704_v14 }
 0x760   :  { %v21724_v4 = vsub.f32 %v7213_v53, %v21718_v48  ;;  %v21726_v37 = vand.u32 4294901760, %v7212_v36  ;;  %16196 = vmatpush3.msra.mxu1 %v21452_v44  ;;  %v7319_v32 = vand.u32 4294901760, %v7318_v50  ;;  %v7330_v15 = vsub.f32 %v21711_v13, %v7329_v26 }
 0x761   :  { %16197 = vmatprep.subr.mxu1 %v21460_v24 }
 0x762   :  { %v21734_v46 = vsub.f32 %v7212_v36, %v21726_v37  ;;  %16198 = vmatpush3.msra.mxu1 %v21460_v24  ;;  %16154 = vmatprep.mubr.f32.mxu1 %v21726_v37  ;;  %v7320_v35 = vsub.f32 %v7318_v50, %v7319_v32  ;;  %v7349_v28 = vand.u32 4294901760, %v21724_v4  ;;  %v7331_v30 = vand.u32 4294901760, %v7330_v15  ;;  %v12171_v36 = vld [vmem:[%s24067_s1 + $0x3c8] sm:$0xff] }
 0x763   :  { %16199 = vmatprep.subr.mxu1 %v21472_v43  ;;  %16155 = vmatmul.mubr.f32.gmra.mxu1 %v21718_v48  ;;  %v21967_v15 = vand.u32 4294901760, %v12171_v36 }
 0x764   :  { %16200 = vmatpush3.msra.mxu1 %v21472_v43  ;;  %16227 = vmatprep.mubr.f32.mxu1 %v7319_v32  ;;  %v7321_v20 = vand.u32 4294901760, %v7320_v35  ;;  %v7339_v6 = vand.u32 4294901760, %v21734_v46  ;;  %v7350_v47 = vsub.f32 %v21724_v4, %v7349_v28  ;;  %v12170_v35 = vld [vmem:[%s24067_s1 + $0x3c0] sm:$0xff] }
 0x765   :  { %16201 = vmatprep.subr.mxu1 %v21474_v17 }
 0x766   :  { %16202 = vmatpush3.msra.mxu1 %v21474_v17  ;;  %16113 = vmatprep.mubr.f32.mxu0 %v7321_v20  ;;  %v7340_v61 = vsub.f32 %v21734_v46, %v7339_v6  ;;  %v7351_v22 = vand.u32 4294901760, %v7350_v47  ;;  %v12169_v47 = vld [vmem:[%s24067_s1 + $0x3b8] sm:$0xff] }
 0x767   :  { %16203 = vmatprep.subr.mxu1 %v21476_v62  ;;  %16114 = vmatmul.mubr.f32.vlgmr.msra.gmra.mxu0 %v7331_v30  ;;  %v21983_v30 = vand.u32 4294901760, %v12170_v35 }
 0x768   :  { %16158 = vmatpush3.msra.mxu0 %v21458_v60  ;;  %16204 = vmatpush3.msra.mxu1 %v21476_v62  ;;  %v7341_v63 = vand.u32 4294901760, %v7340_v61  ;;  %v24951_v60 = vld [vmem:[#allocation19_spill] sm:$0xff] }
 0x769   :  { %16159 = vmatprep.subr.mxu0 %v21486_v16  ;;  %16205 = vmatprep.subr.mxu1 %v21489_v18 }
 0x76a   :  { %16160 = vmatpush3.msra.mxu0 %v21486_v16  ;;  %16206 = vmatpush3.msra.mxu1 %v21489_v18  ;;  %v24952_v16 = vld [vmem:[#allocation50_spill] sm:$0xff] }
 0x76b   :  { %16116 = vmatprep.mubr.f32.mxu0 %v7341_v63  ;;  %16161 = vmatprep.subr.mxu0 %v21492_v31 }
 0x76c   :  { %16207 = vmatprep.subr.mxu1 %v21540_v55  ;;  %16117 = vmatmul.mubr.f32.gmra.mxu0 %v7351_v22 }
 0x76d   :  { %16162 = vmatpush3.msra.mxu0 %v21492_v31  ;;  %16208 = vmatpush3.msra.mxu1 %v21540_v55  ;;  %v24959_v31 = vld [vmem:[#allocation46_spill] sm:$0xff] }
 0x76e   :  { %16163 = vmatprep.subr.mxu0 %v21495_v11  ;;  %16189 = vmatprep.mubr.f32.mxu0 %v7318_v50 }
 0x76f   :  { %16209 = vmatprep.subr.mxu1 %v21550_v5  ;;  %16164 = vmatpush3.msra.mxu0 %v21495_v11  ;;  %v24960_v11 = vld [vmem:[#allocation44_spill] sm:$0xff] }
 0x770   :  { %16210 = vmatpush3.msra.mxu1 %v21550_v5  ;;  %16165 = vmatprep.subr.mxu0 %v21498_v3 }
 0x771   :  { %16211 = vmatprep.subr.mxu1 %v21563_v56  ;;  %16166 = vmatpush3.msra.mxu0 %v21498_v3  ;;  %v24961_v3 = vld [vmem:[#allocation40_spill] sm:$0xff] }
 0x772   :  { %16212 = vmatpush3.msra.mxu1 %v21563_v56  ;;  %16167 = vmatprep.subr.mxu0 %v21507_v25 }
 0x773   :  { %16213 = vmatprep.subr.mxu1 %v21578_v45  ;;  %16168 = vmatpush3.msra.mxu0 %v21507_v25  ;;  %v24962_v25 = vld [vmem:[#allocation6_spill] sm:$0xff] }
 0x774   :  { %16214 = vmatpush3.msra.mxu1 %v21578_v45  ;;  %16169 = vmatprep.subr.mxu0 %v21548_v41 }
 0x775   :  { %16215 = vmatprep.subr.mxu1 %v21594_v10  ;;  %16170 = vmatpush3.msra.mxu0 %v21548_v41  ;;  %v24964_v41 = vld [vmem:[#allocation17_spill] sm:$0xff] }
 0x776   :  { %16216 = vmatpush3.msra.mxu1 %v21594_v10  ;;  %16171 = vmatprep.subr.mxu0 %v21561_v23 }
 0x777   :  { %16217 = vmatprep.subr.mxu1 %v21605_v12  ;;  %16172 = vmatpush3.msra.mxu0 %v21561_v23  ;;  %v24966_v23 = vld [vmem:[#allocation20_spill] sm:$0xff] }
 0x778   :  { %16218 = vmatpush3.msra.mxu1 %v21605_v12  ;;  %16173 = vmatprep.subr.mxu0 %v21576_v49 }
 0x779   :  { %16219 = vmatprep.subr.mxu1 %v21619_v33  ;;  %16174 = vmatpush3.msra.mxu0 %v21576_v49  ;;  %v24968_v49 = vld [vmem:[#allocation27_spill] sm:$0xff] }
 0x77a   :  { %16220 = vmatpush3.msra.mxu1 %v21619_v33  ;;  %16175 = vmatprep.subr.mxu0 %v21591_v59 }
 0x77b   :  { %16221 = vmatprep.subr.mxu1 %v21635_v21  ;;  %16176 = vmatpush3.msra.mxu0 %v21591_v59  ;;  %v12177_v59 = vld [vmem:[%s24067_s1 + $0x3f8] sm:$0xff] }
 0x77c   :  { %16222 = vmatpush3.msra.mxu1 %v21635_v21  ;;  %16177 = vmatprep.subr.mxu0 %v21608_v27 }
 0x77d   :  { %16223 = vmatprep.subr.mxu1 %v21652_v8  ;;  %16178 = vmatpush3.msra.mxu0 %v21608_v27 }
 0x77e   :  { %16224 = vmatpush3.msra.mxu1 %v21652_v8  ;;  %16179 = vmatprep.subr.mxu0 %v21617_v29 }
 0x77f   :  { %16225 = vmatprep.subr.mxu1 %v21668_v39  ;;  %16180 = vmatpush3.msra.mxu0 %v21617_v29 }
 0x780   :  { %16226 = vmatpush3.msra.mxu1 %v21668_v39  ;;  %16181 = vmatprep.subr.mxu0 %v21633_v58 }
 0x781   :  { %16228 = vmatmul.mubr.f32.vlgmr.msra.gmra.mxu1 %v7329_v26  ;;  %16271 = vmatprep.subr.mxu1 %v21452_v44 }
 0x782   :  { %16182 = vmatpush3.msra.mxu0 %v21633_v58  ;;  %16230 = vmatprep.mubr.f32.mxu1 %v7339_v6  ;;  %v21981_v6 = vsub.f32 %v12171_v36, %v21967_v15 }
 0x783   :  { %16272 = vmatpush3.msra.mxu1 %v21452_v44  ;;  %16183 = vmatprep.subr.mxu0 %v24951_v60  ;;  %v24953_v44 = vld [vmem:[#allocation9_spill] sm:$0xff] }
 0x784   :  { %16273 = vmatprep.subr.mxu1 %v21460_v24  ;;  %16184 = vmatpush3.msra.mxu0 %v24951_v60  ;;  %v21995_v22 = vand.u32 4294901760, %v21981_v6  ;;  %v21998_v60 = vsub.f32 %v12170_v35, %v21983_v30  ;;  %v12163_v35 = vld [vmem:[%s24067_s1 + $0x388] sm:$0xff] }
 0x785   :  { %16274 = vmatpush3.msra.mxu1 %v21460_v24  ;;  %16185 = vmatprep.subr.mxu0 %v24952_v16  ;;  %v24954_v24 = vld [vmem:[#allocation49_spill] sm:$0xff] }
 0x786   :  { %16231 = vmatmul.mubr.f32.gmra.mxu1 %v7349_v28  ;;  %16275 = vmatprep.subr.mxu1 %v21472_v43  ;;  %24976 = vst [vmem:[#allocation7_spill] sm:$0xff] %v21995_v22 }
 0x787   :  { %16186 = vmatpush3.msra.mxu0 %v24952_v16  ;;  %16276 = vmatpush3.msra.mxu1 %v21472_v43  ;;  %v24955_v43 = vld [vmem:[#allocation43_spill] sm:$0xff]  ;;  %v22000_v16 = vand.u32 4294901760, %v12169_v47 }
 0x788   :  { %16303 = vmatprep.mubr.f32.mxu1 %v21713_v38  ;;  %16187 = vmatprep.subr.mxu0 %v24953_v44 }
 0x789   :  { %16277 = vmatprep.subr.mxu1 %v21474_v17  ;;  %16188 = vmatpush3.msra.mxu0 %v24953_v44 }
 0x78a   :  { %16278 = vmatpush3.msra.mxu1 %v21474_v17  ;;  %16190 = vmatmul.mubr.f32.vlgmr.msra.gmra.mxu0 %v21711_v13  ;;  %v24956_v17 = vld [vmem:[#allocation37_spill] sm:$0xff]  ;;  %v21942_v13 = vand.u32 4294901760, %v12173_v51 }
 0x78b   :  { %16233 = vmatprep.subr.mxu0 %v24954_v24  ;;  %16279 = vmatprep.subr.mxu1 %v21476_v62 }
 0x78c   :  { %16192 = vmatprep.mubr.f32.mxu0 %v21734_v46  ;;  %16234 = vmatpush3.msra.mxu0 %v24954_v24  ;;  %v12168_v24 = vld [vmem:[%s24067_s1 + $0x3b0] sm:$0xff] }
 0x78d   :  { %16280 = vmatpush3.msra.mxu1 %v21476_v62  ;;  %16235 = vmatprep.subr.mxu0 %v24955_v43  ;;  %v24957_v62 = vld [vmem:[#allocation31_spill] sm:$0xff] }
 0x78e   :  { %16281 = vmatprep.subr.mxu1 %v21489_v18  ;;  %16236 = vmatpush3.msra.mxu0 %v24955_v43 }
 0x78f   :  { %16282 = vmatpush3.msra.mxu1 %v21489_v18  ;;  %16193 = vmatmul.mubr.f32.gmra.mxu0 %v21724_v4  ;;  %v24958_v18 = vld [vmem:[#allocation41_spill] sm:$0xff] }
 0x790   :  { %16237 = vmatprep.subr.mxu0 %v24956_v17  ;;  %16283 = vmatprep.subr.mxu1 %v21540_v55 }
 0x791   :  { %16238 = vmatpush3.msra.mxu0 %v24956_v17  ;;  %16265 = vmatprep.mubr.f32.mxu0 %v21713_v38  ;;  %v12172_v38 = vld [vmem:[%s24067_s1 + $0x3d0] sm:$0xff]  ;;  %v8227_v17 = vsub.f32 %v21981_v6, %v21995_v22 }
 0x792   :  { %16284 = vmatpush3.msra.mxu1 %v21540_v55  ;;  %16239 = vmatprep.subr.mxu0 %v24957_v62  ;;  %v24963_v55 = vld [vmem:[#allocation12_spill] sm:$0xff]  ;;  %v21953_v50 = vand.u32 4294901760, %v12172_v38 }
 0x793   :  { %16285 = vmatprep.subr.mxu1 %v21550_v5  ;;  %16240 = vmatpush3.msra.mxu0 %v24957_v62  ;;  %v22010_v62 = vand.u32 4294901760, %v21998_v60 }
 0x794   :  { %16286 = vmatpush3.msra.mxu1 %v21550_v5  ;;  %16241 = vmatprep.subr.mxu0 %v24958_v18  ;;  %v24965_v5 = vld [vmem:[#allocation18_spill] sm:$0xff]  ;;  %v21965_v32 = vsub.f32 %v12172_v38, %v21953_v50  ;;  %v12164_v38 = vld [vmem:[%s24067_s1 + $0x390] sm:$0xff] }
 0x795   :  { %16287 = vmatprep.subr.mxu1 %v21563_v56  ;;  %16242 = vmatpush3.msra.mxu0 %v24958_v18  ;;  %24977 = vst [vmem:[#allocation59_spill] sm:$0xff] %v22010_v62  ;;  %v22013_v18 = vsub.f32 %v12169_v47, %v22000_v16 }
 0x796   :  { %16288 = vmatpush3.msra.mxu1 %v21563_v56  ;;  %16243 = vmatprep.subr.mxu0 %v24959_v31  ;;  %v24967_v56 = vld [vmem:[#allocation24_spill] sm:$0xff]  ;;  %v21978_v20 = vand.u32 4294901760, %v21965_v32 }
 0x797   :  { %16289 = vmatprep.subr.mxu1 %v21578_v45  ;;  %16244 = vmatpush3.msra.mxu0 %v24959_v31  ;;  %v22016_v31 = vand.u32 4294901760, %v12168_v24 }
 0x798   :  { %16290 = vmatpush3.msra.mxu1 %v21578_v45  ;;  %16245 = vmatprep.subr.mxu0 %v24960_v11  ;;  %v24969_v45 = vld [vmem:[#allocation30_spill] sm:$0xff]  ;;  %24975 = vst [vmem:[#allocation57_spill] sm:$0xff] %v21978_v20  ;;  %v8220_v63 = vsub.f32 %v21965_v32, %v21978_v20 }
 0x799   :  { %16291 = vmatprep.subr.mxu1 %v21594_v10  ;;  %16246 = vmatpush3.msra.mxu0 %v24960_v11  ;;  %v12167_v11 = vld [vmem:[%s24067_s1 + $0x3a8] sm:$0xff] }
 0x79a   :  { %16292 = vmatpush3.msra.mxu1 %v21594_v10  ;;  %16247 = vmatprep.subr.mxu0 %v24961_v3  ;;  %v21890_v10 = vand.u32 4294901760, %v12177_v59  ;;  %v8221_v43 = vand.u32 4294901760, %v8220_v63 }
 0x79b   :  { %16293 = vmatprep.subr.mxu1 %v21605_v12  ;;  %16248 = vmatpush3.msra.mxu0 %v24961_v3  ;;  %v8228_v3 = vand.u32 4294901760, %v8227_v17 }
 0x79c   :  { %16294 = vmatpush3.msra.mxu1 %v21605_v12  ;;  %16249 = vmatprep.subr.mxu0 %v24962_v25  ;;  %v12176_v12 = vld [vmem:[%s24067_s1 + $0x3f0] sm:$0xff]  ;;  %v21896_v27 = vsub.f32 %v12177_v59, %v21890_v10 }
 0x79d   :  { %16295 = vmatprep.subr.mxu1 %v21619_v33  ;;  %16250 = vmatpush3.msra.mxu0 %v24962_v25  ;;  %v21898_v29 = vand.u32 4294901760, %v12176_v12  ;;  %v8234_v25 = vsub.f32 %v21998_v60, %v22010_v62 }
 0x79e   :  { %16296 = vmatpush3.msra.mxu1 %v21619_v33  ;;  %16251 = vmatprep.subr.mxu0 %v24963_v55  ;;  %v12175_v33 = vld [vmem:[%s24067_s1 + $0x3e8] sm:$0xff]  ;;  %v21906_v58 = vand.u32 4294901760, %v21896_v27 }
 0x79f   :  { %16297 = vmatprep.subr.mxu1 %v21635_v21  ;;  %16252 = vmatpush3.msra.mxu0 %v24963_v55  ;;  %v22025_v55 = vand.u32 4294901760, %v22013_v18 }
 0x7a0   :  { %16298 = vmatpush3.msra.mxu1 %v21635_v21  ;;  %16253 = vmatprep.subr.mxu0 %v24964_v41  ;;  %24970 = vst [vmem:[#allocation56_spill] sm:$0xff] %v21906_v58  ;;  %v21909_v21 = vsub.f32 %v12176_v12, %v21898_v29  ;;  %v8185_v40 = vsub.f32 %v21896_v27, %v21906_v58 }
 0x7a1   :  { %16299 = vmatprep.subr.mxu1 %v21652_v8  ;;  %16254 = vmatpush3.msra.mxu0 %v24964_v41  ;;  %24978 = vst [vmem:[#allocation23_spill] sm:$0xff] %v22025_v55  ;;  %v22027_v41 = vand.u32 4294901760, %v12167_v11 }
 0x7a2   :  { %16300 = vmatpush3.msra.mxu1 %v21652_v8  ;;  %16255 = vmatprep.subr.mxu0 %v24965_v5  ;;  %v21911_v8 = vand.u32 4294901760, %v12175_v33  ;;  %v21921_v2 = vand.u32 4294901760, %v21909_v21  ;;  %v8186_v1 = vand.u32 4294901760, %v8185_v40 }
 0x7a3   :  { %16301 = vmatprep.subr.mxu1 %v21668_v39  ;;  %16256 = vmatpush3.msra.mxu0 %v24965_v5  ;;  %v22031_v5 = vsub.f32 %v12168_v24, %v22016_v31  ;;  %v12162_v24 = vld [vmem:[%s24067_s1 + $0x380] sm:$0xff] }
 0x7a4   :  { %16302 = vmatpush3.msra.mxu1 %v21668_v39  ;;  %16257 = vmatprep.subr.mxu0 %v24966_v23  ;;  %v12174_v39 = vld [vmem:[%s24067_s1 + $0x3e0] sm:$0xff]  ;;  %24971 = vst [vmem:[#allocation53_spill] sm:$0xff] %v21921_v2  ;;  %v21924_v54 = vsub.f32 %v12175_v33, %v21911_v8  ;;  %v8192_v42 = vsub.f32 %v21909_v21, %v21921_v2  ;;  %v12165_v33 = vld [vmem:[%s24067_s1 + $0x398] sm:$0xff] }
 0x7a5   :  { %16304 = vmatmul.mubr.f32.vlgmr.msra.gmra.mxu1 %v21704_v14  ;;  %16258 = vmatpush3.msra.mxu0 %v24966_v23  ;;  %v12166_v23 = vld [vmem:[%s24067_s1 + $0x3a0] sm:$0xff]  ;;  %v22046_v12 = vand.u32 4294901760, %v22031_v5 }
 0x7a6   :  { %16306 = vmatprep.mubr.f32.mxu1 %v21726_v37  ;;  %16259 = vmatprep.subr.mxu0 %v24967_v56  ;;  %v21936_v57 = vand.u32 4294901760, %v21924_v54  ;;  %v8193_v53 = vand.u32 4294901760, %v8192_v42  ;;  %v22042_v59 = vand.u32 4294901760, %v12166_v23 }
 0x7a7   :  { %16260 = vmatpush3.msra.mxu0 %v24967_v56  ;;  %16347 = vmatprep.subr.mxu1 %v8186_v1  ;;  %v8235_v56 = vand.u32 4294901760, %v8234_v25  ;;  %24979 = vst [vmem:[#allocation8_spill] sm:$0xff] %v22046_v12  ;;  %v8248_v42 = vsub.f32 %v22031_v5, %v22046_v12 }
 0x7a8   :  { %16261 = vmatprep.subr.mxu0 %v24968_v49  ;;  %24972 = vst [vmem:[#allocation61_spill] sm:$0xff] %v21936_v57  ;;  %v8199_v9 = vsub.f32 %v21924_v54, %v21936_v57  ;;  %16348 = vmatpush3.msra.mxu1 %v8186_v1  ;;  %v22058_v1 = vand.u32 4294901760, %v12165_v33 }
 0x7a9   :  { %16307 = vmatmul.mubr.f32.gmra.mxu1 %v21718_v48  ;;  %16262 = vmatpush3.msra.mxu0 %v24968_v49  ;;  %v8241_v49 = vsub.f32 %v22013_v18, %v22025_v55 }
 0x7aa   :  { %16263 = vmatprep.subr.mxu0 %v24969_v45  ;;  %16349 = vmatprep.subr.mxu1 %v8193_v53  ;;  %v8200_v4 = vand.u32 4294901760, %v8199_v9  ;;  %v22073_v36 = vsub.f32 %v12165_v33, %v22058_v1 }
 0x7ab   :  { %16264 = vmatpush3.msra.mxu0 %v24969_v45  ;;  %16350 = vmatpush3.msra.mxu1 %v8193_v53  ;;  %v22040_v45 = vsub.f32 %v12167_v11, %v22027_v41 }
 0x7ac   :  { %16266 = vmatmul.mubr.f32.vlgmr.msra.gmra.mxu0 %v21704_v14  ;;  %16309 = vmatprep.subr.mxu0 %v21890_v10  ;;  %v21926_v14 = vand.u32 4294901760, %v12174_v39  ;;  %v22085_v47 = vand.u32 4294901760, %v22073_v36 }
 0x7ad   :  { %16268 = vmatprep.mubr.f32.mxu0 %v21726_v37  ;;  %16310 = vmatpush3.msra.mxu0 %v21890_v10  ;;  %v22053_v40 = vand.u32 4294901760, %v22040_v45 }
 0x7ae   :  { %16311 = vmatprep.subr.mxu0 %v21898_v29  ;;  %v21939_v34 = vsub.f32 %v12174_v39, %v21926_v14  ;;  %16351 = vmatprep.subr.mxu1 %v8200_v4  ;;  %v8242_v39 = vand.u32 4294901760, %v8241_v49  ;;  %24982 = vst [vmem:[#allocation32_spill] sm:$0xff] %v22085_v47  ;;  %v8269_v17 = vsub.f32 %v22073_v36, %v22085_v47 }
 0x7af   :  { %16312 = vmatpush3.msra.mxu0 %v21898_v29  ;;  %16352 = vmatpush3.msra.mxu1 %v8200_v4  ;;  %24980 = vst [vmem:[#allocation16_spill] sm:$0xff] %v22053_v40  ;;  %v8255_v53 = vsub.f32 %v22040_v45, %v22053_v40  ;;  %v22075_v4 = vand.u32 4294901760, %v12164_v38 }
 0x7b0   :  { %16269 = vmatmul.mubr.f32.gmra.mxu0 %v21718_v48  ;;  %16313 = vmatprep.subr.mxu0 %v21911_v8  ;;  %v21951_v26 = vand.u32 4294901760, %v21939_v34  ;;  %v21956_v48 = vsub.f32 %v12173_v51, %v21942_v13  ;;  %v22056_v51 = vsub.f32 %v12166_v23, %v22042_v59  ;;  %v8270_v23 = vand.u32 4294901760, %v8269_v17 }
 0x7b1   :  { %16314 = vmatpush3.msra.mxu0 %v21911_v8  ;;  %v22088_v63 = vsub.f32 %v12164_v38, %v22075_v4 }
 0x7b2   :  { %16315 = vmatprep.subr.mxu0 %v21926_v14  ;;  %24973 = vst [vmem:[#allocation55_spill] sm:$0xff] %v21951_v26  ;;  %v8206_v37 = vsub.f32 %v21939_v34, %v21951_v26  ;;  %v21971_v46 = vand.u32 4294901760, %v21956_v48  ;;  %v22070_v9 = vand.u32 4294901760, %v22056_v51 }
 0x7b3   :  { %16316 = vmatpush3.msra.mxu0 %v21926_v14  ;;  %24983 = vst [vmem:[#allocation47_spill] sm:$0xff] %v22088_v63  ;;  %v22100_v11 = vand.u32 4294901760, %v22088_v63 }
 0x7b4   :  { %16317 = vmatprep.subr.mxu0 %v21942_v13  ;;  %24974 = vst [vmem:[#allocation62_spill] sm:$0xff] %v21971_v46  ;;  %v8207_v28 = vand.u32 4294901760, %v8206_v37  ;;  %v8213_v61 = vsub.f32 %v21956_v48, %v21971_v46  ;;  %24981 = vst [vmem:[#allocation10_spill] sm:$0xff] %v22070_v9  ;;  %v8249_v37 = vand.u32 4294901760, %v8248_v42 }
 0x7b5   :  { %16318 = vmatpush3.msra.mxu0 %v21942_v13  ;;  %24984 = vst [vmem:[#allocation26_spill] sm:$0xff] %v22100_v11 }
 0x7b6   :  { %16319 = vmatprep.subr.mxu0 %v21953_v50  ;;  %16353 = vmatprep.subr.mxu1 %v8207_v28  ;;  %v8214_v44 = vand.u32 4294901760, %v8213_v61  ;;  %v8262_v61 = vsub.f32 %v22056_v51, %v22070_v9 }
 0x7b7   :  { %16320 = vmatpush3.msra.mxu0 %v21953_v50  ;;  %16354 = vmatpush3.msra.mxu1 %v8207_v28  ;;  %v8256_v28 = vand.u32 4294901760, %v8255_v53 }
 0x7b8   :  { %16321 = vmatprep.subr.mxu0 %v21967_v15  ;;  %16355 = vmatprep.subr.mxu1 %v8214_v44 }
 0x7b9   :  { %16322 = vmatpush3.msra.mxu0 %v21967_v15  ;;  %16356 = vmatpush3.msra.mxu1 %v8214_v44  ;;  %v22091_v44 = vand.u32 4294901760, %v12163_v35 }
 0x7ba   :  { %16323 = vmatprep.subr.mxu0 %v21983_v30  ;;  %16357 = vmatprep.subr.mxu1 %v8221_v43 }
 0x7bb   :  { %16324 = vmatpush3.msra.mxu0 %v21983_v30  ;;  %16358 = vmatpush3.msra.mxu1 %v8221_v43  ;;  %v8263_v43 = vand.u32 4294901760, %v8262_v61  ;;  %v22106_v25 = vsub.f32 %v12163_v35, %v22091_v44 }
 0x7bc   :  { %16325 = vmatprep.subr.mxu0 %v22000_v16  ;;  %16359 = vmatprep.subr.mxu1 %v8228_v3 }
 0x7bd   :  { %16326 = vmatpush3.msra.mxu0 %v22000_v16  ;;  %16360 = vmatpush3.msra.mxu1 %v8228_v3  ;;  %v22102_v3 = vand.u32 4294901760, %v12162_v24  ;;  %24985 = vst [vmem:[#allocation22_spill] sm:$0xff] %v22106_v25  ;;  %v22116_v33 = vand.u32 4294901760, %v22106_v25 }
 0x7be   :  { %16327 = vmatprep.subr.mxu0 %v22016_v31  ;;  %16361 = vmatprep.subr.mxu1 %v8235_v56 }
 0x7bf   :  { %16328 = vmatpush3.msra.mxu0 %v22016_v31  ;;  %16362 = vmatpush3.msra.mxu1 %v8235_v56  ;;  %v8276_v56 = vsub.f32 %v22088_v63, %v22100_v11  ;;  %v22112_v49 = vsub.f32 %v12162_v24, %v22102_v3  ;;  %24987 = vst [vmem:[#allocation33_spill] sm:$0xff] %v22116_v33 }
 0x7c0   :  { %16329 = vmatprep.subr.mxu0 %v22027_v41  ;;  %16363 = vmatprep.subr.mxu1 %v8242_v39  ;;  %v8283_v38 = vsub.f32 %v22106_v25, %v22116_v33 }
 0x7c1   :  { %16330 = vmatpush3.msra.mxu0 %v22027_v41  ;;  %16364 = vmatpush3.msra.mxu1 %v8242_v39  ;;  %24986 = vst [vmem:[#allocation34_spill] sm:$0xff] %v22112_v49  ;;  %v8277_v39 = vand.u32 4294901760, %v8276_v56  ;;  %v22120_v42 = vand.u32 4294901760, %v22112_v49 }
 0x7c2   :  { %16331 = vmatprep.subr.mxu0 %v22042_v59  ;;  %16365 = vmatprep.subr.mxu1 %v8249_v37 }
 0x7c3   :  { %16332 = vmatpush3.msra.mxu0 %v22042_v59  ;;  %16366 = vmatpush3.msra.mxu1 %v8249_v37  ;;  %24988 = vst [vmem:[#allocation39_spill] sm:$0xff] %v22120_v42  ;;  %v8290_v53 = vsub.f32 %v22112_v49, %v22120_v42  ;;  %v8284_v37 = vand.u32 4294901760, %v8283_v38 }
 0x7c4   :  { %16333 = vmatprep.subr.mxu0 %v22058_v1  ;;  %16367 = vmatprep.subr.mxu1 %v8256_v28 }
 0x7c5   :  { %16334 = vmatpush3.msra.mxu0 %v22058_v1  ;;  %16368 = vmatpush3.msra.mxu1 %v8256_v28  ;;  %v8291_v35 = vand.u32 4294901760, %v8290_v53 }
 0x7c6   :  { %16335 = vmatprep.subr.mxu0 %v22075_v4  ;;  %16369 = vmatprep.subr.mxu1 %v8263_v43 }
 0x7c7   :  { %16336 = vmatpush3.msra.mxu0 %v22075_v4  ;;  %16370 = vmatpush3.msra.mxu1 %v8263_v43 }
 0x7c8   :  { %16337 = vmatprep.subr.mxu0 %v22091_v44  ;;  %16371 = vmatprep.subr.mxu1 %v8270_v23 }
 0x7c9   :  { %16338 = vmatpush3.msra.mxu0 %v22091_v44  ;;  %16372 = vmatpush3.msra.mxu1 %v8270_v23 }
 0x7ca   :  { %16339 = vmatprep.subr.mxu0 %v22102_v3  ;;  %16373 = vmatprep.subr.mxu1 %v8277_v39 }
 0x7cb   :  { %16340 = vmatpush3.msra.mxu0 %v22102_v3  ;;  %16374 = vmatpush3.msra.mxu1 %v8277_v39  ;;  %v12145_v39 = vld [vmem:[%s24071_s4 + $0x3] ss:$0 sm:$0xff] }
 0x7cc   :  { %16385 = vmatprep.subr.mxu0 %v21896_v27  ;;  %16375 = vmatprep.subr.mxu1 %v8284_v37 }
 0x7cd   :  { %16376 = vmatpush3.msra.mxu1 %v8284_v37 }
 0x7ce   :  { %16377 = vmatprep.subr.mxu1 %v8291_v35 }
 0x7cf   :  { %16378 = vmatpush3.msra.mxu1 %v8291_v35 }
 0x7d0   :  { %16423 = vmatprep.subr.mxu1 %v21890_v10 }
 0x81f   :  { %v16153_v28 = vpop.f32.mrf.mxu1 }
 0x821   :  { %v7504_v61 = vpop.f32.mrf.mxu1 }
 0x823   :  { %v16156_v43 = vpop.f32.mrf.mxu1 }
 0x825   :  { %v7516_v56 = vpop.f32.mrf.mxu1 }
 0x827   :  { %v16115_v24 = vpop.f32.mrf.mxu0 }
 0x828   :  { %v7334_v37 = vadd.f32 %v16115_v24, %v12145_v39 }
 0x829   :  { %v7323_v17 = vpop.f32.mrf.mxu0 }
 0x82a   :  { %v7324_v0 = vadd.f32 %v12145_v39, %v7323_v17  ;;  %v7511_v33 = vadd.f32 %v16153_v28, %v7334_v37 }
 0x82c   :  { %v16118_v23 = vpop.f32.mrf.mxu0  ;;  %v7505_v12 = vadd.f32 %v7504_v61, %v7324_v0 }
 0x82d   :  { %v7354_v42 = vadd.f32 %v16118_v23, %v12145_v39 }
 0x82e   :  { %v7343_v52 = vpop.f32.mrf.mxu0 }
 0x82f   :  { %v7344_v9 = vadd.f32 %v12145_v39, %v7343_v52  ;;  %v7523_v22 = vadd.f32 %v16156_v43, %v7354_v42 }
 0x831   :  { %v7517_v26 = vadd.f32 %v7516_v56, %v7344_v9 }
 0x841   :  { %v16229_v7 = vpop.f32.mrf.mxu1 }
 0x843   :  { %v7736_v38 = vpop.f32.mrf.mxu1 }
 0x846   :  { %v16232_v19 = vpop.f32.mrf.mxu1 }
 0x848   :  { %v7752_v11 = vpop.f32.mrf.mxu1 }
 0x84a   :  { %v16191_v53 = vpop.f32.mrf.mxu0 }
 0x84b   :  { %v7634_v40 = vadd.f32 %v16191_v53, %v7511_v33 }
 0x84c   :  { %v7626_v35 = vpop.f32.mrf.mxu0 }
 0x84d   :  { %v7627_v62 = vadd.f32 %v7626_v35, %v7505_v12  ;;  %v7745_v57 = vadd.f32 %v16229_v7, %v7634_v40 }
 0x84f   :  { %v16194_v47 = vpop.f32.mrf.mxu0  ;;  %v7737_v25 = vadd.f32 %v7736_v38, %v7627_v62 }
 0x850   :  { %v7648_v46 = vadd.f32 %v16194_v47, %v7523_v22 }
 0x851   :  { %v7640_v20 = vpop.f32.mrf.mxu0 }
 0x852   :  { %v7641_v24 = vadd.f32 %v7640_v20, %v7517_v26  ;;  %v7761_v37 = vadd.f32 %v16232_v19, %v7648_v46 }
 0x854   :  { %v7753_v12 = vadd.f32 %v7752_v11, %v7641_v24 }
 0x865   :  { %v16305_v55 = vpop.f32.mrf.mxu1 }
 0x867   :  { %v7984_v2 = vpop.f32.mrf.mxu1 }
 0x869   :  { %v16308_v63 = vpop.f32.mrf.mxu1 }
 0x86b   :  { %v7996_v40 = vpop.f32.mrf.mxu1 }
 0x86c   :  { %v16267_v58 = vpop.f32.mrf.mxu0 }
 0x86d   :  { %v7886_v49 = vadd.f32 %v16267_v58, %v7745_v57 }
 0x86e   :  { %v7879_v17 = vpop.f32.mrf.mxu0 }
 0x86f   :  { %v7991_v23 = vadd.f32 %v16305_v55, %v7886_v49  ;;  %v7880_v28 = vadd.f32 %v7879_v17, %v7737_v25 }
 0x870   :  { %v16270_v52 = vpop.f32.mrf.mxu0 }
 0x871   :  { %v8007_v33 = vmax.f32 %v7991_v23, 0.0  ;;  %v7985_v0 = vadd.f32 %v7984_v2, %v7880_v28  ;;  %v7898_v61 = vadd.f32 %v16270_v52, %v7761_v37  ;;  %v12156_v52 = vld [vmem:[%s24067_s1 + $0x350] sm:$0xff] }
 0x872   :  { %v7891_v42 = vpop.f32.mrf.mxu0 }
 0x873   :  { %8015 = vst [vmem:[#allocation2 + $0x10] sm:$0xff] %v8007_v33  ;;  %v8006_v22 = vmax.f32 %v7985_v0, 0.0  ;;  %v8003_v9 = vadd.f32 %v16308_v63, %v7898_v61  ;;  %v7892_v7 = vadd.f32 %v7891_v42, %v7753_v12  ;;  %v22132_v47 = vand.u32 4294901760, %v8007_v33  ;;  %v12155_v12 = vld [vmem:[%s24067_s1 + $0x348] sm:$0xff] }
 0x875   :  { %8014 = vst [vmem:[#allocation2 + $0x8] sm:$0xff] %v8006_v22  ;;  %v8009_v58 = vmax.f32 %v8003_v9, 0.0  ;;  %v7997_v57 = vadd.f32 %v7996_v40, %v7892_v7  ;;  %v22134_v26 = vand.u32 4294901760, %v8006_v22  ;;  %v22137_v19 = vsub.f32 %v8007_v33, %v22132_v47  ;;  %v25000_v33 = vld [vmem:[#allocation23_spill] sm:$0xff] }
 0x876   :  { %v12154_v7 = vld [vmem:[%s24067_s1 + $0x340] sm:$0xff] }
 0x877   :  { %8017 = vst [vmem:[#allocation2 + $0x30] sm:$0xff] %v8009_v58  ;;  %v8008_v2 = vmax.f32 %v7997_v57, 0.0  ;;  %16379 = vmatprep.mubr.f32.mxu1 %v22134_v26  ;;  %v22140_v46 = vand.u32 4294901760, %v8009_v58  ;;  %v8142_v20 = vsub.f32 %v8006_v22, %v22134_v26  ;;  %v8153_v62 = vand.u32 4294901760, %v22137_v19 }
 0x878   :  { %16380 = vmatmul.mubr.f32.vlgmr.msra.gmra.mxu1 %v22132_v47  ;;  %v22338_v22 = vand.u32 4294901760, %v12156_v52  ;;  %v22352_v57 = vand.u32 4294901760, %v12155_v12 }
 0x879   :  { %8016 = vst [vmem:[#allocation2 + $0x28] sm:$0xff] %v8008_v2  ;;  %16424 = vmatpush3.msra.mxu1 %v21890_v10  ;;  %v22146_v55 = vand.u32 4294901760, %v8008_v2  ;;  %v22149_v63 = vsub.f32 %v8009_v58, %v22140_v46  ;;  %v8143_v11 = vand.u32 4294901760, %v8142_v20  ;;  %v8154_v25 = vsub.f32 %v22137_v19, %v8153_v62 }
 0x87a   :  { %16425 = vmatprep.subr.mxu1 %v21898_v29 }
 0x87b   :  { %16426 = vmatpush3.msra.mxu1 %v21898_v29  ;;  %16382 = vmatprep.mubr.f32.mxu1 %v22146_v55  ;;  %v8144_v49 = vsub.f32 %v8142_v20, %v8143_v11  ;;  %v22158_v43 = vsub.f32 %v8008_v2, %v22146_v55  ;;  %v8173_v56 = vand.u32 4294901760, %v22149_v63  ;;  %v8155_v53 = vand.u32 4294901760, %v8154_v25  ;;  %v25003_v2 = vld [vmem:[#allocation10_spill] sm:$0xff]  ;;  %v12152_v25 = vld [vmem:[%s24067_s1 + $0x330] sm:$0xff] }
 0x87c   :  { %16427 = vmatprep.subr.mxu1 %v21911_v8  ;;  %16383 = vmatmul.mubr.f32.gmra.mxu1 %v22140_v46  ;;  %v8018_v58 = vld [vmem:[#allocation2 + $0x2] sm:$0xff] }
 0x87d   :  { %16428 = vmatpush3.msra.mxu1 %v21911_v8  ;;  %16455 = vmatprep.mubr.f32.mxu1 %v8143_v11  ;;  %v8145_v39 = vand.u32 4294901760, %v8144_v49  ;;  %v8163_v38 = vand.u32 4294901760, %v22158_v43  ;;  %v8174_v24 = vsub.f32 %v22149_v63, %v8173_v56  ;;  %v22373_v11 = vand.u32 4294901760, %v8018_v58  ;;  %v25004_v49 = vld [vmem:[#allocation32_spill] sm:$0xff] }
 0x87e   :  { %16429 = vmatprep.subr.mxu1 %v21926_v14 }
 0x87f   :  { %16430 = vmatpush3.msra.mxu1 %v21926_v14  ;;  %16341 = vmatprep.mubr.f32.mxu0 %v8145_v39  ;;  %v8164_v35 = vsub.f32 %v22158_v43, %v8163_v38  ;;  %v8175_v23 = vand.u32 4294901760, %v8174_v24  ;;  %v22399_v24 = vand.u32 4294901760, %v12152_v25 }
 0x880   :  { %16431 = vmatprep.subr.mxu1 %v21942_v13  ;;  %16342 = vmatmul.mubr.f32.vlgmr.msra.gmra.mxu0 %v8155_v53 }
 0x881   :  { %16386 = vmatpush3.msra.mxu0 %v21896_v27  ;;  %16432 = vmatpush3.msra.mxu1 %v21942_v13  ;;  %v8165_v17 = vand.u32 4294901760, %v8164_v35  ;;  %v24989_v27 = vld [vmem:[#allocation47_spill] sm:$0xff] }
 0x882   :  { %16387 = vmatprep.subr.mxu0 %v21909_v21  ;;  %16433 = vmatprep.subr.mxu1 %v21953_v50 }
 0x883   :  { %16388 = vmatpush3.msra.mxu0 %v21909_v21  ;;  %16434 = vmatpush3.msra.mxu1 %v21953_v50  ;;  %v24990_v21 = vld [vmem:[#allocation22_spill] sm:$0xff] }
 0x884   :  { %16344 = vmatprep.mubr.f32.mxu0 %v8165_v17  ;;  %16389 = vmatprep.subr.mxu0 %v21924_v54  ;;  %v12151_v17 = vld [vmem:[%s24067_s1 + $0x328] sm:$0xff] }
 0x885   :  { %16435 = vmatprep.subr.mxu1 %v21967_v15  ;;  %16345 = vmatmul.mubr.f32.gmra.mxu0 %v8175_v23  ;;  %v25005_v23 = vld [vmem:[#allocation26_spill] sm:$0xff] }
 0x886   :  { %16390 = vmatpush3.msra.mxu0 %v21924_v54  ;;  %16436 = vmatpush3.msra.mxu1 %v21967_v15  ;;  %v12161_v54 = vld [vmem:[%s24067_s1 + $0x378] sm:$0xff] }
 0x887   :  { %16391 = vmatprep.subr.mxu0 %v21939_v34  ;;  %16417 = vmatprep.mubr.f32.mxu0 %v8142_v20  ;;  %v22364_v20 = vsub.f32 %v12156_v52, %v22338_v22 }
 0x888   :  { %16437 = vmatprep.subr.mxu1 %v21983_v30  ;;  %16392 = vmatpush3.msra.mxu0 %v21939_v34  ;;  %v22261_v34 = vand.u32 4294901760, %v12161_v54 }
 0x889   :  { %16438 = vmatpush3.msra.mxu1 %v21983_v30  ;;  %16393 = vmatprep.subr.mxu0 %v21956_v48 }
 0x88a   :  { %16439 = vmatprep.subr.mxu1 %v22000_v16  ;;  %16394 = vmatpush3.msra.mxu0 %v21956_v48  ;;  %v24995_v48 = vld [vmem:[#allocation55_spill] sm:$0xff] }
 0x88b   :  { %16440 = vmatpush3.msra.mxu1 %v22000_v16  ;;  %16395 = vmatprep.subr.mxu0 %v21965_v32 }
 0x88c   :  { %16441 = vmatprep.subr.mxu1 %v22016_v31  ;;  %16396 = vmatpush3.msra.mxu0 %v21965_v32  ;;  %v24996_v32 = vld [vmem:[#allocation62_spill] sm:$0xff] }
 0x88d   :  { %16442 = vmatpush3.msra.mxu1 %v22016_v31  ;;  %16397 = vmatprep.subr.mxu0 %v21981_v6 }
 0x88e   :  { %16443 = vmatprep.subr.mxu1 %v22027_v41  ;;  %16398 = vmatpush3.msra.mxu0 %v21981_v6 }
 0x88f   :  { %16444 = vmatpush3.msra.mxu1 %v22027_v41  ;;  %16399 = vmatprep.subr.mxu0 %v21998_v60 }
 0x890   :  { %16445 = vmatprep.subr.mxu1 %v22042_v59  ;;  %16400 = vmatpush3.msra.mxu0 %v21998_v60  ;;  %v24997_v60 = vld [vmem:[#allocation57_spill] sm:$0xff] }
 0x891   :  { %16446 = vmatpush3.msra.mxu1 %v22042_v59  ;;  %16401 = vmatprep.subr.mxu0 %v22013_v18 }
 0x892   :  { %16447 = vmatprep.subr.mxu1 %v22058_v1  ;;  %16402 = vmatpush3.msra.mxu0 %v22013_v18 }
 0x893   :  { %16448 = vmatpush3.msra.mxu1 %v22058_v1  ;;  %16403 = vmatprep.subr.mxu0 %v22031_v5 }
 0x894   :  { %16449 = vmatprep.subr.mxu1 %v22075_v4  ;;  %16404 = vmatpush3.msra.mxu0 %v22031_v5  ;;  %v24998_v5 = vld [vmem:[#allocation7_spill] sm:$0xff] }
 0x895   :  { %16450 = vmatpush3.msra.mxu1 %v22075_v4  ;;  %16405 = vmatprep.subr.mxu0 %v22040_v45 }
 0x896   :  { %16451 = vmatprep.subr.mxu1 %v22091_v44  ;;  %16406 = vmatpush3.msra.mxu0 %v22040_v45 }
 0x897   :  { %16452 = vmatpush3.msra.mxu1 %v22091_v44  ;;  %16407 = vmatprep.subr.mxu0 %v22056_v51 }
 0x898   :  { %16453 = vmatprep.subr.mxu1 %v22102_v3  ;;  %16408 = vmatpush3.msra.mxu0 %v22056_v51 }
 0x899   :  { %16454 = vmatpush3.msra.mxu1 %v22102_v3  ;;  %16409 = vmatprep.subr.mxu0 %v22073_v36 }
 0x89a   :  { %16456 = vmatmul.mubr.f32.vlgmr.msra.gmra.mxu1 %v8153_v62  ;;  %16499 = vmatprep.subr.mxu1 %v21890_v10  ;;  %v22366_v62 = vand.u32 4294901760, %v12154_v7 }
 0x89b   :  { %16410 = vmatpush3.msra.mxu0 %v22073_v36  ;;  %16458 = vmatprep.mubr.f32.mxu1 %v8163_v38 }
 0x89c   :  { %16500 = vmatpush3.msra.mxu1 %v21890_v10  ;;  %16411 = vmatprep.subr.mxu0 %v24989_v27  ;;  %v24991_v10 = vld [vmem:[#allocation34_spill] sm:$0xff]  ;;  %v22397_v35 = vsub.f32 %v12154_v7, %v22366_v62 }
 0x89d   :  { %16501 = vmatprep.subr.mxu1 %v21898_v29  ;;  %16412 = vmatpush3.msra.mxu0 %v24989_v27 }
 0x89e   :  { %16502 = vmatpush3.msra.mxu1 %v21898_v29  ;;  %16413 = vmatprep.subr.mxu0 %v24990_v21  ;;  %v24992_v29 = vld [vmem:[#allocation56_spill] sm:$0xff] }
 0x89f   :  { %16459 = vmatmul.mubr.f32.gmra.mxu1 %v8173_v56  ;;  %16503 = vmatprep.subr.mxu1 %v21911_v8  ;;  %v22384_v56 = vsub.f32 %v12155_v12, %v22352_v57 }
 0x8a0   :  { %16414 = vmatpush3.msra.mxu0 %v24990_v21  ;;  %16504 = vmatpush3.msra.mxu1 %v21911_v8  ;;  %v24993_v8 = vld [vmem:[#allocation53_spill] sm:$0xff]  ;;  %v22408_v21 = vsub.f32 %v8018_v58, %v22373_v11  ;;  %v12147_v58 = vld [vmem:[%s24067_s1 + $0x308] sm:$0xff] }
 0x8a1   :  { %16531 = vmatprep.mubr.f32.mxu1 %v22134_v26  ;;  %16415 = vmatprep.subr.mxu0 %v24991_v10 }
 0x8a2   :  { %16505 = vmatprep.subr.mxu1 %v21926_v14  ;;  %16416 = vmatpush3.msra.mxu0 %v24991_v10  ;;  %v22412_v10 = vand.u32 4294901760, %v22384_v56 }
 0x8a3   :  { %16506 = vmatpush3.msra.mxu1 %v21926_v14  ;;  %16418 = vmatmul.mubr.f32.vlgmr.msra.gmra.mxu0 %v22137_v19  ;;  %v24994_v14 = vld [vmem:[#allocation61_spill] sm:$0xff] }
 0x8a4   :  { %16461 = vmatprep.subr.mxu0 %v24992_v29  ;;  %16507 = vmatprep.subr.mxu1 %v21942_v13  ;;  %v8997_v52 = vsub.f32 %v22384_v56, %v22412_v10 }
 0x8a5   :  { %16420 = vmatprep.mubr.f32.mxu0 %v22158_v43  ;;  %16462 = vmatpush3.msra.mxu0 %v24992_v29  ;;  %v12150_v29 = vld [vmem:[%s24067_s1 + $0x320] sm:$0xff] }
 0x8a6   :  { %16508 = vmatpush3.msra.mxu1 %v21942_v13  ;;  %16463 = vmatprep.subr.mxu0 %v24993_v8  ;;  %v12160_v13 = vld [vmem:[%s24067_s1 + $0x370] sm:$0xff] }
 0x8a7   :  { %16509 = vmatprep.subr.mxu1 %v21953_v50  ;;  %16464 = vmatpush3.msra.mxu0 %v24993_v8  ;;  %v22275_v6 = vand.u32 4294901760, %v12160_v13  ;;  %v25006_v8 = vld [vmem:[#allocation33_spill] sm:$0xff] }
 0x8a8   :  { %16510 = vmatpush3.msra.mxu1 %v21953_v50  ;;  %16421 = vmatmul.mubr.f32.gmra.mxu0 %v22149_v63  ;;  %v12159_v50 = vld [vmem:[%s24067_s1 + $0x368] sm:$0xff]  ;;  %v12153_v63 = vld [vmem:[%s24067_s1 + $0x338] sm:$0xff] }
 0x8a9   :  { %16465 = vmatprep.subr.mxu0 %v24994_v14  ;;  %16511 = vmatprep.subr.mxu1 %v21967_v15  ;;  %v22284_v18 = vand.u32 4294901760, %v12159_v50  ;;  %v22294_v45 = vsub.f32 %v12160_v13, %v22275_v6  ;;  %v22389_v38 = vand.u32 4294901760, %v12153_v63  ;;  %v22421_v13 = vand.u32 4294901760, %v12151_v17 }
 0x8aa   :  { %16466 = vmatpush3.msra.mxu0 %v24994_v14  ;;  %16493 = vmatprep.mubr.f32.mxu0 %v22134_v26 }
 0x8ab   :  { %16512 = vmatpush3.msra.mxu1 %v21967_v15  ;;  %16467 = vmatprep.subr.mxu0 %v24995_v48  ;;  %v22280_v15 = vsub.f32 %v12161_v54, %v22261_v34  ;;  %v22309_v28 = vsub.f32 %v12159_v50, %v22284_v18  ;;  %v22419_v14 = vsub.f32 %v12153_v63, %v22389_v38  ;;  %v22427_v50 = vand.u32 4294901760, %v22397_v35  ;;  %v12146_v63 = vld [vmem:[%s24067_s1 + $0x300] sm:$0xff] }
 0x8ac   :  { %16513 = vmatprep.subr.mxu1 %v21983_v30  ;;  %16468 = vmatpush3.msra.mxu0 %v24995_v48  ;;  %v22451_v12 = vsub.f32 %v12151_v17, %v22421_v13 }
 0x8ad   :  { %16514 = vmatpush3.msra.mxu1 %v21983_v30  ;;  %16469 = vmatprep.subr.mxu0 %v24996_v32  ;;  %v12158_v30 = vld [vmem:[%s24067_s1 + $0x360] sm:$0xff]  ;;  %v22302_v51 = vand.u32 4294901760, %v22280_v15  ;;  %v22336_v42 = vand.u32 4294901760, %v22309_v28 }
 0x8ae   :  { %16515 = vmatprep.subr.mxu1 %v22000_v16  ;;  %16470 = vmatpush3.msra.mxu0 %v24996_v32  ;;  %v22304_v36 = vand.u32 4294901760, %v12158_v30  ;;  %v22430_v32 = vsub.f32 %v12152_v25, %v22399_v24 }
 0x8af   :  { %16516 = vmatpush3.msra.mxu1 %v22000_v16  ;;  %16471 = vmatprep.subr.mxu0 %v24997_v60  ;;  %v12157_v16 = vld [vmem:[%s24067_s1 + $0x358] sm:$0xff]  ;;  %v8955_v0 = vsub.f32 %v22280_v15, %v22302_v51 }
 0x8b0   :  { %16517 = vmatprep.subr.mxu1 %v22016_v31  ;;  %16472 = vmatpush3.msra.mxu0 %v24997_v60  ;;  %v22313_v37 = vand.u32 4294901760, %v12157_v16  ;;  %v22328_v61 = vsub.f32 %v12158_v30, %v22304_v36  ;;  %v12149_v60 = vld [vmem:[%s24067_s1 + $0x318] sm:$0xff] }
 0x8b1   :  { %16518 = vmatpush3.msra.mxu1 %v22016_v31  ;;  %16473 = vmatprep.subr.mxu0 %v24998_v5  ;;  %v24999_v31 = vld [vmem:[#allocation59_spill] sm:$0xff]  ;;  %v8956_v26 = vand.u32 4294901760, %v8955_v0  ;;  %v22448_v0 = vand.u32 4294901760, %v22419_v14 }
 0x8b2   :  { %16519 = vmatprep.subr.mxu1 %v22027_v41  ;;  %16474 = vmatpush3.msra.mxu0 %v24998_v5  ;;  %v22343_v9 = vsub.f32 %v12157_v16, %v22313_v37  ;;  %v22357_v19 = vand.u32 4294901760, %v22328_v61  ;;  %v8913_v5 = vand.u32 4294901760, %v22408_v21  ;;  %v22437_v16 = vand.u32 4294901760, %v12150_v29 }
 0x8b3   :  { %16520 = vmatpush3.msra.mxu1 %v22027_v41  ;;  %16475 = vmatprep.subr.mxu0 %v24999_v31  ;;  %v22321_v41 = vand.u32 4294901760, %v22294_v45  ;;  %v9011_v25 = vsub.f32 %v22419_v14, %v22448_v0 }
 0x8b4   :  { %16521 = vmatprep.subr.mxu1 %v22042_v59  ;;  %16476 = vmatpush3.msra.mxu0 %v24999_v31  ;;  %v8976_v39 = vsub.f32 %v22328_v61, %v22357_v19  ;;  %v25007_v31 = vld [vmem:[#allocation39_spill] sm:$0xff] }
 0x8b5   :  { %16522 = vmatpush3.msra.mxu1 %v22042_v59  ;;  %16477 = vmatprep.subr.mxu0 %v25000_v33  ;;  %v25001_v59 = vld [vmem:[#allocation8_spill] sm:$0xff]  ;;  %v8962_v40 = vsub.f32 %v22294_v45, %v22321_v41 }
 0x8b6   :  { %16523 = vmatprep.subr.mxu1 %v22058_v1  ;;  %16478 = vmatpush3.msra.mxu0 %v25000_v33  ;;  %v8977_v54 = vand.u32 4294901760, %v8976_v39  ;;  %v12148_v33 = vld [vmem:[%s24067_s1 + $0x310] sm:$0xff] }
 0x8b7   :  { %16524 = vmatpush3.msra.mxu1 %v22058_v1  ;;  %16479 = vmatprep.subr.mxu0 %v25001_v59  ;;  %v25002_v1 = vld [vmem:[#allocation16_spill] sm:$0xff]  ;;  %v8963_v43 = vand.u32 4294901760, %v8962_v40  ;;  %v22459_v40 = vand.u32 4294901760, %v22430_v32 }
 0x8b8   :  { %16525 = vmatprep.subr.mxu1 %v22075_v4  ;;  %16480 = vmatpush3.msra.mxu0 %v25001_v59  ;;  %v22453_v59 = vand.u32 4294901760, %v12149_v60 }
 0x8b9   :  { %16526 = vmatpush3.msra.mxu1 %v22075_v4  ;;  %16481 = vmatprep.subr.mxu0 %v25002_v1  ;;  %v8969_v4 = vsub.f32 %v22309_v28, %v22336_v42 }
 0x8ba   :  { %16527 = vmatprep.subr.mxu1 %v22091_v44  ;;  %16482 = vmatpush3.msra.mxu0 %v25002_v1  ;;  %v9004_v1 = vsub.f32 %v22397_v35, %v22427_v50 }
 0x8bb   :  { %16528 = vmatpush3.msra.mxu1 %v22091_v44  ;;  %16483 = vmatprep.subr.mxu0 %v25003_v2  ;;  %v22376_v44 = vand.u32 4294901760, %v22343_v9  ;;  %v8970_v53 = vand.u32 4294901760, %v8969_v4  ;;  %v8998_v4 = vand.u32 4294901760, %v8997_v52 }
 0x8bc   :  { %16529 = vmatprep.subr.mxu1 %v22102_v3  ;;  %16484 = vmatpush3.msra.mxu0 %v25003_v2  ;;  %v22471_v2 = vand.u32 4294901760, %v12148_v33  ;;  %v9005_v39 = vand.u32 4294901760, %v9004_v1 }
 0x8bd   :  { %16530 = vmatpush3.msra.mxu1 %v22102_v3  ;;  %16485 = vmatprep.subr.mxu0 %v25004_v49  ;;  %v22394_v3 = vand.u32 4294901760, %v22364_v20  ;;  %v8983_v27 = vsub.f32 %v22343_v9, %v22376_v44 }
 0x8be   :  { %16532 = vmatmul.mubr.f32.vlgmr.msra.gmra.mxu1 %v22132_v47  ;;  %16575 = vmatprep.subr.mxu1 %v8956_v26 }
 0x8bf   :  { %16486 = vmatpush3.msra.mxu0 %v25004_v49  ;;  %16534 = vmatprep.mubr.f32.mxu1 %v22146_v55  ;;  %v8990_v48 = vsub.f32 %v22364_v20, %v22394_v3  ;;  %v8984_v30 = vand.u32 4294901760, %v8983_v27  ;;  %v22482_v49 = vand.u32 4294901760, %v22451_v12  ;;  %v22497_v27 = vsub.f32 %v12148_v33, %v22471_v2 }
 0x8c0   :  { %16576 = vmatpush3.msra.mxu1 %v8956_v26  ;;  %16487 = vmatprep.subr.mxu0 %v25005_v23  ;;  %v8914_v26 = vsub.f32 %v22408_v21, %v8913_v5 }
 0x8c1   :  { %16577 = vmatprep.subr.mxu1 %v8963_v43  ;;  %16488 = vmatpush3.msra.mxu0 %v25005_v23  ;;  %v8991_v7 = vand.u32 4294901760, %v8990_v48 }
 0x8c2   :  { %16578 = vmatpush3.msra.mxu1 %v8963_v43  ;;  %16489 = vmatprep.subr.mxu0 %v25006_v8  ;;  %v22485_v43 = vsub.f32 %v12149_v60, %v22453_v59  ;;  %v8915_v17 = vand.u32 4294901760, %v8914_v26 }
 0x8c3   :  { %16535 = vmatmul.mubr.f32.gmra.mxu1 %v22140_v46  ;;  %16579 = vmatprep.subr.mxu1 %v8970_v53 }
 0x8c4   :  { %16490 = vmatpush3.msra.mxu0 %v25006_v8  ;;  %16580 = vmatpush3.msra.mxu1 %v8970_v53  ;;  %v9018_v53 = vsub.f32 %v22430_v32, %v22459_v40  ;;  %v9012_v8 = vand.u32 4294901760, %v9011_v25 }
 0x8c5   :  { %16607 = vmatprep.mubr.f32.mxu1 %v22373_v11  ;;  %16491 = vmatprep.subr.mxu0 %v25007_v31 }
 0x8c6   :  { %16581 = vmatprep.subr.mxu1 %v8977_v54  ;;  %16492 = vmatpush3.msra.mxu0 %v25007_v31  ;;  %v9019_v60 = vand.u32 4294901760, %v9018_v53  ;;  %v22516_v31 = vand.u32 4294901760, %v22497_v27 }
 0x8c7   :  { %16582 = vmatpush3.msra.mxu1 %v8977_v54  ;;  %16494 = vmatmul.mubr.f32.vlgmr.msra.gmra.mxu0 %v22132_v47  ;;  %v22469_v47 = vsub.f32 %v12150_v29, %v22437_v16  ;;  %v22499_v29 = vand.u32 4294901760, %v12146_v63  ;;  %v9025_v54 = vsub.f32 %v22451_v12, %v22482_v49 }
 0x8c8   :  { %16537 = vmatprep.subr.mxu0 %v22261_v34  ;;  %16583 = vmatprep.subr.mxu1 %v8984_v30  ;;  %v9046_v26 = vsub.f32 %v22497_v27, %v22516_v31 }
 0x8c9   :  { %16496 = vmatprep.mubr.f32.mxu0 %v22146_v55  ;;  %16538 = vmatpush3.msra.mxu0 %v22261_v34  ;;  %v22487_v55 = vand.u32 4294901760, %v12147_v58  ;;  %v22494_v23 = vand.u32 4294901760, %v22469_v47  ;;  %v22519_v52 = vsub.f32 %v12146_v63, %v22499_v29  ;;  %v9026_v33 = vand.u32 4294901760, %v9025_v54 }
 0x8ca   :  { %16584 = vmatpush3.msra.mxu1 %v8984_v30  ;;  %16539 = vmatprep.subr.mxu0 %v22275_v6  ;;  %v9047_v53 = vand.u32 4294901760, %v9046_v26 }
 0x8cb   :  { %16585 = vmatprep.subr.mxu1 %v8991_v7  ;;  %16540 = vmatpush3.msra.mxu0 %v22275_v6  ;;  %v22509_v48 = vsub.f32 %v12147_v58, %v22487_v55  ;;  %v9032_v30 = vsub.f32 %v22469_v47, %v22494_v23 }
 0x8cc   :  { %16586 = vmatpush3.msra.mxu1 %v8991_v7  ;;  %16497 = vmatmul.mubr.f32.gmra.mxu0 %v22140_v46  ;;  %v22506_v46 = vand.u32 4294901760, %v22485_v43 }
 0x8cd   :  { %16541 = vmatprep.subr.mxu0 %v22284_v18  ;;  %16587 = vmatprep.subr.mxu1 %v8998_v4  ;;  %v22526_v1 = vand.u32 4294901760, %v22509_v48  ;;  %v9033_v58 = vand.u32 4294901760, %v9032_v30 }
 0x8ce   :  { %16542 = vmatpush3.msra.mxu0 %v22284_v18  ;;  %16569 = vmatprep.mubr.f32.mxu0 %v8915_v17  ;;  %v9039_v7 = vsub.f32 %v22485_v43, %v22506_v46 }
 0x8cf   :  { %16588 = vmatpush3.msra.mxu1 %v8998_v4  ;;  %16543 = vmatprep.subr.mxu0 %v22304_v36  ;;  %v22533_v4 = vand.u32 4294901760, %v22519_v52  ;;  %v9053_v25 = vsub.f32 %v22509_v48, %v22526_v1 }
 0x8d0   :  { %16589 = vmatprep.subr.mxu1 %v9005_v39  ;;  %16544 = vmatpush3.msra.mxu0 %v22304_v36  ;;  %v9040_v63 = vand.u32 4294901760, %v9039_v7 }
 0x8d1   :  { %16590 = vmatpush3.msra.mxu1 %v9005_v39  ;;  %16545 = vmatprep.subr.mxu0 %v22313_v37  ;;  %v8019_v39 = vld [vmem:[#allocation2 + $0xa] sm:$0xff]  ;;  %v9060_v17 = vsub.f32 %v22519_v52, %v22533_v4 }
 0x8d2   :  { %16591 = vmatprep.subr.mxu1 %v9012_v8  ;;  %16546 = vmatpush3.msra.mxu0 %v22313_v37  ;;  %v22544_v54 = vand.u32 4294901760, %v8019_v39 }
 0x8d3   :  { %16592 = vmatpush3.msra.mxu1 %v9012_v8  ;;  %16547 = vmatprep.subr.mxu0 %v22338_v22  ;;  %v8020_v8 = vld [vmem:[#allocation2 + $0x22] sm:$0xff]  ;;  %v9061_v7 = vand.u32 4294901760, %v9060_v17 }
 0x8d4   :  { %16593 = vmatprep.subr.mxu1 %v9019_v60  ;;  %16548 = vmatpush3.msra.mxu0 %v22338_v22  ;;  %v22548_v30 = vand.u32 4294901760, %v8020_v8 }
 0x8d5   :  { %16594 = vmatpush3.msra.mxu1 %v9019_v60  ;;  %16549 = vmatprep.subr.mxu0 %v22352_v57  ;;  %v9054_v60 = vand.u32 4294901760, %v9053_v25 }
 0x8d6   :  { %16595 = vmatprep.subr.mxu1 %v9026_v33  ;;  %16550 = vmatpush3.msra.mxu0 %v22352_v57 }
 0x8d7   :  { %16596 = vmatpush3.msra.mxu1 %v9026_v33  ;;  %16551 = vmatprep.subr.mxu0 %v22366_v62  ;;  %v8021_v33 = vld [vmem:[#allocation2 + $0x2a] sm:$0xff] }
 0x8d8   :  { %16597 = vmatprep.subr.mxu1 %v9033_v58  ;;  %16552 = vmatpush3.msra.mxu0 %v22366_v62  ;;  %v22556_v26 = vand.u32 4294901760, %v8021_v33 }
 0x8d9   :  { %16598 = vmatpush3.msra.mxu1 %v9033_v58  ;;  %16553 = vmatprep.subr.mxu0 %v22389_v38  ;;  %v22553_v58 = vsub.f32 %v8019_v39, %v22544_v54 }
 0x8da   :  { %16599 = vmatprep.subr.mxu1 %v9040_v63  ;;  %16554 = vmatpush3.msra.mxu0 %v22389_v38  ;;  %v22568_v39 = vsub.f32 %v8021_v33, %v22556_v26 }
 0x8db   :  { %16600 = vmatpush3.msra.mxu1 %v9040_v63  ;;  %16555 = vmatprep.subr.mxu0 %v22399_v24  ;;  %v22560_v63 = vsub.f32 %v8020_v8, %v22548_v30  ;;  %v8923_v25 = vand.u32 4294901760, %v22553_v58 }
 0x8dc   :  { %16601 = vmatprep.subr.mxu1 %v9047_v53  ;;  %16556 = vmatpush3.msra.mxu0 %v22399_v24  ;;  %v8943_v8 = vand.u32 4294901760, %v22568_v39 }
 0x8dd   :  { %16602 = vmatpush3.msra.mxu1 %v9047_v53  ;;  %16557 = vmatprep.subr.mxu0 %v22421_v13  ;;  %v24449_v53 = vand.u32 4294901760, %v22560_v63  ;;  %v8924_v17 = vsub.f32 %v22553_v58, %v8923_v25 }
 0x8de   :  { %16603 = vmatprep.subr.mxu1 %v9054_v60  ;;  %16558 = vmatpush3.msra.mxu0 %v22421_v13 }
 0x8df   :  { %16604 = vmatpush3.msra.mxu1 %v9054_v60  ;;  %16559 = vmatprep.subr.mxu0 %v22437_v16  ;;  %v8934_v60 = vsub.f32 %v22560_v63, %v24449_v53  ;;  %v8925_v33 = vand.u32 4294901760, %v8924_v17 }
 0x8e0   :  { %16605 = vmatprep.subr.mxu1 %v9061_v7  ;;  %16560 = vmatpush3.msra.mxu0 %v22437_v16 }
 0x8e1   :  { %16606 = vmatpush3.msra.mxu1 %v9061_v7  ;;  %16561 = vmatprep.subr.mxu0 %v22453_v59  ;;  %v8944_v7 = vsub.f32 %v22568_v39, %v8943_v8  ;;  %v8935_v53 = vand.u32 4294901760, %v8934_v60  ;;  %v12181_v60 = vld [vmem:[%s24067_s1 + $0x418] sm:$0xff] }
 0x8e2   :  { %16608 = vmatmul.mubr.f32.vlgmr.msra.gmra.mxu1 %v22544_v54  ;;  %16651 = vmatprep.subr.mxu1 %v22261_v34 }
 0x8e3   :  { %16562 = vmatpush3.msra.mxu0 %v22453_v59  ;;  %16610 = vmatprep.mubr.f32.mxu1 %v22548_v30 }
 0x8e4   :  { %16652 = vmatpush3.msra.mxu1 %v22261_v34  ;;  %16563 = vmatprep.subr.mxu0 %v22471_v2 }
 0x8e5   :  { %16653 = vmatprep.subr.mxu1 %v22275_v6  ;;  %16564 = vmatpush3.msra.mxu0 %v22471_v2 }
 0x8e6   :  { %16654 = vmatpush3.msra.mxu1 %v22275_v6  ;;  %16565 = vmatprep.subr.mxu0 %v22487_v55 }
 0x8e7   :  { %16611 = vmatmul.mubr.f32.gmra.mxu1 %v22556_v26  ;;  %16655 = vmatprep.subr.mxu1 %v22284_v18 }
 0x8e8   :  { %16566 = vmatpush3.msra.mxu0 %v22487_v55  ;;  %16656 = vmatpush3.msra.mxu1 %v22284_v18 }
 0x8e9   :  { %16683 = vmatprep.mubr.f32.mxu1 %v8913_v5  ;;  %16567 = vmatprep.subr.mxu0 %v22499_v29  ;;  %v8945_v5 = vand.u32 4294901760, %v8944_v7 }
 0x8ea   :  { %16657 = vmatprep.subr.mxu1 %v22304_v36  ;;  %16568 = vmatpush3.msra.mxu0 %v22499_v29 }
 0x8eb   :  { %16658 = vmatpush3.msra.mxu1 %v22304_v36  ;;  %16570 = vmatmul.mubr.f32.vlgmr.msra.gmra.mxu0 %v8925_v33 }
 0x8ec   :  { %16613 = vmatprep.subr.mxu0 %v22280_v15  ;;  %16659 = vmatprep.subr.mxu1 %v22313_v37 }
 0x8ed   :  { %16572 = vmatprep.mubr.f32.mxu0 %v8935_v53  ;;  %16614 = vmatpush3.msra.mxu0 %v22280_v15  ;;  %v25008_v15 = vand.u32 4294901760, %v22560_v63 }
 0x8ee   :  { %16660 = vmatpush3.msra.mxu1 %v22313_v37  ;;  %16615 = vmatprep.subr.mxu0 %v22294_v45 }
 0x8ef   :  { %16661 = vmatprep.subr.mxu1 %v22338_v22  ;;  %16616 = vmatpush3.msra.mxu0 %v22294_v45  ;;  %v12191_v45 = vld [vmem:[%s24067_s1 + $0x468] sm:$0xff] }
 0x8f0   :  { %16662 = vmatpush3.msra.mxu1 %v22338_v22  ;;  %16573 = vmatmul.mubr.f32.gmra.mxu0 %v8945_v5 }
 0x8f1   :  { %16617 = vmatprep.subr.mxu0 %v22309_v28  ;;  %16663 = vmatprep.subr.mxu1 %v22352_v57 }
 0x8f2   :  { %16618 = vmatpush3.msra.mxu0 %v22309_v28  ;;  %16645 = vmatprep.mubr.f32.mxu0 %v22408_v21  ;;  %v22712_v28 = vand.u32 4294901760, %v12191_v45 }
 0x8f3   :  { %16664 = vmatpush3.msra.mxu1 %v22352_v57  ;;  %16619 = vmatprep.subr.mxu0 %v22328_v61 }
 0x8f4   :  { %16665 = vmatprep.subr.mxu1 %v22366_v62  ;;  %16620 = vmatpush3.msra.mxu0 %v22328_v61  ;;  %v12189_v61 = vld [vmem:[%s24067_s1 + $0x458] sm:$0xff] }
 0x8f5   :  { %16666 = vmatpush3.msra.mxu1 %v22366_v62  ;;  %16621 = vmatprep.subr.mxu0 %v22343_v9 }
 0x8f6   :  { %16667 = vmatprep.subr.mxu1 %v22389_v38  ;;  %16622 = vmatpush3.msra.mxu0 %v22343_v9  ;;  %v22737_v9 = vsub.f32 %v12191_v45, %v22712_v28  ;;  %v22881_v45 = vand.u32 4294901760, %v12181_v60 }
 0x8f7   :  { %16668 = vmatpush3.msra.mxu1 %v22389_v38  ;;  %16623 = vmatprep.subr.mxu0 %v22364_v20 }
 0x8f8   :  { %16669 = vmatprep.subr.mxu1 %v22399_v24  ;;  %16624 = vmatpush3.msra.mxu0 %v22364_v20 }
 0x8f9   :  { %16670 = vmatpush3.msra.mxu1 %v22399_v24  ;;  %16625 = vmatprep.subr.mxu0 %v22384_v56 }
 0x8fa   :  { %16671 = vmatprep.subr.mxu1 %v22421_v13  ;;  %16626 = vmatpush3.msra.mxu0 %v22384_v56  ;;  %v22764_v56 = vand.u32 4294901760, %v22737_v9 }
 0x8fb   :  { %16672 = vmatpush3.msra.mxu1 %v22421_v13  ;;  %16627 = vmatprep.subr.mxu0 %v22397_v35 }
 0x8fc   :  { %16673 = vmatprep.subr.mxu1 %v22437_v16  ;;  %16628 = vmatpush3.msra.mxu0 %v22397_v35 }
 0x8fd   :  { %16674 = vmatpush3.msra.mxu1 %v22437_v16  ;;  %16629 = vmatprep.subr.mxu0 %v22419_v14 }
 0x8fe   :  { %16675 = vmatprep.subr.mxu1 %v22453_v59  ;;  %16630 = vmatpush3.msra.mxu0 %v22419_v14 }
 0x8ff   :  { %16676 = vmatpush3.msra.mxu1 %v22453_v59  ;;  %16631 = vmatprep.subr.mxu0 %v22430_v32 }
 0x900   :  { %16677 = vmatprep.subr.mxu1 %v22471_v2  ;;  %16632 = vmatpush3.msra.mxu0 %v22430_v32 }
 0x901   :  { %16678 = vmatpush3.msra.mxu1 %v22471_v2  ;;  %16633 = vmatprep.subr.mxu0 %v22451_v12 }
 0x902   :  { %16679 = vmatprep.subr.mxu1 %v22487_v55  ;;  %16634 = vmatpush3.msra.mxu0 %v22451_v12  ;;  %v12185_v12 = vld [vmem:[%s24067_s1 + $0x438] sm:$0xff] }
 0x903   :  { %16680 = vmatpush3.msra.mxu1 %v22487_v55  ;;  %16635 = vmatprep.subr.mxu0 %v22469_v47 }
 0x904   :  { %16681 = vmatprep.subr.mxu1 %v22499_v29  ;;  %16636 = vmatpush3.msra.mxu0 %v22469_v47 }
 0x905   :  { %16682 = vmatpush3.msra.mxu1 %v22499_v29  ;;  %16637 = vmatprep.subr.mxu0 %v22485_v43 }
 0x906   :  { %16684 = vmatmul.mubr.f32.vlgmr.msra.gmra.mxu1 %v8923_v25  ;;  %16727 = vmatprep.subr.mxu1 %v22261_v34 }
 0x907   :  { %16638 = vmatpush3.msra.mxu0 %v22485_v43  ;;  %16686 = vmatprep.mubr.f32.mxu1 %v25008_v15  ;;  %v22817_v43 = vand.u32 4294901760, %v12185_v12 }
 0x908   :  { %16728 = vmatpush3.msra.mxu1 %v22261_v34  ;;  %16639 = vmatprep.subr.mxu0 %v22497_v27  ;;  %v12193_v34 = vld [vmem:[%s24067_s1 + $0x478] sm:$0xff] }
 0x909   :  { %16729 = vmatprep.subr.mxu1 %v22275_v6  ;;  %16640 = vmatpush3.msra.mxu0 %v22497_v27 }
 0x90a   :  { %16730 = vmatpush3.msra.mxu1 %v22275_v6  ;;  %16641 = vmatprep.subr.mxu0 %v22509_v48  ;;  %v22689_v6 = vand.u32 4294901760, %v12193_v34 }
 0x90b   :  { %16687 = vmatmul.mubr.f32.gmra.mxu1 %v8943_v8  ;;  %16731 = vmatprep.subr.mxu1 %v22284_v18 }
 0x90c   :  { %16642 = vmatpush3.msra.mxu0 %v22509_v48  ;;  %16732 = vmatpush3.msra.mxu1 %v22284_v18  ;;  %v12192_v18 = vld [vmem:[%s24067_s1 + $0x470] sm:$0xff]  ;;  %v12183_v48 = vld [vmem:[%s24067_s1 + $0x428] sm:$0xff] }
 0x90d   :  { %16759 = vmatprep.mubr.f32.mxu1 %v22373_v11  ;;  %16643 = vmatprep.subr.mxu0 %v22519_v52  ;;  %v22849_v53 = vand.u32 4294901760, %v12183_v48 }
 0x90e   :  { %16733 = vmatprep.subr.mxu1 %v22304_v36  ;;  %16644 = vmatpush3.msra.mxu0 %v22519_v52 }
 0x90f   :  { %16734 = vmatpush3.msra.mxu1 %v22304_v36  ;;  %16646 = vmatmul.mubr.f32.vlgmr.msra.gmra.mxu0 %v22553_v58  ;;  %v22708_v36 = vsub.f32 %v12193_v34, %v22689_v6  ;;  %v12180_v34 = vld [vmem:[%s24067_s1 + $0x410] sm:$0xff] }
 0x910   :  { %16689 = vmatprep.subr.mxu0 %v22302_v51  ;;  %16735 = vmatprep.subr.mxu1 %v22313_v37 }
 0x911   :  { %16648 = vmatprep.mubr.f32.mxu0 %v22560_v63  ;;  %16690 = vmatpush3.msra.mxu0 %v22302_v51  ;;  %v22703_v51 = vand.u32 4294901760, %v12192_v18  ;;  %v12182_v63 = vld [vmem:[%s24067_s1 + $0x420] sm:$0xff] }
 0x912   :  { %16736 = vmatpush3.msra.mxu1 %v22313_v37  ;;  %16691 = vmatprep.subr.mxu0 %v22321_v41  ;;  %v12190_v37 = vld [vmem:[%s24067_s1 + $0x460] sm:$0xff]  ;;  %v22865_v5 = vand.u32 4294901760, %v12182_v63 }
 0x913   :  { %16737 = vmatprep.subr.mxu1 %v22338_v22  ;;  %16692 = vmatpush3.msra.mxu0 %v22321_v41  ;;  %v22722_v41 = vsub.f32 %v12192_v18, %v22703_v51  ;;  %v22879_v18 = vsub.f32 %v12183_v48, %v22849_v53 }
 0x914   :  { %16738 = vmatpush3.msra.mxu1 %v22338_v22  ;;  %16649 = vmatmul.mubr.f32.gmra.mxu0 %v22568_v39  ;;  %v22732_v22 = vand.u32 4294901760, %v12190_v37  ;;  %v22847_v39 = vsub.f32 %v12185_v12, %v22817_v43 }
 0x915   :  { %16693 = vmatprep.subr.mxu0 %v22336_v42  ;;  %16739 = vmatprep.subr.mxu1 %v22352_v57  ;;  %v22749_v20 = vand.u32 4294901760, %v22722_v41 }
 0x916   :  { %16694 = vmatpush3.msra.mxu0 %v22336_v42  ;;  %16721 = vmatprep.mubr.f32.mxu0 %v22373_v11  ;;  %v22730_v42 = vand.u32 4294901760, %v22708_v36  ;;  %v22756_v11 = vsub.f32 %v12190_v37, %v22732_v22 }
 0x917   :  { %16740 = vmatpush3.msra.mxu1 %v22352_v57  ;;  %16695 = vmatprep.subr.mxu0 %v22357_v19  ;;  %v22741_v57 = vand.u32 4294901760, %v12189_v61  ;;  %v9753_v21 = vsub.f32 %v22722_v41, %v22749_v20 }
 0x918   :  { %16741 = vmatprep.subr.mxu1 %v22366_v62  ;;  %16696 = vmatpush3.msra.mxu0 %v22357_v19  ;;  %v12188_v19 = vld [vmem:[%s24067_s1 + $0x450] sm:$0xff] }
 0x919   :  { %16742 = vmatpush3.msra.mxu1 %v22366_v62  ;;  %16697 = vmatprep.subr.mxu0 %v22376_v44  ;;  %v9746_v62 = vsub.f32 %v22708_v36, %v22730_v42  ;;  %v22771_v35 = vsub.f32 %v12189_v61, %v22741_v57 }
 0x91a   :  { %16743 = vmatprep.subr.mxu1 %v22389_v38  ;;  %16698 = vmatpush3.msra.mxu0 %v22376_v44  ;;  %v12187_v44 = vld [vmem:[%s24067_s1 + $0x448] sm:$0xff] }
 0x91b   :  { %16744 = vmatpush3.msra.mxu1 %v22389_v38  ;;  %16699 = vmatprep.subr.mxu0 %v22394_v3  ;;  %v22766_v38 = vand.u32 4294901760, %v12188_v19  ;;  %v9747_v14 = vand.u32 4294901760, %v9746_v62 }
 0x91c   :  { %16745 = vmatprep.subr.mxu1 %v22399_v24  ;;  %16700 = vmatpush3.msra.mxu0 %v22394_v3  ;;  %v9600_v3 = vld [vmem:[#allocation2 + $0xe] sm:$0xff] }
 0x91d   :  { %16746 = vmatpush3.msra.mxu1 %v22399_v24  ;;  %16701 = vmatprep.subr.mxu0 %v22412_v10  ;;  %v12186_v24 = vld [vmem:[%s24067_s1 + $0x440] sm:$0xff]  ;;  %v22791_v32 = vand.u32 4294901760, %v9600_v3 }
 0x91e   :  { %16747 = vmatprep.subr.mxu1 %v22421_v13  ;;  %16702 = vmatpush3.msra.mxu0 %v22412_v10  ;;  %v22780_v10 = vand.u32 4294901760, %v12187_v44 }
 0x91f   :  { %16748 = vmatpush3.msra.mxu1 %v22421_v13  ;;  %16703 = vmatprep.subr.mxu0 %v22427_v50  ;;  %v22785_v13 = vand.u32 4294901760, %v22756_v11  ;;  %v22825_v27 = vsub.f32 %v9600_v3, %v22791_v32 }
 0x920   :  { %16749 = vmatprep.subr.mxu1 %v22437_v16  ;;  %16704 = vmatpush3.msra.mxu0 %v22427_v50  ;;  %v9760_v50 = vsub.f32 %v22737_v9, %v22764_v56  ;;  %v22809_v47 = vsub.f32 %v12187_v44, %v22780_v10  ;;  %v22899_v44 = vand.u32 4294901760, %v12180_v34 }
 0x921   :  { %16750 = vmatpush3.msra.mxu1 %v22437_v16  ;;  %16705 = vmatprep.subr.mxu0 %v22448_v0  ;;  %v22794_v16 = vsub.f32 %v12188_v19, %v22766_v38  ;;  %v9704_v17 = vand.u32 4294901760, %v22825_v27 }
 0x922   :  { %16751 = vmatprep.subr.mxu1 %v22453_v59  ;;  %16706 = vmatpush3.msra.mxu0 %v22448_v0  ;;  %v22796_v0 = vand.u32 4294901760, %v12186_v24  ;;  %v22840_v58 = vand.u32 4294901760, %v22809_v47 }
 0x923   :  { %16752 = vmatpush3.msra.mxu1 %v22453_v59  ;;  %16707 = vmatprep.subr.mxu0 %v22459_v40  ;;  %v22804_v59 = vand.u32 4294901760, %v22771_v35  ;;  %v9705_v61 = vsub.f32 %v22825_v27, %v9704_v17 }
 0x924   :  { %16753 = vmatprep.subr.mxu1 %v22471_v2  ;;  %16708 = vmatpush3.msra.mxu0 %v22459_v40  ;;  %v9754_v40 = vand.u32 4294901760, %v9753_v21  ;;  %v9788_v15 = vsub.f32 %v22809_v47, %v22840_v58 }
 0x925   :  { %16754 = vmatpush3.msra.mxu1 %v22471_v2  ;;  %16709 = vmatprep.subr.mxu0 %v22482_v49  ;;  %v12184_v2 = vld [vmem:[%s24067_s1 + $0x430] sm:$0xff]  ;;  %v9706_v12 = vand.u32 4294901760, %v9705_v61 }
 0x926   :  { %16755 = vmatprep.subr.mxu1 %v22487_v55  ;;  %16710 = vmatpush3.msra.mxu0 %v22482_v49  ;;  %v9767_v49 = vsub.f32 %v22756_v11, %v22785_v13  ;;  %v22836_v52 = vand.u32 4294901760, %v12184_v2  ;;  %v9789_v3 = vand.u32 4294901760, %v9788_v15 }
 0x927   :  { %16756 = vmatpush3.msra.mxu1 %v22487_v55  ;;  %16711 = vmatprep.subr.mxu0 %v22494_v23  ;;  %v9761_v55 = vand.u32 4294901760, %v9760_v50  ;;  %v22913_v50 = vsub.f32 %v12181_v60, %v22881_v45 }
 0x928   :  { %16757 = vmatprep.subr.mxu1 %v22499_v29  ;;  %16712 = vmatpush3.msra.mxu0 %v22494_v23  ;;  %v22822_v23 = vand.u32 4294901760, %v22794_v16  ;;  %v9768_v25 = vand.u32 4294901760, %v9767_v49  ;;  %v22863_v7 = vsub.f32 %v12184_v2, %v22836_v52 }
 0x929   :  { %16758 = vmatpush3.msra.mxu1 %v22499_v29  ;;  %16713 = vmatprep.subr.mxu0 %v22506_v46  ;;  %v22828_v29 = vsub.f32 %v12186_v24, %v22796_v0  ;;  %v12178_v24 = vld [vmem:[%s24067_s1 + $0x400] sm:$0xff] }
 0x92a   :  { %16760 = vmatmul.mubr.f32.vlgmr.msra.gmra.mxu1 %v22544_v54  ;;  %16803 = vmatprep.subr.mxu1 %v9747_v14  ;;  %v22894_v62 = vand.u32 4294901760, %v22863_v7  ;;  %v22927_v48 = vand.u32 4294901760, %v12178_v24 }
 0x92b   :  { %16714 = vmatpush3.msra.mxu0 %v22506_v46  ;;  %16762 = vmatprep.mubr.f32.mxu1 %v22548_v30  ;;  %v9774_v46 = vsub.f32 %v22771_v35, %v22804_v59  ;;  %v22856_v8 = vand.u32 4294901760, %v22828_v29 }
 0x92c   :  { %16804 = vmatpush3.msra.mxu1 %v9747_v14  ;;  %16715 = vmatprep.subr.mxu0 %v22516_v31  ;;  %v22910_v14 = vand.u32 4294901760, %v22879_v18  ;;  %v9809_v2 = vsub.f32 %v22863_v7, %v22894_v62  ;;  %v22947_v15 = vsub.f32 %v12178_v24, %v22927_v48 }
 0x92d   :  { %16805 = vmatprep.subr.mxu1 %v9754_v40  ;;  %16716 = vmatpush3.msra.mxu0 %v22516_v31  ;;  %v9781_v31 = vsub.f32 %v22794_v16, %v22822_v23  ;;  %v9775_v33 = vand.u32 4294901760, %v9774_v46  ;;  %v9795_v19 = vsub.f32 %v22828_v29, %v22856_v8 }
 0x92e   :  { %16806 = vmatpush3.msra.mxu1 %v9754_v40  ;;  %16717 = vmatprep.subr.mxu0 %v22526_v1 }
 0x92f   :  { %16763 = vmatmul.mubr.f32.gmra.mxu1 %v22556_v26  ;;  %16807 = vmatprep.subr.mxu1 %v9761_v55  ;;  %v9782_v37 = vand.u32 4294901760, %v9781_v31  ;;  %v9796_v40 = vand.u32 4294901760, %v9795_v19  ;;  %v9810_v31 = vand.u32 4294901760, %v9809_v2 }
 0x930   :  { %16718 = vmatpush3.msra.mxu0 %v22526_v1  ;;  %16808 = vmatpush3.msra.mxu1 %v9761_v55  ;;  %v22876_v1 = vand.u32 4294901760, %v22847_v39  ;;  %v22925_v55 = vsub.f32 %v12180_v34, %v22899_v44 }
 0x931   :  { %16835 = vmatprep.mubr.f32.mxu1 %v22791_v32  ;;  %16719 = vmatprep.subr.mxu0 %v22533_v4 }
 0x932   :  { %16809 = vmatprep.subr.mxu1 %v9768_v25  ;;  %16720 = vmatpush3.msra.mxu0 %v22533_v4  ;;  %v12179_v4 = vld [vmem:[%s24067_s1 + $0x408] sm:$0xff]  ;;  %v9802_v21 = vsub.f32 %v22847_v39, %v22876_v1 }
 0x933   :  { %16810 = vmatpush3.msra.mxu1 %v9768_v25  ;;  %16722 = vmatmul.mubr.f32.vlgmr.msra.gmra.mxu0 %v22544_v54  ;;  %v22897_v54 = vsub.f32 %v12182_v63, %v22865_v5  ;;  %v22934_v63 = vand.u32 4294901760, %v22913_v50 }
 0x934   :  { %16765 = vmatprep.subr.mxu0 %v22689_v6  ;;  %16811 = vmatprep.subr.mxu1 %v9775_v33  ;;  %v9803_v46 = vand.u32 4294901760, %v9802_v21 }
 0x935   :  { %16724 = vmatprep.mubr.f32.mxu0 %v22548_v30  ;;  %16766 = vmatpush3.msra.mxu0 %v22689_v6  ;;  %v22915_v30 = vand.u32 4294901760, %v12179_v4  ;;  %v22922_v49 = vand.u32 4294901760, %v22897_v54 }
 0x936   :  { %16812 = vmatpush3.msra.mxu1 %v9775_v33  ;;  %16767 = vmatprep.subr.mxu0 %v22703_v51  ;;  %v22944_v33 = vand.u32 4294901760, %v22925_v55 }
 0x937   :  { %16813 = vmatprep.subr.mxu1 %v9782_v37  ;;  %16768 = vmatpush3.msra.mxu0 %v22703_v51  ;;  %v22937_v25 = vsub.f32 %v12179_v4, %v22915_v30  ;;  %v9823_v60 = vsub.f32 %v22897_v54, %v22922_v49 }
 0x938   :  { %16814 = vmatpush3.msra.mxu1 %v9782_v37  ;;  %16725 = vmatmul.mubr.f32.gmra.mxu0 %v22556_v26  ;;  %v9816_v26 = vsub.f32 %v22879_v18, %v22910_v14  ;;  %v9830_v37 = vsub.f32 %v22913_v50, %v22934_v63  ;;  %v9837_v4 = vsub.f32 %v22925_v55, %v22944_v33 }
 0x939   :  { %16769 = vmatprep.subr.mxu0 %v22712_v28  ;;  %16815 = vmatprep.subr.mxu1 %v9789_v3  ;;  %v22954_v61 = vand.u32 4294901760, %v22937_v25  ;;  %v9824_v19 = vand.u32 4294901760, %v9823_v60 }
 0x93a   :  { %16770 = vmatpush3.msra.mxu0 %v22712_v28  ;;  %16797 = vmatprep.mubr.f32.mxu0 %v9706_v12  ;;  %v9817_v34 = vand.u32 4294901760, %v9816_v26  ;;  %v9831_v24 = vand.u32 4294901760, %v9830_v37  ;;  %v9601_v12 = vld [vmem:[#allocation2 + $0x16] sm:$0xff] }
 0x93b   :  { %16816 = vmatpush3.msra.mxu1 %v9789_v3  ;;  %16771 = vmatprep.subr.mxu0 %v22732_v22  ;;  %v22961_v3 = vand.u32 4294901760, %v22947_v15  ;;  %v9844_v21 = vsub.f32 %v22937_v25, %v22954_v61  ;;  %v22972_v26 = vand.u32 4294901760, %v9601_v12 }
 0x93c   :  { %16817 = vmatprep.subr.mxu1 %v9796_v40  ;;  %16772 = vmatpush3.msra.mxu0 %v22732_v22 }
 0x93d   :  { %16818 = vmatpush3.msra.mxu1 %v9796_v40  ;;  %16773 = vmatprep.subr.mxu0 %v22741_v57  ;;  %v9838_v40 = vand.u32 4294901760, %v9837_v4  ;;  %v9851_v2 = vsub.f32 %v22947_v15, %v22961_v3 }
 0x93e   :  { %16819 = vmatprep.subr.mxu1 %v9803_v46  ;;  %16774 = vmatpush3.msra.mxu0 %v22741_v57 }
 0x93f   :  { %16820 = vmatpush3.msra.mxu1 %v9803_v46  ;;  %16775 = vmatprep.subr.mxu0 %v22766_v38  ;;  %v9602_v46 = vld [vmem:[#allocation2 + $0x2e] sm:$0xff]  ;;  %v9852_v37 = vand.u32 4294901760, %v9851_v2 }
 0x940   :  { %16821 = vmatprep.subr.mxu1 %v9810_v31  ;;  %16776 = vmatpush3.msra.mxu0 %v22766_v38  ;;  %v22976_v60 = vand.u32 4294901760, %v9602_v46 }
 0x941   :  { %16822 = vmatpush3.msra.mxu1 %v9810_v31  ;;  %16777 = vmatprep.subr.mxu0 %v22780_v10  ;;  %v9845_v31 = vand.u32 4294901760, %v9844_v21 }
 0x942   :  { %16823 = vmatprep.subr.mxu1 %v9817_v34  ;;  %16778 = vmatpush3.msra.mxu0 %v22780_v10 }
 0x943   :  { %16824 = vmatpush3.msra.mxu1 %v9817_v34  ;;  %16779 = vmatprep.subr.mxu0 %v22796_v0  ;;  %v9603_v34 = vld [vmem:[#allocation2 + $0x36] sm:$0xff] }
 0x944   :  { %16825 = vmatprep.subr.mxu1 %v9824_v19  ;;  %16780 = vmatpush3.msra.mxu0 %v22796_v0  ;;  %v22984_v4 = vand.u32 4294901760, %v9603_v34 }
 0x945   :  { %16826 = vmatpush3.msra.mxu1 %v9824_v19  ;;  %16781 = vmatprep.subr.mxu0 %v22817_v43  ;;  %v22981_v19 = vsub.f32 %v9601_v12, %v22972_v26 }
 0x946   :  { %16827 = vmatprep.subr.mxu1 %v9831_v24  ;;  %16782 = vmatpush3.msra.mxu0 %v22817_v43  ;;  %v22996_v12 = vsub.f32 %v9603_v34, %v22984_v4 }
 0x947   :  { %16828 = vmatpush3.msra.mxu1 %v9831_v24  ;;  %16783 = vmatprep.subr.mxu0 %v22836_v52  ;;  %v22988_v24 = vsub.f32 %v9602_v46, %v22976_v60  ;;  %v9714_v21 = vand.u32 4294901760, %v22981_v19 }
 0x948   :  { %16829 = vmatprep.subr.mxu1 %v9838_v40  ;;  %16784 = vmatpush3.msra.mxu0 %v22836_v52  ;;  %v9734_v46 = vand.u32 4294901760, %v22996_v12 }
 0x949   :  { %16830 = vmatpush3.msra.mxu1 %v9838_v40  ;;  %16785 = vmatprep.subr.mxu0 %v22849_v53  ;;  %v24450_v40 = vand.u32 4294901760, %v22988_v24  ;;  %v9715_v2 = vsub.f32 %v22981_v19, %v9714_v21 }
 0x94a   :  { %16831 = vmatprep.subr.mxu1 %v9845_v31  ;;  %16786 = vmatpush3.msra.mxu0 %v22849_v53 }
 0x94b   :  { %16832 = vmatpush3.msra.mxu1 %v9845_v31  ;;  %16787 = vmatprep.subr.mxu0 %v22865_v5  ;;  %v9725_v31 = vsub.f32 %v22988_v24, %v24450_v40  ;;  %v9716_v34 = vand.u32 4294901760, %v9715_v2 }
 0x94c   :  { %16833 = vmatprep.subr.mxu1 %v9852_v37  ;;  %16788 = vmatpush3.msra.mxu0 %v22865_v5 }
 0x94d   :  { %16834 = vmatpush3.msra.mxu1 %v9852_v37  ;;  %16789 = vmatprep.subr.mxu0 %v22881_v45  ;;  %v9735_v37 = vsub.f32 %v22996_v12, %v9734_v46  ;;  %v9726_v40 = vand.u32 4294901760, %v9725_v31 }
 0x94e   :  { %16836 = vmatmul.mubr.f32.vlgmr.msra.gmra.mxu1 %v22972_v26  ;;  %16879 = vmatprep.subr.mxu1 %v22689_v6 }
 0x94f   :  { %16790 = vmatpush3.msra.mxu0 %v22881_v45  ;;  %16838 = vmatprep.mubr.f32.mxu1 %v22976_v60 }
 0x950   :  { %16880 = vmatpush3.msra.mxu1 %v22689_v6  ;;  %16791 = vmatprep.subr.mxu0 %v22899_v44 }
 0x951   :  { %16881 = vmatprep.subr.mxu1 %v22703_v51  ;;  %16792 = vmatpush3.msra.mxu0 %v22899_v44 }
 0x952   :  { %16882 = vmatpush3.msra.mxu1 %v22703_v51  ;;  %16793 = vmatprep.subr.mxu0 %v22915_v30 }
 0x953   :  { %16839 = vmatmul.mubr.f32.gmra.mxu1 %v22984_v4  ;;  %16883 = vmatprep.subr.mxu1 %v22712_v28 }
 0x954   :  { %16794 = vmatpush3.msra.mxu0 %v22915_v30  ;;  %16884 = vmatpush3.msra.mxu1 %v22712_v28 }
 0x955   :  { %16911 = vmatprep.mubr.f32.mxu1 %v9704_v17  ;;  %16795 = vmatprep.subr.mxu0 %v22927_v48  ;;  %v9736_v17 = vand.u32 4294901760, %v9735_v37 }
 0x956   :  { %16885 = vmatprep.subr.mxu1 %v22732_v22  ;;  %16796 = vmatpush3.msra.mxu0 %v22927_v48 }
 0x957   :  { %16886 = vmatpush3.msra.mxu1 %v22732_v22  ;;  %16798 = vmatmul.mubr.f32.vlgmr.msra.gmra.mxu0 %v9716_v34 }
 0x958   :  { %16841 = vmatprep.subr.mxu0 %v22708_v36  ;;  %16887 = vmatprep.subr.mxu1 %v22741_v57 }
 0x959   :  { %16800 = vmatprep.mubr.f32.mxu0 %v9726_v40  ;;  %16842 = vmatpush3.msra.mxu0 %v22708_v36  ;;  %v25009_v36 = vand.u32 4294901760, %v22988_v24  ;;  %v12199_v40 = vld [vmem:[%s24069_s3 + $0x220] sm:$0xff] }
 0x95a   :  { %16888 = vmatpush3.msra.mxu1 %v22741_v57  ;;  %16843 = vmatprep.subr.mxu0 %v22722_v41 }
 0x95b   :  { %16889 = vmatprep.subr.mxu1 %v22766_v38  ;;  %16844 = vmatpush3.msra.mxu0 %v22722_v41  ;;  %v12208_v41 = vld [vmem:[%s24069_s3 + $0x268] sm:$0xff] }
 0x95c   :  { %16890 = vmatpush3.msra.mxu1 %v22766_v38  ;;  %16801 = vmatmul.mubr.f32.gmra.mxu0 %v9736_v17  ;;  %v12198_v17 = vld [vmem:[%s24069_s3 + $0x218] sm:$0xff] }
 0x95d   :  { %16845 = vmatprep.subr.mxu0 %v22737_v9  ;;  %16891 = vmatprep.subr.mxu1 %v22780_v10 }
 0x95e   :  { %16846 = vmatpush3.msra.mxu0 %v22737_v9  ;;  %16873 = vmatprep.mubr.f32.mxu0 %v22825_v27  ;;  %v23181_v9 = vand.u32 4294901760, %v12208_v41 }
 0x95f   :  { %16892 = vmatpush3.msra.mxu1 %v22780_v10  ;;  %16847 = vmatprep.subr.mxu0 %v22756_v11 }
 0x960   :  { %16893 = vmatprep.subr.mxu1 %v22796_v0  ;;  %16848 = vmatpush3.msra.mxu0 %v22756_v11  ;;  %25012 = vst [vmem:[#allocation48_spill] sm:$0xff] %v23181_v9 }
 0x961   :  { %16894 = vmatpush3.msra.mxu1 %v22796_v0  ;;  %16849 = vmatprep.subr.mxu0 %v22771_v35 }
 0x962   :  { %16895 = vmatprep.subr.mxu1 %v22817_v43  ;;  %16850 = vmatpush3.msra.mxu0 %v22771_v35  ;;  %v23198_v35 = vsub.f32 %v12208_v41, %v23181_v9 }
 0x963   :  { %16896 = vmatpush3.msra.mxu1 %v22817_v43  ;;  %16851 = vmatprep.subr.mxu0 %v22794_v16 }
 0x964   :  { %16897 = vmatprep.subr.mxu1 %v22836_v52  ;;  %16852 = vmatpush3.msra.mxu0 %v22794_v16  ;;  %25017 = vst [vmem:[#allocation3_spill] sm:$0xff] %v23198_v35 }
 0x965   :  { %16898 = vmatpush3.msra.mxu1 %v22836_v52  ;;  %16853 = vmatprep.subr.mxu0 %v22809_v47 }
 0x966   :  { %16899 = vmatprep.subr.mxu1 %v22849_v53  ;;  %16854 = vmatpush3.msra.mxu0 %v22809_v47 }
 0x967   :  { %16900 = vmatpush3.msra.mxu1 %v22849_v53  ;;  %16855 = vmatprep.subr.mxu0 %v22828_v29 }
 0x968   :  { %16901 = vmatprep.subr.mxu1 %v22865_v5  ;;  %16856 = vmatpush3.msra.mxu0 %v22828_v29 }
 0x969   :  { %16902 = vmatpush3.msra.mxu1 %v22865_v5  ;;  %16857 = vmatprep.subr.mxu0 %v22847_v39 }
 0x96a   :  { %16903 = vmatprep.subr.mxu1 %v22881_v45  ;;  %16858 = vmatpush3.msra.mxu0 %v22847_v39  ;;  %v12205_v39 = vld [vmem:[%s24069_s3 + $0x250] sm:$0xff] }
 0x96b   :  { %16904 = vmatpush3.msra.mxu1 %v22881_v45  ;;  %16859 = vmatprep.subr.mxu0 %v22863_v7 }
 0x96c   :  { %16905 = vmatprep.subr.mxu1 %v22899_v44  ;;  %16860 = vmatpush3.msra.mxu0 %v22863_v7  ;;  %v23241_v7 = vand.u32 4294901760, %v12205_v39 }
 0x96d   :  { %16906 = vmatpush3.msra.mxu1 %v22899_v44  ;;  %16861 = vmatprep.subr.mxu0 %v22879_v18 }
 0x96e   :  { %16907 = vmatprep.subr.mxu1 %v22915_v30  ;;  %16862 = vmatpush3.msra.mxu0 %v22879_v18  ;;  %25025 = vst [vmem:[#allocation13_spill] sm:$0xff] %v23241_v7  ;;  %v23249_v18 = vsub.f32 %v12205_v39, %v23241_v7 }
 0x96f   :  { %16908 = vmatpush3.msra.mxu1 %v22915_v30  ;;  %16863 = vmatprep.subr.mxu0 %v22897_v54 }
 0x970   :  { %16909 = vmatprep.subr.mxu1 %v22927_v48  ;;  %16864 = vmatpush3.msra.mxu0 %v22897_v54  ;;  %25026 = vst [vmem:[#allocation21_spill] sm:$0xff] %v23249_v18 }
 0x971   :  { %16910 = vmatpush3.msra.mxu1 %v22927_v48  ;;  %16865 = vmatprep.subr.mxu0 %v22913_v50 }
 0x972   :  { %16912 = vmatmul.mubr.f32.vlgmr.msra.gmra.mxu1 %v9714_v21  ;;  %16955 = vmatprep.subr.mxu1 %v22689_v6 }
 0x973   :  { %16866 = vmatpush3.msra.mxu0 %v22913_v50  ;;  %16914 = vmatprep.mubr.f32.mxu1 %v25009_v36 }
 0x974   :  { %16956 = vmatpush3.msra.mxu1 %v22689_v6  ;;  %16867 = vmatprep.subr.mxu0 %v22925_v55  ;;  %v12210_v6 = vld [vmem:[%s24069_s3 + $0x278] sm:$0xff] }
 0x975   :  { %16957 = vmatprep.subr.mxu1 %v22703_v51  ;;  %16868 = vmatpush3.msra.mxu0 %v22925_v55 }
 0x976   :  { %16958 = vmatpush3.msra.mxu1 %v22703_v51  ;;  %16869 = vmatprep.subr.mxu0 %v22937_v25  ;;  %v23168_v51 = vand.u32 4294901760, %v12210_v6 }
 0x977   :  { %16915 = vmatmul.mubr.f32.gmra.mxu1 %v9734_v46  ;;  %16959 = vmatprep.subr.mxu1 %v22712_v28  ;;  %v23315_v46 = vand.u32 4294901760, %v12199_v40 }
 0x978   :  { %16870 = vmatpush3.msra.mxu0 %v22937_v25  ;;  %16960 = vmatpush3.msra.mxu1 %v22712_v28  ;;  %25010 = vst [vmem:[#allocation42_spill] sm:$0xff] %v23168_v51  ;;  %v12209_v28 = vld [vmem:[%s24069_s3 + $0x270] sm:$0xff]  ;;  %v23189_v11 = vsub.f32 %v12210_v6, %v23168_v51  ;;  %v23333_v6 = vand.u32 4294901760, %v12198_v17 }
 0x979   :  { %16987 = vmatprep.mubr.f32.mxu1 %v22791_v32  ;;  %16871 = vmatprep.subr.mxu0 %v22947_v15  ;;  %v12201_v25 = vld [vmem:[%s24069_s3 + $0x230] sm:$0xff]  ;;  %25040 = vst [vmem:[#allocation12_spill] sm:$0xff] %v23315_v46  ;;  %v23331_v36 = vsub.f32 %v12199_v40, %v23315_v46 }
 0x97a   :  { %16961 = vmatprep.subr.mxu1 %v22732_v22  ;;  %16872 = vmatpush3.msra.mxu0 %v22947_v15  ;;  %25014 = vst [vmem:[#allocation51_spill] sm:$0xff] %v23189_v11  ;;  %25044 = vst [vmem:[#allocation24_spill] sm:$0xff] %v23333_v6 }
 0x97b   :  { %16962 = vmatpush3.msra.mxu1 %v22732_v22  ;;  %16874 = vmatmul.mubr.f32.vlgmr.msra.gmra.mxu0 %v22981_v19  ;;  %v23179_v22 = vand.u32 4294901760, %v12209_v28  ;;  %25043 = vst [vmem:[#allocation20_spill] sm:$0xff] %v23331_v36 }
 0x97c   :  { %16917 = vmatprep.subr.mxu0 %v22730_v42  ;;  %16963 = vmatprep.subr.mxu1 %v22741_v57 }
 0x97d   :  { %16876 = vmatprep.mubr.f32.mxu0 %v22988_v24  ;;  %16918 = vmatpush3.msra.mxu0 %v22730_v42  ;;  %v12207_v42 = vld [vmem:[%s24069_s3 + $0x260] sm:$0xff]  ;;  %25011 = vst [vmem:[#allocation45_spill] sm:$0xff] %v23179_v22 }
 0x97e   :  { %16964 = vmatpush3.msra.mxu1 %v22741_v57  ;;  %16919 = vmatprep.subr.mxu0 %v22749_v20  ;;  %v23183_v57 = vand.u32 4294901760, %v12207_v42 }
 0x97f   :  { %16965 = vmatprep.subr.mxu1 %v22766_v38  ;;  %16920 = vmatpush3.msra.mxu0 %v22749_v20  ;;  %v12206_v20 = vld [vmem:[%s24069_s3 + $0x258] sm:$0xff] }
 0x980   :  { %16966 = vmatpush3.msra.mxu1 %v22766_v38  ;;  %16877 = vmatmul.mubr.f32.gmra.mxu0 %v22996_v12  ;;  %25013 = vst [vmem:[#allocation4_spill] sm:$0xff] %v23183_v57  ;;  %v23195_v38 = vsub.f32 %v12209_v28, %v23179_v22 }
 0x981   :  { %16921 = vmatprep.subr.mxu0 %v22764_v56  ;;  %16967 = vmatprep.subr.mxu1 %v22780_v10 }
 0x982   :  { %16922 = vmatpush3.msra.mxu0 %v22764_v56  ;;  %16949 = vmatprep.mubr.f32.mxu0 %v22791_v32  ;;  %v23192_v56 = vand.u32 4294901760, %v12206_v20  ;;  %25016 = vst [vmem:[#allocation60_spill] sm:$0xff] %v23195_v38  ;;  %v23212_v16 = vand.u32 4294901760, %v23195_v38 }
 0x983   :  { %16968 = vmatpush3.msra.mxu1 %v22780_v10  ;;  %16923 = vmatprep.subr.mxu0 %v22785_v13  ;;  %v23201_v10 = vsub.f32 %v12207_v42, %v23183_v57 }
 0x984   :  { %16969 = vmatprep.subr.mxu1 %v22796_v0  ;;  %16924 = vmatpush3.msra.mxu0 %v22785_v13  ;;  %25015 = vst [vmem:[#allocation58_spill] sm:$0xff] %v23192_v56  ;;  %v23205_v13 = vand.u32 4294901760, %v23189_v11  ;;  %v23208_v32 = vsub.f32 %v12206_v20, %v23192_v56  ;;  %25021 = vst [vmem:[#allocation29_spill] sm:$0xff] %v23212_v16  ;;  %v12197_v20 = vld [vmem:[%s24069_s3 + $0x210] sm:$0xff] }
 0x985   :  { %16970 = vmatpush3.msra.mxu1 %v22796_v0  ;;  %16925 = vmatprep.subr.mxu0 %v22804_v59  ;;  %25018 = vst [vmem:[#allocation35_spill] sm:$0xff] %v23201_v10  ;;  %v23215_v0 = vand.u32 4294901760, %v23198_v35 }
 0x986   :  { %16971 = vmatprep.subr.mxu1 %v22817_v43  ;;  %16926 = vmatpush3.msra.mxu0 %v22804_v59  ;;  %25019 = vst [vmem:[#allocation36_spill] sm:$0xff] %v23205_v13  ;;  %25020 = vst [vmem:[#allocation15_spill] sm:$0xff] %v23208_v32  ;;  %v23218_v59 = vand.u32 4294901760, %v23201_v10  ;;  %v10555_v47 = vsub.f32 %v23189_v11, %v23205_v13 }
 0x987   :  { %16972 = vmatpush3.msra.mxu1 %v22817_v43  ;;  %16927 = vmatprep.subr.mxu0 %v22822_v23  ;;  %25022 = vst [vmem:[#allocation25_spill] sm:$0xff] %v23215_v0  ;;  %v23224_v43 = vand.u32 4294901760, %v23208_v32  ;;  %v10569_v27 = vsub.f32 %v23198_v35, %v23215_v0 }
 0x988   :  { %16973 = vmatprep.subr.mxu1 %v22836_v52  ;;  %16928 = vmatpush3.msra.mxu0 %v22822_v23  ;;  %25023 = vst [vmem:[#allocation28_spill] sm:$0xff] %v23218_v59  ;;  %v10562_v23 = vsub.f32 %v23195_v38, %v23212_v16  ;;  %v10556_v29 = vand.u32 4294901760, %v10555_v47  ;;  %v23346_v47 = vand.u32 4294901760, %v23331_v36 }
 0x989   :  { %16974 = vmatpush3.msra.mxu1 %v22836_v52  ;;  %16929 = vmatprep.subr.mxu0 %v22840_v58  ;;  %25024 = vst [vmem:[#allocation11_spill] sm:$0xff] %v23224_v43  ;;  %v10576_v52 = vsub.f32 %v23201_v10, %v23218_v59 }
 0x98a   :  { %16975 = vmatprep.subr.mxu1 %v22849_v53  ;;  %16930 = vmatpush3.msra.mxu0 %v22840_v58  ;;  %v10563_v58 = vand.u32 4294901760, %v10562_v23  ;;  %25046 = vst [vmem:[#allocation30_spill] sm:$0xff] %v23346_v47  ;;  %v23349_v23 = vsub.f32 %v12198_v17, %v23333_v6  ;;  %v10632_v39 = vsub.f32 %v23331_v36, %v23346_v47 }
 0x98b   :  { %16976 = vmatpush3.msra.mxu1 %v22849_v53  ;;  %16931 = vmatprep.subr.mxu0 %v22856_v8  ;;  %v10570_v53 = vand.u32 4294901760, %v10569_v27  ;;  %v23351_v27 = vand.u32 4294901760, %v12197_v20 }
 0x98c   :  { %16977 = vmatprep.subr.mxu1 %v22865_v5  ;;  %16932 = vmatpush3.msra.mxu0 %v22856_v8  ;;  %v10583_v8 = vsub.f32 %v23208_v32, %v23224_v43  ;;  %25047 = vst [vmem:[#allocation47_spill] sm:$0xff] %v23349_v23 }
 0x98d   :  { %16978 = vmatpush3.msra.mxu1 %v22865_v5  ;;  %16933 = vmatprep.subr.mxu0 %v22876_v1  ;;  %v12204_v5 = vld [vmem:[%s24069_s3 + $0x248] sm:$0xff]  ;;  %25048 = vst [vmem:[#allocation22_spill] sm:$0xff] %v23351_v27 }
 0x98e   :  { %16979 = vmatprep.subr.mxu1 %v22881_v45  ;;  %16934 = vmatpush3.msra.mxu0 %v22876_v1  ;;  %v10577_v1 = vand.u32 4294901760, %v10576_v52  ;;  %v10584_v54 = vand.u32 4294901760, %v10583_v8  ;;  %v23366_v8 = vsub.f32 %v12197_v20, %v23351_v27 }
 0x98f   :  { %16980 = vmatpush3.msra.mxu1 %v22881_v45  ;;  %16935 = vmatprep.subr.mxu0 %v22894_v62  ;;  %v23251_v45 = vand.u32 4294901760, %v12204_v5 }
 0x990   :  { %16981 = vmatprep.subr.mxu1 %v22899_v44  ;;  %16936 = vmatpush3.msra.mxu0 %v22894_v62  ;;  %v12203_v62 = vld [vmem:[%s24069_s3 + $0x240] sm:$0xff]  ;;  %25050 = vst [vmem:[#allocation56_spill] sm:$0xff] %v23366_v8 }
 0x991   :  { %16982 = vmatpush3.msra.mxu1 %v22899_v44  ;;  %16937 = vmatprep.subr.mxu0 %v22910_v14  ;;  %25027 = vst [vmem:[#allocation14_spill] sm:$0xff] %v23251_v45  ;;  %v23259_v44 = vand.u32 4294901760, %v23249_v18  ;;  %v23264_v50 = vand.u32 4294901760, %v12203_v62 }
 0x992   :  { %16983 = vmatprep.subr.mxu1 %v22915_v30  ;;  %16938 = vmatpush3.msra.mxu0 %v22910_v14  ;;  %v23262_v14 = vsub.f32 %v12204_v5, %v23251_v45 }
 0x993   :  { %16984 = vmatpush3.msra.mxu1 %v22915_v30  ;;  %16939 = vmatprep.subr.mxu0 %v22922_v49  ;;  %25028 = vst [vmem:[#allocation19_spill] sm:$0xff] %v23259_v44  ;;  %25030 = vst [vmem:[#allocation9_spill] sm:$0xff] %v23264_v50  ;;  %v12202_v30 = vld [vmem:[%s24069_s3 + $0x238] sm:$0xff] }
 0x994   :  { %16985 = vmatprep.subr.mxu1 %v22927_v48  ;;  %16940 = vmatpush3.msra.mxu0 %v22922_v49  ;;  %25029 = vst [vmem:[#allocation50_spill] sm:$0xff] %v23262_v14  ;;  %v10590_v49 = vsub.f32 %v23249_v18, %v23259_v44  ;;  %v23274_v55 = vand.u32 4294901760, %v23262_v14 }
 0x995   :  { %16986 = vmatpush3.msra.mxu1 %v22927_v48  ;;  %16941 = vmatprep.subr.mxu0 %v22934_v63  ;;  %v23277_v48 = vsub.f32 %v12203_v62, %v23264_v50  ;;  %v12195_v62 = vld [vmem:[%s24069_s3 + $0x200] sm:$0xff] }
 0x996   :  { %16988 = vmatmul.mubr.f32.vlgmr.msra.gmra.mxu1 %v22972_v26  ;;  %16942 = vmatpush3.msra.mxu0 %v22934_v63  ;;  %25031 = vst [vmem:[#allocation49_spill] sm:$0xff] %v23274_v55  ;;  %v23279_v63 = vand.u32 4294901760, %v12202_v30  ;;  %v10597_v15 = vsub.f32 %v23262_v14, %v23274_v55 }
 0x997   :  { %16990 = vmatprep.mubr.f32.mxu1 %v22976_v60  ;;  %16943 = vmatprep.subr.mxu0 %v22944_v33  ;;  %25032 = vst [vmem:[#allocation43_spill] sm:$0xff] %v23277_v48 }
 0x998   :  { %16944 = vmatpush3.msra.mxu0 %v22944_v33  ;;  %17031 = vmatprep.subr.mxu1 %v10556_v29  ;;  %25033 = vst [vmem:[#allocation37_spill] sm:$0xff] %v23279_v63  ;;  %v10591_v33 = vand.u32 4294901760, %v10590_v49  ;;  %v10598_v19 = vand.u32 4294901760, %v10597_v15  ;;  %v23378_v49 = vand.u32 4294901760, %v23366_v8 }
 0x999   :  { %16945 = vmatprep.subr.mxu0 %v22954_v61  ;;  %17032 = vmatpush3.msra.mxu1 %v10556_v29 }
 0x99a   :  { %16991 = vmatmul.mubr.f32.gmra.mxu1 %v22984_v4  ;;  %16946 = vmatpush3.msra.mxu0 %v22954_v61  ;;  %v23289_v61 = vand.u32 4294901760, %v23277_v48  ;;  %25052 = vst [vmem:[#allocation61_spill] sm:$0xff] %v23378_v49 }
 0x99b   :  { %16947 = vmatprep.subr.mxu0 %v22961_v3  ;;  %17033 = vmatprep.subr.mxu1 %v10563_v58 }
 0x99c   :  { %16948 = vmatpush3.msra.mxu0 %v22961_v3  ;;  %17034 = vmatpush3.msra.mxu1 %v10563_v58  ;;  %25034 = vst [vmem:[#allocation31_spill] sm:$0xff] %v23289_v61  ;;  %v23293_v3 = vsub.f32 %v12202_v30, %v23279_v63  ;;  %v12196_v58 = vld [vmem:[%s24069_s3 + $0x208] sm:$0xff] }
 0x99d   :  { %16950 = vmatmul.mubr.f32.vlgmr.msra.gmra.mxu0 %v22972_v26  ;;  %16993 = vmatprep.subr.mxu0 %v23168_v51  ;;  %v23295_v26 = vand.u32 4294901760, %v12201_v25  ;;  %v23368_v5 = vand.u32 4294901760, %v12196_v58 }
 0x99e   :  { %16952 = vmatprep.mubr.f32.mxu0 %v22976_v60  ;;  %16994 = vmatpush3.msra.mxu0 %v23168_v51  ;;  %25035 = vst [vmem:[#allocation41_spill] sm:$0xff] %v23293_v3  ;;  %v12200_v60 = vld [vmem:[%s24069_s3 + $0x228] sm:$0xff]  ;;  %v23304_v24 = vand.u32 4294901760, %v23293_v3 }
 0x99f   :  { %16995 = vmatprep.subr.mxu0 %v23179_v22  ;;  %17035 = vmatprep.subr.mxu1 %v10570_v53  ;;  %25036 = vst [vmem:[#allocation46_spill] sm:$0xff] %v23295_v26  ;;  %v23307_v21 = vsub.f32 %v12201_v25, %v23295_v26  ;;  %v23309_v12 = vand.u32 4294901760, %v12200_v60  ;;  %25051 = vst [vmem:[#allocation53_spill] sm:$0xff] %v23368_v5  ;;  %v23381_v25 = vsub.f32 %v12196_v58, %v23368_v5 }
 0x9a0   :  { %16996 = vmatpush3.msra.mxu0 %v23179_v22  ;;  %17036 = vmatpush3.msra.mxu1 %v10570_v53  ;;  %25037 = vst [vmem:[#allocation44_spill] sm:$0xff] %v23304_v24  ;;  %v10611_v31 = vsub.f32 %v23293_v3, %v23304_v24  ;;  %v23363_v53 = vand.u32 4294901760, %v23349_v23 }
 0x9a1   :  { %16953 = vmatmul.mubr.f32.gmra.mxu0 %v22984_v4  ;;  %16997 = vmatprep.subr.mxu0 %v23181_v9  ;;  %v10604_v4 = vsub.f32 %v23277_v48, %v23289_v61  ;;  %25038 = vst [vmem:[#allocation40_spill] sm:$0xff] %v23307_v21  ;;  %25039 = vst [vmem:[#allocation6_spill] sm:$0xff] %v23309_v12  ;;  %v23321_v34 = vand.u32 4294901760, %v23307_v21  ;;  %v23324_v37 = vsub.f32 %v12200_v60, %v23309_v12 }
 0x9a2   :  { %16998 = vmatpush3.msra.mxu0 %v23181_v9  ;;  %17037 = vmatprep.subr.mxu1 %v10577_v1  ;;  %v10612_v28 = vand.u32 4294901760, %v10611_v31  ;;  %25049 = vst [vmem:[#allocation34_spill] sm:$0xff] %v23363_v53  ;;  %v10639_v30 = vsub.f32 %v23349_v23, %v23363_v53  ;;  %25053 = vst [vmem:[#allocation55_spill] sm:$0xff] %v23381_v25  ;;  %v10646_v60 = vsub.f32 %v23366_v8, %v23378_v49 }
 0x9a3   :  { %16999 = vmatprep.subr.mxu0 %v23183_v57  ;;  %17038 = vmatpush3.msra.mxu1 %v10577_v1  ;;  %v10605_v2 = vand.u32 4294901760, %v10604_v4  ;;  %25041 = vst [vmem:[#allocation17_spill] sm:$0xff] %v23321_v34  ;;  %25042 = vst [vmem:[#allocation18_spill] sm:$0xff] %v23324_v37  ;;  %v10618_v41 = vsub.f32 %v23307_v21, %v23321_v34  ;;  %v23339_v42 = vand.u32 4294901760, %v23324_v37 }
 0x9a4   :  { %17000 = vmatpush3.msra.mxu0 %v23183_v57  ;;  %17039 = vmatprep.subr.mxu1 %v10584_v54  ;;  %v10640_v15 = vand.u32 4294901760, %v10639_v30  ;;  %v10647_v40 = vand.u32 4294901760, %v10646_v60 }
 0x9a5   :  { %17001 = vmatprep.subr.mxu0 %v23192_v56  ;;  %17040 = vmatpush3.msra.mxu1 %v10584_v54  ;;  %25045 = vst [vmem:[#allocation27_spill] sm:$0xff] %v23339_v42  ;;  %v10619_v29 = vand.u32 4294901760, %v10618_v41  ;;  %v10625_v52 = vsub.f32 %v23324_v37, %v23339_v42  ;;  %v10633_v54 = vand.u32 4294901760, %v10632_v39  ;;  %v16381_v41 = vpop.f32.mrf.mxu1 }
 0x9a6   :  { %17002 = vmatpush3.msra.mxu0 %v23192_v56  ;;  %17041 = vmatprep.subr.mxu1 %v10591_v33 }
 0x9a7   :  { %17003 = vmatprep.subr.mxu0 %v23241_v7  ;;  %17042 = vmatpush3.msra.mxu1 %v10591_v33  ;;  %v10626_v1 = vand.u32 4294901760, %v10625_v52  ;;  %v23384_v33 = vand.u32 4294901760, %v12195_v62  ;;  %v16343_v52 = vpop.f32.mrf.mxu0 }
 0x9a8   :  { %17004 = vmatpush3.msra.mxu0 %v23241_v7  ;;  %17043 = vmatprep.subr.mxu1 %v10598_v19  ;;  %v8335_v32 = vadd.f32 %v16381_v41, %v16343_v52 }
 0x9a9   :  { %17005 = vmatprep.subr.mxu0 %v23251_v45  ;;  %17044 = vmatpush3.msra.mxu1 %v10598_v19  ;;  %25054 = vst [vmem:[#allocation62_spill] sm:$0xff] %v23384_v33  ;;  %v23390_v19 = vand.u32 4294901760, %v23381_v25  ;;  %v23394_v4 = vsub.f32 %v12195_v62, %v23384_v33  ;;  %v8147_v39 = vpop.f32.mrf.mxu0 }
 0x9aa   :  { %17006 = vmatpush3.msra.mxu0 %v23251_v45  ;;  %17045 = vmatprep.subr.mxu1 %v10605_v2 }
 0x9ab   :  { %17007 = vmatprep.subr.mxu0 %v23264_v50  ;;  %17046 = vmatpush3.msra.mxu1 %v10605_v2  ;;  %25055 = vst [vmem:[#allocation57_spill] sm:$0xff] %v23390_v19  ;;  %25056 = vst [vmem:[#allocation7_spill] sm:$0xff] %v23394_v4  ;;  %v10653_v2 = vsub.f32 %v23381_v25, %v23390_v19  ;;  %v23401_v31 = vand.u32 4294901760, %v23394_v4  ;;  %v16346_v62 = vpop.f32.mrf.mxu0 }
 0x9ac   :  { %17008 = vmatpush3.msra.mxu0 %v23264_v50  ;;  %17047 = vmatprep.subr.mxu1 %v10612_v28 }
 0x9ad   :  { %17009 = vmatprep.subr.mxu0 %v23279_v63  ;;  %17048 = vmatpush3.msra.mxu1 %v10612_v28  ;;  %25057 = vst [vmem:[#allocation59_spill] sm:$0xff] %v23401_v31  ;;  %v10654_v17 = vand.u32 4294901760, %v10653_v2  ;;  %v10660_v28 = vsub.f32 %v23394_v4, %v23401_v31  ;;  %v8167_v30 = vpop.f32.mrf.mxu0 }
 0x9ae   :  { %17010 = vmatpush3.msra.mxu0 %v23279_v63  ;;  %17049 = vmatprep.subr.mxu1 %v10619_v29 }
 0x9af   :  { %17011 = vmatprep.subr.mxu0 %v23295_v26  ;;  %17050 = vmatpush3.msra.mxu1 %v10619_v29  ;;  %v10661_v20 = vand.u32 4294901760, %v10660_v28  ;;  %v8328_v29 = vpop.f32.mrf.mxu1  ;;  %v16419_v60 = vpop.f32.mrf.mxu0 }
 0x9b0   :  { %17012 = vmatpush3.msra.mxu0 %v23295_v26  ;;  %17051 = vmatprep.subr.mxu1 %v10626_v1  ;;  %v8329_v50 = vadd.f32 %v8328_v29, %v8147_v39  ;;  %v8458_v10 = vadd.f32 %v16419_v60, %v8335_v32 }
 0x9b1   :  { %17013 = vmatprep.subr.mxu0 %v23309_v12  ;;  %17052 = vmatpush3.msra.mxu1 %v10626_v1  ;;  %v16384_v58 = vpop.f32.mrf.mxu1  ;;  %v8450_v31 = vpop.f32.mrf.mxu0 }
 0x9b2   :  { %17014 = vmatpush3.msra.mxu0 %v23309_v12  ;;  %17053 = vmatprep.subr.mxu1 %v10633_v54  ;;  %v8347_v45 = vadd.f32 %v16384_v58, %v16346_v62  ;;  %v8451_v35 = vadd.f32 %v8450_v31, %v8329_v50 }
 0x9b3   :  { %17015 = vmatprep.subr.mxu0 %v23315_v46  ;;  %17054 = vmatpush3.msra.mxu1 %v10633_v54  ;;  %v8340_v1 = vpop.f32.mrf.mxu1  ;;  %v16422_v19 = vpop.f32.mrf.mxu0 }
 0x9b4   :  { %17016 = vmatpush3.msra.mxu0 %v23315_v46  ;;  %17055 = vmatprep.subr.mxu1 %v10640_v15  ;;  %v8472_v56 = vadd.f32 %v16422_v19, %v8347_v45 }
 0x9b5   :  { %17017 = vmatprep.subr.mxu0 %v23333_v6  ;;  %17056 = vmatpush3.msra.mxu1 %v10640_v15  ;;  %v16457_v54 = vpop.f32.mrf.mxu1 }
 0x9b6   :  { %17018 = vmatpush3.msra.mxu0 %v23333_v6  ;;  %17057 = vmatprep.subr.mxu1 %v10647_v40  ;;  %v8569_v57 = vadd.f32 %v16457_v54, %v8458_v10 }
 0x9b7   :  { %17019 = vmatprep.subr.mxu0 %v23351_v27  ;;  %17058 = vmatpush3.msra.mxu1 %v10647_v40  ;;  %v8560_v15 = vpop.f32.mrf.mxu1 }
 0x9b8   :  { %17020 = vmatpush3.msra.mxu0 %v23351_v27  ;;  %17059 = vmatprep.subr.mxu1 %v10654_v17  ;;  %v8561_v22 = vadd.f32 %v8560_v15, %v8451_v35 }
 0x9b9   :  { %17021 = vmatprep.subr.mxu0 %v23368_v5  ;;  %17060 = vmatpush3.msra.mxu1 %v10654_v17  ;;  %v16460_v2 = vpop.f32.mrf.mxu1  ;;  %v8464_v17 = vpop.f32.mrf.mxu0 }
 0x9ba   :  { %17022 = vmatpush3.msra.mxu0 %v23368_v5  ;;  %17061 = vmatprep.subr.mxu1 %v10661_v20 }
 0x9bb   :  { %17023 = vmatprep.subr.mxu0 %v23384_v33  ;;  %17062 = vmatpush3.msra.mxu1 %v10661_v20  ;;  %v8576_v40 = vpop.f32.mrf.mxu1  ;;  %v16495_v53 = vpop.f32.mrf.mxu0 }
 0x9bc   :  { %17024 = vmatpush3.msra.mxu0 %v23384_v33  ;;  %17107 = vmatprep.subr.mxu1 %v23168_v51 }
 0x9bd   :  { %17069 = vmatprep.subr.mxu0 %v23189_v11  ;;  %v16533_v28 = vpop.f32.mrf.mxu1  ;;  %v8703_v20 = vpop.f32.mrf.mxu0  ;;  %v8341_v11 = vadd.f32 %v8340_v1, %v8167_v30 }
 0x9bf   :  { %v8808_v49 = vpop.f32.mrf.mxu1  ;;  %v16498_v34 = vpop.f32.mrf.mxu0  ;;  %v8465_v9 = vadd.f32 %v8464_v17, %v8341_v11 }
 0x9c1   :  { %v16536_v47 = vpop.f32.mrf.mxu1  ;;  %v8715_v61 = vpop.f32.mrf.mxu0 }
 0x9c3   :  { %v8820_v42 = vpop.f32.mrf.mxu1  ;;  %v16571_v44 = vpop.f32.mrf.mxu0 }
 0x9c5   :  { %v16609_v24 = vpop.f32.mrf.mxu1  ;;  %v8917_v59 = vpop.f32.mrf.mxu0 }
 0x9c7   :  { %v9098_v55 = vpop.f32.mrf.mxu1  ;;  %v16574_v16 = vpop.f32.mrf.mxu0 }
 0x9c9   :  { %v23407_v43 = vpop.f32.mrf.mxu1  ;;  %v8937_v4 = vpop.f32.mrf.mxu0 }
 0x9cb   :  { %v23409_v0 = vpop.f32.mrf.mxu1 }
 0x9cd   :  { %v23411_v13 = vpop.f32.mrf.mxu1 }
 0x9cf   :  { %v23413_v25 = vpop.f32.mrf.mxu1  ;;  %v16647_v8 = vpop.f32.mrf.mxu0 }
 0x9d1   :  { %v23415_v23 = vpop.f32.mrf.mxu1  ;;  %v9220_v33 = vpop.f32.mrf.mxu0 }
 0x9d3   :  { %v23417_v36 = vpop.f32.mrf.mxu1 }
 0x9d4   :  { %25058 = vst [vmem:[#allocation23_spill] sm:$0xff] %v23417_v36  ;;  %v16650_v5 = vpop.f32.mrf.mxu0 }
 0x9d6   :  { %v9234_v27 = vpop.f32.mrf.mxu0 }
 0x9ea   :  { %v23419_v37 = vpop.f32.mrf.mxu1 }
 0x9eb   :  { %25059 = vst [vmem:[#allocation8_spill] sm:$0xff] %v23419_v37  ;;  %v8585_v37 = vadd.f32 %v16460_v2, %v8472_v56  ;;  %v12194_v2 = vld [vmem:[%s24070_s2 + $0x2] ss:$0 sm:$0xff] }
 0x9ec   :  { %v23421_v21 = vpop.f32.mrf.mxu1 }
 0x9ed   :  { %25060 = vst [vmem:[#allocation16_spill] sm:$0xff] %v23421_v21  ;;  %v8704_v21 = vadd.f32 %v8703_v20, %v8561_v22  ;;  %v8722_v36 = vadd.f32 %v16498_v34, %v8585_v37 }
 0x9ef   :  { %v23423_v3 = vpop.f32.mrf.mxu1  ;;  %v8809_v52 = vadd.f32 %v8808_v49, %v8704_v21  ;;  %v8827_v45 = vadd.f32 %v16536_v47, %v8722_v36 }
 0x9f0   :  { %25061 = vst [vmem:[#allocation10_spill] sm:$0xff] %v23423_v3  ;;  %v8710_v3 = vadd.f32 %v16495_v53, %v8569_v57 }
 0x9f1   :  { %v23427_v48 = vpop.f32.mrf.mxu1  ;;  %v8918_v39 = vadd.f32 %v8917_v59, %v8809_v52  ;;  %v8948_v10 = vadd.f32 %v16574_v16, %v8827_v45 }
 0x9f2   :  { %25062 = vst [vmem:[#allocation32_spill] sm:$0xff] %v23427_v48  ;;  %v8815_v29 = vadd.f32 %v16533_v28, %v8710_v3 }
 0x9f3   :  { %v16723_v6 = vpop.f32.mrf.mxu0  ;;  %v9099_v22 = vadd.f32 %v9098_v55, %v8918_v39 }
 0x9f4   :  { %v8928_v58 = vadd.f32 %v16571_v44, %v8815_v29 }
 0x9f5   :  { %v23425_v46 = vpop.f32.mrf.mxu0  ;;  %v9221_v34 = vadd.f32 %v9220_v33, %v9099_v22 }
 0x9f6   :  { %v9105_v1 = vadd.f32 %v16609_v24, %v8928_v58 }
 0x9f7   :  { %v9331_v55 = vadd.f32 %v23413_v25, %v9221_v34  ;;  %v25067_v25 = vld [vmem:[#allocation8_spill] sm:$0xff]  ;;  %v25070_v29 = vld [vmem:[#allocation10_spill] sm:$0xff] }
 0x9f8   :  { %v23429_v12 = vpop.f32.mrf.mxu0  ;;  %v9228_v56 = vadd.f32 %v16647_v8, %v9105_v1 }
 0x9f9   :  { %25063 = vst [vmem:[#allocation26_spill] sm:$0xff] %v23429_v12  ;;  %v8577_v12 = vadd.f32 %v8576_v40, %v8465_v9  ;;  %v9117_v9 = vadd.f32 %v23407_v43, %v8948_v10  ;;  %v9474_v49 = vadd.f32 %v23425_v46, %v9331_v55  ;;  %v25071_v45 = vld [vmem:[#allocation32_spill] sm:$0xff] }
 0x9fa   :  { %v23431_v26 = vpop.f32.mrf.mxu0  ;;  %v9339_v16 = vadd.f32 %v23411_v13, %v9228_v56 }
 0x9fb   :  { %25064 = vst [vmem:[#allocation33_spill] sm:$0xff] %v23431_v26  ;;  %v8716_v32 = vadd.f32 %v8715_v61, %v8577_v12  ;;  %v9242_v37 = vadd.f32 %v16650_v5, %v9117_v9 }
 0x9fd   :  { %v8821_v11 = vadd.f32 %v8820_v42, %v8716_v32 }
 0x9ff   :  { %v8938_v57 = vadd.f32 %v8937_v4, %v8821_v11 }
 0xa00   :  { %v25065_v13 = vld [vmem:[#allocation26_spill] sm:$0xff] }
 0xa01   :  { %v9111_v59 = vadd.f32 %v23409_v0, %v8938_v57 }
 0xa02   :  { %v25069_v46 = vld [vmem:[#allocation33_spill] sm:$0xff] }
 0xa03   :  { %v9235_v24 = vadd.f32 %v9234_v27, %v9111_v59 }
 0xa0e   :  { %v16837_v14 = vpop.f32.mrf.mxu1 }
 0xa10   :  { %v9889_v18 = vpop.f32.mrf.mxu1 }
 0xa13   :  { %v16840_v7 = vpop.f32.mrf.mxu1 }
 0xa15   :  { %v9901_v51 = vpop.f32.mrf.mxu1 }
 0xa17   :  { %v16799_v63 = vpop.f32.mrf.mxu0 }
 0xa18   :  { %v9896_v53 = vadd.f32 %v16837_v14, %v16799_v63  ;;  %v9480_v14 = vadd.f32 %v16723_v6, %v9339_v16  ;;  %v25072_v16 = vld [vmem:[#allocation42_spill] sm:$0xff] }
 0xa19   :  { %v9708_v38 = vpop.f32.mrf.mxu0 }
 0xa1a   :  { %v9890_v21 = vadd.f32 %v9889_v18, %v9708_v38  ;;  %v9355_v38 = vadd.f32 %v23415_v23, %v9242_v37  ;;  %v9585_v54 = vadd.f32 %v25067_v25, %v9480_v14  ;;  %v25080_v25 = vld [vmem:[#allocation3_spill] sm:$0xff] }
 0xa1c   :  { %v16802_v48 = vpop.f32.mrf.mxu0 }
 0xa1d   :  { %v9908_v36 = vadd.f32 %v16840_v7, %v16802_v48  ;;  %v9492_v7 = vadd.f32 %v25065_v13, %v9355_v38  ;;  %v25066_v48 = vld [vmem:[#allocation23_spill] sm:$0xff] }
 0xa1e   :  { %v9728_v41 = vpop.f32.mrf.mxu0  ;;  %v9347_v27 = vadd.f32 %v25066_v48, %v9235_v24  ;;  %v25077_v13 = vld [vmem:[#allocation51_spill] sm:$0xff]  ;;  %v25078_v48 = vld [vmem:[#allocation60_spill] sm:$0xff] }
 0xa1f   :  { %v9902_v63 = vadd.f32 %v9901_v51, %v9728_v41  ;;  %v9597_v32 = vadd.f32 %v25070_v29, %v9492_v7  ;;  %v25096_v29 = vld [vmem:[#allocation18_spill] sm:$0xff] }
 0xa20   :  { %v9486_v60 = vadd.f32 %v25069_v46, %v9347_v27  ;;  %v25079_v27 = vld [vmem:[#allocation13_spill] sm:$0xff]  ;;  %v25087_v46 = vld [vmem:[#allocation46_spill] sm:$0xff] }
 0xa22   :  { %v9591_v10 = vadd.f32 %v25071_v45, %v9486_v60  ;;  %v25088_v60 = vld [vmem:[#allocation50_spill] sm:$0xff]  ;;  %v25103_v45 = vld [vmem:[#allocation7_spill] sm:$0xff] }
 0xa32   :  { %v16913_v26 = vpop.f32.mrf.mxu1 }
 0xa34   :  { %v10121_v50 = vpop.f32.mrf.mxu1 }
 0xa37   :  { %v16916_v35 = vpop.f32.mrf.mxu1 }
 0xa39   :  { %v10137_v3 = vpop.f32.mrf.mxu1 }
 0xa3b   :  { %v16875_v31 = vpop.f32.mrf.mxu0 }
 0xa3c   :  { %v10019_v12 = vadd.f32 %v16875_v31, %v9896_v53 }
 0xa3d   :  { %v10011_v19 = vpop.f32.mrf.mxu0 }
 0xa3e   :  { %v10012_v42 = vadd.f32 %v10011_v19, %v9890_v21  ;;  %v10130_v43 = vadd.f32 %v16913_v26, %v10019_v12  ;;  %v25068_v26 = vld [vmem:[#allocation16_spill] sm:$0xff] }
 0xa3f   :  { %v9579_v15 = vadd.f32 %v25068_v26, %v9474_v49  ;;  %v25085_v26 = vld [vmem:[#allocation37_spill] sm:$0xff] }
 0xa40   :  { %v16878_v61 = vpop.f32.mrf.mxu0  ;;  %v10122_v4 = vadd.f32 %v10121_v50, %v10012_v42 }
 0xa41   :  { %v10033_v8 = vadd.f32 %v16878_v61, %v9908_v36 }
 0xa42   :  { %v10025_v47 = vpop.f32.mrf.mxu0 }
 0xa43   :  { %v10026_v0 = vadd.f32 %v10025_v47, %v9902_v63  ;;  %v10146_v30 = vadd.f32 %v16916_v35, %v10033_v8  ;;  %v25073_v47 = vld [vmem:[#allocation45_spill] sm:$0xff] }
 0xa45   :  { %v10138_v41 = vadd.f32 %v10137_v3, %v10026_v0 }
 0xa56   :  { %v16989_v44 = vpop.f32.mrf.mxu1 }
 0xa58   :  { %v10369_v18 = vpop.f32.mrf.mxu1 }
 0xa5a   :  { %v16992_v23 = vpop.f32.mrf.mxu1 }
 0xa5c   :  { %v10381_v11 = vpop.f32.mrf.mxu1 }
 0xa5d   :  { %v16951_v5 = vpop.f32.mrf.mxu0 }
 0xa5e   :  { %v10271_v33 = vadd.f32 %v16951_v5, %v10130_v43  ;;  %v25074_v43 = vld [vmem:[#allocation48_spill] sm:$0xff] }
 0xa5f   :  { %v10264_v62 = vpop.f32.mrf.mxu0  ;;  %v25075_v5 = vld [vmem:[#allocation4_spill] sm:$0xff] }
 0xa60   :  { %v10376_v6 = vadd.f32 %v16989_v44, %v10271_v33  ;;  %v10265_v51 = vadd.f32 %v10264_v62, %v10122_v4  ;;  %v25076_v4 = vld [vmem:[#allocation58_spill] sm:$0xff] }
 0xa61   :  { %v16954_v40 = vpop.f32.mrf.mxu0 }
 0xa62   :  { %v10392_v28 = vadd.f32 %v10376_v6, %v9585_v54  ;;  %v10370_v17 = vadd.f32 %v10369_v18, %v10265_v51  ;;  %v10283_v20 = vadd.f32 %v16954_v40, %v10146_v30  ;;  %v25081_v54 = vld [vmem:[#allocation14_spill] sm:$0xff]  ;;  %v25082_v6 = vld [vmem:[#allocation35_spill] sm:$0xff]  ;;  %v25083_v51 = vld [vmem:[#allocation9_spill] sm:$0xff] }
 0xa63   :  { %v10276_v52 = vpop.f32.mrf.mxu0  ;;  %v25084_v30 = vld [vmem:[#allocation15_spill] sm:$0xff]  ;;  %v25091_v40 = vld [vmem:[#allocation12_spill] sm:$0xff] }
 0xa64   :  { %v10401_v50 = vadd.f32 %v12194_v2, %v10392_v28  ;;  %v10391_v31 = vadd.f32 %v10370_v17, %v9579_v15  ;;  %v10388_v58 = vadd.f32 %v16992_v23, %v10283_v20  ;;  %v10277_v39 = vadd.f32 %v10276_v52, %v10138_v41  ;;  %v25086_v15 = vld [vmem:[#allocation21_spill] sm:$0xff]  ;;  %v25089_v23 = vld [vmem:[#allocation6_spill] sm:$0xff]  ;;  %v25093_v17 = vld [vmem:[#allocation24_spill] sm:$0xff] }
 0xa65   :  { %v25092_v28 = vld [vmem:[#allocation41_spill] sm:$0xff]  ;;  %v25094_v20 = vld [vmem:[#allocation40_spill] sm:$0xff]  ;;  %v25095_v41 = vld [vmem:[#allocation22_spill] sm:$0xff] }
 0xa66   :  { %v10405_v35 = vmax.f32 %v10401_v50, 0.0  ;;  %v10400_v19 = vadd.f32 %v12194_v2, %v10391_v31  ;;  %v10394_v1 = vadd.f32 %v10388_v58, %v9597_v32  ;;  %v10382_v57 = vadd.f32 %v10381_v11, %v10277_v39  ;;  %v25097_v32 = vld [vmem:[#allocation53_spill] sm:$0xff]  ;;  %v25098_v52 = vld [vmem:[#allocation20_spill] sm:$0xff]  ;;  %v25099_v50 = vld [vmem:[#allocation62_spill] sm:$0xff] }
 0xa67   :  { %v25100_v31 = vld [vmem:[#allocation47_spill] sm:$0xff]  ;;  %v25101_v58 = vld [vmem:[#allocation56_spill] sm:$0xff]  ;;  %v25105_v11 = vld [vmem:[#allocation29_spill] sm:$0xff] }
 0xa68   :  { %v23449_v22 = vand.u32 4294901760, %v10405_v35  ;;  %v10404_v56 = vmax.f32 %v10400_v19, 0.0  ;;  %v10403_v53 = vadd.f32 %v12194_v2, %v10394_v1  ;;  %v10393_v34 = vadd.f32 %v10382_v57, %v9591_v10  ;;  %v25102_v39 = vld [vmem:[#allocation55_spill] sm:$0xff]  ;;  %v25104_v10 = vld [vmem:[#allocation36_spill] sm:$0xff] }
 0xa69   :  { %v25107_v19 = vld [vmem:[#allocation28_spill] sm:$0xff]  ;;  %v25108_v1 = vld [vmem:[#allocation11_spill] sm:$0xff] }
 0xa6a   :  { %v23452_v9 = vsub.f32 %v10405_v35, %v23449_v22  ;;  %v10407_v3 = vmax.f32 %v10403_v53, 0.0  ;;  %v10402_v61 = vadd.f32 %v12194_v2, %v10393_v34  ;;  %v23454_v21 = vand.u32 4294901760, %v10404_v56  ;;  %v25090_v2 = vld [vmem:[#allocation43_spill] sm:$0xff]  ;;  %v25106_v35 = vld [vmem:[#allocation25_spill] sm:$0xff]  ;;  %v25112_v34 = vld [vmem:[#allocation44_spill] sm:$0xff] }
 0xa6b   :  { %v25109_v57 = vld [vmem:[#allocation19_spill] sm:$0xff] }
 0xa6c   :  { %v10523_v12 = vand.u32 4294901760, %v23452_v9  ;;  %v10406_v37 = vmax.f32 %v10402_v61, 0.0  ;;  %17063 = vmatprep.mubr.f32.mxu1 %v23454_v21  ;;  %v23458_v59 = vand.u32 4294901760, %v10407_v3  ;;  %v10512_v44 = vsub.f32 %v10404_v56, %v23454_v21  ;;  %v25110_v56 = vld [vmem:[#allocation49_spill] sm:$0xff]  ;;  %v25111_v53 = vld [vmem:[#allocation31_spill] sm:$0xff]  ;;  %v25115_v61 = vld [vmem:[#allocation30_spill] sm:$0xff] }
 0xa6d   :  { %17064 = vmatmul.mubr.f32.vlgmr.msra.gmra.mxu1 %v23449_v22 }
 0xa6e   :  { %17108 = vmatpush3.msra.mxu1 %v25072_v16  ;;  %v23463_v36 = vand.u32 4294901760, %v10406_v37  ;;  %v10513_v42 = vand.u32 4294901760, %v10512_v44  ;;  %v23466_v24 = vsub.f32 %v10407_v3, %v23458_v59  ;;  %v10524_v55 = vsub.f32 %v23452_v9, %v10523_v12  ;;  %v25114_v3 = vld [vmem:[#allocation27_spill] sm:$0xff] }
 0xa6f   :  { %17109 = vmatprep.subr.mxu1 %v25073_v47 }
 0xa70   :  { %17110 = vmatpush3.msra.mxu1 %v25073_v47  ;;  %17066 = vmatprep.mubr.f32.mxu1 %v23463_v36  ;;  %v10514_v14 = vsub.f32 %v10512_v44, %v10513_v42  ;;  %v23475_v63 = vsub.f32 %v10406_v37, %v23463_v36  ;;  %v10543_v8 = vand.u32 4294901760, %v23466_v24  ;;  %v10525_v18 = vand.u32 4294901760, %v10524_v55  ;;  %v25118_v37 = vld [vmem:[#allocation57_spill] sm:$0xff] }
 0xa71   :  { %17111 = vmatprep.subr.mxu1 %v25074_v43  ;;  %17067 = vmatmul.mubr.f32.gmra.mxu1 %v23458_v59 }
 0xa72   :  { %17112 = vmatpush3.msra.mxu1 %v25074_v43  ;;  %17139 = vmatprep.mubr.f32.mxu1 %v10513_v42  ;;  %v10515_v49 = vand.u32 4294901760, %v10514_v14  ;;  %v10533_v38 = vand.u32 4294901760, %v23475_v63  ;;  %v10544_v33 = vsub.f32 %v23466_v24, %v10543_v8 }
 0xa73   :  { %17113 = vmatprep.subr.mxu1 %v25075_v5 }
 0xa74   :  { %17114 = vmatpush3.msra.mxu1 %v25075_v5  ;;  %17025 = vmatprep.mubr.f32.mxu0 %v10515_v49  ;;  %v10534_v0 = vsub.f32 %v23475_v63, %v10533_v38  ;;  %v10545_v62 = vand.u32 4294901760, %v10544_v33 }
 0xa75   :  { %17115 = vmatprep.subr.mxu1 %v25076_v4  ;;  %17026 = vmatmul.mubr.f32.vlgmr.msra.gmra.mxu0 %v10525_v18 }
 0xa76   :  { %17070 = vmatpush3.msra.mxu0 %v25077_v13  ;;  %17116 = vmatpush3.msra.mxu1 %v25076_v4  ;;  %v10535_v7 = vand.u32 4294901760, %v10534_v0 }
 0xa77   :  { %17071 = vmatprep.subr.mxu0 %v25078_v48  ;;  %17117 = vmatprep.subr.mxu1 %v25079_v27 }
 0xa78   :  { %17072 = vmatpush3.msra.mxu0 %v25078_v48  ;;  %17118 = vmatpush3.msra.mxu1 %v25079_v27 }
 0xa79   :  { %17028 = vmatprep.mubr.f32.mxu0 %v10535_v7  ;;  %17073 = vmatprep.subr.mxu0 %v25080_v25 }
 0xa7a   :  { %17119 = vmatprep.subr.mxu1 %v25081_v54  ;;  %17029 = vmatmul.mubr.f32.gmra.mxu0 %v10545_v62 }
 0xa7b   :  { %17074 = vmatpush3.msra.mxu0 %v25080_v25  ;;  %17120 = vmatpush3.msra.mxu1 %v25081_v54 }
 0xa7c   :  { %17075 = vmatprep.subr.mxu0 %v25082_v6  ;;  %17101 = vmatprep.mubr.f32.mxu0 %v10512_v44  ;;  %v25119_v44 = vld [vmem:[#allocation59_spill] sm:$0xff] }
 0xa7d   :  { %17121 = vmatprep.subr.mxu1 %v25083_v51  ;;  %17076 = vmatpush3.msra.mxu0 %v25082_v6 }
 0xa7e   :  { %17122 = vmatpush3.msra.mxu1 %v25083_v51  ;;  %17077 = vmatprep.subr.mxu0 %v25084_v30 }
 0xa7f   :  { %17123 = vmatprep.subr.mxu1 %v25085_v26  ;;  %17078 = vmatpush3.msra.mxu0 %v25084_v30 }
 0xa80   :  { %17124 = vmatpush3.msra.mxu1 %v25085_v26  ;;  %17079 = vmatprep.subr.mxu0 %v25086_v15 }
 0xa81   :  { %17125 = vmatprep.subr.mxu1 %v25087_v46  ;;  %17080 = vmatpush3.msra.mxu0 %v25086_v15 }
 0xa82   :  { %17126 = vmatpush3.msra.mxu1 %v25087_v46  ;;  %17081 = vmatprep.subr.mxu0 %v25088_v60 }
 0xa83   :  { %17127 = vmatprep.subr.mxu1 %v25089_v23  ;;  %17082 = vmatpush3.msra.mxu0 %v25088_v60  ;;  %v12221_v60 = vld [vmem:[%s24069_s3 + $0x2c8] sm:$0xff] }
 0xa84   :  { %17128 = vmatpush3.msra.mxu1 %v25089_v23  ;;  %17083 = vmatprep.subr.mxu0 %v25090_v2 }
 0xa85   :  { %17129 = vmatprep.subr.mxu1 %v25091_v40  ;;  %17084 = vmatpush3.msra.mxu0 %v25090_v2 }
 0xa86   :  { %17130 = vmatpush3.msra.mxu1 %v25091_v40  ;;  %17085 = vmatprep.subr.mxu0 %v25092_v28 }
 0xa87   :  { %17131 = vmatprep.subr.mxu1 %v25093_v17  ;;  %17086 = vmatpush3.msra.mxu0 %v25092_v28  ;;  %v12220_v28 = vld [vmem:[%s24069_s3 + $0x2c0] sm:$0xff] }
 0xa88   :  { %17132 = vmatpush3.msra.mxu1 %v25093_v17  ;;  %17087 = vmatprep.subr.mxu0 %v25094_v20 }
 0xa89   :  { %17133 = vmatprep.subr.mxu1 %v25095_v41  ;;  %17088 = vmatpush3.msra.mxu0 %v25094_v20 }
 0xa8a   :  { %17134 = vmatpush3.msra.mxu1 %v25095_v41  ;;  %17089 = vmatprep.subr.mxu0 %v25096_v29 }
 0xa8b   :  { %17135 = vmatprep.subr.mxu1 %v25097_v32  ;;  %17090 = vmatpush3.msra.mxu0 %v25096_v29  ;;  %v12219_v29 = vld [vmem:[%s24069_s3 + $0x2b8] sm:$0xff] }
 0xa8c   :  { %17136 = vmatpush3.msra.mxu1 %v25097_v32  ;;  %17091 = vmatprep.subr.mxu0 %v25098_v52 }
 0xa8d   :  { %17137 = vmatprep.subr.mxu1 %v25099_v50  ;;  %17092 = vmatpush3.msra.mxu0 %v25098_v52 }
 0xa8e   :  { %17138 = vmatpush3.msra.mxu1 %v25099_v50  ;;  %17093 = vmatprep.subr.mxu0 %v25100_v31 }
 0xa8f   :  { %17140 = vmatmul.mubr.f32.vlgmr.msra.gmra.mxu1 %v10523_v12  ;;  %17183 = vmatprep.subr.mxu1 %v25072_v16  ;;  %v25117_v12 = vld [vmem:[#allocation61_spill] sm:$0xff] }
 0xa90   :  { %17094 = vmatpush3.msra.mxu0 %v25100_v31  ;;  %17142 = vmatprep.mubr.f32.mxu1 %v10533_v38  ;;  %v23740_v31 = vand.u32 4294901760, %v12219_v29 }
 0xa91   :  { %17184 = vmatpush3.msra.mxu1 %v25072_v16  ;;  %17095 = vmatprep.subr.mxu0 %v25101_v58  ;;  %v12227_v16 = vld [vmem:[%s24069_s3 + $0x2f8] sm:$0xff] }
 0xa92   :  { %17185 = vmatprep.subr.mxu1 %v25073_v47  ;;  %17096 = vmatpush3.msra.mxu0 %v25101_v58  ;;  %v23629_v42 = vand.u32 4294901760, %v12227_v16  ;;  %v12218_v58 = vld [vmem:[%s24069_s3 + $0x2b0] sm:$0xff] }
 0xa93   :  { %17186 = vmatpush3.msra.mxu1 %v25073_v47  ;;  %17097 = vmatprep.subr.mxu0 %v25102_v39 }
 0xa94   :  { %17143 = vmatmul.mubr.f32.gmra.mxu1 %v10543_v8  ;;  %17187 = vmatprep.subr.mxu1 %v25074_v43  ;;  %v23635_v55 = vsub.f32 %v12227_v16, %v23629_v42 }
 0xa95   :  { %17098 = vmatpush3.msra.mxu0 %v25102_v39  ;;  %17188 = vmatpush3.msra.mxu1 %v25074_v43  ;;  %v12222_v43 = vld [vmem:[%s24069_s3 + $0x2d0] sm:$0xff] }
 0xa96   :  { %17215 = vmatprep.mubr.f32.mxu1 %v23454_v21  ;;  %17099 = vmatprep.subr.mxu0 %v25103_v45  ;;  %v23660_v49 = vand.u32 4294901760, %v23635_v55  ;;  %v23666_v18 = vand.u32 4294901760, %v12222_v43 }
 0xa97   :  { %17189 = vmatprep.subr.mxu1 %v25075_v5  ;;  %17100 = vmatpush3.msra.mxu0 %v25103_v45 }
 0xa98   :  { %17190 = vmatpush3.msra.mxu1 %v25075_v5  ;;  %17102 = vmatmul.mubr.f32.vlgmr.msra.gmra.mxu0 %v23452_v9  ;;  %v25113_v9 = vld [vmem:[#allocation17_spill] sm:$0xff]  ;;  %25120 = vst [vmem:[#allocation39_spill] sm:$0xff] %v23660_v49  ;;  %v23684_v7 = vsub.f32 %v12222_v43, %v23666_v18 }
 0xa99   :  { %17145 = vmatprep.subr.mxu0 %v25104_v10  ;;  %17191 = vmatprep.subr.mxu1 %v25076_v4 }
 0xa9a   :  { %17104 = vmatprep.mubr.f32.mxu0 %v23475_v63  ;;  %17146 = vmatpush3.msra.mxu0 %v25104_v10  ;;  %v23700_v6 = vand.u32 4294901760, %v23684_v7  ;;  %v23753_v10 = vsub.f32 %v12219_v29, %v23740_v31 }
 0xa9b   :  { %17192 = vmatpush3.msra.mxu1 %v25076_v4  ;;  %17147 = vmatprep.subr.mxu0 %v25105_v11  ;;  %v11355_v4 = vsub.f32 %v23635_v55, %v23660_v49 }
 0xa9c   :  { %17193 = vmatprep.subr.mxu1 %v25079_v27  ;;  %17148 = vmatpush3.msra.mxu0 %v25105_v11  ;;  %25125 = vst [vmem:[#allocation33_spill] sm:$0xff] %v23700_v6  ;;  %v11390_v2 = vsub.f32 %v23684_v7, %v23700_v6  ;;  %v23755_v11 = vand.u32 4294901760, %v12218_v58 }
 0xa9d   :  { %17194 = vmatpush3.msra.mxu1 %v25079_v27  ;;  %17105 = vmatmul.mubr.f32.gmra.mxu0 %v23466_v24  ;;  %v12226_v24 = vld [vmem:[%s24069_s3 + $0x2f0] sm:$0xff]  ;;  %v11356_v25 = vand.u32 4294901760, %v11355_v4 }
 0xa9e   :  { %17149 = vmatprep.subr.mxu0 %v25106_v35  ;;  %17195 = vmatprep.subr.mxu1 %v25081_v54  ;;  %v23637_v47 = vand.u32 4294901760, %v12226_v24 }
 0xa9f   :  { %17150 = vmatpush3.msra.mxu0 %v25106_v35  ;;  %17177 = vmatprep.mubr.f32.mxu0 %v23454_v21  ;;  %v25116_v21 = vld [vmem:[#allocation34_spill] sm:$0xff]  ;;  %v12217_v35 = vld [vmem:[%s24069_s3 + $0x2a8] sm:$0xff] }
 0xaa0   :  { %17196 = vmatpush3.msra.mxu1 %v25081_v54  ;;  %17151 = vmatprep.subr.mxu0 %v25107_v19  ;;  %v23663_v38 = vsub.f32 %v12226_v24, %v23637_v47 }
 0xaa1   :  { %17197 = vmatprep.subr.mxu1 %v25083_v51  ;;  %17152 = vmatpush3.msra.mxu0 %v25107_v19 }
 0xaa2   :  { %17198 = vmatpush3.msra.mxu1 %v25083_v51  ;;  %17153 = vmatprep.subr.mxu0 %v25108_v1  ;;  %v23681_v13 = vand.u32 4294901760, %v23663_v38 }
 0xaa3   :  { %17199 = vmatprep.subr.mxu1 %v25085_v26  ;;  %17154 = vmatpush3.msra.mxu0 %v25108_v1 }
 0xaa4   :  { %17200 = vmatpush3.msra.mxu1 %v25085_v26  ;;  %17155 = vmatprep.subr.mxu0 %v25109_v57  ;;  %25121 = vst [vmem:[#allocation26_spill] sm:$0xff] %v23681_v13  ;;  %v11362_v54 = vsub.f32 %v23663_v38, %v23681_v13 }
 0xaa5   :  { %17201 = vmatprep.subr.mxu1 %v25087_v46  ;;  %17156 = vmatpush3.msra.mxu0 %v25109_v57  ;;  %v23765_v57 = vand.u32 4294901760, %v23753_v10 }
 0xaa6   :  { %17202 = vmatpush3.msra.mxu1 %v25087_v46  ;;  %17157 = vmatprep.subr.mxu0 %v25110_v56  ;;  %v11363_v26 = vand.u32 4294901760, %v11362_v54 }
 0xaa7   :  { %17203 = vmatprep.subr.mxu1 %v25089_v23  ;;  %17158 = vmatpush3.msra.mxu0 %v25110_v56  ;;  %25128 = vst [vmem:[#allocation42_spill] sm:$0xff] %v23765_v57  ;;  %v23768_v56 = vsub.f32 %v12218_v58, %v23755_v11 }
 0xaa8   :  { %17204 = vmatpush3.msra.mxu1 %v25089_v23  ;;  %17159 = vmatprep.subr.mxu0 %v25111_v53 }
 0xaa9   :  { %17205 = vmatprep.subr.mxu1 %v25091_v40  ;;  %17160 = vmatpush3.msra.mxu0 %v25111_v53  ;;  %v23771_v53 = vand.u32 4294901760, %v12217_v35 }
 0xaaa   :  { %17206 = vmatpush3.msra.mxu1 %v25091_v40  ;;  %17161 = vmatprep.subr.mxu0 %v25112_v34  ;;  %v23717_v40 = vand.u32 4294901760, %v12221_v60 }
 0xaab   :  { %17207 = vmatprep.subr.mxu1 %v25093_v17  ;;  %17162 = vmatpush3.msra.mxu0 %v25112_v34  ;;  %v12216_v34 = vld [vmem:[%s24069_s3 + $0x2a0] sm:$0xff] }
 0xaac   :  { %17208 = vmatpush3.msra.mxu1 %v25093_v17  ;;  %17163 = vmatprep.subr.mxu0 %v25113_v9  ;;  %v23725_v20 = vsub.f32 %v12221_v60, %v23717_v40 }
 0xaad   :  { %17209 = vmatprep.subr.mxu1 %v25095_v41  ;;  %17164 = vmatpush3.msra.mxu0 %v25113_v9 }
 0xaae   :  { %17210 = vmatpush3.msra.mxu1 %v25095_v41  ;;  %17165 = vmatprep.subr.mxu0 %v25114_v3  ;;  %v23727_v41 = vand.u32 4294901760, %v12220_v28  ;;  %v23735_v52 = vand.u32 4294901760, %v23725_v20 }
 0xaaf   :  { %17211 = vmatprep.subr.mxu1 %v25097_v32  ;;  %17166 = vmatpush3.msra.mxu0 %v25114_v3  ;;  %v11411_v3 = vsub.f32 %v23753_v10, %v23765_v57 }
 0xab0   :  { %17212 = vmatpush3.msra.mxu1 %v25097_v32  ;;  %17167 = vmatprep.subr.mxu0 %v25115_v61  ;;  %v11391_v32 = vand.u32 4294901760, %v11390_v2  ;;  %25126 = vst [vmem:[#allocation10_spill] sm:$0xff] %v23735_v52  ;;  %v11397_v39 = vsub.f32 %v23725_v20, %v23735_v52  ;;  %v12212_v2 = vld [vmem:[%s24069_s3 + $0x280] sm:$0xff] }
 0xab1   :  { %17213 = vmatprep.subr.mxu1 %v25099_v50  ;;  %17168 = vmatpush3.msra.mxu0 %v25115_v61  ;;  %v23780_v61 = vand.u32 4294901760, %v23768_v56  ;;  %v23845_v58 = vand.u32 4294901760, %v12212_v2 }
 0xab2   :  { %17214 = vmatpush3.msra.mxu1 %v25099_v50  ;;  %17169 = vmatprep.subr.mxu0 %v25116_v21  ;;  %v23738_v50 = vsub.f32 %v12220_v28, %v23727_v41  ;;  %v11398_v19 = vand.u32 4294901760, %v11397_v39 }
 0xab3   :  { %17216 = vmatmul.mubr.f32.vlgmr.msra.gmra.mxu1 %v23449_v22  ;;  %17170 = vmatpush3.msra.mxu0 %v25116_v21  ;;  %25129 = vst [vmem:[#allocation45_spill] sm:$0xff] %v23780_v61  ;;  %v23782_v21 = vand.u32 4294901760, %v12216_v34  ;;  %v11418_v16 = vsub.f32 %v23768_v56, %v23780_v61 }
 0xab4   :  { %17218 = vmatprep.mubr.f32.mxu1 %v23463_v36  ;;  %17171 = vmatprep.subr.mxu0 %v25117_v12  ;;  %v23750_v45 = vand.u32 4294901760, %v23738_v50 }
 0xab5   :  { %17172 = vmatpush3.msra.mxu0 %v25117_v12  ;;  %17259 = vmatprep.subr.mxu1 %v11356_v25  ;;  %v23785_v12 = vsub.f32 %v12217_v35, %v23771_v53  ;;  %v23794_v24 = vsub.f32 %v12216_v34, %v23782_v21  ;;  %v11419_v43 = vand.u32 4294901760, %v11418_v16 }
 0xab6   :  { %17173 = vmatprep.subr.mxu0 %v25118_v37  ;;  %17260 = vmatpush3.msra.mxu1 %v11356_v25  ;;  %25127 = vst [vmem:[#allocation32_spill] sm:$0xff] %v23750_v45  ;;  %v11404_v1 = vsub.f32 %v23738_v50, %v23750_v45 }
 0xab7   :  { %17219 = vmatmul.mubr.f32.gmra.mxu1 %v23458_v59  ;;  %17174 = vmatpush3.msra.mxu0 %v25118_v37  ;;  %v12215_v37 = vld [vmem:[%s24069_s3 + $0x298] sm:$0xff]  ;;  %v23807_v4 = vand.u32 4294901760, %v23794_v24 }
 0xab8   :  { %17175 = vmatprep.subr.mxu0 %v25119_v44  ;;  %17261 = vmatprep.subr.mxu1 %v11363_v26  ;;  %v11405_v9 = vand.u32 4294901760, %v11404_v1  ;;  %v23855_v1 = vsub.f32 %v12212_v2, %v23845_v58 }
 0xab9   :  { %17176 = vmatpush3.msra.mxu0 %v25119_v44  ;;  %17262 = vmatpush3.msra.mxu1 %v11363_v26  ;;  %v11412_v44 = vand.u32 4294901760, %v11411_v3  ;;  %25131 = vst [vmem:[#allocation4_spill] sm:$0xff] %v23807_v4  ;;  %v11432_v26 = vsub.f32 %v23794_v24, %v23807_v4 }
 0xaba   :  { %17178 = vmatmul.mubr.f32.vlgmr.msra.gmra.mxu0 %v23449_v22  ;;  %v12225_v22 = vld [vmem:[%s24069_s3 + $0x2e8] sm:$0xff]  ;;  %17221 = vmatprep.subr.mxu0 %v23629_v42  ;;  %25137 = vst [vmem:[#allocation14_spill] sm:$0xff] %v23855_v1  ;;  %v23862_v3 = vand.u32 4294901760, %v23855_v1 }
 0xabb   :  { %17180 = vmatprep.mubr.f32.mxu0 %v23463_v36  ;;  %v12223_v36 = vld [vmem:[%s24069_s3 + $0x2d8] sm:$0xff]  ;;  %v23649_v14 = vand.u32 4294901760, %v12225_v22  ;;  %17222 = vmatpush3.msra.mxu0 %v23629_v42  ;;  %v11433_v28 = vand.u32 4294901760, %v11432_v26 }
 0xabc   :  { %v23653_v8 = vand.u32 4294901760, %v12223_v36  ;;  %17223 = vmatprep.subr.mxu0 %v23637_v47  ;;  %25138 = vst [vmem:[#allocation35_spill] sm:$0xff] %v23862_v3 }
 0xabd   :  { %v23669_v5 = vsub.f32 %v12225_v22, %v23649_v14  ;;  %17224 = vmatpush3.msra.mxu0 %v23637_v47  ;;  %v23796_v22 = vand.u32 4294901760, %v12215_v37 }
 0xabe   :  { %17181 = vmatmul.mubr.f32.gmra.mxu0 %v23458_v59  ;;  %v12224_v59 = vld [vmem:[%s24069_s3 + $0x2e0] sm:$0xff]  ;;  %v23675_v33 = vsub.f32 %v12223_v36, %v23653_v8  ;;  %17225 = vmatprep.subr.mxu0 %v23649_v14  ;;  %v12214_v36 = vld [vmem:[%s24069_s3 + $0x290] sm:$0xff] }
 0xabf   :  { %v23651_v63 = vand.u32 4294901760, %v12224_v59  ;;  %v23688_v48 = vand.u32 4294901760, %v23669_v5  ;;  %17226 = vmatpush3.msra.mxu0 %v23649_v14  ;;  %v23810_v25 = vsub.f32 %v12215_v37, %v23796_v22  ;;  %v23812_v54 = vand.u32 4294901760, %v12214_v36 }
 0xac0   :  { %v23694_v62 = vand.u32 4294901760, %v23675_v33 }
 0xac1   :  { %v23672_v0 = vsub.f32 %v12224_v59, %v23651_v63  ;;  %25122 = vst [vmem:[#allocation23_spill] sm:$0xff] %v23688_v48  ;;  %17227 = vmatprep.subr.mxu0 %v23651_v63  ;;  %v11369_v51 = vsub.f32 %v23669_v5, %v23688_v48  ;;  %v23800_v59 = vand.u32 4294901760, %v23785_v12 }
 0xac2   :  { %25124 = vst [vmem:[#allocation16_spill] sm:$0xff] %v23694_v62  ;;  %17228 = vmatpush3.msra.mxu0 %v23651_v63  ;;  %v11383_v15 = vsub.f32 %v23675_v33, %v23694_v62 }
 0xac3   :  { %v23691_v27 = vand.u32 4294901760, %v23672_v0  ;;  %17229 = vmatprep.subr.mxu0 %v23653_v8  ;;  %v11370_v46 = vand.u32 4294901760, %v11369_v51  ;;  %25130 = vst [vmem:[#allocation48_spill] sm:$0xff] %v23800_v59  ;;  %v11425_v51 = vsub.f32 %v23785_v12, %v23800_v59 }
 0xac4   :  { %17230 = vmatpush3.msra.mxu0 %v23653_v8  ;;  %v11384_v17 = vand.u32 4294901760, %v11383_v15  ;;  %v23824_v15 = vand.u32 4294901760, %v23810_v25 }
 0xac5   :  { %25123 = vst [vmem:[#allocation8_spill] sm:$0xff] %v23691_v27  ;;  %v11376_v30 = vsub.f32 %v23672_v0, %v23691_v27  ;;  %17231 = vmatprep.subr.mxu0 %v23666_v18  ;;  %17263 = vmatprep.subr.mxu1 %v11370_v46 }
 0xac6   :  { %17232 = vmatpush3.msra.mxu0 %v23666_v18  ;;  %17264 = vmatpush3.msra.mxu1 %v11370_v46  ;;  %25132 = vst [vmem:[#allocation58_spill] sm:$0xff] %v23824_v15  ;;  %v23827_v46 = vsub.f32 %v12214_v36, %v23812_v54 }
 0xac7   :  { %v11377_v23 = vand.u32 4294901760, %v11376_v30  ;;  %17233 = vmatprep.subr.mxu0 %v23717_v40  ;;  %v12213_v30 = vld [vmem:[%s24069_s3 + $0x288] sm:$0xff] }
 0xac8   :  { %17234 = vmatpush3.msra.mxu0 %v23717_v40  ;;  %25133 = vst [vmem:[#allocation51_spill] sm:$0xff] %v23827_v46  ;;  %v23829_v60 = vand.u32 4294901760, %v12213_v30  ;;  %v23839_v29 = vand.u32 4294901760, %v23827_v46 }
 0xac9   :  { %17265 = vmatprep.subr.mxu1 %v11377_v23  ;;  %17235 = vmatprep.subr.mxu0 %v23727_v41 }
 0xaca   :  { %17266 = vmatpush3.msra.mxu1 %v11377_v23  ;;  %17236 = vmatpush3.msra.mxu0 %v23727_v41  ;;  %v11426_v23 = vand.u32 4294901760, %v11425_v51  ;;  %25134 = vst [vmem:[#allocation60_spill] sm:$0xff] %v23839_v29  ;;  %v11446_v35 = vsub.f32 %v23827_v46, %v23839_v29  ;;  %v17458_v46 = vld [vmem:[#allocation2 + $0x10] sm:$0xff] }
 0xacb   :  { %17267 = vmatprep.subr.mxu1 %v11384_v17  ;;  %17237 = vmatprep.subr.mxu0 %v23740_v31 }
 0xacc   :  { %17268 = vmatpush3.msra.mxu1 %v11384_v17  ;;  %17238 = vmatpush3.msra.mxu0 %v23740_v31  ;;  %v11439_v17 = vsub.f32 %v23810_v25, %v23824_v15  ;;  %v11447_v34 = vand.u32 4294901760, %v11446_v35 }
 0xacd   :  { %17269 = vmatprep.subr.mxu1 %v11391_v32  ;;  %17239 = vmatprep.subr.mxu0 %v23755_v11 }
 0xace   :  { %17270 = vmatpush3.msra.mxu1 %v11391_v32  ;;  %17240 = vmatpush3.msra.mxu0 %v23755_v11  ;;  %v23842_v32 = vsub.f32 %v12213_v30, %v23829_v60  ;;  %v11440_v39 = vand.u32 4294901760, %v11439_v17 }
 0xacf   :  { %17271 = vmatprep.subr.mxu1 %v11398_v19  ;;  %17241 = vmatprep.subr.mxu0 %v23771_v53 }
 0xad0   :  { %17272 = vmatpush3.msra.mxu1 %v11398_v19  ;;  %17242 = vmatpush3.msra.mxu0 %v23771_v53  ;;  %25135 = vst [vmem:[#allocation13_spill] sm:$0xff] %v23842_v32  ;;  %v23851_v19 = vand.u32 4294901760, %v23842_v32 }
 0xad1   :  { %17273 = vmatprep.subr.mxu1 %v11405_v9  ;;  %17243 = vmatprep.subr.mxu0 %v23782_v21 }
 0xad2   :  { %17274 = vmatpush3.msra.mxu1 %v11405_v9  ;;  %17244 = vmatpush3.msra.mxu0 %v23782_v21  ;;  %25136 = vst [vmem:[#allocation3_spill] sm:$0xff] %v23851_v19  ;;  %v11453_v9 = vsub.f32 %v23842_v32, %v23851_v19 }
 0xad3   :  { %17275 = vmatprep.subr.mxu1 %v11412_v44  ;;  %17245 = vmatprep.subr.mxu0 %v23796_v22 }
 0xad4   :  { %17276 = vmatpush3.msra.mxu1 %v11412_v44  ;;  %17246 = vmatpush3.msra.mxu0 %v23796_v22  ;;  %v11454_v37 = vand.u32 4294901760, %v11453_v9  ;;  %v11460_v44 = vsub.f32 %v23855_v1, %v23862_v3 }
 0xad5   :  { %17277 = vmatprep.subr.mxu1 %v11419_v43  ;;  %17247 = vmatprep.subr.mxu0 %v23812_v54 }
 0xad6   :  { %17278 = vmatpush3.msra.mxu1 %v11419_v43  ;;  %17248 = vmatpush3.msra.mxu0 %v23812_v54  ;;  %v11461_v16 = vand.u32 4294901760, %v11460_v44 }
 0xad7   :  { %17279 = vmatprep.subr.mxu1 %v11426_v23  ;;  %17249 = vmatprep.subr.mxu0 %v23829_v60 }
 0xad8   :  { %17280 = vmatpush3.msra.mxu1 %v11426_v23  ;;  %17250 = vmatpush3.msra.mxu0 %v23829_v60 }
 0xad9   :  { %17281 = vmatprep.subr.mxu1 %v11433_v28  ;;  %17251 = vmatprep.subr.mxu0 %v23845_v58 }
 0xada   :  { %17282 = vmatpush3.msra.mxu1 %v11433_v28  ;;  %17252 = vmatpush3.msra.mxu0 %v23845_v58 }
 0xadb   :  { %17283 = vmatprep.subr.mxu1 %v11440_v39  ;;  %17297 = vmatprep.subr.mxu0 %v23635_v55 }
 0xadc   :  { %17284 = vmatpush3.msra.mxu1 %v11440_v39  ;;  %v12211_v39 = vld [vmem:[%s24071_s4 + $0x4] ss:$0 sm:$0xff] }
 0xadd   :  { %17285 = vmatprep.subr.mxu1 %v11447_v34 }
 0xade   :  { %17286 = vmatpush3.msra.mxu1 %v11447_v34 }
 0xadf   :  { %17287 = vmatprep.subr.mxu1 %v11454_v37 }
 0xae0   :  { %17288 = vmatpush3.msra.mxu1 %v11454_v37 }
 0xae1   :  { %17289 = vmatprep.subr.mxu1 %v11461_v16 }
 0xae2   :  { %17290 = vmatpush3.msra.mxu1 %v11461_v16 }
 0xae3   :  { %17335 = vmatprep.subr.mxu1 %v23629_v42 }
 0xb2d   :  { %v17065_v36 = vpop.f32.mrf.mxu1 }
 0xb2f   :  { %v10698_v43 = vpop.f32.mrf.mxu1 }
 0xb31   :  { %v17068_v30 = vpop.f32.mrf.mxu1 }
 0xb33   :  { %v10710_v23 = vpop.f32.mrf.mxu1 }
 0xb35   :  { %v17027_v51 = vpop.f32.mrf.mxu0 }
 0xb36   :  { %v10528_v9 = vadd.f32 %v17027_v51, %v12211_v39 }
 0xb37   :  { %v10517_v26 = vpop.f32.mrf.mxu0 }
 0xb38   :  { %v10518_v16 = vadd.f32 %v12211_v39, %v10517_v26  ;;  %v10705_v19 = vadd.f32 %v17065_v36, %v10528_v9 }
 0xb3a   :  { %v17030_v2 = vpop.f32.mrf.mxu0  ;;  %v10699_v61 = vadd.f32 %v10698_v43, %v10518_v16 }
 0xb3b   :  { %v10548_v3 = vadd.f32 %v17030_v2, %v12211_v39 }
 0xb3c   :  { %v10537_v17 = vpop.f32.mrf.mxu0 }
 0xb3d   :  { %v10538_v4 = vadd.f32 %v12211_v39, %v10537_v17  ;;  %v10717_v52 = vadd.f32 %v17068_v30, %v10548_v3  ;;  %v25139_v17 = vld [vmem:[#allocation52_spill] sm:$0xff] }
 0xb3f   :  { %v10711_v27 = vadd.f32 %v10710_v23, %v10538_v4  ;;  %v17459_v4 = vld [vmem:[#allocation2 + $0x8] sm:$0xff] }
 0xb4f   :  { %v17141_v28 = vpop.f32.mrf.mxu1 }
 0xb51   :  { %v10930_v35 = vpop.f32.mrf.mxu1 }
 0xb54   :  { %v17144_v37 = vpop.f32.mrf.mxu1 }
 0xb56   :  { %v10946_v29 = vpop.f32.mrf.mxu1 }
 0xb58   :  { %v17103_v34 = vpop.f32.mrf.mxu0 }
 0xb59   :  { %v10828_v59 = vadd.f32 %v17103_v34, %v10705_v19  ;;  %v8011_v19 = vadd.f32 %v17458_v46, %v25139_v17  ;;  %v25142_v34 = vld [vmem:[#allocation5_spill] sm:$0xff] }
 0xb5a   :  { %v10820_v44 = vpop.f32.mrf.mxu0 }
 0xb5b   :  { %v10821_v45 = vadd.f32 %v10820_v44, %v10699_v61  ;;  %v10939_v48 = vadd.f32 %v17141_v28, %v10828_v59  ;;  %v25140_v59 = vld [vmem:[#allocation38_spill] sm:$0xff] }
 0xb5d   :  { %v17106_v15 = vpop.f32.mrf.mxu0  ;;  %v10931_v32 = vadd.f32 %v10930_v35, %v10821_v45  ;;  %v17460_v45 = vld [vmem:[#allocation2 + $0x30] sm:$0xff] }
 0xb5e   :  { %v10842_v62 = vadd.f32 %v17106_v15, %v10717_v52  ;;  %v8010_v15 = vadd.f32 %v17459_v4, %v25140_v59 }
 0xb5f   :  { %v10834_v6 = vpop.f32.mrf.mxu0 }
 0xb60   :  { %v10835_v51 = vadd.f32 %v10834_v6, %v10711_v27  ;;  %v10955_v9 = vadd.f32 %v17144_v37, %v10842_v62 }
 0xb62   :  { %v10947_v52 = vadd.f32 %v10946_v29, %v10835_v51 }
 0xb73   :  { %v17217_v57 = vpop.f32.mrf.mxu1 }
 0xb75   :  { %v11178_v13 = vpop.f32.mrf.mxu1 }
 0xb77   :  { %v17220_v43 = vpop.f32.mrf.mxu1 }
 0xb7a   :  { %v17179_v49 = vpop.f32.mrf.mxu0 }
 0xb7b   :  { %v11080_v1 = vadd.f32 %v17179_v49, %v10939_v48 }
 0xb7c   :  { %v11073_v26 = vpop.f32.mrf.mxu0 }
 0xb7d   :  { %v11185_v2 = vadd.f32 %v17217_v57, %v11080_v1  ;;  %v11074_v36 = vadd.f32 %v11073_v26, %v10931_v32  ;;  %v25141_v57 = vld [vmem:[#allocation54_spill] sm:$0xff]  ;;  %v11190_v32 = vpop.f32.mrf.mxu1 }
 0xb7e   :  { %v17182_v39 = vpop.f32.mrf.mxu0  ;;  %v8013_v62 = vadd.f32 %v17460_v45, %v25141_v57 }
 0xb7f   :  { %v11201_v61 = vmax.f32 %v11185_v2, 0.0  ;;  %v11179_v3 = vadd.f32 %v11178_v13, %v11074_v36  ;;  %v11092_v30 = vadd.f32 %v17182_v39, %v10955_v9  ;;  %v17461_v13 = vld [vmem:[#allocation2 + $0x28] sm:$0xff] }
 0xb80   :  { %v11085_v23 = vpop.f32.mrf.mxu0  ;;  %v8012_v29 = vadd.f32 %v17461_v13, %v25142_v34 }
 0xb81   :  { %v11205_v27 = vadd.f32 %v11201_v61, %v8011_v19  ;;  %v11200_v49 = vmax.f32 %v11179_v3, 0.0  ;;  %v11197_v48 = vadd.f32 %v17220_v43, %v11092_v30  ;;  %v11086_v6 = vadd.f32 %v11085_v23, %v10947_v52 }
 0xb83   :  { %v23874_v1 = vand.u32 4294901760, %v11205_v27  ;;  %v11204_v46 = vadd.f32 %v11200_v49, %v8010_v15  ;;  %v11203_v28 = vmax.f32 %v11197_v48, 0.0  ;;  %v11191_v35 = vadd.f32 %v11190_v32, %v11086_v6 }
 0xb85   :  { %v23878_v37 = vsub.f32 %v11205_v27, %v23874_v1  ;;  %v23880_v44 = vand.u32 4294901760, %v11204_v46  ;;  %v11207_v16 = vadd.f32 %v11203_v28, %v8013_v62  ;;  %v11202_v51 = vmax.f32 %v11191_v35, 0.0 }
 0xb87   :  { %v11323_v26 = vand.u32 4294901760, %v23878_v37  ;;  %v11312_v2 = vsub.f32 %v11204_v46, %v23880_v44  ;;  %v23884_v36 = vand.u32 4294901760, %v11207_v16  ;;  %v11206_v9 = vadd.f32 %v11202_v51, %v8012_v29  ;;  %17291 = vmatprep.mubr.f32.mxu1 %v23880_v44 }
 0xb88   :  { %17292 = vmatmul.mubr.f32.vlgmr.msra.gmra.mxu1 %v23874_v1 }
 0xb89   :  { %v23889_v17 = vsub.f32 %v11207_v16, %v23884_v36  ;;  %v23891_v19 = vand.u32 4294901760, %v11206_v9  ;;  %17336 = vmatpush3.msra.mxu1 %v23629_v42  ;;  %v11313_v43 = vand.u32 4294901760, %v11312_v2  ;;  %v11324_v39 = vsub.f32 %v23878_v37, %v11323_v26 }
 0xb8a   :  { %17337 = vmatprep.subr.mxu1 %v23637_v47 }
 0xb8b   :  { %v23899_v61 = vsub.f32 %v11206_v9, %v23891_v19  ;;  %17338 = vmatpush3.msra.mxu1 %v23637_v47  ;;  %17294 = vmatprep.mubr.f32.mxu1 %v23891_v19  ;;  %v11314_v3 = vsub.f32 %v11312_v2, %v11313_v43  ;;  %v11343_v30 = vand.u32 4294901760, %v23889_v17  ;;  %v11325_v59 = vand.u32 4294901760, %v11324_v39 }
 0xb8c   :  { %17339 = vmatprep.subr.mxu1 %v23649_v14  ;;  %17295 = vmatmul.mubr.f32.gmra.mxu1 %v23884_v36 }
 0xb8d   :  { %17340 = vmatpush3.msra.mxu1 %v23649_v14  ;;  %17367 = vmatprep.mubr.f32.mxu1 %v11313_v43  ;;  %v11315_v52 = vand.u32 4294901760, %v11314_v3  ;;  %v11333_v4 = vand.u32 4294901760, %v23899_v61  ;;  %v11344_v23 = vsub.f32 %v23889_v17, %v11343_v30 }
 0xb8e   :  { %17341 = vmatprep.subr.mxu1 %v23651_v63 }
 0xb8f   :  { %17342 = vmatpush3.msra.mxu1 %v23651_v63  ;;  %17253 = vmatprep.mubr.f32.mxu0 %v11315_v52  ;;  %v11334_v15 = vsub.f32 %v23899_v61, %v11333_v4  ;;  %v11345_v49 = vand.u32 4294901760, %v11344_v23 }
 0xb90   :  { %17343 = vmatprep.subr.mxu1 %v23653_v8  ;;  %17254 = vmatmul.mubr.f32.vlgmr.msra.gmra.mxu0 %v11325_v59 }
 0xb91   :  { %17298 = vmatpush3.msra.mxu0 %v23635_v55  ;;  %17344 = vmatpush3.msra.mxu1 %v23653_v8  ;;  %v11335_v27 = vand.u32 4294901760, %v11334_v15  ;;  %v25143_v55 = vld [vmem:[#allocation51_spill] sm:$0xff] }
 0xb92   :  { %17299 = vmatprep.subr.mxu0 %v23663_v38  ;;  %17345 = vmatprep.subr.mxu1 %v23666_v18 }
 0xb93   :  { %17300 = vmatpush3.msra.mxu0 %v23663_v38  ;;  %17346 = vmatpush3.msra.mxu1 %v23666_v18  ;;  %v25144_v38 = vld [vmem:[#allocation13_spill] sm:$0xff] }
 0xb94   :  { %17256 = vmatprep.mubr.f32.mxu0 %v11335_v27  ;;  %17301 = vmatprep.subr.mxu0 %v23669_v5 }
 0xb95   :  { %17347 = vmatprep.subr.mxu1 %v23717_v40  ;;  %17257 = vmatmul.mubr.f32.gmra.mxu0 %v11345_v49 }
 0xb96   :  { %17302 = vmatpush3.msra.mxu0 %v23669_v5  ;;  %17348 = vmatpush3.msra.mxu1 %v23717_v40  ;;  %v25151_v5 = vld [vmem:[#allocation33_spill] sm:$0xff] }
 0xb97   :  { %17303 = vmatprep.subr.mxu0 %v23672_v0  ;;  %17329 = vmatprep.mubr.f32.mxu0 %v11312_v2 }
 0xb98   :  { %17349 = vmatprep.subr.mxu1 %v23727_v41  ;;  %17304 = vmatpush3.msra.mxu0 %v23672_v0  ;;  %v25152_v0 = vld [vmem:[#allocation10_spill] sm:$0xff] }
 0xb99   :  { %17350 = vmatpush3.msra.mxu1 %v23727_v41  ;;  %17305 = vmatprep.subr.mxu0 %v23675_v33 }
 0xb9a   :  { %17351 = vmatprep.subr.mxu1 %v23740_v31  ;;  %17306 = vmatpush3.msra.mxu0 %v23675_v33  ;;  %v25153_v33 = vld [vmem:[#allocation32_spill] sm:$0xff] }
 0xb9b   :  { %17352 = vmatpush3.msra.mxu1 %v23740_v31  ;;  %17307 = vmatprep.subr.mxu0 %v23684_v7 }
 0xb9c   :  { %17353 = vmatprep.subr.mxu1 %v23755_v11  ;;  %17308 = vmatpush3.msra.mxu0 %v23684_v7  ;;  %v25154_v7 = vld [vmem:[#allocation42_spill] sm:$0xff] }
 0xb9d   :  { %17354 = vmatpush3.msra.mxu1 %v23755_v11  ;;  %17309 = vmatprep.subr.mxu0 %v23725_v20 }
 0xb9e   :  { %17355 = vmatprep.subr.mxu1 %v23771_v53  ;;  %17310 = vmatpush3.msra.mxu0 %v23725_v20  ;;  %v25156_v20 = vld [vmem:[#allocation48_spill] sm:$0xff] }
 0xb9f   :  { %17356 = vmatpush3.msra.mxu1 %v23771_v53  ;;  %17311 = vmatprep.subr.mxu0 %v23738_v50 }
 0xba0   :  { %17357 = vmatprep.subr.mxu1 %v23782_v21  ;;  %17312 = vmatpush3.msra.mxu0 %v23738_v50  ;;  %v25158_v50 = vld [vmem:[#allocation58_spill] sm:$0xff] }
 0xba1   :  { %17358 = vmatpush3.msra.mxu1 %v23782_v21  ;;  %17313 = vmatprep.subr.mxu0 %v23753_v10 }
 0xba2   :  { %17359 = vmatprep.subr.mxu1 %v23796_v22  ;;  %17314 = vmatpush3.msra.mxu0 %v23753_v10  ;;  %v25160_v10 = vld [vmem:[#allocation3_spill] sm:$0xff] }
 0xba3   :  { %17360 = vmatpush3.msra.mxu1 %v23796_v22  ;;  %17315 = vmatprep.subr.mxu0 %v23768_v56 }
 0xba4   :  { %17361 = vmatprep.subr.mxu1 %v23812_v54  ;;  %17316 = vmatpush3.msra.mxu0 %v23768_v56 }
 0xba5   :  { %17362 = vmatpush3.msra.mxu1 %v23812_v54  ;;  %17317 = vmatprep.subr.mxu0 %v23785_v12 }
 0xba6   :  { %17363 = vmatprep.subr.mxu1 %v23829_v60  ;;  %17318 = vmatpush3.msra.mxu0 %v23785_v12 }
 0xba7   :  { %17364 = vmatpush3.msra.mxu1 %v23829_v60  ;;  %17319 = vmatprep.subr.mxu0 %v23794_v24 }
 0xba8   :  { %17365 = vmatprep.subr.mxu1 %v23845_v58  ;;  %17320 = vmatpush3.msra.mxu0 %v23794_v24 }
 0xba9   :  { %17366 = vmatpush3.msra.mxu1 %v23845_v58  ;;  %17321 = vmatprep.subr.mxu0 %v23810_v25 }
 0xbaa   :  { %17368 = vmatmul.mubr.f32.vlgmr.msra.gmra.mxu1 %v11323_v26  ;;  %17411 = vmatprep.subr.mxu1 %v23629_v42 }
 0xbab   :  { %17322 = vmatpush3.msra.mxu0 %v23810_v25  ;;  %17370 = vmatprep.mubr.f32.mxu1 %v11333_v4 }
 0xbac   :  { %17412 = vmatpush3.msra.mxu1 %v23629_v42  ;;  %17323 = vmatprep.subr.mxu0 %v25143_v55  ;;  %v25145_v42 = vld [vmem:[#allocation14_spill] sm:$0xff] }
 0xbad   :  { %17413 = vmatprep.subr.mxu1 %v23637_v47  ;;  %17324 = vmatpush3.msra.mxu0 %v25143_v55 }
 0xbae   :  { %17414 = vmatpush3.msra.mxu1 %v23637_v47  ;;  %17325 = vmatprep.subr.mxu0 %v25144_v38  ;;  %v25146_v47 = vld [vmem:[#allocation39_spill] sm:$0xff] }
 0xbaf   :  { %17371 = vmatmul.mubr.f32.gmra.mxu1 %v11343_v30  ;;  %17415 = vmatprep.subr.mxu1 %v23649_v14 }
 0xbb0   :  { %17326 = vmatpush3.msra.mxu0 %v25144_v38  ;;  %17416 = vmatpush3.msra.mxu1 %v23649_v14  ;;  %v25147_v14 = vld [vmem:[#allocation26_spill] sm:$0xff] }
 0xbb1   :  { %17443 = vmatprep.mubr.f32.mxu1 %v23880_v44  ;;  %17327 = vmatprep.subr.mxu0 %v25145_v42 }
 0xbb2   :  { %17417 = vmatprep.subr.mxu1 %v23651_v63  ;;  %17328 = vmatpush3.msra.mxu0 %v25145_v42 }
 0xbb3   :  { %17418 = vmatpush3.msra.mxu1 %v23651_v63  ;;  %17330 = vmatmul.mubr.f32.vlgmr.msra.gmra.mxu0 %v23878_v37  ;;  %v25148_v63 = vld [vmem:[#allocation23_spill] sm:$0xff] }
 0xbb4   :  { %17373 = vmatprep.subr.mxu0 %v25146_v47  ;;  %17419 = vmatprep.subr.mxu1 %v23653_v8 }
 0xbb5   :  { %17332 = vmatprep.mubr.f32.mxu0 %v23899_v61  ;;  %17374 = vmatpush3.msra.mxu0 %v25146_v47 }
 0xbb6   :  { %17420 = vmatpush3.msra.mxu1 %v23653_v8  ;;  %17375 = vmatprep.subr.mxu0 %v25147_v14  ;;  %v25149_v8 = vld [vmem:[#allocation8_spill] sm:$0xff] }
 0xbb7   :  { %17421 = vmatprep.subr.mxu1 %v23666_v18  ;;  %17376 = vmatpush3.msra.mxu0 %v25147_v14 }
 0xbb8   :  { %17422 = vmatpush3.msra.mxu1 %v23666_v18  ;;  %17333 = vmatmul.mubr.f32.gmra.mxu0 %v23889_v17  ;;  %v25150_v18 = vld [vmem:[#allocation16_spill] sm:$0xff] }
 0xbb9   :  { %17377 = vmatprep.subr.mxu0 %v25148_v63  ;;  %17423 = vmatprep.subr.mxu1 %v23717_v40 }
 0xbba   :  { %17378 = vmatpush3.msra.mxu0 %v25148_v63  ;;  %17405 = vmatprep.mubr.f32.mxu0 %v23880_v44 }
 0xbbb   :  { %17424 = vmatpush3.msra.mxu1 %v23717_v40  ;;  %17379 = vmatprep.subr.mxu0 %v25149_v8  ;;  %v25155_v40 = vld [vmem:[#allocation45_spill] sm:$0xff] }
 0xbbc   :  { %17425 = vmatprep.subr.mxu1 %v23727_v41  ;;  %17380 = vmatpush3.msra.mxu0 %v25149_v8 }
 0xbbd   :  { %17426 = vmatpush3.msra.mxu1 %v23727_v41  ;;  %17381 = vmatprep.subr.mxu0 %v25150_v18  ;;  %v25157_v41 = vld [vmem:[#allocation4_spill] sm:$0xff] }
 0xbbe   :  { %17427 = vmatprep.subr.mxu1 %v23740_v31  ;;  %17382 = vmatpush3.msra.mxu0 %v25150_v18 }
 0xbbf   :  { %17428 = vmatpush3.msra.mxu1 %v23740_v31  ;;  %17383 = vmatprep.subr.mxu0 %v25151_v5  ;;  %v25159_v31 = vld [vmem:[#allocation60_spill] sm:$0xff] }
 0xbc0   :  { %17429 = vmatprep.subr.mxu1 %v23755_v11  ;;  %17384 = vmatpush3.msra.mxu0 %v25151_v5 }
 0xbc1   :  { %17430 = vmatpush3.msra.mxu1 %v23755_v11  ;;  %17385 = vmatprep.subr.mxu0 %v25152_v0  ;;  %v25161_v11 = vld [vmem:[#allocation35_spill] sm:$0xff] }
 0xbc2   :  { %17431 = vmatprep.subr.mxu1 %v23771_v53  ;;  %17386 = vmatpush3.msra.mxu0 %v25152_v0 }
 0xbc3   :  { %17432 = vmatpush3.msra.mxu1 %v23771_v53  ;;  %17387 = vmatprep.subr.mxu0 %v25153_v33 }
 0xbc4   :  { %17433 = vmatprep.subr.mxu1 %v23782_v21  ;;  %17388 = vmatpush3.msra.mxu0 %v25153_v33 }
 0xbc5   :  { %17434 = vmatpush3.msra.mxu1 %v23782_v21  ;;  %17389 = vmatprep.subr.mxu0 %v25154_v7 }
 0xbc6   :  { %17435 = vmatprep.subr.mxu1 %v23796_v22  ;;  %17390 = vmatpush3.msra.mxu0 %v25154_v7 }
 0xbc7   :  { %17436 = vmatpush3.msra.mxu1 %v23796_v22  ;;  %17391 = vmatprep.subr.mxu0 %v25155_v40 }
 0xbc8   :  { %17437 = vmatprep.subr.mxu1 %v23812_v54  ;;  %17392 = vmatpush3.msra.mxu0 %v25155_v40 }
 0xbc9   :  { %17438 = vmatpush3.msra.mxu1 %v23812_v54  ;;  %17393 = vmatprep.subr.mxu0 %v25156_v20 }
 0xbca   :  { %17439 = vmatprep.subr.mxu1 %v23829_v60  ;;  %17394 = vmatpush3.msra.mxu0 %v25156_v20 }
 0xbcb   :  { %17440 = vmatpush3.msra.mxu1 %v23829_v60  ;;  %17395 = vmatprep.subr.mxu0 %v25157_v41 }
 0xbcc   :  { %17441 = vmatprep.subr.mxu1 %v23845_v58  ;;  %17396 = vmatpush3.msra.mxu0 %v25157_v41 }
 0xbcd   :  { %17442 = vmatpush3.msra.mxu1 %v23845_v58  ;;  %17397 = vmatprep.subr.mxu0 %v25158_v50  ;;  %v12228_v58 = vld [vmem:[%s24071_s4 + $0x5] ss:$0 sm:$0xff] }
 0xbce   :  { %17444 = vmatmul.mubr.f32.vlgmr.msra.gmra.mxu1 %v23874_v1  ;;  %17398 = vmatpush3.msra.mxu0 %v25158_v50 }
 0xbcf   :  { %17446 = vmatprep.mubr.f32.mxu1 %v23891_v19  ;;  %17399 = vmatprep.subr.mxu0 %v25159_v31 }
 0xbd0   :  { %17400 = vmatpush3.msra.mxu0 %v25159_v31 }
 0xbd1   :  { %17401 = vmatprep.subr.mxu0 %v25160_v10 }
 0xbd2   :  { %17447 = vmatmul.mubr.f32.gmra.mxu1 %v23884_v36  ;;  %17402 = vmatpush3.msra.mxu0 %v25160_v10 }
 0xbd3   :  { %17403 = vmatprep.subr.mxu0 %v25161_v11 }
 0xbd4   :  { %17404 = vmatpush3.msra.mxu0 %v25161_v11 }
 0xbd5   :  { %17406 = vmatmul.mubr.f32.vlgmr.msra.gmra.mxu0 %v23874_v1 }
 0xbd6   :  { %17408 = vmatprep.mubr.f32.mxu0 %v23891_v19 }
 0xbd9   :  { %17409 = vmatmul.mubr.f32.gmra.mxu0 %v23884_v36 }
 0xc48   :  { %v17293_v56 = vpop.f32.mrf.mxu1 }
 0xc4a   :  { %v11498_v53 = vpop.f32.mrf.mxu1 }
 0xc4c   :  { %v17296_v12 = vpop.f32.mrf.mxu1 }
 0xc4e   :  { %v11510_v22 = vpop.f32.mrf.mxu1 }
 0xc50   :  { %v17255_v21 = vpop.f32.mrf.mxu0 }
 0xc51   :  { %v11328_v45 = vadd.f32 %v17255_v21, %v12228_v58 }
 0xc52   :  { %v11317_v24 = vpop.f32.mrf.mxu0 }
 0xc53   :  { %v11318_v32 = vadd.f32 %v12228_v58, %v11317_v24  ;;  %v11505_v46 = vadd.f32 %v17293_v56, %v11328_v45 }
 0xc55   :  { %v17258_v25 = vpop.f32.mrf.mxu0  ;;  %v11499_v29 = vadd.f32 %v11498_v53, %v11318_v32 }
 0xc56   :  { %v11348_v1 = vadd.f32 %v17258_v25, %v12228_v58 }
 0xc57   :  { %v11337_v60 = vpop.f32.mrf.mxu0 }
 0xc58   :  { %v11338_v13 = vadd.f32 %v12228_v58, %v11337_v60  ;;  %v11517_v16 = vadd.f32 %v17296_v12, %v11348_v1 }
 0xc5a   :  { %v11511_v2 = vadd.f32 %v11510_v22, %v11338_v13 }
 0xc6a   :  { %v17369_v54 = vpop.f32.mrf.mxu1 }
 0xc6c   :  { %v11730_v48 = vpop.f32.mrf.mxu1 }
 0xc6f   :  { %v17372_v57 = vpop.f32.mrf.mxu1 }
 0xc71   :  { %v11746_v28 = vpop.f32.mrf.mxu1 }
 0xc73   :  { %v17331_v6 = vpop.f32.mrf.mxu0 }
 0xc74   :  { %v11628_v34 = vadd.f32 %v17331_v6, %v11505_v46 }
 0xc75   :  { %v11620_v62 = vpop.f32.mrf.mxu0 }
 0xc76   :  { %v11621_v44 = vadd.f32 %v11620_v62, %v11499_v29  ;;  %v11739_v36 = vadd.f32 %v17369_v54, %v11628_v34 }
 0xc78   :  { %v17334_v35 = vpop.f32.mrf.mxu0  ;;  %v11731_v39 = vadd.f32 %v11730_v48, %v11621_v44 }
 0xc79   :  { %v11642_v26 = vadd.f32 %v17334_v35, %v11517_v16 }
 0xc7a   :  { %v11634_v51 = vpop.f32.mrf.mxu0 }
 0xc7b   :  { %v11635_v19 = vadd.f32 %v11634_v51, %v11511_v2  ;;  %v11755_v52 = vadd.f32 %v17372_v57, %v11642_v26 }
 0xc7d   :  { %v11747_v49 = vadd.f32 %v11746_v28, %v11635_v19 }
 0xc8e   :  { %v17445_v37 = vpop.f32.mrf.mxu1 }
 0xc90   :  { %v11978_v9 = vpop.f32.mrf.mxu1 }
 0xc92   :  { %v17448_v4 = vpop.f32.mrf.mxu1 }
 0xc94   :  { %v11990_v14 = vpop.f32.mrf.mxu1 }
 0xc95   :  { %v17407_v17 = vpop.f32.mrf.mxu0 }
 0xc96   :  { %v11880_v43 = vadd.f32 %v17407_v17, %v11739_v36 }
 0xc97   :  { %v11873_v61 = vpop.f32.mrf.mxu0 }
 0xc98   :  { %v11985_v3 = vadd.f32 %v17445_v37, %v11880_v43  ;;  %v11874_v30 = vadd.f32 %v11873_v61, %v11731_v39 }
 0xc99   :  { %v17410_v59 = vpop.f32.mrf.mxu0 }
 0xc9a   :  { %v12001_v15 = vmax.f32 %v11985_v3, 0.0  ;;  %v11979_v23 = vadd.f32 %v11978_v9, %v11874_v30  ;;  %v11892_v27 = vadd.f32 %v17410_v59, %v11755_v52 }
 0xc9b   :  { %v11885_v55 = vpop.f32.mrf.mxu0 }
 0xc9c   :  { %12005 = vst [vmem:[%s24072_s5 + $0x8] sm:$0xff] %v12001_v15  ;;  %v12000_v38 = vmax.f32 %v11979_v23, 0.0  ;;  %v11997_v42 = vadd.f32 %v17448_v4, %v11892_v27  ;;  %v11886_v47 = vadd.f32 %v11885_v55, %v11747_v49 }
 0xc9e   :  { %12004 = vst [vmem:[%s24072_s5] sm:$0xff] %v12000_v38  ;;  %v12003_v63 = vmax.f32 %v11997_v42, 0.0  ;;  %v11991_v8 = vadd.f32 %v11990_v14, %v11886_v47 }
 0xca0   :  { %12007 = vst [vmem:[%s24072_s5 + $0x18] sm:$0xff] %v12003_v63  ;;  %v12002_v18 = vmax.f32 %v11991_v8, 0.0 }
 0xca2   :  { %12006 = vst [vmem:[%s24072_s5 + $0x10] sm:$0xff] %v12002_v18 }

</bundles_post_ra>
